<compile_context>
chip_gen: v7x
topology: tpu7x:2x2x1
jax: 0.10.0
libtpu: 0.0.40
codegen_flags: <defaults>
</compile_context>

<pallas_src>
import numpy as np
import jax
import jax.numpy as jnp
from jax.experimental import pallas as pl
from jax.experimental.pallas import tpu as pltpu


# ----------------------------------------------------------------------------
# in-kernel structural constants (iota/compare only -- no int division needed)
# ----------------------------------------------------------------------------
def _iota2(shape, dim):
    return jax.lax.broadcasted_iota(jnp.int32, shape, dim)


def _blk_idx(v, group, nblk):
    """Block index i // group for 0 <= i < nblk*group, via nblk-1 comparisons."""
    idx = jnp.zeros(v.shape, jnp.int32)
    for t in range(1, nblk):
        idx = idx + (v >= t * group).astype(jnp.int32)
    return idx


def _seg_mat(rows, group, scale):
    """(rows, rows): `scale` where row and col fall in the same group-block."""
    nblk = rows // group
    r = _blk_idx(_iota2((rows, rows), 0), group, nblk)
    c = _blk_idx(_iota2((rows, rows), 1), group, nblk)
    return jnp.where(r == c, jnp.float32(scale), jnp.float32(0.0))


def _node_mean_mat(node_n, s2):
    """(node_n*s2, node_n): per-node sequence-mean (AdaptiveAvgPool1d(1))."""
    rows = node_n * s2
    r = _blk_idx(_iota2((rows, node_n), 0), s2, node_n)
    c = _iota2((rows, node_n), 1)
    return jnp.where(r == c, jnp.float32(1.0 / s2), jnp.float32(0.0))


def _avgpool2_mat(cols_in):
    """(cols_in, cols_in//2): average-pool(2) along the lane-dense (node,seq) axis."""
    cols_out = cols_in // 2
    r = _iota2((cols_in, cols_out), 0)
    c = _iota2((cols_in, cols_out), 1)
    keep = (r >= 2 * c) & (r <= 2 * c + 1)
    return jnp.where(keep, jnp.float32(0.5), jnp.float32(0.0))


# ----------------------------------------------------------------------------
# fused per-grid-step math (operates on the batched, row-stacked layout)
# ----------------------------------------------------------------------------
def _gcn_apply(h, wright, wft_blk, bias):
    """out = kron(I_B, Wft) @ (H @ kron(Ws, Wt)) + bias_tiled."""
    t = jnp.dot(h, wright, preferred_element_type=jnp.float32)
    return jnp.dot(wft_blk, t, preferred_element_type=jnp.float32) + bias


def _ln_tanh(y, gamma, beta, b_tile):
    """Per-sample LayerNorm over the whole slab (one-pass stats), affine, tanh."""
    rows, cols = y.shape
    group = rows // b_tile
    seg = _seg_mat(rows, group, 1.0 / (group * cols))
    rs = jnp.sum(y, axis=-1, keepdims=True)
    rs2 = jnp.sum(y * y, axis=-1, keepdims=True)
    mean = jnp.dot(seg, rs, preferred_element_type=jnp.float32)
    mean_sq = jnp.dot(seg, rs2, preferred_element_type=jnp.float32)
    var = jnp.maximum(mean_sq - mean * mean, 0.0)
    return jnp.tanh((y - mean) * jax.lax.rsqrt(var + 1e-5) * gamma + beta)


def _fused_forward(h0, last, w, plan, meta):
    b_tile = meta["b_tile"]
    node_n = meta["node_n"]
    fin = meta["in_features"]
    lf = meta["lf"]

    pos = [0]

    def take(k):
        r = w[pos[0]:pos[0] + k]
        pos[0] += k
        return r

    # ---- input_blocks (fully unrolled) -------------------------------------
    h = h0
    for kind in plan:
        if kind == "gcn":
            wr, wf, b = take(3)
            h = _gcn_apply(h, wr[...], wf[...], b[...])
        elif kind == "res_id":                     # identity skip (C == D)
            wr, wf, b, lnwb = take(4)
            y = _gcn_apply(h, wr[...], wf[...], b[...])
            h = _ln_tanh(y, lnwb[0], lnwb[1], b_tile) + h   # dropout: eval identity
        elif kind == "res_proj":                   # 1x1-conv skip (C != D)
            wr, wf, b, lnwb, wsk, bsk = take(6)
            skip = jnp.dot(wsk[...], h, preferred_element_type=jnp.float32) + bsk[...]
            y = _gcn_apply(h, wr[...], wf[...], b[...])
            h = _ln_tanh(y, lnwb[0], lnwb[1], b_tile) + skip
        else:                                      # "down": avg-pool(2) over seq
            h = jnp.dot(h, _avgpool2_mat(h.shape[-1]),
                        preferred_element_type=jnp.float32)

    s2 = h.shape[-1] // node_n

    # ---- prediction heads: Conv1d(k=3,p=1) on the last Lf steps ->
    #      LayerNorm -> Tanh -> Conv1d(k=1) -> Tanh -> + last observed frame ----
    def run_head(n_terms, hlast):
        sel, w1stk, b1, lnwb, w2blk, b2 = take(6)
        slab = jnp.dot(h, sel[...], preferred_element_type=jnp.float32)
        y = b1[...]
        for t in range(n_terms):
            y = y + jnp.dot(w1stk[t], slab[:, t * lf:(t + 1) * lf],
                            preferred_element_type=jnp.float32)
        y = _ln_tanh(y, lnwb[0], lnwb[1], b_tile)
        y = jnp.tanh(jnp.dot(w2blk[...], y, preferred_element_type=jnp.float32)
                     + b2[...])
        return y + hlast

    hand_last = last[:b_tile * 2 * fin, :]
    head_last = last[b_tile * 2 * fin:, :]
    pred_hand = run_head(meta["hand_terms"], hand_last)
    z = run_head(meta["head_terms"], head_last)

    # F.normalize(dim=1): per-sample per-step L2 over channels (rsqrt -> EUP)
    ssq = jnp.dot(_seg_mat(z.shape[0], fin, 1.0), z * z,
                  preferred_element_type=jnp.float32)
    pred_head = z * jax.lax.rsqrt(jnp.maximum(ssq, 1e-24))

    # ---- out head: AdaptiveAvgPool1d(1) then fused Conv1d(F*N -> Dout, 1) ----
    woutstk, bout = take(2)
    mean_n = jnp.dot(h, _node_mean_mat(node_n, s2),
                     preferred_element_type=jnp.float32)
    out = bout[...]
    for n in range(node_n):
        out = out + jnp.dot(woutstk[n], mean_n[:, n:n + 1],
                            preferred_element_type=jnp.float32)
    return out, pred_hand, pred_head


# ----------------------------------------------------------------------------
# host-side input / weight preparation (batch packing + block-diag folding)
# ----------------------------------------------------------------------------
def _prepare_inputs(x, conf, b_tile):
    batch, _, seq = x.shape
    fin, node_n = conf["in_features"], conf["node_n"]
    pad = (-batch) % b_tile
    if pad:
        x = jnp.concatenate([x, jnp.zeros((pad,) + x.shape[1:], x.dtype)], axis=0)
    bp = batch + pad
    bg = bp // b_tile
    xf = x.astype(jnp.float32)
    # (B, N*Fin, S) -> row-stacked groups (Bg, B_tile*Fin, N*S)
    h0 = (xf.reshape(bg, b_tile, node_n, fin, seq)
            .transpose(0, 1, 3, 2, 4)
            .reshape(bg, b_tile * fin, node_n * seq))
    # last observed frame, packed [hand block ; head block] along rows
    xl = xf[:, :, -1]
    hand_last = xl[:, :2 * fin].reshape(bg, b_tile * 2 * fin, 1)
    head_last = xl[:, 2 * fin:].reshape(bg, b_tile * fin, 1)
    last = jnp.concatenate([hand_last, head_last], axis=1)
    return h0, last, bg, pad


def _prepare_weights(params, conf, b_tile):
    fin, node_n = conf["in_features"], conf["node_n"]
    seq, lf = conf["seq_len"], conf["seq_len_future"]
    ident = jnp.eye(b_tile, dtype=jnp.float32)

    def blk(w):                                        # kron(I_Btile, W)
        return jnp.kron(ident, jnp.asarray(w, jnp.float32))

    def rows(v):                                       # row-tile over the batch tile
        v = jnp.asarray(v, jnp.float32)
        if v.ndim == 1:
            v = v[:, None]
        return jnp.tile(v, (b_tile, 1))

    weights, plan = [], []
    res = seq
    feat = fin
    for p in params["input_blocks"]:
        kind = p["kind"]
        if kind == "down":
            plan.append("down")
            res //= 2
            continue
        wright = jnp.kron(jnp.asarray(p["ws"], jnp.float32),
                          jnp.asarray(p["wt"], jnp.float32))
        wfb, b = blk(p["wft"]), rows(p["bias"])
        feat = p["wft"].shape[0]
        if kind == "gcn":
            weights += [wright, wfb, b]
            plan.append("gcn")
        else:
            lnwb = jnp.stack([rows(p["gamma"].reshape(feat, -1)),
                              rows(p["beta"].reshape(feat, -1))])
            if "wskip" in p:
                weights += [wright, wfb, b, lnwb, blk(p["wskip"]), rows(p["bskip"])]
                plan.append("res_proj")
            else:
                weights += [wright, wfb, b, lnwb]
                plan.append("res_id")
    s2 = res

    def head_fused(p, node_parts):
        nparts = len(node_parts)
        sel_cols, w1_blocks = [], []
        for j, node in enumerate(node_parts):
            for k in range(3):
                sel = np.zeros((node_n * s2, lf), np.float32)
                for l in range(lf):
                    m = l + k - 1                      # conv pads the Lf-long slice
                    if 0 <= m < lf:
                        sel[node * s2 + (s2 - lf + m), l] = 1.0
                sel_cols.append(sel)
                # interleaved channels c_in = f*nparts + j absorbed here
                w1_blocks.append(blk(p["w1"][:, j::nparts, k]))
        sel_all = jnp.asarray(np.concatenate(sel_cols, axis=1))
        ws = [sel_all, jnp.stack(w1_blocks), rows(p["b1"]),
              jnp.stack([rows(p["gamma"]), rows(p["beta"])]),
              blk(p["w2"]), rows(p["b2"])]
        return ws, 3 * nparts

    hand_w, hand_terms = head_fused(params["hand"], (0, 1))
    head_w, head_terms = head_fused(params["head"], (2,))
    weights += hand_w
    weights += head_w

    dout = params["out"]["bout"].shape[0]
    wout3 = jnp.asarray(params["out"]["wout"], jnp.float32).reshape(dout, feat, node_n)
    weights += [jnp.stack([blk(wout3[:, :, n]) for n in range(node_n)]),
                rows(params["out"]["bout"])]

    meta = dict(b_tile=b_tile, node_n=node_n, in_features=fin, lf=lf,
                hand_terms=hand_terms, head_terms=head_terms)
    return weights, tuple(plan), meta


# ----------------------------------------------------------------------------
# single fused pallas_call
# ----------------------------------------------------------------------------
def gcn_encoder_forward(x, params, conf, *, b_tile=4, core_parallel=False):
    batch = x.shape[0]
    fin, node_n, lf = conf["in_features"], conf["node_n"], conf["seq_len_future"]
    assert node_n == 3, "only the node_n == 3 branch is implemented"

    h0, last, b_groups, _ = _prepare_inputs(x, conf, b_tile)
    weights, plan, meta = _prepare_weights(params, conf, b_tile)
    n_w = len(weights)
    consumed = {"gcn": 3, "res_id": 4, "res_proj": 6, "down": 0}
    assert sum(consumed[k] for k in plan) + 6 + 6 + 2 == n_w

    dout = params["out"]["bout"].shape[0]
    r_out = b_tile * dout
    r_hand = b_tile * 2 * fin
    r_head = b_tile * fin
    rows_total = r_out + r_hand + r_head

    def kernel(*refs):
        h0_ref, last_ref = refs[0], refs[1]
        wrefs = refs[2:2 + n_w]
        o_ref = refs[2 + n_w]
        out, pred_hand, pred_head = _fused_forward(h0_ref[...], last_ref[...],
                                                   wrefs, plan, meta)
        # merged, lane-dense output slab (single writeback stream)
        o_ref[0:r_out, :] = jnp.broadcast_to(out, (r_out, lf))
        o_ref[r_out:r_out + r_hand, :] = pred_hand
        o_ref[r_out + r_hand:, :] = pred_head

    def batched_spec(arr):
        return pl.BlockSpec((None,) + arr.shape[1:], lambda g: (g, 0, 0))

    def rep_spec(arr):
        nd = arr.ndim
        return pl.BlockSpec(arr.shape, lambda g, _n=nd: (0,) * _n)

    sem = (pltpu.CORE_PARALLEL,) if core_parallel else ("parallel",)
    slab = pl.pallas_call(
        kernel,
        out_shape=jax.ShapeDtypeStruct((b_groups, rows_total, lf), jnp.float32),
        grid=(b_groups,),
        in_specs=[batched_spec(h0), batched_spec(last)]
                 + [rep_spec(w) for w in weights],
        out_specs=pl.BlockSpec((None, rows_total, lf), lambda g: (g, 0, 0)),
        compiler_params=pltpu.CompilerParams(dimension_semantics=sem),
    )(h0, last, *weights)

    # host-side split of the merged slab
    bp = b_groups * b_tile
    out = slab[:, :r_out, 0].reshape(bp, dout)
    pred_hand = slab[:, r_out:r_out + r_hand, :].reshape(bp, 2 * fin, lf)
    pred_head = slab[:, r_out + r_hand:, :].reshape(bp, fin, lf)
    return out[:batch], pred_hand[:batch], pred_head[:batch]


# ----------------------------------------------------------------------------
# independent pure-JAX reference (unfused math -> validates fusion + kernel)
# ----------------------------------------------------------------------------
def gcn_encoder_reference(x, params, conf):
    batch, _, seq = x.shape
    fin, node_n, lf = conf["in_features"], conf["node_n"], conf["seq_len_future"]
    xf = x.astype(jnp.float32)
    hand_last = xf[:, :2 * fin, -1:]
    head_last = xf[:, 2 * fin:, -1:]
    h = xf.reshape(batch, node_n, fin, seq).transpose(0, 2, 1, 3)   # (B, Fin, N, S)

    def gcn(h, p):
        y = jnp.einsum("bcns,st->bcnt", h, p["wt"])
        y = jnp.einsum("bcnt,nm->bcmt", y, p["ws"])
        y = jnp.einsum("dc,bcmt->bdmt", p["wft"], y)
        return y + p["bias"][None, :, None, None]

    for p in params["input_blocks"]:
        if p["kind"] == "gcn":
            h = gcn(h, p)
        elif p["kind"] == "res":
            y = gcn(h, p)
            mean = jnp.mean(y, axis=(1, 2, 3), keepdims=True)
            var = jnp.mean((y - mean) ** 2, axis=(1, 2, 3), keepdims=True)
            y = jnp.tanh((y - mean) / jnp.sqrt(var + 1e-5) * p["gamma"][None]
                         + p["beta"][None])
            if "wskip" in p:
                skip = (jnp.einsum("dc,bcns->bdns", p["wskip"], h)
                        + p["bskip"][None, :, None, None])
            else:
                skip = h
            h = y + skip
        else:                                      # downsample: avg-pool(2) over seq
            b_, c_, n_, s_ = h.shape
            h = h.reshape(b_, c_, n_, s_ // 2, 2).mean(-1)

    b_, feat, _, s2 = h.shape

    def head(x_in, p):
        xpad = jnp.pad(x_in, ((0, 0), (0, 0), (1, 1)))
        xs = jnp.stack([xpad[:, :, k:k + lf] for k in range(3)], axis=-1)
        y = jnp.einsum("oik,bilk->bol", p["w1"], xs) + p["b1"][None, :, None]
        mean = jnp.mean(y, axis=(1, 2), keepdims=True)
        var = jnp.mean((y - mean) ** 2, axis=(1, 2), keepdims=True)
        y = jnp.tanh((y - mean) / jnp.sqrt(var + 1e-5) * p["gamma"][None]
                     + p["beta"][None])
        y = jnp.einsum("oi,bil->bol", p["w2"], y) + p["b2"][None, :, None]
        return jnp.tanh(y)

    hand_feat = h[:, :, :2, -lf:].reshape(b_, feat * 2, lf)
    head_feat = h[:, :, 2:, -lf:].reshape(b_, feat, lf)
    pred_hand = head(hand_feat, params["hand"]) + hand_last
    pred_head = head(head_feat, params["head"]) + head_last
    nrm = jnp.maximum(jnp.sqrt(jnp.sum(pred_head ** 2, axis=1, keepdims=True)), 1e-12)
    pred_head = pred_head / nrm

    pooled = h.reshape(b_, feat * node_n, s2).mean(-1)
    out = pooled @ params["out"]["wout"].T + params["out"]["bout"][None]
    return out, pred_hand, pred_head


# ----------------------------------------------------------------------------
# deterministic synthetic parameters (original, unfused forms)
# ----------------------------------------------------------------------------
def _uniform(key, shape, scale):
    return jax.random.uniform(key, shape, jnp.float32, minval=-scale, maxval=scale)


def init_gcn_block(key, c_in, c_out, node_n, seq_len):
    k1, k2, k3, k4 = jax.random.split(key, 4)
    s = 1.0 / np.sqrt(c_out)
    return dict(kind="gcn",
                wt=_uniform(k1, (seq_len, seq_len), s),
                ws=_uniform(k2, (node_n, node_n), s),
                wft=_uniform(k3, (c_out, c_in), s),
                bias=_uniform(k4, (c_out,), s))


def init_res_block(key, c_in, c_out, node_n, seq_len):
    kg, k1, k2 = jax.random.split(key, 3)
    p = init_gcn_block(kg, c_in, c_out, node_n, seq_len)
    p["kind"] = "res"
    p["gamma"] = jnp.ones((c_out, node_n, seq_len), jnp.float32)
    p["beta"] = jnp.zeros((c_out, node_n, seq_len), jnp.float32)
    if c_in != c_out:
        s = 1.0 / np.sqrt(c_in)
        p["wskip"] = _uniform(k1, (c_out, c_in), s)
        p["bskip"] = _uniform(k2, (c_out,), s)
    return p


def init_pred_head(key, c1, c2, lf):
    k1, k2, k3, k4 = jax.random.split(key, 4)
    s1 = 1.0 / np.sqrt(c1 * 3)
    s2 = 1.0 / np.sqrt(c1)
    return dict(w1=_uniform(k1, (c1, c1, 3), s1), b1=_uniform(k2, (c1,), s1),
                gamma=jnp.ones((c1, lf), jnp.float32),
                beta=jnp.zeros((c1, lf), jnp.float32),
                w2=_uniform(k3, (c2, c1), s2), b2=_uniform(k4, (c2,), s2))


def init_model(key, conf):
    keys = iter(jax.random.split(key, 64))
    node_n, fin, seq = conf["node_n"], conf["in_features"], conf["seq_len"]
    ch = int(conf["channel_mult"][0] * conf["model_channels"])
    blocks = [init_gcn_block(next(keys), fin, ch, node_n, seq)]
    resolution = seq
    for level, mult in enumerate(conf["channel_mult"]):
        for _ in range(conf["num_res_blocks"]):
            out_ch = int(mult * conf["model_channels"])
            blocks.append(init_res_block(next(keys), ch, out_ch, node_n, resolution))
            ch = out_ch
        if level != len(conf["channel_mult"]) - 1:
            resolution //= 2
            blocks.append(dict(kind="down"))
    lf = conf["seq_len_future"]
    hand = init_pred_head(next(keys), ch * 2, 2 * fin, lf)
    head = init_pred_head(next(keys), ch, fin, lf)
    k1, k2 = jax.random.split(next(keys))
    dout = conf["out_channels"]
    s = 1.0 / np.sqrt(ch * node_n)
    out = dict(wout=_uniform(k1, (dout, ch * node_n), s),
               bout=_uniform(k2, (dout,), s))
    return dict(input_blocks=blocks, hand=hand, head=head, out=out)


# ----------------------------------------------------------------------------
if __name__ == "__main__":
    conf = dict(in_features=3, node_n=3, seq_len=16, seq_len_future=3,
                num_res_blocks=1, model_channels=8, out_channels=8,
                channel_mult=(1, 2))
    key = jax.random.PRNGKey(0)
    pkey, xkey = jax.random.split(key)
    params = init_model(pkey, conf)

    B = 8                              # B_tile=4 -> grid=(2,): even, >=2 for v7x TCs
    x = jax.random.normal(
        xkey, (B, conf["node_n"] * conf["in_features"], conf["seq_len"]), jnp.float32)

    # Prefer CORE_PARALLEL (splits grid steps across v7x's two TensorCores); fall
    # back to plain "parallel" if unsupported on the current chip / jax version.
    outs, last_err = None, None
    for core_parallel in (True, False):
        try:
            fwd = jax.jit(lambda xx, cp=core_parallel: gcn_encoder_forward(
                xx, params, conf, b_tile=4, core_parallel=cp))
            outs = fwd(x)
            jax.block_until_ready(outs)
            break
        except Exception as e:          # noqa: BLE001 - fall back once, then re-raise
            last_err = e
            outs = None
    if outs is None:
        raise last_err
    out, pred_hand, pred_head = outs

    assert out.shape == (B, conf["out_channels"])
    assert pred_hand.shape == (B, 2 * conf["in_features"], conf["seq_len_future"])
    assert pred_head.shape == (B, conf["in_features"], conf["seq_len_future"])

    # independent (unfused) pure-JAX reference; tight tolerance -- only MXU vs
    # XLA f32 matmul rounding and one-pass-LN rounding remain.
    ref_out, ref_hand, ref_head = jax.jit(
        lambda xx: gcn_encoder_reference(xx, params, conf))(x)
    np.testing.assert_allclose(np.asarray(out), np.asarray(ref_out),
                               rtol=2e-3, atol=2e-3)
    np.testing.assert_allclose(np.asarray(pred_hand), np.asarray(ref_hand),
                               rtol=2e-3, atol=2e-3)
    np.testing.assert_allclose(np.asarray(pred_head), np.asarray(ref_head),
                               rtol=2e-3, atol=2e-3)

    print("KERNEL_OK")
</pallas_src>

<mosaic_0001>
module attributes {stable_mosaic.version = 11 : i64} {
  func.func @kernel(%arg0: i32, %arg1: memref<1x12x48xf32, #tpu.memory_space<vmem>>, %arg2: memref<1x36x1xf32, #tpu.memory_space<vmem>>, %arg3: memref<48x48xf32, #tpu.memory_space<vmem>>, %arg4: memref<32x12xf32, #tpu.memory_space<vmem>>, %arg5: memref<32x1xf32, #tpu.memory_space<vmem>>, %arg6: memref<48x48xf32, #tpu.memory_space<vmem>>, %arg7: memref<32x32xf32, #tpu.memory_space<vmem>>, %arg8: memref<32x1xf32, #tpu.memory_space<vmem>>, %arg9: memref<2x32x48xf32, #tpu.memory_space<vmem>>, %arg10: memref<24x24xf32, #tpu.memory_space<vmem>>, %arg11: memref<64x32xf32, #tpu.memory_space<vmem>>, %arg12: memref<64x1xf32, #tpu.memory_space<vmem>>, %arg13: memref<2x64x24xf32, #tpu.memory_space<vmem>>, %arg14: memref<64x32xf32, #tpu.memory_space<vmem>>, %arg15: memref<64x1xf32, #tpu.memory_space<vmem>>, %arg16: memref<24x18xf32, #tpu.memory_space<vmem>>, %arg17: memref<6x128x64xf32, #tpu.memory_space<vmem>>, %arg18: memref<128x1xf32, #tpu.memory_space<vmem>>, %arg19: memref<2x128x3xf32, #tpu.memory_space<vmem>>, %arg20: memref<24x128xf32, #tpu.memory_space<vmem>>, %arg21: memref<24x1xf32, #tpu.memory_space<vmem>>, %arg22: memref<24x9xf32, #tpu.memory_space<vmem>>, %arg23: memref<3x64x64xf32, #tpu.memory_space<vmem>>, %arg24: memref<64x1xf32, #tpu.memory_space<vmem>>, %arg25: memref<2x64x3xf32, #tpu.memory_space<vmem>>, %arg26: memref<12x64xf32, #tpu.memory_space<vmem>>, %arg27: memref<12x1xf32, #tpu.memory_space<vmem>>, %arg28: memref<3x32x64xf32, #tpu.memory_space<vmem>>, %arg29: memref<32x1xf32, #tpu.memory_space<vmem>>, %arg30: memref<1x68x3xf32, #tpu.memory_space<vmem>>) attributes {dimension_semantics = [#tpu.dimension_semantics<core_parallel>], iteration_bounds = array<i64: 2>, scalar_prefetch = 0 : i64, scratch_operands = 0 : i64, tpu.core_type = #tpu.core_type<tc>, window_params = [{transform_indices = @transform_0, window_bounds = array<i64: 1, 12, 48>}, {transform_indices = @transform_1, window_bounds = array<i64: 1, 36, 1>}, {pipeline_mode = #tpu.pipeline_mode<synchronous>, transform_indices = @transform_2, window_bounds = array<i64: 48, 48>}, {pipeline_mode = #tpu.pipeline_mode<synchronous>, transform_indices = @transform_3, window_bounds = array<i64: 32, 12>}, {pipeline_mode = #tpu.pipeline_mode<synchronous>, transform_indices = @transform_4, window_bounds = array<i64: 32, 1>}, {pipeline_mode = #tpu.pipeline_mode<synchronous>, transform_indices = @transform_5, window_bounds = array<i64: 48, 48>}, {pipeline_mode = #tpu.pipeline_mode<synchronous>, transform_indices = @transform_6, window_bounds = array<i64: 32, 32>}, {pipeline_mode = #tpu.pipeline_mode<synchronous>, transform_indices = @transform_7, window_bounds = array<i64: 32, 1>}, {pipeline_mode = #tpu.pipeline_mode<synchronous>, transform_indices = @transform_8, window_bounds = array<i64: 2, 32, 48>}, {pipeline_mode = #tpu.pipeline_mode<synchronous>, transform_indices = @transform_9, window_bounds = array<i64: 24, 24>}, {pipeline_mode = #tpu.pipeline_mode<synchronous>, transform_indices = @transform_10, window_bounds = array<i64: 64, 32>}, {pipeline_mode = #tpu.pipeline_mode<synchronous>, transform_indices = @transform_11, window_bounds = array<i64: 64, 1>}, {pipeline_mode = #tpu.pipeline_mode<synchronous>, transform_indices = @transform_12, window_bounds = array<i64: 2, 64, 24>}, {pipeline_mode = #tpu.pipeline_mode<synchronous>, transform_indices = @transform_13, window_bounds = array<i64: 64, 32>}, {pipeline_mode = #tpu.pipeline_mode<synchronous>, transform_indices = @transform_14, window_bounds = array<i64: 64, 1>}, {pipeline_mode = #tpu.pipeline_mode<synchronous>, transform_indices = @transform_15, window_bounds = array<i64: 24, 18>}, {pipeline_mode = #tpu.pipeline_mode<synchronous>, transform_indices = @transform_16, window_bounds = array<i64: 6, 128, 64>}, {pipeline_mode = #tpu.pipeline_mode<synchronous>, transform_indices = @transform_17, window_bounds = array<i64: 128, 1>}, {pipeline_mode = #tpu.pipeline_mode<synchronous>, transform_indices = @transform_18, window_bounds = array<i64: 2, 128, 3>}, {pipeline_mode = #tpu.pipeline_mode<synchronous>, transform_indices = @transform_19, window_bounds = array<i64: 24, 128>}, {pipeline_mode = #tpu.pipeline_mode<synchronous>, transform_indices = @transform_20, window_bounds = array<i64: 24, 1>}, {pipeline_mode = #tpu.pipeline_mode<synchronous>, transform_indices = @transform_21, window_bounds = array<i64: 24, 9>}, {pipeline_mode = #tpu.pipeline_mode<synchronous>, transform_indices = @transform_22, window_bounds = array<i64: 3, 64, 64>}, {pipeline_mode = #tpu.pipeline_mode<synchronous>, transform_indices = @transform_23, window_bounds = array<i64: 64, 1>}, {pipeline_mode = #tpu.pipeline_mode<synchronous>, transform_indices = @transform_24, window_bounds = array<i64: 2, 64, 3>}, {pipeline_mode = #tpu.pipeline_mode<synchronous>, transform_indices = @transform_25, window_bounds = array<i64: 12, 64>}, {pipeline_mode = #tpu.pipeline_mode<synchronous>, transform_indices = @transform_26, window_bounds = array<i64: 12, 1>}, {pipeline_mode = #tpu.pipeline_mode<synchronous>, transform_indices = @transform_27, window_bounds = array<i64: 3, 32, 64>}, {pipeline_mode = #tpu.pipeline_mode<synchronous>, transform_indices = @transform_28, window_bounds = array<i64: 32, 1>}, {transform_indices = @transform_29, window_bounds = array<i64: 1, 68, 3>}]} {
    %c0 = arith.constant 0 : index
    %c0_0 = arith.constant 0 : index
    %c0_1 = arith.constant 0 : index
    %0 = vector.load %arg1[%c0, %c0_0, %c0_1] : memref<1x12x48xf32, #tpu.memory_space<vmem>>, vector<1x12x48xf32>
    %1 = vector.shape_cast %0 : vector<1x12x48xf32> to vector<12x48xf32>
    %c0_2 = arith.constant 0 : index
    %c0_3 = arith.constant 0 : index
    %c0_4 = arith.constant 0 : index
    %2 = vector.load %arg2[%c0_2, %c0_3, %c0_4] : memref<1x36x1xf32, #tpu.memory_space<vmem>>, vector<1x36x1xf32>
    %3 = vector.shape_cast %2 : vector<1x36x1xf32> to vector<36x1xf32>
    %c0_5 = arith.constant 0 : index
    %c0_6 = arith.constant 0 : index
    %4 = vector.load %arg3[%c0_5, %c0_6] : memref<48x48xf32, #tpu.memory_space<vmem>>, vector<48x48xf32>
    %c0_7 = arith.constant 0 : index
    %c0_8 = arith.constant 0 : index
    %5 = vector.load %arg4[%c0_7, %c0_8] : memref<32x12xf32, #tpu.memory_space<vmem>>, vector<32x12xf32>
    %c0_9 = arith.constant 0 : index
    %c0_10 = arith.constant 0 : index
    %6 = vector.load %arg5[%c0_9, %c0_10] : memref<32x1xf32, #tpu.memory_space<vmem>>, vector<32x1xf32>
    %cst = arith.constant dense<0.000000e+00> : vector<12x48xf32>
    %7 = tpu.matmul %1, %4, %cst {dimension_numbers = #tpu.dot_dimension_numbers<[1], [0], [0], [1], [0, 0, 1, 1], [], []>} : vector<12x48xf32>, vector<48x48xf32>, vector<12x48xf32> -> vector<12x48xf32>
    %cst_11 = arith.constant dense<0.000000e+00> : vector<32x48xf32>
    %8 = tpu.matmul %5, %7, %cst_11 {dimension_numbers = #tpu.dot_dimension_numbers<[1], [0], [0], [1], [0, 0, 1, 1], [], []>} : vector<32x12xf32>, vector<12x48xf32>, vector<32x48xf32> -> vector<32x48xf32>
    %9 = vector.broadcast %6 : vector<32x1xf32> to vector<32x48xf32>
    %10 = arith.addf %8, %9 : vector<32x48xf32>
    %c0_12 = arith.constant 0 : index
    %c0_13 = arith.constant 0 : index
    %11 = vector.load %arg6[%c0_12, %c0_13] : memref<48x48xf32, #tpu.memory_space<vmem>>, vector<48x48xf32>
    %c0_14 = arith.constant 0 : index
    %c0_15 = arith.constant 0 : index
    %12 = vector.load %arg7[%c0_14, %c0_15] : memref<32x32xf32, #tpu.memory_space<vmem>>, vector<32x32xf32>
    %c0_16 = arith.constant 0 : index
    %c0_17 = arith.constant 0 : index
    %13 = vector.load %arg8[%c0_16, %c0_17] : memref<32x1xf32, #tpu.memory_space<vmem>>, vector<32x1xf32>
    %cst_18 = arith.constant dense<0.000000e+00> : vector<32x48xf32>
    %14 = tpu.matmul %10, %11, %cst_18 {dimension_numbers = #tpu.dot_dimension_numbers<[1], [0], [0], [1], [0, 0, 1, 1], [], []>} : vector<32x48xf32>, vector<48x48xf32>, vector<32x48xf32> -> vector<32x48xf32>
    %cst_19 = arith.constant dense<0.000000e+00> : vector<32x48xf32>
    %15 = tpu.matmul %12, %14, %cst_19 {dimension_numbers = #tpu.dot_dimension_numbers<[1], [0], [0], [1], [0, 0, 1, 1], [], []>} : vector<32x32xf32>, vector<32x48xf32>, vector<32x48xf32> -> vector<32x48xf32>
    %16 = vector.broadcast %13 : vector<32x1xf32> to vector<32x48xf32>
    %17 = arith.addf %15, %16 : vector<32x48xf32>
    %c0_20 = arith.constant 0 : index
    %c0_21 = arith.constant 0 : index
    %c0_22 = arith.constant 0 : index
    %18 = vector.load %arg9[%c0_20, %c0_21, %c0_22] : memref<2x32x48xf32, #tpu.memory_space<vmem>>, vector<1x32x48xf32>
    %19 = vector.shape_cast %18 : vector<1x32x48xf32> to vector<32x48xf32>
    %c1 = arith.constant 1 : index
    %c0_23 = arith.constant 0 : index
    %c0_24 = arith.constant 0 : index
    %20 = vector.load %arg9[%c1, %c0_23, %c0_24] : memref<2x32x48xf32, #tpu.memory_space<vmem>>, vector<1x32x48xf32>
    %21 = vector.shape_cast %20 : vector<1x32x48xf32> to vector<32x48xf32>
    %22 = tpu.iota {dimensions = array<i32: 0>} : vector<32x32xi32>
    %c0_i32 = arith.constant 0 : i32
    %23 = vector.broadcast %c0_i32 : i32 to vector<32x32xi32>
    %c8_i32 = arith.constant 8 : i32
    %24 = vector.broadcast %c8_i32 : i32 to vector<32x32xi32>
    %25 = arith.cmpi sge, %22, %24 : vector<32x32xi32>
    %26 = arith.extui %25 : vector<32x32xi1> to vector<32x32xi32>
    %27 = arith.addi %23, %26 : vector<32x32xi32>
    %c16_i32 = arith.constant 16 : i32
    %28 = vector.broadcast %c16_i32 : i32 to vector<32x32xi32>
    %29 = arith.cmpi sge, %22, %28 : vector<32x32xi32>
    %30 = arith.extui %29 : vector<32x32xi1> to vector<32x32xi32>
    %31 = arith.addi %27, %30 : vector<32x32xi32>
    %c24_i32 = arith.constant 24 : i32
    %32 = vector.broadcast %c24_i32 : i32 to vector<32x32xi32>
    %33 = arith.cmpi sge, %22, %32 : vector<32x32xi32>
    %34 = arith.extui %33 : vector<32x32xi1> to vector<32x32xi32>
    %35 = arith.addi %31, %34 : vector<32x32xi32>
    %36 = tpu.iota {dimensions = array<i32: 1>} : vector<32x32xi32>
    %c0_i32_25 = arith.constant 0 : i32
    %37 = vector.broadcast %c0_i32_25 : i32 to vector<32x32xi32>
    %c8_i32_26 = arith.constant 8 : i32
    %38 = vector.broadcast %c8_i32_26 : i32 to vector<32x32xi32>
    %39 = arith.cmpi sge, %36, %38 : vector<32x32xi32>
    %40 = arith.extui %39 : vector<32x32xi1> to vector<32x32xi32>
    %41 = arith.addi %37, %40 : vector<32x32xi32>
    %c16_i32_27 = arith.constant 16 : i32
    %42 = vector.broadcast %c16_i32_27 : i32 to vector<32x32xi32>
    %43 = arith.cmpi sge, %36, %42 : vector<32x32xi32>
    %44 = arith.extui %43 : vector<32x32xi1> to vector<32x32xi32>
    %45 = arith.addi %41, %44 : vector<32x32xi32>
    %c24_i32_28 = arith.constant 24 : i32
    %46 = vector.broadcast %c24_i32_28 : i32 to vector<32x32xi32>
    %47 = arith.cmpi sge, %36, %46 : vector<32x32xi32>
    %48 = arith.extui %47 : vector<32x32xi1> to vector<32x32xi32>
    %49 = arith.addi %45, %48 : vector<32x32xi32>
    %50 = arith.cmpi eq, %35, %49 : vector<32x32xi32>
    %cst_29 = arith.constant 0.00260416674 : f32
    %cst_30 = arith.constant 0.000000e+00 : f32
    %51 = vector.broadcast %cst_29 : f32 to vector<32x32xf32>
    %52 = vector.broadcast %cst_30 : f32 to vector<32x32xf32>
    %53 = arith.select %50, %51, %52 : vector<32x32xi1>, vector<32x32xf32>
    %cst_31 = arith.constant dense<0.000000e+00> : vector<32xf32>
    %54 = vector.multi_reduction <add>, %17, %cst_31 [1] : vector<32x48xf32> to vector<32xf32>
    %55 = vector.shape_cast %54 : vector<32xf32> to vector<32x1xf32>
    %56 = arith.mulf %17, %17 : vector<32x48xf32>
    %cst_32 = arith.constant dense<0.000000e+00> : vector<32xf32>
    %57 = vector.multi_reduction <add>, %56, %cst_32 [1] : vector<32x48xf32> to vector<32xf32>
    %58 = vector.shape_cast %57 : vector<32xf32> to vector<32x1xf32>
    %cst_33 = arith.constant dense<0.000000e+00> : vector<32x1xf32>
    %59 = tpu.matmul %53, %55, %cst_33 {dimension_numbers = #tpu.dot_dimension_numbers<[1], [0], [0], [1], [0, 0, 1, 1], [], []>} : vector<32x32xf32>, vector<32x1xf32>, vector<32x1xf32> -> vector<32x1xf32>
    %cst_34 = arith.constant dense<0.000000e+00> : vector<32x1xf32>
    %60 = tpu.matmul %53, %58, %cst_34 {dimension_numbers = #tpu.dot_dimension_numbers<[1], [0], [0], [1], [0, 0, 1, 1], [], []>} : vector<32x32xf32>, vector<32x1xf32>, vector<32x1xf32> -> vector<32x1xf32>
    %61 = arith.mulf %59, %59 : vector<32x1xf32>
    %62 = arith.subf %60, %61 : vector<32x1xf32>
    %cst_35 = arith.constant 0.000000e+00 : f32
    %63 = vector.broadcast %cst_35 : f32 to vector<32x1xf32>
    %64 = arith.maximumf %62, %63 : vector<32x1xf32>
    %65 = vector.broadcast %59 : vector<32x1xf32> to vector<32x48xf32>
    %66 = arith.subf %17, %65 : vector<32x48xf32>
    %cst_36 = arith.constant 9.99999974E-6 : f32
    %67 = vector.broadcast %cst_36 : f32 to vector<32x1xf32>
    %68 = arith.addf %64, %67 : vector<32x1xf32>
    %69 = math.rsqrt %68 : vector<32x1xf32>
    %70 = vector.broadcast %69 : vector<32x1xf32> to vector<32x48xf32>
    %71 = arith.mulf %66, %70 : vector<32x48xf32>
    %72 = arith.mulf %71, %19 : vector<32x48xf32>
    %73 = arith.addf %72, %21 : vector<32x48xf32>
    %74 = math.tanh %73 : vector<32x48xf32>
    %75 = arith.addf %74, %10 : vector<32x48xf32>
    %76 = tpu.iota {dimensions = array<i32: 0>} : vector<48x24xi32>
    %77 = tpu.iota {dimensions = array<i32: 1>} : vector<48x24xi32>
    %c2_i32 = arith.constant 2 : i32
    %78 = vector.broadcast %c2_i32 : i32 to vector<48x24xi32>
    %79 = arith.muli %78, %77 : vector<48x24xi32>
    %80 = arith.cmpi sge, %76, %79 : vector<48x24xi32>
    %c2_i32_37 = arith.constant 2 : i32
    %81 = vector.broadcast %c2_i32_37 : i32 to vector<48x24xi32>
    %82 = arith.muli %81, %77 : vector<48x24xi32>
    %c1_i32 = arith.constant 1 : i32
    %83 = vector.broadcast %c1_i32 : i32 to vector<48x24xi32>
    %84 = arith.addi %82, %83 : vector<48x24xi32>
    %85 = arith.cmpi sle, %76, %84 : vector<48x24xi32>
    %86 = arith.andi %80, %85 : vector<48x24xi1>
    %cst_38 = arith.constant 5.000000e-01 : f32
    %cst_39 = arith.constant 0.000000e+00 : f32
    %87 = vector.broadcast %cst_38 : f32 to vector<48x24xf32>
    %88 = vector.broadcast %cst_39 : f32 to vector<48x24xf32>
    %89 = arith.select %86, %87, %88 : vector<48x24xi1>, vector<48x24xf32>
    %cst_40 = arith.constant dense<0.000000e+00> : vector<32x24xf32>
    %90 = tpu.matmul %75, %89, %cst_40 {dimension_numbers = #tpu.dot_dimension_numbers<[1], [0], [0], [1], [0, 0, 1, 1], [], []>} : vector<32x48xf32>, vector<48x24xf32>, vector<32x24xf32> -> vector<32x24xf32>
    %c0_41 = arith.constant 0 : index
    %c0_42 = arith.constant 0 : index
    %91 = vector.load %arg14[%c0_41, %c0_42] : memref<64x32xf32, #tpu.memory_space<vmem>>, vector<64x32xf32>
    %cst_43 = arith.constant dense<0.000000e+00> : vector<64x24xf32>
    %92 = tpu.matmul %91, %90, %cst_43 {dimension_numbers = #tpu.dot_dimension_numbers<[1], [0], [0], [1], [0, 0, 1, 1], [], []>} : vector<64x32xf32>, vector<32x24xf32>, vector<64x24xf32> -> vector<64x24xf32>
    %c0_44 = arith.constant 0 : index
    %c0_45 = arith.constant 0 : index
    %93 = vector.load %arg15[%c0_44, %c0_45] : memref<64x1xf32, #tpu.memory_space<vmem>>, vector<64x1xf32>
    %94 = vector.broadcast %93 : vector<64x1xf32> to vector<64x24xf32>
    %95 = arith.addf %92, %94 : vector<64x24xf32>
    %c0_46 = arith.constant 0 : index
    %c0_47 = arith.constant 0 : index
    %96 = vector.load %arg10[%c0_46, %c0_47] : memref<24x24xf32, #tpu.memory_space<vmem>>, vector<24x24xf32>
    %c0_48 = arith.constant 0 : index
    %c0_49 = arith.constant 0 : index
    %97 = vector.load %arg11[%c0_48, %c0_49] : memref<64x32xf32, #tpu.memory_space<vmem>>, vector<64x32xf32>
    %c0_50 = arith.constant 0 : index
    %c0_51 = arith.constant 0 : index
    %98 = vector.load %arg12[%c0_50, %c0_51] : memref<64x1xf32, #tpu.memory_space<vmem>>, vector<64x1xf32>
    %cst_52 = arith.constant dense<0.000000e+00> : vector<32x24xf32>
    %99 = tpu.matmul %90, %96, %cst_52 {dimension_numbers = #tpu.dot_dimension_numbers<[1], [0], [0], [1], [0, 0, 1, 1], [], []>} : vector<32x24xf32>, vector<24x24xf32>, vector<32x24xf32> -> vector<32x24xf32>
    %cst_53 = arith.constant dense<0.000000e+00> : vector<64x24xf32>
    %100 = tpu.matmul %97, %99, %cst_53 {dimension_numbers = #tpu.dot_dimension_numbers<[1], [0], [0], [1], [0, 0, 1, 1], [], []>} : vector<64x32xf32>, vector<32x24xf32>, vector<64x24xf32> -> vector<64x24xf32>
    %101 = vector.broadcast %98 : vector<64x1xf32> to vector<64x24xf32>
    %102 = arith.addf %100, %101 : vector<64x24xf32>
    %c0_54 = arith.constant 0 : index
    %c0_55 = arith.constant 0 : index
    %c0_56 = arith.constant 0 : index
    %103 = vector.load %arg13[%c0_54, %c0_55, %c0_56] : memref<2x64x24xf32, #tpu.memory_space<vmem>>, vector<1x64x24xf32>
    %104 = vector.shape_cast %103 : vector<1x64x24xf32> to vector<64x24xf32>
    %c1_57 = arith.constant 1 : index
    %c0_58 = arith.constant 0 : index
    %c0_59 = arith.constant 0 : index
    %105 = vector.load %arg13[%c1_57, %c0_58, %c0_59] : memref<2x64x24xf32, #tpu.memory_space<vmem>>, vector<1x64x24xf32>
    %106 = vector.shape_cast %105 : vector<1x64x24xf32> to vector<64x24xf32>
    %107 = tpu.iota {dimensions = array<i32: 0>} : vector<64x64xi32>
    %c0_i32_60 = arith.constant 0 : i32
    %108 = vector.broadcast %c0_i32_60 : i32 to vector<64x64xi32>
    %c16_i32_61 = arith.constant 16 : i32
    %109 = vector.broadcast %c16_i32_61 : i32 to vector<64x64xi32>
    %110 = arith.cmpi sge, %107, %109 : vector<64x64xi32>
    %111 = arith.extui %110 : vector<64x64xi1> to vector<64x64xi32>
    %112 = arith.addi %108, %111 : vector<64x64xi32>
    %c32_i32 = arith.constant 32 : i32
    %113 = vector.broadcast %c32_i32 : i32 to vector<64x64xi32>
    %114 = arith.cmpi sge, %107, %113 : vector<64x64xi32>
    %115 = arith.extui %114 : vector<64x64xi1> to vector<64x64xi32>
    %116 = arith.addi %112, %115 : vector<64x64xi32>
    %c48_i32 = arith.constant 48 : i32
    %117 = vector.broadcast %c48_i32 : i32 to vector<64x64xi32>
    %118 = arith.cmpi sge, %107, %117 : vector<64x64xi32>
    %119 = arith.extui %118 : vector<64x64xi1> to vector<64x64xi32>
    %120 = arith.addi %116, %119 : vector<64x64xi32>
    %121 = tpu.iota {dimensions = array<i32: 1>} : vector<64x64xi32>
    %c0_i32_62 = arith.constant 0 : i32
    %122 = vector.broadcast %c0_i32_62 : i32 to vector<64x64xi32>
    %c16_i32_63 = arith.constant 16 : i32
    %123 = vector.broadcast %c16_i32_63 : i32 to vector<64x64xi32>
    %124 = arith.cmpi sge, %121, %123 : vector<64x64xi32>
    %125 = arith.extui %124 : vector<64x64xi1> to vector<64x64xi32>
    %126 = arith.addi %122, %125 : vector<64x64xi32>
    %c32_i32_64 = arith.constant 32 : i32
    %127 = vector.broadcast %c32_i32_64 : i32 to vector<64x64xi32>
    %128 = arith.cmpi sge, %121, %127 : vector<64x64xi32>
    %129 = arith.extui %128 : vector<64x64xi1> to vector<64x64xi32>
    %130 = arith.addi %126, %129 : vector<64x64xi32>
    %c48_i32_65 = arith.constant 48 : i32
    %131 = vector.broadcast %c48_i32_65 : i32 to vector<64x64xi32>
    %132 = arith.cmpi sge, %121, %131 : vector<64x64xi32>
    %133 = arith.extui %132 : vector<64x64xi1> to vector<64x64xi32>
    %134 = arith.addi %130, %133 : vector<64x64xi32>
    %135 = arith.cmpi eq, %120, %134 : vector<64x64xi32>
    %cst_66 = arith.constant 0.00260416674 : f32
    %cst_67 = arith.constant 0.000000e+00 : f32
    %136 = vector.broadcast %cst_66 : f32 to vector<64x64xf32>
    %137 = vector.broadcast %cst_67 : f32 to vector<64x64xf32>
    %138 = arith.select %135, %136, %137 : vector<64x64xi1>, vector<64x64xf32>
    %cst_68 = arith.constant dense<0.000000e+00> : vector<64xf32>
    %139 = vector.multi_reduction <add>, %102, %cst_68 [1] : vector<64x24xf32> to vector<64xf32>
    %140 = vector.shape_cast %139 : vector<64xf32> to vector<64x1xf32>
    %141 = arith.mulf %102, %102 : vector<64x24xf32>
    %cst_69 = arith.constant dense<0.000000e+00> : vector<64xf32>
    %142 = vector.multi_reduction <add>, %141, %cst_69 [1] : vector<64x24xf32> to vector<64xf32>
    %143 = vector.shape_cast %142 : vector<64xf32> to vector<64x1xf32>
    %cst_70 = arith.constant dense<0.000000e+00> : vector<64x1xf32>
    %144 = tpu.matmul %138, %140, %cst_70 {dimension_numbers = #tpu.dot_dimension_numbers<[1], [0], [0], [1], [0, 0, 1, 1], [], []>} : vector<64x64xf32>, vector<64x1xf32>, vector<64x1xf32> -> vector<64x1xf32>
    %cst_71 = arith.constant dense<0.000000e+00> : vector<64x1xf32>
    %145 = tpu.matmul %138, %143, %cst_71 {dimension_numbers = #tpu.dot_dimension_numbers<[1], [0], [0], [1], [0, 0, 1, 1], [], []>} : vector<64x64xf32>, vector<64x1xf32>, vector<64x1xf32> -> vector<64x1xf32>
    %146 = arith.mulf %144, %144 : vector<64x1xf32>
    %147 = arith.subf %145, %146 : vector<64x1xf32>
    %cst_72 = arith.constant 0.000000e+00 : f32
    %148 = vector.broadcast %cst_72 : f32 to vector<64x1xf32>
    %149 = arith.maximumf %147, %148 : vector<64x1xf32>
    %150 = vector.broadcast %144 : vector<64x1xf32> to vector<64x24xf32>
    %151 = arith.subf %102, %150 : vector<64x24xf32>
    %cst_73 = arith.constant 9.99999974E-6 : f32
    %152 = vector.broadcast %cst_73 : f32 to vector<64x1xf32>
    %153 = arith.addf %149, %152 : vector<64x1xf32>
    %154 = math.rsqrt %153 : vector<64x1xf32>
    %155 = vector.broadcast %154 : vector<64x1xf32> to vector<64x24xf32>
    %156 = arith.mulf %151, %155 : vector<64x24xf32>
    %157 = arith.mulf %156, %104 : vector<64x24xf32>
    %158 = arith.addf %157, %106 : vector<64x24xf32>
    %159 = math.tanh %158 : vector<64x24xf32>
    %160 = arith.addf %159, %95 : vector<64x24xf32>
    %161 = vector.extract_strided_slice %3 {offsets = [0, 0], sizes = [24, 1], strides = [1, 1]} : vector<36x1xf32> to vector<24x1xf32>
    %162 = vector.extract_strided_slice %3 {offsets = [24, 0], sizes = [12, 1], strides = [1, 1]} : vector<36x1xf32> to vector<12x1xf32>
    %c0_74 = arith.constant 0 : index
    %c0_75 = arith.constant 0 : index
    %163 = vector.load %arg16[%c0_74, %c0_75] : memref<24x18xf32, #tpu.memory_space<vmem>>, vector<24x18xf32>
    %cst_76 = arith.constant dense<0.000000e+00> : vector<64x18xf32>
    %164 = tpu.matmul %160, %163, %cst_76 {dimension_numbers = #tpu.dot_dimension_numbers<[1], [0], [0], [1], [0, 0, 1, 1], [], []>} : vector<64x24xf32>, vector<24x18xf32>, vector<64x18xf32> -> vector<64x18xf32>
    %c0_77 = arith.constant 0 : index
    %c0_78 = arith.constant 0 : index
    %165 = vector.load %arg18[%c0_77, %c0_78] : memref<128x1xf32, #tpu.memory_space<vmem>>, vector<128x1xf32>
    %c0_79 = arith.constant 0 : index
    %c0_80 = arith.constant 0 : index
    %c0_81 = arith.constant 0 : index
    %166 = vector.load %arg17[%c0_79, %c0_80, %c0_81] : memref<6x128x64xf32, #tpu.memory_space<vmem>>, vector<1x128x64xf32>
    %167 = vector.shape_cast %166 : vector<1x128x64xf32> to vector<128x64xf32>
    %168 = vector.extract_strided_slice %164 {offsets = [0, 0], sizes = [64, 3], strides = [1, 1]} : vector<64x18xf32> to vector<64x3xf32>
    %cst_82 = arith.constant dense<0.000000e+00> : vector<128x3xf32>
    %169 = tpu.matmul %167, %168, %cst_82 {dimension_numbers = #tpu.dot_dimension_numbers<[1], [0], [0], [1], [0, 0, 1, 1], [], []>} : vector<128x64xf32>, vector<64x3xf32>, vector<128x3xf32> -> vector<128x3xf32>
    %170 = vector.broadcast %165 : vector<128x1xf32> to vector<128x3xf32>
    %171 = arith.addf %170, %169 : vector<128x3xf32>
    %c1_83 = arith.constant 1 : index
    %c0_84 = arith.constant 0 : index
    %c0_85 = arith.constant 0 : index
    %172 = vector.load %arg17[%c1_83, %c0_84, %c0_85] : memref<6x128x64xf32, #tpu.memory_space<vmem>>, vector<1x128x64xf32>
    %173 = vector.shape_cast %172 : vector<1x128x64xf32> to vector<128x64xf32>
    %174 = vector.extract_strided_slice %164 {offsets = [0, 3], sizes = [64, 3], strides = [1, 1]} : vector<64x18xf32> to vector<64x3xf32>
    %cst_86 = arith.constant dense<0.000000e+00> : vector<128x3xf32>
    %175 = tpu.matmul %173, %174, %cst_86 {dimension_numbers = #tpu.dot_dimension_numbers<[1], [0], [0], [1], [0, 0, 1, 1], [], []>} : vector<128x64xf32>, vector<64x3xf32>, vector<128x3xf32> -> vector<128x3xf32>
    %176 = arith.addf %171, %175 : vector<128x3xf32>
    %c2 = arith.constant 2 : index
    %c0_87 = arith.constant 0 : index
    %c0_88 = arith.constant 0 : index
    %177 = vector.load %arg17[%c2, %c0_87, %c0_88] : memref<6x128x64xf32, #tpu.memory_space<vmem>>, vector<1x128x64xf32>
    %178 = vector.shape_cast %177 : vector<1x128x64xf32> to vector<128x64xf32>
    %179 = vector.extract_strided_slice %164 {offsets = [0, 6], sizes = [64, 3], strides = [1, 1]} : vector<64x18xf32> to vector<64x3xf32>
    %cst_89 = arith.constant dense<0.000000e+00> : vector<128x3xf32>
    %180 = tpu.matmul %178, %179, %cst_89 {dimension_numbers = #tpu.dot_dimension_numbers<[1], [0], [0], [1], [0, 0, 1, 1], [], []>} : vector<128x64xf32>, vector<64x3xf32>, vector<128x3xf32> -> vector<128x3xf32>
    %181 = arith.addf %176, %180 : vector<128x3xf32>
    %c3 = arith.constant 3 : index
    %c0_90 = arith.constant 0 : index
    %c0_91 = arith.constant 0 : index
    %182 = vector.load %arg17[%c3, %c0_90, %c0_91] : memref<6x128x64xf32, #tpu.memory_space<vmem>>, vector<1x128x64xf32>
    %183 = vector.shape_cast %182 : vector<1x128x64xf32> to vector<128x64xf32>
    %184 = vector.extract_strided_slice %164 {offsets = [0, 9], sizes = [64, 3], strides = [1, 1]} : vector<64x18xf32> to vector<64x3xf32>
    %cst_92 = arith.constant dense<0.000000e+00> : vector<128x3xf32>
    %185 = tpu.matmul %183, %184, %cst_92 {dimension_numbers = #tpu.dot_dimension_numbers<[1], [0], [0], [1], [0, 0, 1, 1], [], []>} : vector<128x64xf32>, vector<64x3xf32>, vector<128x3xf32> -> vector<128x3xf32>
    %186 = arith.addf %181, %185 : vector<128x3xf32>
    %c4 = arith.constant 4 : index
    %c0_93 = arith.constant 0 : index
    %c0_94 = arith.constant 0 : index
    %187 = vector.load %arg17[%c4, %c0_93, %c0_94] : memref<6x128x64xf32, #tpu.memory_space<vmem>>, vector<1x128x64xf32>
    %188 = vector.shape_cast %187 : vector<1x128x64xf32> to vector<128x64xf32>
    %189 = vector.extract_strided_slice %164 {offsets = [0, 12], sizes = [64, 3], strides = [1, 1]} : vector<64x18xf32> to vector<64x3xf32>
    %cst_95 = arith.constant dense<0.000000e+00> : vector<128x3xf32>
    %190 = tpu.matmul %188, %189, %cst_95 {dimension_numbers = #tpu.dot_dimension_numbers<[1], [0], [0], [1], [0, 0, 1, 1], [], []>} : vector<128x64xf32>, vector<64x3xf32>, vector<128x3xf32> -> vector<128x3xf32>
    %191 = arith.addf %186, %190 : vector<128x3xf32>
    %c5 = arith.constant 5 : index
    %c0_96 = arith.constant 0 : index
    %c0_97 = arith.constant 0 : index
    %192 = vector.load %arg17[%c5, %c0_96, %c0_97] : memref<6x128x64xf32, #tpu.memory_space<vmem>>, vector<1x128x64xf32>
    %193 = vector.shape_cast %192 : vector<1x128x64xf32> to vector<128x64xf32>
    %194 = vector.extract_strided_slice %164 {offsets = [0, 15], sizes = [64, 3], strides = [1, 1]} : vector<64x18xf32> to vector<64x3xf32>
    %cst_98 = arith.constant dense<0.000000e+00> : vector<128x3xf32>
    %195 = tpu.matmul %193, %194, %cst_98 {dimension_numbers = #tpu.dot_dimension_numbers<[1], [0], [0], [1], [0, 0, 1, 1], [], []>} : vector<128x64xf32>, vector<64x3xf32>, vector<128x3xf32> -> vector<128x3xf32>
    %196 = arith.addf %191, %195 : vector<128x3xf32>
    %c0_99 = arith.constant 0 : index
    %c0_100 = arith.constant 0 : index
    %c0_101 = arith.constant 0 : index
    %197 = vector.load %arg19[%c0_99, %c0_100, %c0_101] : memref<2x128x3xf32, #tpu.memory_space<vmem>>, vector<1x128x3xf32>
    %198 = vector.shape_cast %197 : vector<1x128x3xf32> to vector<128x3xf32>
    %c1_102 = arith.constant 1 : index
    %c0_103 = arith.constant 0 : index
    %c0_104 = arith.constant 0 : index
    %199 = vector.load %arg19[%c1_102, %c0_103, %c0_104] : memref<2x128x3xf32, #tpu.memory_space<vmem>>, vector<1x128x3xf32>
    %200 = vector.shape_cast %199 : vector<1x128x3xf32> to vector<128x3xf32>
    %201 = tpu.iota {dimensions = array<i32: 0>} : vector<128x128xi32>
    %c0_i32_105 = arith.constant 0 : i32
    %202 = vector.broadcast %c0_i32_105 : i32 to vector<128x128xi32>
    %c32_i32_106 = arith.constant 32 : i32
    %203 = vector.broadcast %c32_i32_106 : i32 to vector<128x128xi32>
    %204 = arith.cmpi sge, %201, %203 : vector<128x128xi32>
    %205 = arith.extui %204 : vector<128x128xi1> to vector<128x128xi32>
    %206 = arith.addi %202, %205 : vector<128x128xi32>
    %c64_i32 = arith.constant 64 : i32
    %207 = vector.broadcast %c64_i32 : i32 to vector<128x128xi32>
    %208 = arith.cmpi sge, %201, %207 : vector<128x128xi32>
    %209 = arith.extui %208 : vector<128x128xi1> to vector<128x128xi32>
    %210 = arith.addi %206, %209 : vector<128x128xi32>
    %c96_i32 = arith.constant 96 : i32
    %211 = vector.broadcast %c96_i32 : i32 to vector<128x128xi32>
    %212 = arith.cmpi sge, %201, %211 : vector<128x128xi32>
    %213 = arith.extui %212 : vector<128x128xi1> to vector<128x128xi32>
    %214 = arith.addi %210, %213 : vector<128x128xi32>
    %215 = tpu.iota {dimensions = array<i32: 1>} : vector<128x128xi32>
    %c0_i32_107 = arith.constant 0 : i32
    %216 = vector.broadcast %c0_i32_107 : i32 to vector<128x128xi32>
    %c32_i32_108 = arith.constant 32 : i32
    %217 = vector.broadcast %c32_i32_108 : i32 to vector<128x128xi32>
    %218 = arith.cmpi sge, %215, %217 : vector<128x128xi32>
    %219 = arith.extui %218 : vector<128x128xi1> to vector<128x128xi32>
    %220 = arith.addi %216, %219 : vector<128x128xi32>
    %c64_i32_109 = arith.constant 64 : i32
    %221 = vector.broadcast %c64_i32_109 : i32 to vector<128x128xi32>
    %222 = arith.cmpi sge, %215, %221 : vector<128x128xi32>
    %223 = arith.extui %222 : vector<128x128xi1> to vector<128x128xi32>
    %224 = arith.addi %220, %223 : vector<128x128xi32>
    %c96_i32_110 = arith.constant 96 : i32
    %225 = vector.broadcast %c96_i32_110 : i32 to vector<128x128xi32>
    %226 = arith.cmpi sge, %215, %225 : vector<128x128xi32>
    %227 = arith.extui %226 : vector<128x128xi1> to vector<128x128xi32>
    %228 = arith.addi %224, %227 : vector<128x128xi32>
    %229 = arith.cmpi eq, %214, %228 : vector<128x128xi32>
    %cst_111 = arith.constant 0.010416667 : f32
    %cst_112 = arith.constant 0.000000e+00 : f32
    %230 = vector.broadcast %cst_111 : f32 to vector<128x128xf32>
    %231 = vector.broadcast %cst_112 : f32 to vector<128x128xf32>
    %232 = arith.select %229, %230, %231 : vector<128x128xi1>, vector<128x128xf32>
    %cst_113 = arith.constant dense<0.000000e+00> : vector<128xf32>
    %233 = vector.multi_reduction <add>, %196, %cst_113 [1] : vector<128x3xf32> to vector<128xf32>
    %234 = vector.shape_cast %233 : vector<128xf32> to vector<128x1xf32>
    %235 = arith.mulf %196, %196 : vector<128x3xf32>
    %cst_114 = arith.constant dense<0.000000e+00> : vector<128xf32>
    %236 = vector.multi_reduction <add>, %235, %cst_114 [1] : vector<128x3xf32> to vector<128xf32>
    %237 = vector.shape_cast %236 : vector<128xf32> to vector<128x1xf32>
    %cst_115 = arith.constant dense<0.000000e+00> : vector<128x1xf32>
    %238 = tpu.matmul %232, %234, %cst_115 {dimension_numbers = #tpu.dot_dimension_numbers<[1], [0], [0], [1], [0, 0, 1, 1], [], []>} : vector<128x128xf32>, vector<128x1xf32>, vector<128x1xf32> -> vector<128x1xf32>
    %cst_116 = arith.constant dense<0.000000e+00> : vector<128x1xf32>
    %239 = tpu.matmul %232, %237, %cst_116 {dimension_numbers = #tpu.dot_dimension_numbers<[1], [0], [0], [1], [0, 0, 1, 1], [], []>} : vector<128x128xf32>, vector<128x1xf32>, vector<128x1xf32> -> vector<128x1xf32>
    %240 = arith.mulf %238, %238 : vector<128x1xf32>
    %241 = arith.subf %239, %240 : vector<128x1xf32>
    %cst_117 = arith.constant 0.000000e+00 : f32
    %242 = vector.broadcast %cst_117 : f32 to vector<128x1xf32>
    %243 = arith.maximumf %241, %242 : vector<128x1xf32>
    %244 = vector.broadcast %238 : vector<128x1xf32> to vector<128x3xf32>
    %245 = arith.subf %196, %244 : vector<128x3xf32>
    %cst_118 = arith.constant 9.99999974E-6 : f32
    %246 = vector.broadcast %cst_118 : f32 to vector<128x1xf32>
    %247 = arith.addf %243, %246 : vector<128x1xf32>
    %248 = math.rsqrt %247 : vector<128x1xf32>
    %249 = vector.broadcast %248 : vector<128x1xf32> to vector<128x3xf32>
    %250 = arith.mulf %245, %249 : vector<128x3xf32>
    %251 = arith.mulf %250, %198 : vector<128x3xf32>
    %252 = arith.addf %251, %200 : vector<128x3xf32>
    %253 = math.tanh %252 : vector<128x3xf32>
    %c0_119 = arith.constant 0 : index
    %c0_120 = arith.constant 0 : index
    %254 = vector.load %arg20[%c0_119, %c0_120] : memref<24x128xf32, #tpu.memory_space<vmem>>, vector<24x128xf32>
    %cst_121 = arith.constant dense<0.000000e+00> : vector<24x3xf32>
    %255 = tpu.matmul %254, %253, %cst_121 {dimension_numbers = #tpu.dot_dimension_numbers<[1], [0], [0], [1], [0, 0, 1, 1], [], []>} : vector<24x128xf32>, vector<128x3xf32>, vector<24x3xf32> -> vector<24x3xf32>
    %c0_122 = arith.constant 0 : index
    %c0_123 = arith.constant 0 : index
    %256 = vector.load %arg21[%c0_122, %c0_123] : memref<24x1xf32, #tpu.memory_space<vmem>>, vector<24x1xf32>
    %257 = vector.broadcast %256 : vector<24x1xf32> to vector<24x3xf32>
    %258 = arith.addf %255, %257 : vector<24x3xf32>
    %259 = math.tanh %258 : vector<24x3xf32>
    %260 = vector.broadcast %161 : vector<24x1xf32> to vector<24x3xf32>
    %261 = arith.addf %259, %260 : vector<24x3xf32>
    %c0_124 = arith.constant 0 : index
    %c0_125 = arith.constant 0 : index
    %262 = vector.load %arg22[%c0_124, %c0_125] : memref<24x9xf32, #tpu.memory_space<vmem>>, vector<24x9xf32>
    %cst_126 = arith.constant dense<0.000000e+00> : vector<64x9xf32>
    %263 = tpu.matmul %160, %262, %cst_126 {dimension_numbers = #tpu.dot_dimension_numbers<[1], [0], [0], [1], [0, 0, 1, 1], [], []>} : vector<64x24xf32>, vector<24x9xf32>, vector<64x9xf32> -> vector<64x9xf32>
    %c0_127 = arith.constant 0 : index
    %c0_128 = arith.constant 0 : index
    %264 = vector.load %arg24[%c0_127, %c0_128] : memref<64x1xf32, #tpu.memory_space<vmem>>, vector<64x1xf32>
    %c0_129 = arith.constant 0 : index
    %c0_130 = arith.constant 0 : index
    %c0_131 = arith.constant 0 : index
    %265 = vector.load %arg23[%c0_129, %c0_130, %c0_131] : memref<3x64x64xf32, #tpu.memory_space<vmem>>, vector<1x64x64xf32>
    %266 = vector.shape_cast %265 : vector<1x64x64xf32> to vector<64x64xf32>
    %267 = vector.extract_strided_slice %263 {offsets = [0, 0], sizes = [64, 3], strides = [1, 1]} : vector<64x9xf32> to vector<64x3xf32>
    %cst_132 = arith.constant dense<0.000000e+00> : vector<64x3xf32>
    %268 = tpu.matmul %266, %267, %cst_132 {dimension_numbers = #tpu.dot_dimension_numbers<[1], [0], [0], [1], [0, 0, 1, 1], [], []>} : vector<64x64xf32>, vector<64x3xf32>, vector<64x3xf32> -> vector<64x3xf32>
    %269 = vector.broadcast %264 : vector<64x1xf32> to vector<64x3xf32>
    %270 = arith.addf %269, %268 : vector<64x3xf32>
    %c1_133 = arith.constant 1 : index
    %c0_134 = arith.constant 0 : index
    %c0_135 = arith.constant 0 : index
    %271 = vector.load %arg23[%c1_133, %c0_134, %c0_135] : memref<3x64x64xf32, #tpu.memory_space<vmem>>, vector<1x64x64xf32>
    %272 = vector.shape_cast %271 : vector<1x64x64xf32> to vector<64x64xf32>
    %273 = vector.extract_strided_slice %263 {offsets = [0, 3], sizes = [64, 3], strides = [1, 1]} : vector<64x9xf32> to vector<64x3xf32>
    %cst_136 = arith.constant dense<0.000000e+00> : vector<64x3xf32>
    %274 = tpu.matmul %272, %273, %cst_136 {dimension_numbers = #tpu.dot_dimension_numbers<[1], [0], [0], [1], [0, 0, 1, 1], [], []>} : vector<64x64xf32>, vector<64x3xf32>, vector<64x3xf32> -> vector<64x3xf32>
    %275 = arith.addf %270, %274 : vector<64x3xf32>
    %c2_137 = arith.constant 2 : index
    %c0_138 = arith.constant 0 : index
    %c0_139 = arith.constant 0 : index
    %276 = vector.load %arg23[%c2_137, %c0_138, %c0_139] : memref<3x64x64xf32, #tpu.memory_space<vmem>>, vector<1x64x64xf32>
    %277 = vector.shape_cast %276 : vector<1x64x64xf32> to vector<64x64xf32>
    %278 = vector.extract_strided_slice %263 {offsets = [0, 6], sizes = [64, 3], strides = [1, 1]} : vector<64x9xf32> to vector<64x3xf32>
    %cst_140 = arith.constant dense<0.000000e+00> : vector<64x3xf32>
    %279 = tpu.matmul %277, %278, %cst_140 {dimension_numbers = #tpu.dot_dimension_numbers<[1], [0], [0], [1], [0, 0, 1, 1], [], []>} : vector<64x64xf32>, vector<64x3xf32>, vector<64x3xf32> -> vector<64x3xf32>
    %280 = arith.addf %275, %279 : vector<64x3xf32>
    %c0_141 = arith.constant 0 : index
    %c0_142 = arith.constant 0 : index
    %c0_143 = arith.constant 0 : index
    %281 = vector.load %arg25[%c0_141, %c0_142, %c0_143] : memref<2x64x3xf32, #tpu.memory_space<vmem>>, vector<1x64x3xf32>
    %282 = vector.shape_cast %281 : vector<1x64x3xf32> to vector<64x3xf32>
    %c1_144 = arith.constant 1 : index
    %c0_145 = arith.constant 0 : index
    %c0_146 = arith.constant 0 : index
    %283 = vector.load %arg25[%c1_144, %c0_145, %c0_146] : memref<2x64x3xf32, #tpu.memory_space<vmem>>, vector<1x64x3xf32>
    %284 = vector.shape_cast %283 : vector<1x64x3xf32> to vector<64x3xf32>
    %285 = tpu.iota {dimensions = array<i32: 0>} : vector<64x64xi32>
    %c0_i32_147 = arith.constant 0 : i32
    %286 = vector.broadcast %c0_i32_147 : i32 to vector<64x64xi32>
    %c16_i32_148 = arith.constant 16 : i32
    %287 = vector.broadcast %c16_i32_148 : i32 to vector<64x64xi32>
    %288 = arith.cmpi sge, %285, %287 : vector<64x64xi32>
    %289 = arith.extui %288 : vector<64x64xi1> to vector<64x64xi32>
    %290 = arith.addi %286, %289 : vector<64x64xi32>
    %c32_i32_149 = arith.constant 32 : i32
    %291 = vector.broadcast %c32_i32_149 : i32 to vector<64x64xi32>
    %292 = arith.cmpi sge, %285, %291 : vector<64x64xi32>
    %293 = arith.extui %292 : vector<64x64xi1> to vector<64x64xi32>
    %294 = arith.addi %290, %293 : vector<64x64xi32>
    %c48_i32_150 = arith.constant 48 : i32
    %295 = vector.broadcast %c48_i32_150 : i32 to vector<64x64xi32>
    %296 = arith.cmpi sge, %285, %295 : vector<64x64xi32>
    %297 = arith.extui %296 : vector<64x64xi1> to vector<64x64xi32>
    %298 = arith.addi %294, %297 : vector<64x64xi32>
    %299 = tpu.iota {dimensions = array<i32: 1>} : vector<64x64xi32>
    %c0_i32_151 = arith.constant 0 : i32
    %300 = vector.broadcast %c0_i32_151 : i32 to vector<64x64xi32>
    %c16_i32_152 = arith.constant 16 : i32
    %301 = vector.broadcast %c16_i32_152 : i32 to vector<64x64xi32>
    %302 = arith.cmpi sge, %299, %301 : vector<64x64xi32>
    %303 = arith.extui %302 : vector<64x64xi1> to vector<64x64xi32>
    %304 = arith.addi %300, %303 : vector<64x64xi32>
    %c32_i32_153 = arith.constant 32 : i32
    %305 = vector.broadcast %c32_i32_153 : i32 to vector<64x64xi32>
    %306 = arith.cmpi sge, %299, %305 : vector<64x64xi32>
    %307 = arith.extui %306 : vector<64x64xi1> to vector<64x64xi32>
    %308 = arith.addi %304, %307 : vector<64x64xi32>
    %c48_i32_154 = arith.constant 48 : i32
    %309 = vector.broadcast %c48_i32_154 : i32 to vector<64x64xi32>
    %310 = arith.cmpi sge, %299, %309 : vector<64x64xi32>
    %311 = arith.extui %310 : vector<64x64xi1> to vector<64x64xi32>
    %312 = arith.addi %308, %311 : vector<64x64xi32>
    %313 = arith.cmpi eq, %298, %312 : vector<64x64xi32>
    %cst_155 = arith.constant 0.020833334 : f32
    %cst_156 = arith.constant 0.000000e+00 : f32
    %314 = vector.broadcast %cst_155 : f32 to vector<64x64xf32>
    %315 = vector.broadcast %cst_156 : f32 to vector<64x64xf32>
    %316 = arith.select %313, %314, %315 : vector<64x64xi1>, vector<64x64xf32>
    %cst_157 = arith.constant dense<0.000000e+00> : vector<64xf32>
    %317 = vector.multi_reduction <add>, %280, %cst_157 [1] : vector<64x3xf32> to vector<64xf32>
    %318 = vector.shape_cast %317 : vector<64xf32> to vector<64x1xf32>
    %319 = arith.mulf %280, %280 : vector<64x3xf32>
    %cst_158 = arith.constant dense<0.000000e+00> : vector<64xf32>
    %320 = vector.multi_reduction <add>, %319, %cst_158 [1] : vector<64x3xf32> to vector<64xf32>
    %321 = vector.shape_cast %320 : vector<64xf32> to vector<64x1xf32>
    %cst_159 = arith.constant dense<0.000000e+00> : vector<64x1xf32>
    %322 = tpu.matmul %316, %318, %cst_159 {dimension_numbers = #tpu.dot_dimension_numbers<[1], [0], [0], [1], [0, 0, 1, 1], [], []>} : vector<64x64xf32>, vector<64x1xf32>, vector<64x1xf32> -> vector<64x1xf32>
    %cst_160 = arith.constant dense<0.000000e+00> : vector<64x1xf32>
    %323 = tpu.matmul %316, %321, %cst_160 {dimension_numbers = #tpu.dot_dimension_numbers<[1], [0], [0], [1], [0, 0, 1, 1], [], []>} : vector<64x64xf32>, vector<64x1xf32>, vector<64x1xf32> -> vector<64x1xf32>
    %324 = arith.mulf %322, %322 : vector<64x1xf32>
    %325 = arith.subf %323, %324 : vector<64x1xf32>
    %cst_161 = arith.constant 0.000000e+00 : f32
    %326 = vector.broadcast %cst_161 : f32 to vector<64x1xf32>
    %327 = arith.maximumf %325, %326 : vector<64x1xf32>
    %328 = vector.broadcast %322 : vector<64x1xf32> to vector<64x3xf32>
    %329 = arith.subf %280, %328 : vector<64x3xf32>
    %cst_162 = arith.constant 9.99999974E-6 : f32
    %330 = vector.broadcast %cst_162 : f32 to vector<64x1xf32>
    %331 = arith.addf %327, %330 : vector<64x1xf32>
    %332 = math.rsqrt %331 : vector<64x1xf32>
    %333 = vector.broadcast %332 : vector<64x1xf32> to vector<64x3xf32>
    %334 = arith.mulf %329, %333 : vector<64x3xf32>
    %335 = arith.mulf %334, %282 : vector<64x3xf32>
    %336 = arith.addf %335, %284 : vector<64x3xf32>
    %337 = math.tanh %336 : vector<64x3xf32>
    %c0_163 = arith.constant 0 : index
    %c0_164 = arith.constant 0 : index
    %338 = vector.load %arg26[%c0_163, %c0_164] : memref<12x64xf32, #tpu.memory_space<vmem>>, vector<12x64xf32>
    %cst_165 = arith.constant dense<0.000000e+00> : vector<12x3xf32>
    %339 = tpu.matmul %338, %337, %cst_165 {dimension_numbers = #tpu.dot_dimension_numbers<[1], [0], [0], [1], [0, 0, 1, 1], [], []>} : vector<12x64xf32>, vector<64x3xf32>, vector<12x3xf32> -> vector<12x3xf32>
    %c0_166 = arith.constant 0 : index
    %c0_167 = arith.constant 0 : index
    %340 = vector.load %arg27[%c0_166, %c0_167] : memref<12x1xf32, #tpu.memory_space<vmem>>, vector<12x1xf32>
    %341 = vector.broadcast %340 : vector<12x1xf32> to vector<12x3xf32>
    %342 = arith.addf %339, %341 : vector<12x3xf32>
    %343 = math.tanh %342 : vector<12x3xf32>
    %344 = vector.broadcast %162 : vector<12x1xf32> to vector<12x3xf32>
    %345 = arith.addf %343, %344 : vector<12x3xf32>
    %346 = tpu.iota {dimensions = array<i32: 0>} : vector<12x12xi32>
    %c0_i32_168 = arith.constant 0 : i32
    %347 = vector.broadcast %c0_i32_168 : i32 to vector<12x12xi32>
    %c3_i32 = arith.constant 3 : i32
    %348 = vector.broadcast %c3_i32 : i32 to vector<12x12xi32>
    %349 = arith.cmpi sge, %346, %348 : vector<12x12xi32>
    %350 = arith.extui %349 : vector<12x12xi1> to vector<12x12xi32>
    %351 = arith.addi %347, %350 : vector<12x12xi32>
    %c6_i32 = arith.constant 6 : i32
    %352 = vector.broadcast %c6_i32 : i32 to vector<12x12xi32>
    %353 = arith.cmpi sge, %346, %352 : vector<12x12xi32>
    %354 = arith.extui %353 : vector<12x12xi1> to vector<12x12xi32>
    %355 = arith.addi %351, %354 : vector<12x12xi32>
    %c9_i32 = arith.constant 9 : i32
    %356 = vector.broadcast %c9_i32 : i32 to vector<12x12xi32>
    %357 = arith.cmpi sge, %346, %356 : vector<12x12xi32>
    %358 = arith.extui %357 : vector<12x12xi1> to vector<12x12xi32>
    %359 = arith.addi %355, %358 : vector<12x12xi32>
    %360 = tpu.iota {dimensions = array<i32: 1>} : vector<12x12xi32>
    %c0_i32_169 = arith.constant 0 : i32
    %361 = vector.broadcast %c0_i32_169 : i32 to vector<12x12xi32>
    %c3_i32_170 = arith.constant 3 : i32
    %362 = vector.broadcast %c3_i32_170 : i32 to vector<12x12xi32>
    %363 = arith.cmpi sge, %360, %362 : vector<12x12xi32>
    %364 = arith.extui %363 : vector<12x12xi1> to vector<12x12xi32>
    %365 = arith.addi %361, %364 : vector<12x12xi32>
    %c6_i32_171 = arith.constant 6 : i32
    %366 = vector.broadcast %c6_i32_171 : i32 to vector<12x12xi32>
    %367 = arith.cmpi sge, %360, %366 : vector<12x12xi32>
    %368 = arith.extui %367 : vector<12x12xi1> to vector<12x12xi32>
    %369 = arith.addi %365, %368 : vector<12x12xi32>
    %c9_i32_172 = arith.constant 9 : i32
    %370 = vector.broadcast %c9_i32_172 : i32 to vector<12x12xi32>
    %371 = arith.cmpi sge, %360, %370 : vector<12x12xi32>
    %372 = arith.extui %371 : vector<12x12xi1> to vector<12x12xi32>
    %373 = arith.addi %369, %372 : vector<12x12xi32>
    %374 = arith.cmpi eq, %359, %373 : vector<12x12xi32>
    %cst_173 = arith.constant 1.000000e+00 : f32
    %cst_174 = arith.constant 0.000000e+00 : f32
    %375 = vector.broadcast %cst_173 : f32 to vector<12x12xf32>
    %376 = vector.broadcast %cst_174 : f32 to vector<12x12xf32>
    %377 = arith.select %374, %375, %376 : vector<12x12xi1>, vector<12x12xf32>
    %378 = arith.mulf %345, %345 : vector<12x3xf32>
    %cst_175 = arith.constant dense<0.000000e+00> : vector<12x3xf32>
    %379 = tpu.matmul %377, %378, %cst_175 {dimension_numbers = #tpu.dot_dimension_numbers<[1], [0], [0], [1], [0, 0, 1, 1], [], []>} : vector<12x12xf32>, vector<12x3xf32>, vector<12x3xf32> -> vector<12x3xf32>
    %cst_176 = arith.constant 1.000000e-24 : f32
    %380 = vector.broadcast %cst_176 : f32 to vector<12x3xf32>
    %381 = arith.maximumf %379, %380 : vector<12x3xf32>
    %382 = math.rsqrt %381 : vector<12x3xf32>
    %383 = arith.mulf %345, %382 : vector<12x3xf32>
    %384 = tpu.iota {dimensions = array<i32: 0>} : vector<24x3xi32>
    %c0_i32_177 = arith.constant 0 : i32
    %385 = vector.broadcast %c0_i32_177 : i32 to vector<24x3xi32>
    %c8_i32_178 = arith.constant 8 : i32
    %386 = vector.broadcast %c8_i32_178 : i32 to vector<24x3xi32>
    %387 = arith.cmpi sge, %384, %386 : vector<24x3xi32>
    %388 = arith.extui %387 : vector<24x3xi1> to vector<24x3xi32>
    %389 = arith.addi %385, %388 : vector<24x3xi32>
    %c16_i32_179 = arith.constant 16 : i32
    %390 = vector.broadcast %c16_i32_179 : i32 to vector<24x3xi32>
    %391 = arith.cmpi sge, %384, %390 : vector<24x3xi32>
    %392 = arith.extui %391 : vector<24x3xi1> to vector<24x3xi32>
    %393 = arith.addi %389, %392 : vector<24x3xi32>
    %394 = tpu.iota {dimensions = array<i32: 1>} : vector<24x3xi32>
    %395 = arith.cmpi eq, %393, %394 : vector<24x3xi32>
    %cst_180 = arith.constant 1.250000e-01 : f32
    %cst_181 = arith.constant 0.000000e+00 : f32
    %396 = vector.broadcast %cst_180 : f32 to vector<24x3xf32>
    %397 = vector.broadcast %cst_181 : f32 to vector<24x3xf32>
    %398 = arith.select %395, %396, %397 : vector<24x3xi1>, vector<24x3xf32>
    %cst_182 = arith.constant dense<0.000000e+00> : vector<64x3xf32>
    %399 = tpu.matmul %160, %398, %cst_182 {dimension_numbers = #tpu.dot_dimension_numbers<[1], [0], [0], [1], [0, 0, 1, 1], [], []>} : vector<64x24xf32>, vector<24x3xf32>, vector<64x3xf32> -> vector<64x3xf32>
    %c0_183 = arith.constant 0 : index
    %c0_184 = arith.constant 0 : index
    %400 = vector.load %arg29[%c0_183, %c0_184] : memref<32x1xf32, #tpu.memory_space<vmem>>, vector<32x1xf32>
    %c0_185 = arith.constant 0 : index
    %c0_186 = arith.constant 0 : index
    %c0_187 = arith.constant 0 : index
    %401 = vector.load %arg28[%c0_185, %c0_186, %c0_187] : memref<3x32x64xf32, #tpu.memory_space<vmem>>, vector<1x32x64xf32>
    %402 = vector.shape_cast %401 : vector<1x32x64xf32> to vector<32x64xf32>
    %403 = vector.extract_strided_slice %399 {offsets = [0, 0], sizes = [64, 1], strides = [1, 1]} : vector<64x3xf32> to vector<64x1xf32>
    %cst_188 = arith.constant dense<0.000000e+00> : vector<32x1xf32>
    %404 = tpu.matmul %402, %403, %cst_188 {dimension_numbers = #tpu.dot_dimension_numbers<[1], [0], [0], [1], [0, 0, 1, 1], [], []>} : vector<32x64xf32>, vector<64x1xf32>, vector<32x1xf32> -> vector<32x1xf32>
    %405 = arith.addf %400, %404 : vector<32x1xf32>
    %c1_189 = arith.constant 1 : index
    %c0_190 = arith.constant 0 : index
    %c0_191 = arith.constant 0 : index
    %406 = vector.load %arg28[%c1_189, %c0_190, %c0_191] : memref<3x32x64xf32, #tpu.memory_space<vmem>>, vector<1x32x64xf32>
    %407 = vector.shape_cast %406 : vector<1x32x64xf32> to vector<32x64xf32>
    %408 = vector.extract_strided_slice %399 {offsets = [0, 1], sizes = [64, 1], strides = [1, 1]} : vector<64x3xf32> to vector<64x1xf32>
    %cst_192 = arith.constant dense<0.000000e+00> : vector<32x1xf32>
    %409 = tpu.matmul %407, %408, %cst_192 {dimension_numbers = #tpu.dot_dimension_numbers<[1], [0], [0], [1], [0, 0, 1, 1], [], []>} : vector<32x64xf32>, vector<64x1xf32>, vector<32x1xf32> -> vector<32x1xf32>
    %410 = arith.addf %405, %409 : vector<32x1xf32>
    %c2_193 = arith.constant 2 : index
    %c0_194 = arith.constant 0 : index
    %c0_195 = arith.constant 0 : index
    %411 = vector.load %arg28[%c2_193, %c0_194, %c0_195] : memref<3x32x64xf32, #tpu.memory_space<vmem>>, vector<1x32x64xf32>
    %412 = vector.shape_cast %411 : vector<1x32x64xf32> to vector<32x64xf32>
    %413 = vector.extract_strided_slice %399 {offsets = [0, 2], sizes = [64, 1], strides = [1, 1]} : vector<64x3xf32> to vector<64x1xf32>
    %cst_196 = arith.constant dense<0.000000e+00> : vector<32x1xf32>
    %414 = tpu.matmul %412, %413, %cst_196 {dimension_numbers = #tpu.dot_dimension_numbers<[1], [0], [0], [1], [0, 0, 1, 1], [], []>} : vector<32x64xf32>, vector<64x1xf32>, vector<32x1xf32> -> vector<32x1xf32>
    %415 = arith.addf %410, %414 : vector<32x1xf32>
    %416 = vector.shape_cast %415 : vector<32x1xf32> to vector<32x1xf32>
    %417 = vector.broadcast %416 : vector<32x1xf32> to vector<32x3xf32>
    %c0_197 = arith.constant 0 : index
    %c0_198 = arith.constant 0 : index
    %c0_199 = arith.constant 0 : index
    %418 = vector.load %arg30[%c0_197, %c0_198, %c0_199] : memref<1x68x3xf32, #tpu.memory_space<vmem>>, vector<1x32x3xf32>
    %419 = vector.shape_cast %418 : vector<1x32x3xf32> to vector<32x3xf32>
    %420 = vector.shape_cast %417 : vector<32x3xf32> to vector<1x32x3xf32>
    tpu.vector_store %arg30[%c0_197, %c0_198, %c0_199], %420 {strides = array<i32>} : memref<1x68x3xf32, #tpu.memory_space<vmem>>, vector<1x32x3xf32>,
    %c0_200 = arith.constant 0 : index
    %c32 = arith.constant 32 : index
    %c0_201 = arith.constant 0 : index
    %421 = vector.load %arg30[%c0_200, %c32, %c0_201] : memref<1x68x3xf32, #tpu.memory_space<vmem>>, vector<1x24x3xf32>
    %422 = vector.shape_cast %421 : vector<1x24x3xf32> to vector<24x3xf32>
    %423 = vector.shape_cast %261 : vector<24x3xf32> to vector<1x24x3xf32>
    tpu.vector_store %arg30[%c0_200, %c32, %c0_201], %423 {strides = array<i32>} : memref<1x68x3xf32, #tpu.memory_space<vmem>>, vector<1x24x3xf32>,
    %c0_202 = arith.constant 0 : index
    %c56 = arith.constant 56 : index
    %c0_203 = arith.constant 0 : index
    %424 = vector.load %arg30[%c0_202, %c56, %c0_203] : memref<1x68x3xf32, #tpu.memory_space<vmem>>, vector<1x12x3xf32>
    %425 = vector.shape_cast %424 : vector<1x12x3xf32> to vector<12x3xf32>
    %426 = vector.shape_cast %383 : vector<12x3xf32> to vector<1x12x3xf32>
    tpu.vector_store %arg30[%c0_202, %c56, %c0_203], %426 {strides = array<i32>} : memref<1x68x3xf32, #tpu.memory_space<vmem>>, vector<1x12x3xf32>,
    return
  }
  func.func @transform_0(%arg0: i32) -> (i32, i32, i32) {
    %c0_i32 = arith.constant 0 : i32
    %c0_i32_0 = arith.constant 0 : i32
    %c0_i32_1 = arith.constant 0 : i32
    return %arg0, %c0_i32, %c0_i32_0 : i32, i32, i32
  }
  func.func @transform_1(%arg0: i32) -> (i32, i32, i32) {
    %c0_i32 = arith.constant 0 : i32
    %c0_i32_0 = arith.constant 0 : i32
    %c0_i32_1 = arith.constant 0 : i32
    return %arg0, %c0_i32, %c0_i32_0 : i32, i32, i32
  }
  func.func @transform_2(%arg0: i32) -> (i32, i32) {
    %c0_i32 = arith.constant 0 : i32
    %c0_i32_0 = arith.constant 0 : i32
    %c0_i32_1 = arith.constant 0 : i32
    return %c0_i32, %c0_i32_0 : i32, i32
  }
  func.func @transform_3(%arg0: i32) -> (i32, i32) {
    %c0_i32 = arith.constant 0 : i32
    %c0_i32_0 = arith.constant 0 : i32
    %c0_i32_1 = arith.constant 0 : i32
    return %c0_i32, %c0_i32_0 : i32, i32
  }
  func.func @transform_4(%arg0: i32) -> (i32, i32) {
    %c0_i32 = arith.constant 0 : i32
    %c0_i32_0 = arith.constant 0 : i32
    %c0_i32_1 = arith.constant 0 : i32
    return %c0_i32, %c0_i32_0 : i32, i32
  }
  func.func @transform_5(%arg0: i32) -> (i32, i32) {
    %c0_i32 = arith.constant 0 : i32
    %c0_i32_0 = arith.constant 0 : i32
    %c0_i32_1 = arith.constant 0 : i32
    return %c0_i32, %c0_i32_0 : i32, i32
  }
  func.func @transform_6(%arg0: i32) -> (i32, i32) {
    %c0_i32 = arith.constant 0 : i32
    %c0_i32_0 = arith.constant 0 : i32
    %c0_i32_1 = arith.constant 0 : i32
    return %c0_i32, %c0_i32_0 : i32, i32
  }
  func.func @transform_7(%arg0: i32) -> (i32, i32) {
    %c0_i32 = arith.constant 0 : i32
    %c0_i32_0 = arith.constant 0 : i32
    %c0_i32_1 = arith.constant 0 : i32
    return %c0_i32, %c0_i32_0 : i32, i32
  }
  func.func @transform_8(%arg0: i32) -> (i32, i32, i32) {
    %c0_i32 = arith.constant 0 : i32
    %c0_i32_0 = arith.constant 0 : i32
    %c0_i32_1 = arith.constant 0 : i32
    %c0_i32_2 = arith.constant 0 : i32
    return %c0_i32, %c0_i32_0, %c0_i32_1 : i32, i32, i32
  }
  func.func @transform_9(%arg0: i32) -> (i32, i32) {
    %c0_i32 = arith.constant 0 : i32
    %c0_i32_0 = arith.constant 0 : i32
    %c0_i32_1 = arith.constant 0 : i32
    return %c0_i32, %c0_i32_0 : i32, i32
  }
  func.func @transform_10(%arg0: i32) -> (i32, i32) {
    %c0_i32 = arith.constant 0 : i32
    %c0_i32_0 = arith.constant 0 : i32
    %c0_i32_1 = arith.constant 0 : i32
    return %c0_i32, %c0_i32_0 : i32, i32
  }
  func.func @transform_11(%arg0: i32) -> (i32, i32) {
    %c0_i32 = arith.constant 0 : i32
    %c0_i32_0 = arith.constant 0 : i32
    %c0_i32_1 = arith.constant 0 : i32
    return %c0_i32, %c0_i32_0 : i32, i32
  }
  func.func @transform_12(%arg0: i32) -> (i32, i32, i32) {
    %c0_i32 = arith.constant 0 : i32
    %c0_i32_0 = arith.constant 0 : i32
    %c0_i32_1 = arith.constant 0 : i32
    %c0_i32_2 = arith.constant 0 : i32
    return %c0_i32, %c0_i32_0, %c0_i32_1 : i32, i32, i32
  }
  func.func @transform_13(%arg0: i32) -> (i32, i32) {
    %c0_i32 = arith.constant 0 : i32
    %c0_i32_0 = arith.constant 0 : i32
    %c0_i32_1 = arith.constant 0 : i32
    return %c0_i32, %c0_i32_0 : i32, i32
  }
  func.func @transform_14(%arg0: i32) -> (i32, i32) {
    %c0_i32 = arith.constant 0 : i32
    %c0_i32_0 = arith.constant 0 : i32
    %c0_i32_1 = arith.constant 0 : i32
    return %c0_i32, %c0_i32_0 : i32, i32
  }
  func.func @transform_15(%arg0: i32) -> (i32, i32) {
    %c0_i32 = arith.constant 0 : i32
    %c0_i32_0 = arith.constant 0 : i32
    %c0_i32_1 = arith.constant 0 : i32
    return %c0_i32, %c0_i32_0 : i32, i32
  }
  func.func @transform_16(%arg0: i32) -> (i32, i32, i32) {
    %c0_i32 = arith.constant 0 : i32
    %c0_i32_0 = arith.constant 0 : i32
    %c0_i32_1 = arith.constant 0 : i32
    %c0_i32_2 = arith.constant 0 : i32
    return %c0_i32, %c0_i32_0, %c0_i32_1 : i32, i32, i32
  }
  func.func @transform_17(%arg0: i32) -> (i32, i32) {
    %c0_i32 = arith.constant 0 : i32
    %c0_i32_0 = arith.constant 0 : i32
    %c0_i32_1 = arith.constant 0 : i32
    return %c0_i32, %c0_i32_0 : i32, i32
  }
  func.func @transform_18(%arg0: i32) -> (i32, i32, i32) {
    %c0_i32 = arith.constant 0 : i32
    %c0_i32_0 = arith.constant 0 : i32
    %c0_i32_1 = arith.constant 0 : i32
    %c0_i32_2 = arith.constant 0 : i32
    return %c0_i32, %c0_i32_0, %c0_i32_1 : i32, i32, i32
  }
  func.func @transform_19(%arg0: i32) -> (i32, i32) {
    %c0_i32 = arith.constant 0 : i32
    %c0_i32_0 = arith.constant 0 : i32
    %c0_i32_1 = arith.constant 0 : i32
    return %c0_i32, %c0_i32_0 : i32, i32
  }
  func.func @transform_20(%arg0: i32) -> (i32, i32) {
    %c0_i32 = arith.constant 0 : i32
    %c0_i32_0 = arith.constant 0 : i32
    %c0_i32_1 = arith.constant 0 : i32
    return %c0_i32, %c0_i32_0 : i32, i32
  }
  func.func @transform_21(%arg0: i32) -> (i32, i32) {
    %c0_i32 = arith.constant 0 : i32
    %c0_i32_0 = arith.constant 0 : i32
    %c0_i32_1 = arith.constant 0 : i32
    return %c0_i32, %c0_i32_0 : i32, i32
  }
  func.func @transform_22(%arg0: i32) -> (i32, i32, i32) {
    %c0_i32 = arith.constant 0 : i32
    %c0_i32_0 = arith.constant 0 : i32
    %c0_i32_1 = arith.constant 0 : i32
    %c0_i32_2 = arith.constant 0 : i32
    return %c0_i32, %c0_i32_0, %c0_i32_1 : i32, i32, i32
  }
  func.func @transform_23(%arg0: i32) -> (i32, i32) {
    %c0_i32 = arith.constant 0 : i32
    %c0_i32_0 = arith.constant 0 : i32
    %c0_i32_1 = arith.constant 0 : i32
    return %c0_i32, %c0_i32_0 : i32, i32
  }
  func.func @transform_24(%arg0: i32) -> (i32, i32, i32) {
    %c0_i32 = arith.constant 0 : i32
    %c0_i32_0 = arith.constant 0 : i32
    %c0_i32_1 = arith.constant 0 : i32
    %c0_i32_2 = arith.constant 0 : i32
    return %c0_i32, %c0_i32_0, %c0_i32_1 : i32, i32, i32
  }
  func.func @transform_25(%arg0: i32) -> (i32, i32) {
    %c0_i32 = arith.constant 0 : i32
    %c0_i32_0 = arith.constant 0 : i32
    %c0_i32_1 = arith.constant 0 : i32
    return %c0_i32, %c0_i32_0 : i32, i32
  }
  func.func @transform_26(%arg0: i32) -> (i32, i32) {
    %c0_i32 = arith.constant 0 : i32
    %c0_i32_0 = arith.constant 0 : i32
    %c0_i32_1 = arith.constant 0 : i32
    return %c0_i32, %c0_i32_0 : i32, i32
  }
  func.func @transform_27(%arg0: i32) -> (i32, i32, i32) {
    %c0_i32 = arith.constant 0 : i32
    %c0_i32_0 = arith.constant 0 : i32
    %c0_i32_1 = arith.constant 0 : i32
    %c0_i32_2 = arith.constant 0 : i32
    return %c0_i32, %c0_i32_0, %c0_i32_1 : i32, i32, i32
  }
  func.func @transform_28(%arg0: i32) -> (i32, i32) {
    %c0_i32 = arith.constant 0 : i32
    %c0_i32_0 = arith.constant 0 : i32
    %c0_i32_1 = arith.constant 0 : i32
    return %c0_i32, %c0_i32_0 : i32, i32
  }
  func.func @transform_29(%arg0: i32) -> (i32, i32, i32) {
    %c0_i32 = arith.constant 0 : i32
    %c0_i32_0 = arith.constant 0 : i32
    %c0_i32_1 = arith.constant 0 : i32
    return %arg0, %c0_i32, %c0_i32_0 : i32, i32, i32
  }
}

module attributes {stable_mosaic.version = 11 : i64} {
  func.func @kernel(%arg0: i32, %arg1: memref<1x12x48xf32, #tpu.memory_space<vmem>>, %arg2: memref<1x36x1xf32, #tpu.memory_space<vmem>>, %arg3: memref<48x48xf32, #tpu.memory_space<vmem>>, %arg4: memref<32x12xf32, #tpu.memory_space<vmem>>, %arg5: memref<32x1xf32, #tpu.memory_space<vmem>>, %arg6: memref<48x48xf32, #tpu.memory_space<vmem>>, %arg7: memref<32x32xf32, #tpu.memory_space<vmem>>, %arg8: memref<32x1xf32, #tpu.memory_space<vmem>>, %arg9: memref<2x32x48xf32, #tpu.memory_space<vmem>>, %arg10: memref<24x24xf32, #tpu.memory_space<vmem>>, %arg11: memref<64x32xf32, #tpu.memory_space<vmem>>, %arg12: memref<64x1xf32, #tpu.memory_space<vmem>>, %arg13: memref<2x64x24xf32, #tpu.memory_space<vmem>>, %arg14: memref<64x32xf32, #tpu.memory_space<vmem>>, %arg15: memref<64x1xf32, #tpu.memory_space<vmem>>, %arg16: memref<24x18xf32, #tpu.memory_space<vmem>>, %arg17: memref<6x128x64xf32, #tpu.memory_space<vmem>>, %arg18: memref<128x1xf32, #tpu.memory_space<vmem>>, %arg19: memref<2x128x3xf32, #tpu.memory_space<vmem>>, %arg20: memref<24x128xf32, #tpu.memory_space<vmem>>, %arg21: memref<24x1xf32, #tpu.memory_space<vmem>>, %arg22: memref<24x9xf32, #tpu.memory_space<vmem>>, %arg23: memref<3x64x64xf32, #tpu.memory_space<vmem>>, %arg24: memref<64x1xf32, #tpu.memory_space<vmem>>, %arg25: memref<2x64x3xf32, #tpu.memory_space<vmem>>, %arg26: memref<12x64xf32, #tpu.memory_space<vmem>>, %arg27: memref<12x1xf32, #tpu.memory_space<vmem>>, %arg28: memref<3x32x64xf32, #tpu.memory_space<vmem>>, %arg29: memref<32x1xf32, #tpu.memory_space<vmem>>, %arg30: memref<1x68x3xf32, #tpu.memory_space<vmem>>) attributes {dimension_semantics = [#tpu.dimension_semantics<parallel>], iteration_bounds = array<i64: 2>, scalar_prefetch = 0 : i64, scratch_operands = 0 : i64, tpu.core_type = #tpu.core_type<tc>, window_params = [{transform_indices = @transform_0, window_bounds = array<i64: 1, 12, 48>}, {transform_indices = @transform_1, window_bounds = array<i64: 1, 36, 1>}, {pipeline_mode = #tpu.pipeline_mode<synchronous>, transform_indices = @transform_2, window_bounds = array<i64: 48, 48>}, {pipeline_mode = #tpu.pipeline_mode<synchronous>, transform_indices = @transform_3, window_bounds = array<i64: 32, 12>}, {pipeline_mode = #tpu.pipeline_mode<synchronous>, transform_indices = @transform_4, window_bounds = array<i64: 32, 1>}, {pipeline_mode = #tpu.pipeline_mode<synchronous>, transform_indices = @transform_5, window_bounds = array<i64: 48, 48>}, {pipeline_mode = #tpu.pipeline_mode<synchronous>, transform_indices = @transform_6, window_bounds = array<i64: 32, 32>}, {pipeline_mode = #tpu.pipeline_mode<synchronous>, transform_indices = @transform_7, window_bounds = array<i64: 32, 1>}, {pipeline_mode = #tpu.pipeline_mode<synchronous>, transform_indices = @transform_8, window_bounds = array<i64: 2, 32, 48>}, {pipeline_mode = #tpu.pipeline_mode<synchronous>, transform_indices = @transform_9, window_bounds = array<i64: 24, 24>}, {pipeline_mode = #tpu.pipeline_mode<synchronous>, transform_indices = @transform_10, window_bounds = array<i64: 64, 32>}, {pipeline_mode = #tpu.pipeline_mode<synchronous>, transform_indices = @transform_11, window_bounds = array<i64: 64, 1>}, {pipeline_mode = #tpu.pipeline_mode<synchronous>, transform_indices = @transform_12, window_bounds = array<i64: 2, 64, 24>}, {pipeline_mode = #tpu.pipeline_mode<synchronous>, transform_indices = @transform_13, window_bounds = array<i64: 64, 32>}, {pipeline_mode = #tpu.pipeline_mode<synchronous>, transform_indices = @transform_14, window_bounds = array<i64: 64, 1>}, {pipeline_mode = #tpu.pipeline_mode<synchronous>, transform_indices = @transform_15, window_bounds = array<i64: 24, 18>}, {pipeline_mode = #tpu.pipeline_mode<synchronous>, transform_indices = @transform_16, window_bounds = array<i64: 6, 128, 64>}, {pipeline_mode = #tpu.pipeline_mode<synchronous>, transform_indices = @transform_17, window_bounds = array<i64: 128, 1>}, {pipeline_mode = #tpu.pipeline_mode<synchronous>, transform_indices = @transform_18, window_bounds = array<i64: 2, 128, 3>}, {pipeline_mode = #tpu.pipeline_mode<synchronous>, transform_indices = @transform_19, window_bounds = array<i64: 24, 128>}, {pipeline_mode = #tpu.pipeline_mode<synchronous>, transform_indices = @transform_20, window_bounds = array<i64: 24, 1>}, {pipeline_mode = #tpu.pipeline_mode<synchronous>, transform_indices = @transform_21, window_bounds = array<i64: 24, 9>}, {pipeline_mode = #tpu.pipeline_mode<synchronous>, transform_indices = @transform_22, window_bounds = array<i64: 3, 64, 64>}, {pipeline_mode = #tpu.pipeline_mode<synchronous>, transform_indices = @transform_23, window_bounds = array<i64: 64, 1>}, {pipeline_mode = #tpu.pipeline_mode<synchronous>, transform_indices = @transform_24, window_bounds = array<i64: 2, 64, 3>}, {pipeline_mode = #tpu.pipeline_mode<synchronous>, transform_indices = @transform_25, window_bounds = array<i64: 12, 64>}, {pipeline_mode = #tpu.pipeline_mode<synchronous>, transform_indices = @transform_26, window_bounds = array<i64: 12, 1>}, {pipeline_mode = #tpu.pipeline_mode<synchronous>, transform_indices = @transform_27, window_bounds = array<i64: 3, 32, 64>}, {pipeline_mode = #tpu.pipeline_mode<synchronous>, transform_indices = @transform_28, window_bounds = array<i64: 32, 1>}, {transform_indices = @transform_29, window_bounds = array<i64: 1, 68, 3>}]} {
    %c0 = arith.constant 0 : index
    %c0_0 = arith.constant 0 : index
    %c0_1 = arith.constant 0 : index
    %0 = vector.load %arg1[%c0, %c0_0, %c0_1] : memref<1x12x48xf32, #tpu.memory_space<vmem>>, vector<1x12x48xf32>
    %1 = vector.shape_cast %0 : vector<1x12x48xf32> to vector<12x48xf32>
    %c0_2 = arith.constant 0 : index
    %c0_3 = arith.constant 0 : index
    %c0_4 = arith.constant 0 : index
    %2 = vector.load %arg2[%c0_2, %c0_3, %c0_4] : memref<1x36x1xf32, #tpu.memory_space<vmem>>, vector<1x36x1xf32>
    %3 = vector.shape_cast %2 : vector<1x36x1xf32> to vector<36x1xf32>
    %c0_5 = arith.constant 0 : index
    %c0_6 = arith.constant 0 : index
    %4 = vector.load %arg3[%c0_5, %c0_6] : memref<48x48xf32, #tpu.memory_space<vmem>>, vector<48x48xf32>
    %c0_7 = arith.constant 0 : index
    %c0_8 = arith.constant 0 : index
    %5 = vector.load %arg4[%c0_7, %c0_8] : memref<32x12xf32, #tpu.memory_space<vmem>>, vector<32x12xf32>
    %c0_9 = arith.constant 0 : index
    %c0_10 = arith.constant 0 : index
    %6 = vector.load %arg5[%c0_9, %c0_10] : memref<32x1xf32, #tpu.memory_space<vmem>>, vector<32x1xf32>
    %cst = arith.constant dense<0.000000e+00> : vector<12x48xf32>
    %7 = tpu.matmul %1, %4, %cst {dimension_numbers = #tpu.dot_dimension_numbers<[1], [0], [0], [1], [0, 0, 1, 1], [], []>} : vector<12x48xf32>, vector<48x48xf32>, vector<12x48xf32> -> vector<12x48xf32>
    %cst_11 = arith.constant dense<0.000000e+00> : vector<32x48xf32>
    %8 = tpu.matmul %5, %7, %cst_11 {dimension_numbers = #tpu.dot_dimension_numbers<[1], [0], [0], [1], [0, 0, 1, 1], [], []>} : vector<32x12xf32>, vector<12x48xf32>, vector<32x48xf32> -> vector<32x48xf32>
    %9 = vector.broadcast %6 : vector<32x1xf32> to vector<32x48xf32>
    %10 = arith.addf %8, %9 : vector<32x48xf32>
    %c0_12 = arith.constant 0 : index
    %c0_13 = arith.constant 0 : index
    %11 = vector.load %arg6[%c0_12, %c0_13] : memref<48x48xf32, #tpu.memory_space<vmem>>, vector<48x48xf32>
    %c0_14 = arith.constant 0 : index
    %c0_15 = arith.constant 0 : index
    %12 = vector.load %arg7[%c0_14, %c0_15] : memref<32x32xf32, #tpu.memory_space<vmem>>, vector<32x32xf32>
    %c0_16 = arith.constant 0 : index
    %c0_17 = arith.constant 0 : index
    %13 = vector.load %arg8[%c0_16, %c0_17] : memref<32x1xf32, #tpu.memory_space<vmem>>, vector<32x1xf32>
    %cst_18 = arith.constant dense<0.000000e+00> : vector<32x48xf32>
    %14 = tpu.matmul %10, %11, %cst_18 {dimension_numbers = #tpu.dot_dimension_numbers<[1], [0], [0], [1], [0, 0, 1, 1], [], []>} : vector<32x48xf32>, vector<48x48xf32>, vector<32x48xf32> -> vector<32x48xf32>
    %cst_19 = arith.constant dense<0.000000e+00> : vector<32x48xf32>
    %15 = tpu.matmul %12, %14, %cst_19 {dimension_numbers = #tpu.dot_dimension_numbers<[1], [0], [0], [1], [0, 0, 1, 1], [], []>} : vector<32x32xf32>, vector<32x48xf32>, vector<32x48xf32> -> vector<32x48xf32>
    %16 = vector.broadcast %13 : vector<32x1xf32> to vector<32x48xf32>
    %17 = arith.addf %15, %16 : vector<32x48xf32>
    %c0_20 = arith.constant 0 : index
    %c0_21 = arith.constant 0 : index
    %c0_22 = arith.constant 0 : index
    %18 = vector.load %arg9[%c0_20, %c0_21, %c0_22] : memref<2x32x48xf32, #tpu.memory_space<vmem>>, vector<1x32x48xf32>
    %19 = vector.shape_cast %18 : vector<1x32x48xf32> to vector<32x48xf32>
    %c1 = arith.constant 1 : index
    %c0_23 = arith.constant 0 : index
    %c0_24 = arith.constant 0 : index
    %20 = vector.load %arg9[%c1, %c0_23, %c0_24] : memref<2x32x48xf32, #tpu.memory_space<vmem>>, vector<1x32x48xf32>
    %21 = vector.shape_cast %20 : vector<1x32x48xf32> to vector<32x48xf32>
    %22 = tpu.iota {dimensions = array<i32: 0>} : vector<32x32xi32>
    %c0_i32 = arith.constant 0 : i32
    %23 = vector.broadcast %c0_i32 : i32 to vector<32x32xi32>
    %c8_i32 = arith.constant 8 : i32
    %24 = vector.broadcast %c8_i32 : i32 to vector<32x32xi32>
    %25 = arith.cmpi sge, %22, %24 : vector<32x32xi32>
    %26 = arith.extui %25 : vector<32x32xi1> to vector<32x32xi32>
    %27 = arith.addi %23, %26 : vector<32x32xi32>
    %c16_i32 = arith.constant 16 : i32
    %28 = vector.broadcast %c16_i32 : i32 to vector<32x32xi32>
    %29 = arith.cmpi sge, %22, %28 : vector<32x32xi32>
    %30 = arith.extui %29 : vector<32x32xi1> to vector<32x32xi32>
    %31 = arith.addi %27, %30 : vector<32x32xi32>
    %c24_i32 = arith.constant 24 : i32
    %32 = vector.broadcast %c24_i32 : i32 to vector<32x32xi32>
    %33 = arith.cmpi sge, %22, %32 : vector<32x32xi32>
    %34 = arith.extui %33 : vector<32x32xi1> to vector<32x32xi32>
    %35 = arith.addi %31, %34 : vector<32x32xi32>
    %36 = tpu.iota {dimensions = array<i32: 1>} : vector<32x32xi32>
    %c0_i32_25 = arith.constant 0 : i32
    %37 = vector.broadcast %c0_i32_25 : i32 to vector<32x32xi32>
    %c8_i32_26 = arith.constant 8 : i32
    %38 = vector.broadcast %c8_i32_26 : i32 to vector<32x32xi32>
    %39 = arith.cmpi sge, %36, %38 : vector<32x32xi32>
    %40 = arith.extui %39 : vector<32x32xi1> to vector<32x32xi32>
    %41 = arith.addi %37, %40 : vector<32x32xi32>
    %c16_i32_27 = arith.constant 16 : i32
    %42 = vector.broadcast %c16_i32_27 : i32 to vector<32x32xi32>
    %43 = arith.cmpi sge, %36, %42 : vector<32x32xi32>
    %44 = arith.extui %43 : vector<32x32xi1> to vector<32x32xi32>
    %45 = arith.addi %41, %44 : vector<32x32xi32>
    %c24_i32_28 = arith.constant 24 : i32
    %46 = vector.broadcast %c24_i32_28 : i32 to vector<32x32xi32>
    %47 = arith.cmpi sge, %36, %46 : vector<32x32xi32>
    %48 = arith.extui %47 : vector<32x32xi1> to vector<32x32xi32>
    %49 = arith.addi %45, %48 : vector<32x32xi32>
    %50 = arith.cmpi eq, %35, %49 : vector<32x32xi32>
    %cst_29 = arith.constant 0.00260416674 : f32
    %cst_30 = arith.constant 0.000000e+00 : f32
    %51 = vector.broadcast %cst_29 : f32 to vector<32x32xf32>
    %52 = vector.broadcast %cst_30 : f32 to vector<32x32xf32>
    %53 = arith.select %50, %51, %52 : vector<32x32xi1>, vector<32x32xf32>
    %cst_31 = arith.constant dense<0.000000e+00> : vector<32xf32>
    %54 = vector.multi_reduction <add>, %17, %cst_31 [1] : vector<32x48xf32> to vector<32xf32>
    %55 = vector.shape_cast %54 : vector<32xf32> to vector<32x1xf32>
    %56 = arith.mulf %17, %17 : vector<32x48xf32>
    %cst_32 = arith.constant dense<0.000000e+00> : vector<32xf32>
    %57 = vector.multi_reduction <add>, %56, %cst_32 [1] : vector<32x48xf32> to vector<32xf32>
    %58 = vector.shape_cast %57 : vector<32xf32> to vector<32x1xf32>
    %cst_33 = arith.constant dense<0.000000e+00> : vector<32x1xf32>
    %59 = tpu.matmul %53, %55, %cst_33 {dimension_numbers = #tpu.dot_dimension_numbers<[1], [0], [0], [1], [0, 0, 1, 1], [], []>} : vector<32x32xf32>, vector<32x1xf32>, vector<32x1xf32> -> vector<32x1xf32>
    %cst_34 = arith.constant dense<0.000000e+00> : vector<32x1xf32>
    %60 = tpu.matmul %53, %58, %cst_34 {dimension_numbers = #tpu.dot_dimension_numbers<[1], [0], [0], [1], [0, 0, 1, 1], [], []>} : vector<32x32xf32>, vector<32x1xf32>, vector<32x1xf32> -> vector<32x1xf32>
    %61 = arith.mulf %59, %59 : vector<32x1xf32>
    %62 = arith.subf %60, %61 : vector<32x1xf32>
    %cst_35 = arith.constant 0.000000e+00 : f32
    %63 = vector.broadcast %cst_35 : f32 to vector<32x1xf32>
    %64 = arith.maximumf %62, %63 : vector<32x1xf32>
    %65 = vector.broadcast %59 : vector<32x1xf32> to vector<32x48xf32>
    %66 = arith.subf %17, %65 : vector<32x48xf32>
    %cst_36 = arith.constant 9.99999974E-6 : f32
    %67 = vector.broadcast %cst_36 : f32 to vector<32x1xf32>
    %68 = arith.addf %64, %67 : vector<32x1xf32>
    %69 = math.rsqrt %68 : vector<32x1xf32>
    %70 = vector.broadcast %69 : vector<32x1xf32> to vector<32x48xf32>
    %71 = arith.mulf %66, %70 : vector<32x48xf32>
    %72 = arith.mulf %71, %19 : vector<32x48xf32>
    %73 = arith.addf %72, %21 : vector<32x48xf32>
    %74 = math.tanh %73 : vector<32x48xf32>
    %75 = arith.addf %74, %10 : vector<32x48xf32>
    %76 = tpu.iota {dimensions = array<i32: 0>} : vector<48x24xi32>
    %77 = tpu.iota {dimensions = array<i32: 1>} : vector<48x24xi32>
    %c2_i32 = arith.constant 2 : i32
    %78 = vector.broadcast %c2_i32 : i32 to vector<48x24xi32>
    %79 = arith.muli %78, %77 : vector<48x24xi32>
    %80 = arith.cmpi sge, %76, %79 : vector<48x24xi32>
    %c2_i32_37 = arith.constant 2 : i32
    %81 = vector.broadcast %c2_i32_37 : i32 to vector<48x24xi32>
    %82 = arith.muli %81, %77 : vector<48x24xi32>
    %c1_i32 = arith.constant 1 : i32
    %83 = vector.broadcast %c1_i32 : i32 to vector<48x24xi32>
    %84 = arith.addi %82, %83 : vector<48x24xi32>
    %85 = arith.cmpi sle, %76, %84 : vector<48x24xi32>
    %86 = arith.andi %80, %85 : vector<48x24xi1>
    %cst_38 = arith.constant 5.000000e-01 : f32
    %cst_39 = arith.constant 0.000000e+00 : f32
    %87 = vector.broadcast %cst_38 : f32 to vector<48x24xf32>
    %88 = vector.broadcast %cst_39 : f32 to vector<48x24xf32>
    %89 = arith.select %86, %87, %88 : vector<48x24xi1>, vector<48x24xf32>
    %cst_40 = arith.constant dense<0.000000e+00> : vector<32x24xf32>
    %90 = tpu.matmul %75, %89, %cst_40 {dimension_numbers = #tpu.dot_dimension_numbers<[1], [0], [0], [1], [0, 0, 1, 1], [], []>} : vector<32x48xf32>, vector<48x24xf32>, vector<32x24xf32> -> vector<32x24xf32>
    %c0_41 = arith.constant 0 : index
    %c0_42 = arith.constant 0 : index
    %91 = vector.load %arg14[%c0_41, %c0_42] : memref<64x32xf32, #tpu.memory_space<vmem>>, vector<64x32xf32>
    %cst_43 = arith.constant dense<0.000000e+00> : vector<64x24xf32>
    %92 = tpu.matmul %91, %90, %cst_43 {dimension_numbers = #tpu.dot_dimension_numbers<[1], [0], [0], [1], [0, 0, 1, 1], [], []>} : vector<64x32xf32>, vector<32x24xf32>, vector<64x24xf32> -> vector<64x24xf32>
    %c0_44 = arith.constant 0 : index
    %c0_45 = arith.constant 0 : index
    %93 = vector.load %arg15[%c0_44, %c0_45] : memref<64x1xf32, #tpu.memory_space<vmem>>, vector<64x1xf32>
    %94 = vector.broadcast %93 : vector<64x1xf32> to vector<64x24xf32>
    %95 = arith.addf %92, %94 : vector<64x24xf32>
    %c0_46 = arith.constant 0 : index
    %c0_47 = arith.constant 0 : index
    %96 = vector.load %arg10[%c0_46, %c0_47] : memref<24x24xf32, #tpu.memory_space<vmem>>, vector<24x24xf32>
    %c0_48 = arith.constant 0 : index
    %c0_49 = arith.constant 0 : index
    %97 = vector.load %arg11[%c0_48, %c0_49] : memref<64x32xf32, #tpu.memory_space<vmem>>, vector<64x32xf32>
    %c0_50 = arith.constant 0 : index
    %c0_51 = arith.constant 0 : index
    %98 = vector.load %arg12[%c0_50, %c0_51] : memref<64x1xf32, #tpu.memory_space<vmem>>, vector<64x1xf32>
    %cst_52 = arith.constant dense<0.000000e+00> : vector<32x24xf32>
    %99 = tpu.matmul %90, %96, %cst_52 {dimension_numbers = #tpu.dot_dimension_numbers<[1], [0], [0], [1], [0, 0, 1, 1], [], []>} : vector<32x24xf32>, vector<24x24xf32>, vector<32x24xf32> -> vector<32x24xf32>
    %cst_53 = arith.constant dense<0.000000e+00> : vector<64x24xf32>
    %100 = tpu.matmul %97, %99, %cst_53 {dimension_numbers = #tpu.dot_dimension_numbers<[1], [0], [0], [1], [0, 0, 1, 1], [], []>} : vector<64x32xf32>, vector<32x24xf32>, vector<64x24xf32> -> vector<64x24xf32>
    %101 = vector.broadcast %98 : vector<64x1xf32> to vector<64x24xf32>
    %102 = arith.addf %100, %101 : vector<64x24xf32>
    %c0_54 = arith.constant 0 : index
    %c0_55 = arith.constant 0 : index
    %c0_56 = arith.constant 0 : index
    %103 = vector.load %arg13[%c0_54, %c0_55, %c0_56] : memref<2x64x24xf32, #tpu.memory_space<vmem>>, vector<1x64x24xf32>
    %104 = vector.shape_cast %103 : vector<1x64x24xf32> to vector<64x24xf32>
    %c1_57 = arith.constant 1 : index
    %c0_58 = arith.constant 0 : index
    %c0_59 = arith.constant 0 : index
    %105 = vector.load %arg13[%c1_57, %c0_58, %c0_59] : memref<2x64x24xf32, #tpu.memory_space<vmem>>, vector<1x64x24xf32>
    %106 = vector.shape_cast %105 : vector<1x64x24xf32> to vector<64x24xf32>
    %107 = tpu.iota {dimensions = array<i32: 0>} : vector<64x64xi32>
    %c0_i32_60 = arith.constant 0 : i32
    %108 = vector.broadcast %c0_i32_60 : i32 to vector<64x64xi32>
    %c16_i32_61 = arith.constant 16 : i32
    %109 = vector.broadcast %c16_i32_61 : i32 to vector<64x64xi32>
    %110 = arith.cmpi sge, %107, %109 : vector<64x64xi32>
    %111 = arith.extui %110 : vector<64x64xi1> to vector<64x64xi32>
    %112 = arith.addi %108, %111 : vector<64x64xi32>
    %c32_i32 = arith.constant 32 : i32
    %113 = vector.broadcast %c32_i32 : i32 to vector<64x64xi32>
    %114 = arith.cmpi sge, %107, %113 : vector<64x64xi32>
    %115 = arith.extui %114 : vector<64x64xi1> to vector<64x64xi32>
    %116 = arith.addi %112, %115 : vector<64x64xi32>
    %c48_i32 = arith.constant 48 : i32
    %117 = vector.broadcast %c48_i32 : i32 to vector<64x64xi32>
    %118 = arith.cmpi sge, %107, %117 : vector<64x64xi32>
    %119 = arith.extui %118 : vector<64x64xi1> to vector<64x64xi32>
    %120 = arith.addi %116, %119 : vector<64x64xi32>
    %121 = tpu.iota {dimensions = array<i32: 1>} : vector<64x64xi32>
    %c0_i32_62 = arith.constant 0 : i32
    %122 = vector.broadcast %c0_i32_62 : i32 to vector<64x64xi32>
    %c16_i32_63 = arith.constant 16 : i32
    %123 = vector.broadcast %c16_i32_63 : i32 to vector<64x64xi32>
    %124 = arith.cmpi sge, %121, %123 : vector<64x64xi32>
    %125 = arith.extui %124 : vector<64x64xi1> to vector<64x64xi32>
    %126 = arith.addi %122, %125 : vector<64x64xi32>
    %c32_i32_64 = arith.constant 32 : i32
    %127 = vector.broadcast %c32_i32_64 : i32 to vector<64x64xi32>
    %128 = arith.cmpi sge, %121, %127 : vector<64x64xi32>
    %129 = arith.extui %128 : vector<64x64xi1> to vector<64x64xi32>
    %130 = arith.addi %126, %129 : vector<64x64xi32>
    %c48_i32_65 = arith.constant 48 : i32
    %131 = vector.broadcast %c48_i32_65 : i32 to vector<64x64xi32>
    %132 = arith.cmpi sge, %121, %131 : vector<64x64xi32>
    %133 = arith.extui %132 : vector<64x64xi1> to vector<64x64xi32>
    %134 = arith.addi %130, %133 : vector<64x64xi32>
    %135 = arith.cmpi eq, %120, %134 : vector<64x64xi32>
    %cst_66 = arith.constant 0.00260416674 : f32
    %cst_67 = arith.constant 0.000000e+00 : f32
    %136 = vector.broadcast %cst_66 : f32 to vector<64x64xf32>
    %137 = vector.broadcast %cst_67 : f32 to vector<64x64xf32>
    %138 = arith.select %135, %136, %137 : vector<64x64xi1>, vector<64x64xf32>
    %cst_68 = arith.constant dense<0.000000e+00> : vector<64xf32>
    %139 = vector.multi_reduction <add>, %102, %cst_68 [1] : vector<64x24xf32> to vector<64xf32>
    %140 = vector.shape_cast %139 : vector<64xf32> to vector<64x1xf32>
    %141 = arith.mulf %102, %102 : vector<64x24xf32>
    %cst_69 = arith.constant dense<0.000000e+00> : vector<64xf32>
    %142 = vector.multi_reduction <add>, %141, %cst_69 [1] : vector<64x24xf32> to vector<64xf32>
    %143 = vector.shape_cast %142 : vector<64xf32> to vector<64x1xf32>
    %cst_70 = arith.constant dense<0.000000e+00> : vector<64x1xf32>
    %144 = tpu.matmul %138, %140, %cst_70 {dimension_numbers = #tpu.dot_dimension_numbers<[1], [0], [0], [1], [0, 0, 1, 1], [], []>} : vector<64x64xf32>, vector<64x1xf32>, vector<64x1xf32> -> vector<64x1xf32>
    %cst_71 = arith.constant dense<0.000000e+00> : vector<64x1xf32>
    %145 = tpu.matmul %138, %143, %cst_71 {dimension_numbers = #tpu.dot_dimension_numbers<[1], [0], [0], [1], [0, 0, 1, 1], [], []>} : vector<64x64xf32>, vector<64x1xf32>, vector<64x1xf32> -> vector<64x1xf32>
    %146 = arith.mulf %144, %144 : vector<64x1xf32>
    %147 = arith.subf %145, %146 : vector<64x1xf32>
    %cst_72 = arith.constant 0.000000e+00 : f32
    %148 = vector.broadcast %cst_72 : f32 to vector<64x1xf32>
    %149 = arith.maximumf %147, %148 : vector<64x1xf32>
    %150 = vector.broadcast %144 : vector<64x1xf32> to vector<64x24xf32>
    %151 = arith.subf %102, %150 : vector<64x24xf32>
    %cst_73 = arith.constant 9.99999974E-6 : f32
    %152 = vector.broadcast %cst_73 : f32 to vector<64x1xf32>
    %153 = arith.addf %149, %152 : vector<64x1xf32>
    %154 = math.rsqrt %153 : vector<64x1xf32>
    %155 = vector.broadcast %154 : vector<64x1xf32> to vector<64x24xf32>
    %156 = arith.mulf %151, %155 : vector<64x24xf32>
    %157 = arith.mulf %156, %104 : vector<64x24xf32>
    %158 = arith.addf %157, %106 : vector<64x24xf32>
    %159 = math.tanh %158 : vector<64x24xf32>
    %160 = arith.addf %159, %95 : vector<64x24xf32>
    %161 = vector.extract_strided_slice %3 {offsets = [0, 0], sizes = [24, 1], strides = [1, 1]} : vector<36x1xf32> to vector<24x1xf32>
    %162 = vector.extract_strided_slice %3 {offsets = [24, 0], sizes = [12, 1], strides = [1, 1]} : vector<36x1xf32> to vector<12x1xf32>
    %c0_74 = arith.constant 0 : index
    %c0_75 = arith.constant 0 : index
    %163 = vector.load %arg16[%c0_74, %c0_75] : memref<24x18xf32, #tpu.memory_space<vmem>>, vector<24x18xf32>
    %cst_76 = arith.constant dense<0.000000e+00> : vector<64x18xf32>
    %164 = tpu.matmul %160, %163, %cst_76 {dimension_numbers = #tpu.dot_dimension_numbers<[1], [0], [0], [1], [0, 0, 1, 1], [], []>} : vector<64x24xf32>, vector<24x18xf32>, vector<64x18xf32> -> vector<64x18xf32>
    %c0_77 = arith.constant 0 : index
    %c0_78 = arith.constant 0 : index
    %165 = vector.load %arg18[%c0_77, %c0_78] : memref<128x1xf32, #tpu.memory_space<vmem>>, vector<128x1xf32>
    %c0_79 = arith.constant 0 : index
    %c0_80 = arith.constant 0 : index
    %c0_81 = arith.constant 0 : index
    %166 = vector.load %arg17[%c0_79, %c0_80, %c0_81] : memref<6x128x64xf32, #tpu.memory_space<vmem>>, vector<1x128x64xf32>
    %167 = vector.shape_cast %166 : vector<1x128x64xf32> to vector<128x64xf32>
    %168 = vector.extract_strided_slice %164 {offsets = [0, 0], sizes = [64, 3], strides = [1, 1]} : vector<64x18xf32> to vector<64x3xf32>
    %cst_82 = arith.constant dense<0.000000e+00> : vector<128x3xf32>
    %169 = tpu.matmul %167, %168, %cst_82 {dimension_numbers = #tpu.dot_dimension_numbers<[1], [0], [0], [1], [0, 0, 1, 1], [], []>} : vector<128x64xf32>, vector<64x3xf32>, vector<128x3xf32> -> vector<128x3xf32>
    %170 = vector.broadcast %165 : vector<128x1xf32> to vector<128x3xf32>
    %171 = arith.addf %170, %169 : vector<128x3xf32>
    %c1_83 = arith.constant 1 : index
    %c0_84 = arith.constant 0 : index
    %c0_85 = arith.constant 0 : index
    %172 = vector.load %arg17[%c1_83, %c0_84, %c0_85] : memref<6x128x64xf32, #tpu.memory_space<vmem>>, vector<1x128x64xf32>
    %173 = vector.shape_cast %172 : vector<1x128x64xf32> to vector<128x64xf32>
    %174 = vector.extract_strided_slice %164 {offsets = [0, 3], sizes = [64, 3], strides = [1, 1]} : vector<64x18xf32> to vector<64x3xf32>
    %cst_86 = arith.constant dense<0.000000e+00> : vector<128x3xf32>
    %175 = tpu.matmul %173, %174, %cst_86 {dimension_numbers = #tpu.dot_dimension_numbers<[1], [0], [0], [1], [0, 0, 1, 1], [], []>} : vector<128x64xf32>, vector<64x3xf32>, vector<128x3xf32> -> vector<128x3xf32>
    %176 = arith.addf %171, %175 : vector<128x3xf32>
    %c2 = arith.constant 2 : index
    %c0_87 = arith.constant 0 : index
    %c0_88 = arith.constant 0 : index
    %177 = vector.load %arg17[%c2, %c0_87, %c0_88] : memref<6x128x64xf32, #tpu.memory_space<vmem>>, vector<1x128x64xf32>
    %178 = vector.shape_cast %177 : vector<1x128x64xf32> to vector<128x64xf32>
    %179 = vector.extract_strided_slice %164 {offsets = [0, 6], sizes = [64, 3], strides = [1, 1]} : vector<64x18xf32> to vector<64x3xf32>
    %cst_89 = arith.constant dense<0.000000e+00> : vector<128x3xf32>
    %180 = tpu.matmul %178, %179, %cst_89 {dimension_numbers = #tpu.dot_dimension_numbers<[1], [0], [0], [1], [0, 0, 1, 1], [], []>} : vector<128x64xf32>, vector<64x3xf32>, vector<128x3xf32> -> vector<128x3xf32>
    %181 = arith.addf %176, %180 : vector<128x3xf32>
    %c3 = arith.constant 3 : index
    %c0_90 = arith.constant 0 : index
    %c0_91 = arith.constant 0 : index
    %182 = vector.load %arg17[%c3, %c0_90, %c0_91] : memref<6x128x64xf32, #tpu.memory_space<vmem>>, vector<1x128x64xf32>
    %183 = vector.shape_cast %182 : vector<1x128x64xf32> to vector<128x64xf32>
    %184 = vector.extract_strided_slice %164 {offsets = [0, 9], sizes = [64, 3], strides = [1, 1]} : vector<64x18xf32> to vector<64x3xf32>
    %cst_92 = arith.constant dense<0.000000e+00> : vector<128x3xf32>
    %185 = tpu.matmul %183, %184, %cst_92 {dimension_numbers = #tpu.dot_dimension_numbers<[1], [0], [0], [1], [0, 0, 1, 1], [], []>} : vector<128x64xf32>, vector<64x3xf32>, vector<128x3xf32> -> vector<128x3xf32>
    %186 = arith.addf %181, %185 : vector<128x3xf32>
    %c4 = arith.constant 4 : index
    %c0_93 = arith.constant 0 : index
    %c0_94 = arith.constant 0 : index
    %187 = vector.load %arg17[%c4, %c0_93, %c0_94] : memref<6x128x64xf32, #tpu.memory_space<vmem>>, vector<1x128x64xf32>
    %188 = vector.shape_cast %187 : vector<1x128x64xf32> to vector<128x64xf32>
    %189 = vector.extract_strided_slice %164 {offsets = [0, 12], sizes = [64, 3], strides = [1, 1]} : vector<64x18xf32> to vector<64x3xf32>
    %cst_95 = arith.constant dense<0.000000e+00> : vector<128x3xf32>
    %190 = tpu.matmul %188, %189, %cst_95 {dimension_numbers = #tpu.dot_dimension_numbers<[1], [0], [0], [1], [0, 0, 1, 1], [], []>} : vector<128x64xf32>, vector<64x3xf32>, vector<128x3xf32> -> vector<128x3xf32>
    %191 = arith.addf %186, %190 : vector<128x3xf32>
    %c5 = arith.constant 5 : index
    %c0_96 = arith.constant 0 : index
    %c0_97 = arith.constant 0 : index
    %192 = vector.load %arg17[%c5, %c0_96, %c0_97] : memref<6x128x64xf32, #tpu.memory_space<vmem>>, vector<1x128x64xf32>
    %193 = vector.shape_cast %192 : vector<1x128x64xf32> to vector<128x64xf32>
    %194 = vector.extract_strided_slice %164 {offsets = [0, 15], sizes = [64, 3], strides = [1, 1]} : vector<64x18xf32> to vector<64x3xf32>
    %cst_98 = arith.constant dense<0.000000e+00> : vector<128x3xf32>
    %195 = tpu.matmul %193, %194, %cst_98 {dimension_numbers = #tpu.dot_dimension_numbers<[1], [0], [0], [1], [0, 0, 1, 1], [], []>} : vector<128x64xf32>, vector<64x3xf32>, vector<128x3xf32> -> vector<128x3xf32>
    %196 = arith.addf %191, %195 : vector<128x3xf32>
    %c0_99 = arith.constant 0 : index
    %c0_100 = arith.constant 0 : index
    %c0_101 = arith.constant 0 : index
    %197 = vector.load %arg19[%c0_99, %c0_100, %c0_101] : memref<2x128x3xf32, #tpu.memory_space<vmem>>, vector<1x128x3xf32>
    %198 = vector.shape_cast %197 : vector<1x128x3xf32> to vector<128x3xf32>
    %c1_102 = arith.constant 1 : index
    %c0_103 = arith.constant 0 : index
    %c0_104 = arith.constant 0 : index
    %199 = vector.load %arg19[%c1_102, %c0_103, %c0_104] : memref<2x128x3xf32, #tpu.memory_space<vmem>>, vector<1x128x3xf32>
    %200 = vector.shape_cast %199 : vector<1x128x3xf32> to vector<128x3xf32>
    %201 = tpu.iota {dimensions = array<i32: 0>} : vector<128x128xi32>
    %c0_i32_105 = arith.constant 0 : i32
    %202 = vector.broadcast %c0_i32_105 : i32 to vector<128x128xi32>
    %c32_i32_106 = arith.constant 32 : i32
    %203 = vector.broadcast %c32_i32_106 : i32 to vector<128x128xi32>
    %204 = arith.cmpi sge, %201, %203 : vector<128x128xi32>
    %205 = arith.extui %204 : vector<128x128xi1> to vector<128x128xi32>
    %206 = arith.addi %202, %205 : vector<128x128xi32>
    %c64_i32 = arith.constant 64 : i32
    %207 = vector.broadcast %c64_i32 : i32 to vector<128x128xi32>
    %208 = arith.cmpi sge, %201, %207 : vector<128x128xi32>
    %209 = arith.extui %208 : vector<128x128xi1> to vector<128x128xi32>
    %210 = arith.addi %206, %209 : vector<128x128xi32>
    %c96_i32 = arith.constant 96 : i32
    %211 = vector.broadcast %c96_i32 : i32 to vector<128x128xi32>
    %212 = arith.cmpi sge, %201, %211 : vector<128x128xi32>
    %213 = arith.extui %212 : vector<128x128xi1> to vector<128x128xi32>
    %214 = arith.addi %210, %213 : vector<128x128xi32>
    %215 = tpu.iota {dimensions = array<i32: 1>} : vector<128x128xi32>
    %c0_i32_107 = arith.constant 0 : i32
    %216 = vector.broadcast %c0_i32_107 : i32 to vector<128x128xi32>
    %c32_i32_108 = arith.constant 32 : i32
    %217 = vector.broadcast %c32_i32_108 : i32 to vector<128x128xi32>
    %218 = arith.cmpi sge, %215, %217 : vector<128x128xi32>
    %219 = arith.extui %218 : vector<128x128xi1> to vector<128x128xi32>
    %220 = arith.addi %216, %219 : vector<128x128xi32>
    %c64_i32_109 = arith.constant 64 : i32
    %221 = vector.broadcast %c64_i32_109 : i32 to vector<128x128xi32>
    %222 = arith.cmpi sge, %215, %221 : vector<128x128xi32>
    %223 = arith.extui %222 : vector<128x128xi1> to vector<128x128xi32>
    %224 = arith.addi %220, %223 : vector<128x128xi32>
    %c96_i32_110 = arith.constant 96 : i32
    %225 = vector.broadcast %c96_i32_110 : i32 to vector<128x128xi32>
    %226 = arith.cmpi sge, %215, %225 : vector<128x128xi32>
    %227 = arith.extui %226 : vector<128x128xi1> to vector<128x128xi32>
    %228 = arith.addi %224, %227 : vector<128x128xi32>
    %229 = arith.cmpi eq, %214, %228 : vector<128x128xi32>
    %cst_111 = arith.constant 0.010416667 : f32
    %cst_112 = arith.constant 0.000000e+00 : f32
    %230 = vector.broadcast %cst_111 : f32 to vector<128x128xf32>
    %231 = vector.broadcast %cst_112 : f32 to vector<128x128xf32>
    %232 = arith.select %229, %230, %231 : vector<128x128xi1>, vector<128x128xf32>
    %cst_113 = arith.constant dense<0.000000e+00> : vector<128xf32>
    %233 = vector.multi_reduction <add>, %196, %cst_113 [1] : vector<128x3xf32> to vector<128xf32>
    %234 = vector.shape_cast %233 : vector<128xf32> to vector<128x1xf32>
    %235 = arith.mulf %196, %196 : vector<128x3xf32>
    %cst_114 = arith.constant dense<0.000000e+00> : vector<128xf32>
    %236 = vector.multi_reduction <add>, %235, %cst_114 [1] : vector<128x3xf32> to vector<128xf32>
    %237 = vector.shape_cast %236 : vector<128xf32> to vector<128x1xf32>
    %cst_115 = arith.constant dense<0.000000e+00> : vector<128x1xf32>
    %238 = tpu.matmul %232, %234, %cst_115 {dimension_numbers = #tpu.dot_dimension_numbers<[1], [0], [0], [1], [0, 0, 1, 1], [], []>} : vector<128x128xf32>, vector<128x1xf32>, vector<128x1xf32> -> vector<128x1xf32>
    %cst_116 = arith.constant dense<0.000000e+00> : vector<128x1xf32>
    %239 = tpu.matmul %232, %237, %cst_116 {dimension_numbers = #tpu.dot_dimension_numbers<[1], [0], [0], [1], [0, 0, 1, 1], [], []>} : vector<128x128xf32>, vector<128x1xf32>, vector<128x1xf32> -> vector<128x1xf32>
    %240 = arith.mulf %238, %238 : vector<128x1xf32>
    %241 = arith.subf %239, %240 : vector<128x1xf32>
    %cst_117 = arith.constant 0.000000e+00 : f32
    %242 = vector.broadcast %cst_117 : f32 to vector<128x1xf32>
    %243 = arith.maximumf %241, %242 : vector<128x1xf32>
    %244 = vector.broadcast %238 : vector<128x1xf32> to vector<128x3xf32>
    %245 = arith.subf %196, %244 : vector<128x3xf32>
    %cst_118 = arith.constant 9.99999974E-6 : f32
    %246 = vector.broadcast %cst_118 : f32 to vector<128x1xf32>
    %247 = arith.addf %243, %246 : vector<128x1xf32>
    %248 = math.rsqrt %247 : vector<128x1xf32>
    %249 = vector.broadcast %248 : vector<128x1xf32> to vector<128x3xf32>
    %250 = arith.mulf %245, %249 : vector<128x3xf32>
    %251 = arith.mulf %250, %198 : vector<128x3xf32>
    %252 = arith.addf %251, %200 : vector<128x3xf32>
    %253 = math.tanh %252 : vector<128x3xf32>
    %c0_119 = arith.constant 0 : index
    %c0_120 = arith.constant 0 : index
    %254 = vector.load %arg20[%c0_119, %c0_120] : memref<24x128xf32, #tpu.memory_space<vmem>>, vector<24x128xf32>
    %cst_121 = arith.constant dense<0.000000e+00> : vector<24x3xf32>
    %255 = tpu.matmul %254, %253, %cst_121 {dimension_numbers = #tpu.dot_dimension_numbers<[1], [0], [0], [1], [0, 0, 1, 1], [], []>} : vector<24x128xf32>, vector<128x3xf32>, vector<24x3xf32> -> vector<24x3xf32>
    %c0_122 = arith.constant 0 : index
    %c0_123 = arith.constant 0 : index
    %256 = vector.load %arg21[%c0_122, %c0_123] : memref<24x1xf32, #tpu.memory_space<vmem>>, vector<24x1xf32>
    %257 = vector.broadcast %256 : vector<24x1xf32> to vector<24x3xf32>
    %258 = arith.addf %255, %257 : vector<24x3xf32>
    %259 = math.tanh %258 : vector<24x3xf32>
    %260 = vector.broadcast %161 : vector<24x1xf32> to vector<24x3xf32>
    %261 = arith.addf %259, %260 : vector<24x3xf32>
    %c0_124 = arith.constant 0 : index
    %c0_125 = arith.constant 0 : index
    %262 = vector.load %arg22[%c0_124, %c0_125] : memref<24x9xf32, #tpu.memory_space<vmem>>, vector<24x9xf32>
    %cst_126 = arith.constant dense<0.000000e+00> : vector<64x9xf32>
    %263 = tpu.matmul %160, %262, %cst_126 {dimension_numbers = #tpu.dot_dimension_numbers<[1], [0], [0], [1], [0, 0, 1, 1], [], []>} : vector<64x24xf32>, vector<24x9xf32>, vector<64x9xf32> -> vector<64x9xf32>
    %c0_127 = arith.constant 0 : index
    %c0_128 = arith.constant 0 : index
    %264 = vector.load %arg24[%c0_127, %c0_128] : memref<64x1xf32, #tpu.memory_space<vmem>>, vector<64x1xf32>
    %c0_129 = arith.constant 0 : index
    %c0_130 = arith.constant 0 : index
    %c0_131 = arith.constant 0 : index
    %265 = vector.load %arg23[%c0_129, %c0_130, %c0_131] : memref<3x64x64xf32, #tpu.memory_space<vmem>>, vector<1x64x64xf32>
    %266 = vector.shape_cast %265 : vector<1x64x64xf32> to vector<64x64xf32>
    %267 = vector.extract_strided_slice %263 {offsets = [0, 0], sizes = [64, 3], strides = [1, 1]} : vector<64x9xf32> to vector<64x3xf32>
    %cst_132 = arith.constant dense<0.000000e+00> : vector<64x3xf32>
    %268 = tpu.matmul %266, %267, %cst_132 {dimension_numbers = #tpu.dot_dimension_numbers<[1], [0], [0], [1], [0, 0, 1, 1], [], []>} : vector<64x64xf32>, vector<64x3xf32>, vector<64x3xf32> -> vector<64x3xf32>
    %269 = vector.broadcast %264 : vector<64x1xf32> to vector<64x3xf32>
    %270 = arith.addf %269, %268 : vector<64x3xf32>
    %c1_133 = arith.constant 1 : index
    %c0_134 = arith.constant 0 : index
    %c0_135 = arith.constant 0 : index
    %271 = vector.load %arg23[%c1_133, %c0_134, %c0_135] : memref<3x64x64xf32, #tpu.memory_space<vmem>>, vector<1x64x64xf32>
    %272 = vector.shape_cast %271 : vector<1x64x64xf32> to vector<64x64xf32>
    %273 = vector.extract_strided_slice %263 {offsets = [0, 3], sizes = [64, 3], strides = [1, 1]} : vector<64x9xf32> to vector<64x3xf32>
    %cst_136 = arith.constant dense<0.000000e+00> : vector<64x3xf32>
    %274 = tpu.matmul %272, %273, %cst_136 {dimension_numbers = #tpu.dot_dimension_numbers<[1], [0], [0], [1], [0, 0, 1, 1], [], []>} : vector<64x64xf32>, vector<64x3xf32>, vector<64x3xf32> -> vector<64x3xf32>
    %275 = arith.addf %270, %274 : vector<64x3xf32>
    %c2_137 = arith.constant 2 : index
    %c0_138 = arith.constant 0 : index
    %c0_139 = arith.constant 0 : index
    %276 = vector.load %arg23[%c2_137, %c0_138, %c0_139] : memref<3x64x64xf32, #tpu.memory_space<vmem>>, vector<1x64x64xf32>
    %277 = vector.shape_cast %276 : vector<1x64x64xf32> to vector<64x64xf32>
    %278 = vector.extract_strided_slice %263 {offsets = [0, 6], sizes = [64, 3], strides = [1, 1]} : vector<64x9xf32> to vector<64x3xf32>
    %cst_140 = arith.constant dense<0.000000e+00> : vector<64x3xf32>
    %279 = tpu.matmul %277, %278, %cst_140 {dimension_numbers = #tpu.dot_dimension_numbers<[1], [0], [0], [1], [0, 0, 1, 1], [], []>} : vector<64x64xf32>, vector<64x3xf32>, vector<64x3xf32> -> vector<64x3xf32>
    %280 = arith.addf %275, %279 : vector<64x3xf32>
    %c0_141 = arith.constant 0 : index
    %c0_142 = arith.constant 0 : index
    %c0_143 = arith.constant 0 : index
    %281 = vector.load %arg25[%c0_141, %c0_142, %c0_143] : memref<2x64x3xf32, #tpu.memory_space<vmem>>, vector<1x64x3xf32>
    %282 = vector.shape_cast %281 : vector<1x64x3xf32> to vector<64x3xf32>
    %c1_144 = arith.constant 1 : index
    %c0_145 = arith.constant 0 : index
    %c0_146 = arith.constant 0 : index
    %283 = vector.load %arg25[%c1_144, %c0_145, %c0_146] : memref<2x64x3xf32, #tpu.memory_space<vmem>>, vector<1x64x3xf32>
    %284 = vector.shape_cast %283 : vector<1x64x3xf32> to vector<64x3xf32>
    %285 = tpu.iota {dimensions = array<i32: 0>} : vector<64x64xi32>
    %c0_i32_147 = arith.constant 0 : i32
    %286 = vector.broadcast %c0_i32_147 : i32 to vector<64x64xi32>
    %c16_i32_148 = arith.constant 16 : i32
    %287 = vector.broadcast %c16_i32_148 : i32 to vector<64x64xi32>
    %288 = arith.cmpi sge, %285, %287 : vector<64x64xi32>
    %289 = arith.extui %288 : vector<64x64xi1> to vector<64x64xi32>
    %290 = arith.addi %286, %289 : vector<64x64xi32>
    %c32_i32_149 = arith.constant 32 : i32
    %291 = vector.broadcast %c32_i32_149 : i32 to vector<64x64xi32>
    %292 = arith.cmpi sge, %285, %291 : vector<64x64xi32>
    %293 = arith.extui %292 : vector<64x64xi1> to vector<64x64xi32>
    %294 = arith.addi %290, %293 : vector<64x64xi32>
    %c48_i32_150 = arith.constant 48 : i32
    %295 = vector.broadcast %c48_i32_150 : i32 to vector<64x64xi32>
    %296 = arith.cmpi sge, %285, %295 : vector<64x64xi32>
    %297 = arith.extui %296 : vector<64x64xi1> to vector<64x64xi32>
    %298 = arith.addi %294, %297 : vector<64x64xi32>
    %299 = tpu.iota {dimensions = array<i32: 1>} : vector<64x64xi32>
    %c0_i32_151 = arith.constant 0 : i32
    %300 = vector.broadcast %c0_i32_151 : i32 to vector<64x64xi32>
    %c16_i32_152 = arith.constant 16 : i32
    %301 = vector.broadcast %c16_i32_152 : i32 to vector<64x64xi32>
    %302 = arith.cmpi sge, %299, %301 : vector<64x64xi32>
    %303 = arith.extui %302 : vector<64x64xi1> to vector<64x64xi32>
    %304 = arith.addi %300, %303 : vector<64x64xi32>
    %c32_i32_153 = arith.constant 32 : i32
    %305 = vector.broadcast %c32_i32_153 : i32 to vector<64x64xi32>
    %306 = arith.cmpi sge, %299, %305 : vector<64x64xi32>
    %307 = arith.extui %306 : vector<64x64xi1> to vector<64x64xi32>
    %308 = arith.addi %304, %307 : vector<64x64xi32>
    %c48_i32_154 = arith.constant 48 : i32
    %309 = vector.broadcast %c48_i32_154 : i32 to vector<64x64xi32>
    %310 = arith.cmpi sge, %299, %309 : vector<64x64xi32>
    %311 = arith.extui %310 : vector<64x64xi1> to vector<64x64xi32>
    %312 = arith.addi %308, %311 : vector<64x64xi32>
    %313 = arith.cmpi eq, %298, %312 : vector<64x64xi32>
    %cst_155 = arith.constant 0.020833334 : f32
    %cst_156 = arith.constant 0.000000e+00 : f32
    %314 = vector.broadcast %cst_155 : f32 to vector<64x64xf32>
    %315 = vector.broadcast %cst_156 : f32 to vector<64x64xf32>
    %316 = arith.select %313, %314, %315 : vector<64x64xi1>, vector<64x64xf32>
    %cst_157 = arith.constant dense<0.000000e+00> : vector<64xf32>
    %317 = vector.multi_reduction <add>, %280, %cst_157 [1] : vector<64x3xf32> to vector<64xf32>
    %318 = vector.shape_cast %317 : vector<64xf32> to vector<64x1xf32>
    %319 = arith.mulf %280, %280 : vector<64x3xf32>
    %cst_158 = arith.constant dense<0.000000e+00> : vector<64xf32>
    %320 = vector.multi_reduction <add>, %319, %cst_158 [1] : vector<64x3xf32> to vector<64xf32>
    %321 = vector.shape_cast %320 : vector<64xf32> to vector<64x1xf32>
    %cst_159 = arith.constant dense<0.000000e+00> : vector<64x1xf32>
    %322 = tpu.matmul %316, %318, %cst_159 {dimension_numbers = #tpu.dot_dimension_numbers<[1], [0], [0], [1], [0, 0, 1, 1], [], []>} : vector<64x64xf32>, vector<64x1xf32>, vector<64x1xf32> -> vector<64x1xf32>
    %cst_160 = arith.constant dense<0.000000e+00> : vector<64x1xf32>
    %323 = tpu.matmul %316, %321, %cst_160 {dimension_numbers = #tpu.dot_dimension_numbers<[1], [0], [0], [1], [0, 0, 1, 1], [], []>} : vector<64x64xf32>, vector<64x1xf32>, vector<64x1xf32> -> vector<64x1xf32>
    %324 = arith.mulf %322, %322 : vector<64x1xf32>
    %325 = arith.subf %323, %324 : vector<64x1xf32>
    %cst_161 = arith.constant 0.000000e+00 : f32
    %326 = vector.broadcast %cst_161 : f32 to vector<64x1xf32>
    %327 = arith.maximumf %325, %326 : vector<64x1xf32>
    %328 = vector.broadcast %322 : vector<64x1xf32> to vector<64x3xf32>
    %329 = arith.subf %280, %328 : vector<64x3xf32>
    %cst_162 = arith.constant 9.99999974E-6 : f32
    %330 = vector.broadcast %cst_162 : f32 to vector<64x1xf32>
    %331 = arith.addf %327, %330 : vector<64x1xf32>
    %332 = math.rsqrt %331 : vector<64x1xf32>
    %333 = vector.broadcast %332 : vector<64x1xf32> to vector<64x3xf32>
    %334 = arith.mulf %329, %333 : vector<64x3xf32>
    %335 = arith.mulf %334, %282 : vector<64x3xf32>
    %336 = arith.addf %335, %284 : vector<64x3xf32>
    %337 = math.tanh %336 : vector<64x3xf32>
    %c0_163 = arith.constant 0 : index
    %c0_164 = arith.constant 0 : index
    %338 = vector.load %arg26[%c0_163, %c0_164] : memref<12x64xf32, #tpu.memory_space<vmem>>, vector<12x64xf32>
    %cst_165 = arith.constant dense<0.000000e+00> : vector<12x3xf32>
    %339 = tpu.matmul %338, %337, %cst_165 {dimension_numbers = #tpu.dot_dimension_numbers<[1], [0], [0], [1], [0, 0, 1, 1], [], []>} : vector<12x64xf32>, vector<64x3xf32>, vector<12x3xf32> -> vector<12x3xf32>
    %c0_166 = arith.constant 0 : index
    %c0_167 = arith.constant 0 : index
    %340 = vector.load %arg27[%c0_166, %c0_167] : memref<12x1xf32, #tpu.memory_space<vmem>>, vector<12x1xf32>
    %341 = vector.broadcast %340 : vector<12x1xf32> to vector<12x3xf32>
    %342 = arith.addf %339, %341 : vector<12x3xf32>
    %343 = math.tanh %342 : vector<12x3xf32>
    %344 = vector.broadcast %162 : vector<12x1xf32> to vector<12x3xf32>
    %345 = arith.addf %343, %344 : vector<12x3xf32>
    %346 = tpu.iota {dimensions = array<i32: 0>} : vector<12x12xi32>
    %c0_i32_168 = arith.constant 0 : i32
    %347 = vector.broadcast %c0_i32_168 : i32 to vector<12x12xi32>
    %c3_i32 = arith.constant 3 : i32
    %348 = vector.broadcast %c3_i32 : i32 to vector<12x12xi32>
    %349 = arith.cmpi sge, %346, %348 : vector<12x12xi32>
    %350 = arith.extui %349 : vector<12x12xi1> to vector<12x12xi32>
    %351 = arith.addi %347, %350 : vector<12x12xi32>
    %c6_i32 = arith.constant 6 : i32
    %352 = vector.broadcast %c6_i32 : i32 to vector<12x12xi32>
    %353 = arith.cmpi sge, %346, %352 : vector<12x12xi32>
    %354 = arith.extui %353 : vector<12x12xi1> to vector<12x12xi32>
    %355 = arith.addi %351, %354 : vector<12x12xi32>
    %c9_i32 = arith.constant 9 : i32
    %356 = vector.broadcast %c9_i32 : i32 to vector<12x12xi32>
    %357 = arith.cmpi sge, %346, %356 : vector<12x12xi32>
    %358 = arith.extui %357 : vector<12x12xi1> to vector<12x12xi32>
    %359 = arith.addi %355, %358 : vector<12x12xi32>
    %360 = tpu.iota {dimensions = array<i32: 1>} : vector<12x12xi32>
    %c0_i32_169 = arith.constant 0 : i32
    %361 = vector.broadcast %c0_i32_169 : i32 to vector<12x12xi32>
    %c3_i32_170 = arith.constant 3 : i32
    %362 = vector.broadcast %c3_i32_170 : i32 to vector<12x12xi32>
    %363 = arith.cmpi sge, %360, %362 : vector<12x12xi32>
    %364 = arith.extui %363 : vector<12x12xi1> to vector<12x12xi32>
    %365 = arith.addi %361, %364 : vector<12x12xi32>
    %c6_i32_171 = arith.constant 6 : i32
    %366 = vector.broadcast %c6_i32_171 : i32 to vector<12x12xi32>
    %367 = arith.cmpi sge, %360, %366 : vector<12x12xi32>
    %368 = arith.extui %367 : vector<12x12xi1> to vector<12x12xi32>
    %369 = arith.addi %365, %368 : vector<12x12xi32>
    %c9_i32_172 = arith.constant 9 : i32
    %370 = vector.broadcast %c9_i32_172 : i32 to vector<12x12xi32>
    %371 = arith.cmpi sge, %360, %370 : vector<12x12xi32>
    %372 = arith.extui %371 : vector<12x12xi1> to vector<12x12xi32>
    %373 = arith.addi %369, %372 : vector<12x12xi32>
    %374 = arith.cmpi eq, %359, %373 : vector<12x12xi32>
    %cst_173 = arith.constant 1.000000e+00 : f32
    %cst_174 = arith.constant 0.000000e+00 : f32
    %375 = vector.broadcast %cst_173 : f32 to vector<12x12xf32>
    %376 = vector.broadcast %cst_174 : f32 to vector<12x12xf32>
    %377 = arith.select %374, %375, %376 : vector<12x12xi1>, vector<12x12xf32>
    %378 = arith.mulf %345, %345 : vector<12x3xf32>
    %cst_175 = arith.constant dense<0.000000e+00> : vector<12x3xf32>
    %379 = tpu.matmul %377, %378, %cst_175 {dimension_numbers = #tpu.dot_dimension_numbers<[1], [0], [0], [1], [0, 0, 1, 1], [], []>} : vector<12x12xf32>, vector<12x3xf32>, vector<12x3xf32> -> vector<12x3xf32>
    %cst_176 = arith.constant 1.000000e-24 : f32
    %380 = vector.broadcast %cst_176 : f32 to vector<12x3xf32>
    %381 = arith.maximumf %379, %380 : vector<12x3xf32>
    %382 = math.rsqrt %381 : vector<12x3xf32>
    %383 = arith.mulf %345, %382 : vector<12x3xf32>
    %384 = tpu.iota {dimensions = array<i32: 0>} : vector<24x3xi32>
    %c0_i32_177 = arith.constant 0 : i32
    %385 = vector.broadcast %c0_i32_177 : i32 to vector<24x3xi32>
    %c8_i32_178 = arith.constant 8 : i32
    %386 = vector.broadcast %c8_i32_178 : i32 to vector<24x3xi32>
    %387 = arith.cmpi sge, %384, %386 : vector<24x3xi32>
    %388 = arith.extui %387 : vector<24x3xi1> to vector<24x3xi32>
    %389 = arith.addi %385, %388 : vector<24x3xi32>
    %c16_i32_179 = arith.constant 16 : i32
    %390 = vector.broadcast %c16_i32_179 : i32 to vector<24x3xi32>
    %391 = arith.cmpi sge, %384, %390 : vector<24x3xi32>
    %392 = arith.extui %391 : vector<24x3xi1> to vector<24x3xi32>
    %393 = arith.addi %389, %392 : vector<24x3xi32>
    %394 = tpu.iota {dimensions = array<i32: 1>} : vector<24x3xi32>
    %395 = arith.cmpi eq, %393, %394 : vector<24x3xi32>
    %cst_180 = arith.constant 1.250000e-01 : f32
    %cst_181 = arith.constant 0.000000e+00 : f32
    %396 = vector.broadcast %cst_180 : f32 to vector<24x3xf32>
    %397 = vector.broadcast %cst_181 : f32 to vector<24x3xf32>
    %398 = arith.select %395, %396, %397 : vector<24x3xi1>, vector<24x3xf32>
    %cst_182 = arith.constant dense<0.000000e+00> : vector<64x3xf32>
    %399 = tpu.matmul %160, %398, %cst_182 {dimension_numbers = #tpu.dot_dimension_numbers<[1], [0], [0], [1], [0, 0, 1, 1], [], []>} : vector<64x24xf32>, vector<24x3xf32>, vector<64x3xf32> -> vector<64x3xf32>
    %c0_183 = arith.constant 0 : index
    %c0_184 = arith.constant 0 : index
    %400 = vector.load %arg29[%c0_183, %c0_184] : memref<32x1xf32, #tpu.memory_space<vmem>>, vector<32x1xf32>
    %c0_185 = arith.constant 0 : index
    %c0_186 = arith.constant 0 : index
    %c0_187 = arith.constant 0 : index
    %401 = vector.load %arg28[%c0_185, %c0_186, %c0_187] : memref<3x32x64xf32, #tpu.memory_space<vmem>>, vector<1x32x64xf32>
    %402 = vector.shape_cast %401 : vector<1x32x64xf32> to vector<32x64xf32>
    %403 = vector.extract_strided_slice %399 {offsets = [0, 0], sizes = [64, 1], strides = [1, 1]} : vector<64x3xf32> to vector<64x1xf32>
    %cst_188 = arith.constant dense<0.000000e+00> : vector<32x1xf32>
    %404 = tpu.matmul %402, %403, %cst_188 {dimension_numbers = #tpu.dot_dimension_numbers<[1], [0], [0], [1], [0, 0, 1, 1], [], []>} : vector<32x64xf32>, vector<64x1xf32>, vector<32x1xf32> -> vector<32x1xf32>
    %405 = arith.addf %400, %404 : vector<32x1xf32>
    %c1_189 = arith.constant 1 : index
    %c0_190 = arith.constant 0 : index
    %c0_191 = arith.constant 0 : index
    %406 = vector.load %arg28[%c1_189, %c0_190, %c0_191] : memref<3x32x64xf32, #tpu.memory_space<vmem>>, vector<1x32x64xf32>
    %407 = vector.shape_cast %406 : vector<1x32x64xf32> to vector<32x64xf32>
    %408 = vector.extract_strided_slice %399 {offsets = [0, 1], sizes = [64, 1], strides = [1, 1]} : vector<64x3xf32> to vector<64x1xf32>
    %cst_192 = arith.constant dense<0.000000e+00> : vector<32x1xf32>
    %409 = tpu.matmul %407, %408, %cst_192 {dimension_numbers = #tpu.dot_dimension_numbers<[1], [0], [0], [1], [0, 0, 1, 1], [], []>} : vector<32x64xf32>, vector<64x1xf32>, vector<32x1xf32> -> vector<32x1xf32>
    %410 = arith.addf %405, %409 : vector<32x1xf32>
    %c2_193 = arith.constant 2 : index
    %c0_194 = arith.constant 0 : index
    %c0_195 = arith.constant 0 : index
    %411 = vector.load %arg28[%c2_193, %c0_194, %c0_195] : memref<3x32x64xf32, #tpu.memory_space<vmem>>, vector<1x32x64xf32>
    %412 = vector.shape_cast %411 : vector<1x32x64xf32> to vector<32x64xf32>
    %413 = vector.extract_strided_slice %399 {offsets = [0, 2], sizes = [64, 1], strides = [1, 1]} : vector<64x3xf32> to vector<64x1xf32>
    %cst_196 = arith.constant dense<0.000000e+00> : vector<32x1xf32>
    %414 = tpu.matmul %412, %413, %cst_196 {dimension_numbers = #tpu.dot_dimension_numbers<[1], [0], [0], [1], [0, 0, 1, 1], [], []>} : vector<32x64xf32>, vector<64x1xf32>, vector<32x1xf32> -> vector<32x1xf32>
    %415 = arith.addf %410, %414 : vector<32x1xf32>
    %416 = vector.shape_cast %415 : vector<32x1xf32> to vector<32x1xf32>
    %417 = vector.broadcast %416 : vector<32x1xf32> to vector<32x3xf32>
    %c0_197 = arith.constant 0 : index
    %c0_198 = arith.constant 0 : index
    %c0_199 = arith.constant 0 : index
    %418 = vector.load %arg30[%c0_197, %c0_198, %c0_199] : memref<1x68x3xf32, #tpu.memory_space<vmem>>, vector<1x32x3xf32>
    %419 = vector.shape_cast %418 : vector<1x32x3xf32> to vector<32x3xf32>
    %420 = vector.shape_cast %417 : vector<32x3xf32> to vector<1x32x3xf32>
    tpu.vector_store %arg30[%c0_197, %c0_198, %c0_199], %420 {strides = array<i32>} : memref<1x68x3xf32, #tpu.memory_space<vmem>>, vector<1x32x3xf32>,
    %c0_200 = arith.constant 0 : index
    %c32 = arith.constant 32 : index
    %c0_201 = arith.constant 0 : index
    %421 = vector.load %arg30[%c0_200, %c32, %c0_201] : memref<1x68x3xf32, #tpu.memory_space<vmem>>, vector<1x24x3xf32>
    %422 = vector.shape_cast %421 : vector<1x24x3xf32> to vector<24x3xf32>
    %423 = vector.shape_cast %261 : vector<24x3xf32> to vector<1x24x3xf32>
    tpu.vector_store %arg30[%c0_200, %c32, %c0_201], %423 {strides = array<i32>} : memref<1x68x3xf32, #tpu.memory_space<vmem>>, vector<1x24x3xf32>,
    %c0_202 = arith.constant 0 : index
    %c56 = arith.constant 56 : index
    %c0_203 = arith.constant 0 : index
    %424 = vector.load %arg30[%c0_202, %c56, %c0_203] : memref<1x68x3xf32, #tpu.memory_space<vmem>>, vector<1x12x3xf32>
    %425 = vector.shape_cast %424 : vector<1x12x3xf32> to vector<12x3xf32>
    %426 = vector.shape_cast %383 : vector<12x3xf32> to vector<1x12x3xf32>
    tpu.vector_store %arg30[%c0_202, %c56, %c0_203], %426 {strides = array<i32>} : memref<1x68x3xf32, #tpu.memory_space<vmem>>, vector<1x12x3xf32>,
    return
  }
  func.func @transform_0(%arg0: i32) -> (i32, i32, i32) {
    %c0_i32 = arith.constant 0 : i32
    %c0_i32_0 = arith.constant 0 : i32
    %c0_i32_1 = arith.constant 0 : i32
    return %arg0, %c0_i32, %c0_i32_0 : i32, i32, i32
  }
  func.func @transform_1(%arg0: i32) -> (i32, i32, i32) {
    %c0_i32 = arith.constant 0 : i32
    %c0_i32_0 = arith.constant 0 : i32
    %c0_i32_1 = arith.constant 0 : i32
    return %arg0, %c0_i32, %c0_i32_0 : i32, i32, i32
  }
  func.func @transform_2(%arg0: i32) -> (i32, i32) {
    %c0_i32 = arith.constant 0 : i32
    %c0_i32_0 = arith.constant 0 : i32
    %c0_i32_1 = arith.constant 0 : i32
    return %c0_i32, %c0_i32_0 : i32, i32
  }
  func.func @transform_3(%arg0: i32) -> (i32, i32) {
    %c0_i32 = arith.constant 0 : i32
    %c0_i32_0 = arith.constant 0 : i32
    %c0_i32_1 = arith.constant 0 : i32
    return %c0_i32, %c0_i32_0 : i32, i32
  }
  func.func @transform_4(%arg0: i32) -> (i32, i32) {
    %c0_i32 = arith.constant 0 : i32
    %c0_i32_0 = arith.constant 0 : i32
    %c0_i32_1 = arith.constant 0 : i32
    return %c0_i32, %c0_i32_0 : i32, i32
  }
  func.func @transform_5(%arg0: i32) -> (i32, i32) {
    %c0_i32 = arith.constant 0 : i32
    %c0_i32_0 = arith.constant 0 : i32
    %c0_i32_1 = arith.constant 0 : i32
    return %c0_i32, %c0_i32_0 : i32, i32
  }
  func.func @transform_6(%arg0: i32) -> (i32, i32) {
    %c0_i32 = arith.constant 0 : i32
    %c0_i32_0 = arith.constant 0 : i32
    %c0_i32_1 = arith.constant 0 : i32
    return %c0_i32, %c0_i32_0 : i32, i32
  }
  func.func @transform_7(%arg0: i32) -> (i32, i32) {
    %c0_i32 = arith.constant 0 : i32
    %c0_i32_0 = arith.constant 0 : i32
    %c0_i32_1 = arith.constant 0 : i32
    return %c0_i32, %c0_i32_0 : i32, i32
  }
  func.func @transform_8(%arg0: i32) -> (i32, i32, i32) {
    %c0_i32 = arith.constant 0 : i32
    %c0_i32_0 = arith.constant 0 : i32
    %c0_i32_1 = arith.constant 0 : i32
    %c0_i32_2 = arith.constant 0 : i32
    return %c0_i32, %c0_i32_0, %c0_i32_1 : i32, i32, i32
  }
  func.func @transform_9(%arg0: i32) -> (i32, i32) {
    %c0_i32 = arith.constant 0 : i32
    %c0_i32_0 = arith.constant 0 : i32
    %c0_i32_1 = arith.constant 0 : i32
    return %c0_i32, %c0_i32_0 : i32, i32
  }
  func.func @transform_10(%arg0: i32) -> (i32, i32) {
    %c0_i32 = arith.constant 0 : i32
    %c0_i32_0 = arith.constant 0 : i32
    %c0_i32_1 = arith.constant 0 : i32
    return %c0_i32, %c0_i32_0 : i32, i32
  }
  func.func @transform_11(%arg0: i32) -> (i32, i32) {
    %c0_i32 = arith.constant 0 : i32
    %c0_i32_0 = arith.constant 0 : i32
    %c0_i32_1 = arith.constant 0 : i32
    return %c0_i32, %c0_i32_0 : i32, i32
  }
  func.func @transform_12(%arg0: i32) -> (i32, i32, i32) {
    %c0_i32 = arith.constant 0 : i32
    %c0_i32_0 = arith.constant 0 : i32
    %c0_i32_1 = arith.constant 0 : i32
    %c0_i32_2 = arith.constant 0 : i32
    return %c0_i32, %c0_i32_0, %c0_i32_1 : i32, i32, i32
  }
  func.func @transform_13(%arg0: i32) -> (i32, i32) {
    %c0_i32 = arith.constant 0 : i32
    %c0_i32_0 = arith.constant 0 : i32
    %c0_i32_1 = arith.constant 0 : i32
    return %c0_i32, %c0_i32_0 : i32, i32
  }
  func.func @transform_14(%arg0: i32) -> (i32, i32) {
    %c0_i32 = arith.constant 0 : i32
    %c0_i32_0 = arith.constant 0 : i32
    %c0_i32_1 = arith.constant 0 : i32
    return %c0_i32, %c0_i32_0 : i32, i32
  }
  func.func @transform_15(%arg0: i32) -> (i32, i32) {
    %c0_i32 = arith.constant 0 : i32
    %c0_i32_0 = arith.constant 0 : i32
    %c0_i32_1 = arith.constant 0 : i32
    return %c0_i32, %c0_i32_0 : i32, i32
  }
  func.func @transform_16(%arg0: i32) -> (i32, i32, i32) {
    %c0_i32 = arith.constant 0 : i32
    %c0_i32_0 = arith.constant 0 : i32
    %c0_i32_1 = arith.constant 0 : i32
    %c0_i32_2 = arith.constant 0 : i32
    return %c0_i32, %c0_i32_0, %c0_i32_1 : i32, i32, i32
  }
  func.func @transform_17(%arg0: i32) -> (i32, i32) {
    %c0_i32 = arith.constant 0 : i32
    %c0_i32_0 = arith.constant 0 : i32
    %c0_i32_1 = arith.constant 0 : i32
    return %c0_i32, %c0_i32_0 : i32, i32
  }
  func.func @transform_18(%arg0: i32) -> (i32, i32, i32) {
    %c0_i32 = arith.constant 0 : i32
    %c0_i32_0 = arith.constant 0 : i32
    %c0_i32_1 = arith.constant 0 : i32
    %c0_i32_2 = arith.constant 0 : i32
    return %c0_i32, %c0_i32_0, %c0_i32_1 : i32, i32, i32
  }
  func.func @transform_19(%arg0: i32) -> (i32, i32) {
    %c0_i32 = arith.constant 0 : i32
    %c0_i32_0 = arith.constant 0 : i32
    %c0_i32_1 = arith.constant 0 : i32
    return %c0_i32, %c0_i32_0 : i32, i32
  }
  func.func @transform_20(%arg0: i32) -> (i32, i32) {
    %c0_i32 = arith.constant 0 : i32
    %c0_i32_0 = arith.constant 0 : i32
    %c0_i32_1 = arith.constant 0 : i32
    return %c0_i32, %c0_i32_0 : i32, i32
  }
  func.func @transform_21(%arg0: i32) -> (i32, i32) {
    %c0_i32 = arith.constant 0 : i32
    %c0_i32_0 = arith.constant 0 : i32
    %c0_i32_1 = arith.constant 0 : i32
    return %c0_i32, %c0_i32_0 : i32, i32
  }
  func.func @transform_22(%arg0: i32) -> (i32, i32, i32) {
    %c0_i32 = arith.constant 0 : i32
    %c0_i32_0 = arith.constant 0 : i32
    %c0_i32_1 = arith.constant 0 : i32
    %c0_i32_2 = arith.constant 0 : i32
    return %c0_i32, %c0_i32_0, %c0_i32_1 : i32, i32, i32
  }
  func.func @transform_23(%arg0: i32) -> (i32, i32) {
    %c0_i32 = arith.constant 0 : i32
    %c0_i32_0 = arith.constant 0 : i32
    %c0_i32_1 = arith.constant 0 : i32
    return %c0_i32, %c0_i32_0 : i32, i32
  }
  func.func @transform_24(%arg0: i32) -> (i32, i32, i32) {
    %c0_i32 = arith.constant 0 : i32
    %c0_i32_0 = arith.constant 0 : i32
    %c0_i32_1 = arith.constant 0 : i32
    %c0_i32_2 = arith.constant 0 : i32
    return %c0_i32, %c0_i32_0, %c0_i32_1 : i32, i32, i32
  }
  func.func @transform_25(%arg0: i32) -> (i32, i32) {
    %c0_i32 = arith.constant 0 : i32
    %c0_i32_0 = arith.constant 0 : i32
    %c0_i32_1 = arith.constant 0 : i32
    return %c0_i32, %c0_i32_0 : i32, i32
  }
  func.func @transform_26(%arg0: i32) -> (i32, i32) {
    %c0_i32 = arith.constant 0 : i32
    %c0_i32_0 = arith.constant 0 : i32
    %c0_i32_1 = arith.constant 0 : i32
    return %c0_i32, %c0_i32_0 : i32, i32
  }
  func.func @transform_27(%arg0: i32) -> (i32, i32, i32) {
    %c0_i32 = arith.constant 0 : i32
    %c0_i32_0 = arith.constant 0 : i32
    %c0_i32_1 = arith.constant 0 : i32
    %c0_i32_2 = arith.constant 0 : i32
    return %c0_i32, %c0_i32_0, %c0_i32_1 : i32, i32, i32
  }
  func.func @transform_28(%arg0: i32) -> (i32, i32) {
    %c0_i32 = arith.constant 0 : i32
    %c0_i32_0 = arith.constant 0 : i32
    %c0_i32_1 = arith.constant 0 : i32
    return %c0_i32, %c0_i32_0 : i32, i32
  }
  func.func @transform_29(%arg0: i32) -> (i32, i32, i32) {
    %c0_i32 = arith.constant 0 : i32
    %c0_i32_0 = arith.constant 0 : i32
    %c0_i32_1 = arith.constant 0 : i32
    return %arg0, %c0_i32, %c0_i32_0 : i32, i32, i32
  }
}

</mosaic_0001>

<bundles_post_ra>
// kernel: squeeze.3
= control target key start
LH: loop header
LB: loop body
LE: loop exit
PB: predicated region body
PF: predicated region fallthrough
CT: control target
= control target key end

     0   :  { %s95_s0 = inlined_call_operand.vmem [shape: f32[2,32], index: 0, kind: input, shape index: {}]   ;;  %s96_s1 = inlined_call_operand.hbm [shape: f32[8,8], index: 1, kind: output, shape index: {}]  }
   0x1   :  { %v5_v0 = vld [vmem:[%s95_s0] sm:$0x3] }
   0x2   :  { %6 = vst [vmem:[#allocation2] sm:$0x3] %v5_v0 }
   0x3   :  { %2 = vsyncpa [#allocation1], 0  ;;  %s66_s0 = smov 120   ;;  %s67_s8 = smov 104   ;;  %vm8_vm0 = vcmask 64512  }
   0x4   :  { %s68_s9 = smov 112   ;;  %s69_s10 = smov [#allocation0]  }
   0x5   :  { %s32_s11 = sshll.u32 %s69_s10, 4  ;;  %s33_s11 = int_to_ptr.vmem [resolvable:$true] %s32_s11 }
   0x6   :  { %s42_s12 = scalar_lea.vmem %s33_s11, 128  ;;  %p47_p1 = scmp.lt.s32.totalorder %s33_s11, %s33_s11 }
   0x7   :  { %p43_p0 = scmp.ne.s32.totalorder %s33_s11, %s42_s12  ;;  %p48_p2 = scmp.lt.s32.totalorder %s42_s12, %s42_s12 }
   0x9   :  { %v10_v1 = vld [vmem:[#allocation2] sm:$0x3]   ;;  %p49_p3 = por %p48_p2, %p47_p1 }
   0xa   :  { %v22_v2 = vld [vmem:[#allocation2] sm:$0x3]   ;;  %11 = vrot.lane.b32.xlu0 %v10_v1, %s66_s0 }
   0xb   :  { %23 = vrot.lane.b32.xlu1 %v22_v2, %s67_s8  ;;  %v7_v3 = vld [vmem:[#allocation2] sm:$0x3]   ;;  %p50_p4 = pnand %p49_p3, %p43_p0 }
   0xc   :  { %v16_v4 = vld [vmem:[#allocation2] sm:$0x3]   ;;  %9 = vst.msk [vmem:[#allocation0] ss:$4 sm:$0x3] %vm8_vm0, %v7_v3  }
   0xe   :  { %17 = vrot.lane.b32.xlu0 %v16_v4, %s68_s9 }
  0x7c   :  { %v12_v5 = vpop.permute.xlu0 %11  }
  0x7d   :  { %v24_v6 = vpop.permute.xlu1 %23   ;;  %15 = vst.msk [vmem:[#allocation0 + $0x1] ss:$4 sm:$0x3] %vm8_vm0, %v12_v5  }
  0x7e   :  { %27 = vst.msk [vmem:[#allocation0 + $0x3] ss:$4 sm:$0x3] %vm8_vm0, %v24_v6  }
  0x80   :  { %v18_v7 = vpop.permute.xlu0 %17  }
  0x81   :  { %21 = vst.msk [vmem:[#allocation0 + $0x2] ss:$4 sm:$0x3] %vm8_vm0, %v18_v7  }
  0x82   :  { %53 = shalt.err (!%p50_p4)
}
  0x83   :  { %s54_s15 = scalar_lea.hbm %s96_s1, 128 }
  0x84   :  { %p55_p5 = scmp.ne.s32.totalorder %s96_s1, %s54_s15  ;;  %p58_p6 = scmp.lt.u32.totalorder %s54_s15, %s96_s1 }
  0x86   :  { %p60_p7 = pnand %p58_p6, %p55_p5 }
  0x88   :  { %63 = shalt.err (!%p60_p7)
}
  0x89   :  { %35 = dma.vmem_to_hbm [thread:$0]  %s33_s11, 128, %s96_s1, [#allocation1]  }
  0x8a   :  { %64 = dma.done.wait [#allocation1], 128  }
  0x8b   :  { %65 = vsyncadd [#allocation1], 4294967168 }
  0x8c   :  { %37 = vsyncpa [#allocation1], 1 }

// kernel: squeeze.3
= control target key start
LH: loop header
LB: loop body
LE: loop exit
PB: predicated region body
PF: predicated region fallthrough
CT: control target
= control target key end

     0   :  { %s95_s0 = inlined_call_operand.vmem [shape: f32[2,32], index: 0, kind: input, shape index: {}]   ;;  %s96_s1 = inlined_call_operand.hbm [shape: f32[8,8], index: 1, kind: output, shape index: {}]  }
   0x1   :  { %v5_v0 = vld [vmem:[%s95_s0] sm:$0x3] }
   0x2   :  { %6 = vst [vmem:[#allocation2] sm:$0x3] %v5_v0 }
   0x3   :  { %2 = vsyncpa [#allocation1], 0  ;;  %s66_s0 = smov 120   ;;  %s67_s8 = smov 104   ;;  %vm8_vm0 = vcmask 64512  }
   0x4   :  { %s68_s9 = smov 112   ;;  %s69_s10 = smov [#allocation0]  }
   0x5   :  { %s32_s11 = sshll.u32 %s69_s10, 4  ;;  %s33_s11 = int_to_ptr.vmem [resolvable:$true] %s32_s11 }
   0x6   :  { %s42_s12 = scalar_lea.vmem %s33_s11, 128  ;;  %p47_p1 = scmp.lt.s32.totalorder %s33_s11, %s33_s11 }
   0x7   :  { %p43_p0 = scmp.ne.s32.totalorder %s33_s11, %s42_s12  ;;  %p48_p2 = scmp.lt.s32.totalorder %s42_s12, %s42_s12 }
   0x9   :  { %v10_v1 = vld [vmem:[#allocation2] sm:$0x3]   ;;  %p49_p3 = por %p48_p2, %p47_p1 }
   0xa   :  { %v22_v2 = vld [vmem:[#allocation2] sm:$0x3]   ;;  %11 = vrot.lane.b32.xlu0 %v10_v1, %s66_s0 }
   0xb   :  { %23 = vrot.lane.b32.xlu1 %v22_v2, %s67_s8  ;;  %v7_v3 = vld [vmem:[#allocation2] sm:$0x3]   ;;  %p50_p4 = pnand %p49_p3, %p43_p0 }
   0xc   :  { %v16_v4 = vld [vmem:[#allocation2] sm:$0x3]   ;;  %9 = vst.msk [vmem:[#allocation0] ss:$4 sm:$0x3] %vm8_vm0, %v7_v3  }
   0xe   :  { %17 = vrot.lane.b32.xlu0 %v16_v4, %s68_s9 }
  0x7c   :  { %v12_v5 = vpop.permute.xlu0 %11  }
  0x7d   :  { %v24_v6 = vpop.permute.xlu1 %23   ;;  %15 = vst.msk [vmem:[#allocation0 + $0x1] ss:$4 sm:$0x3] %vm8_vm0, %v12_v5  }
  0x7e   :  { %27 = vst.msk [vmem:[#allocation0 + $0x3] ss:$4 sm:$0x3] %vm8_vm0, %v24_v6  }
  0x80   :  { %v18_v7 = vpop.permute.xlu0 %17  }
  0x81   :  { %21 = vst.msk [vmem:[#allocation0 + $0x2] ss:$4 sm:$0x3] %vm8_vm0, %v18_v7  }
  0x82   :  { %53 = shalt.err (!%p50_p4)
}
  0x83   :  { %s54_s15 = scalar_lea.hbm %s96_s1, 128 }
  0x84   :  { %p55_p5 = scmp.ne.s32.totalorder %s96_s1, %s54_s15  ;;  %p58_p6 = scmp.lt.u32.totalorder %s54_s15, %s96_s1 }
  0x86   :  { %p60_p7 = pnand %p58_p6, %p55_p5 }
  0x88   :  { %63 = shalt.err (!%p60_p7)
}
  0x89   :  { %35 = dma.vmem_to_hbm [thread:$0]  %s33_s11, 128, %s96_s1, [#allocation1]  }
  0x8a   :  { %64 = dma.done.wait [#allocation1], 128  }
  0x8b   :  { %65 = vsyncadd [#allocation1], 4294967168 }
  0x8c   :  { %37 = vsyncpa [#allocation1], 1 }

// kernel: _lambda_.1
= control target key start
LH: loop header
LB: loop body
LE: loop exit
PB: predicated region body
PF: predicated region fallthrough
CT: control target
= control target key end

     0   :  { %s10465_s6 = smov 1   ;;  %s10466_s10 = smov 2   ;;  %s12068_s0 = inlined_call_operand.smem [shape: u32[30], index: -1, kind: input, shape index: {}] }
   0x1   :  { %s10518_s5 = sld [smem:[%s12068_s0]]   ;;  %s10467_s14 = smov 3  }
   0x2   :  { %s10523_s9 = sld [smem:[%s12068_s0 + %s10465_s6]]   ;;  %s10468_s18 = smov 4  }
   0x3   :  { %s10528_s13 = sld [smem:[%s12068_s0 + %s10466_s10]]   ;;  %s10469_s22 = smov 5  }
   0x4   :  { %s10533_s17 = sld [smem:[%s12068_s0 + %s10467_s14]]   ;;  %s10470_s26 = smov 6  }
   0x5   :  { %s10538_s21 = sld [smem:[%s12068_s0 + %s10468_s18]]   ;;  %s10471_s30 = smov 7  }
   0x6   :  { %s10543_s25 = sld [smem:[%s12068_s0 + %s10469_s22]]   ;;  %s10472_s4 = smov 8  }
   0x7   :  { %s10548_s29 = sld [smem:[%s12068_s0 + %s10470_s26]]   ;;  %s10473_s10 = smov 9  }
   0x8   :  { %12089 = sst [smem:[#allocation2_spill]] %s10523_s9  ;;  %s10474_s15 = smov 10  }
   0x9   :  { %s10553_s3 = sld [smem:[%s12068_s0 + %s10471_s30]]   ;;  %s10475_s20 = smov 11  }
   0xa   :  { %s10558_s8 = sld [smem:[%s12068_s0 + %s10472_s4]]   ;;  %s10476_s26 = smov 12  }
   0xb   :  { %s10563_s14 = sld [smem:[%s12068_s0 + %s10473_s10]]   ;;  %s10477_s1 = smov 13  }
   0xc   :  { %s10568_s19 = sld [smem:[%s12068_s0 + %s10474_s15]]   ;;  %s10478_s7 = smov 14  }
   0xd   :  { %s10573_s24 = sld [smem:[%s12068_s0 + %s10475_s20]]   ;;  %s10479_s15 = smov 15  }
   0xe   :  { %s10578_s30 = sld [smem:[%s12068_s0 + %s10476_s26]]   ;;  %s10480_s22 = smov 16  }
   0xf   :  { %12090 = sst [smem:[#allocation3_spill]] %s10553_s3  ;;  %s10481_s28 = smov 17  }
  0x10   :  { %s10583_s6 = sld [smem:[%s12068_s0 + %s10477_s1]]  }
  0x11   :  { %s10588_s12 = sld [smem:[%s12068_s0 + %s10478_s7]]   ;;  %s10482_s7 = smov 18  }
  0x12   :  { %s10593_s20 = sld [smem:[%s12068_s0 + %s10479_s15]]   ;;  %s10483_s15 = smov 19  }
  0x13   :  { %s10598_s27 = sld [smem:[%s12068_s0 + %s10480_s22]]   ;;  %s10484_s22 = smov 20  }
  0x14   :  { %12091 = sst [smem:[#allocation4_spill]] %s10578_s30 }
  0x15   :  { %s10603_s4 = sld [smem:[%s12068_s0 + %s10481_s28]]   ;;  %s10485_s28 = smov 21  }
  0x16   :  { %s10608_s9 = sld [smem:[%s12068_s0 + %s10482_s7]]   ;;  %s10486_s7 = smov 22  }
  0x17   :  { %s10613_s30 = sld [smem:[%s12068_s0 + %s10483_s15]]   ;;  %s10487_s15 = smov 23  }
  0x19   :  { %12092 = sst [smem:[#allocation5_spill]] %s10598_s27 }
  0x1a   :  { %s10618_s27 = sld [smem:[%s12068_s0 + %s10484_s22]]   ;;  %s10488_s22 = smov 24  }
  0x1b   :  { %12093 = sst [smem:[#allocation6_spill]] %s10603_s4 }
  0x1c   :  { %12094 = sst [smem:[#allocation7_spill]] %s10608_s9 }
  0x1d   :  { %12095 = sst [smem:[#allocation8_spill]] %s10613_s30 }
  0x1e   :  { %s10623_s4 = sld [smem:[%s12068_s0 + %s10485_s28]]   ;;  %s10489_s28 = smov 25  }
  0x1f   :  { %s10628_s9 = sld [smem:[%s12068_s0 + %s10486_s7]]   ;;  %s10490_s7 = smov 26  }
  0x20   :  { %12096 = sst [smem:[#allocation9_spill]] %s10618_s27 }
  0x21   :  { %s10633_s30 = sld [smem:[%s12068_s0 + %s10487_s15]]   ;;  %s10491_s15 = smov 27  }
  0x22   :  { %s10638_s27 = sld [smem:[%s12068_s0 + %s10488_s22]]   ;;  %s10492_s22 = smov 28  }
  0x24   :  { %12097 = sst [smem:[#allocation10_spill]] %s10623_s4 }
  0x25   :  { %12098 = sst [smem:[#allocation11_spill]] %s10628_s9 }
  0x26   :  { %s10643_s4 = sld [smem:[%s12068_s0 + %s10489_s28]]   ;;  %s10493_s28 = smov 29  }
  0x27   :  { %12099 = sst [smem:[#allocation12_spill]] %s10633_s30 }
  0x28   :  { %12100 = sst [smem:[#allocation13_spill]] %s10638_s27 }
  0x29   :  { %s10648_s9 = sld [smem:[%s12068_s0 + %s10490_s7]]   ;;  %s10665_s7 = smov 0  }
  0x2a   :  { %s10653_s30 = sld [smem:[%s12068_s0 + %s10491_s15]]  }
  0x2b   :  { %s10658_s27 = sld [smem:[%s12068_s0 + %s10492_s22]]  }
  0x2c   :  { %12101 = sst [smem:[#allocation14_spill]] %s10643_s4 }
  0x2d   :  { %s10663_s4 = sld [smem:[%s12068_s0 + %s10493_s28]]  }
  0x2e LB: > { %s12102_s3 = sld [smem:[#allocation3_spill]]  ;;  %s7601_s10 = sadd.s32 4294967295, %s10463_s7   ;;  %s10463_s7 = sphi %s10665_s7, %s69_s7  }
  0x2f   : > { %p7605_p0 = scmp.ge.s32.totalorder %s10463_s7, 1  ;;  %p827_p1 = scmp.lt.s32.totalorder %s10463_s7, 3 }
  0x31   : > { %p828_p2 = pnand %p7605_p0, %p827_p1 }
  0x33   : > { %831 = sbr.rel (%p828_p2) target bundleno = 5828 (0x16c4), region = 136 }
  0x3a   : > { %v930_v0 = vld [vmem:[%s10528_s13] sm:$0xff]  ;;  %v931_v1 = vld [vmem:[%s10528_s13 + $0x8] sm:$0xff]  ;;  %v932_v2 = vld [vmem:[%s10528_s13 + $0x10] sm:$0xff]  ;;  %p908_p3 = scmp.lt.s32.totalorder %s7601_s10, 1  ;;  %vm944_vm0 = vcmask 392192   ;;  %vm1046_vm1 = vcmask 97280  }
  0x3b   : > { %v9466_v3 = vpack.c.bf16 %v931_v1, %v930_v0  ;;  %v933_v4 = vld [vmem:[%s10528_s13 + $0x18] sm:$0xff]  ;;  %v934_v6 = vld [vmem:[%s10528_s13 + $0x20] sm:$0xff]  ;;  %v935_v7 = vld [vmem:[%s10528_s13 + $0x28] sm:$0xff]  ;;  %v12080_v14 = vmov 0   ;;  %vm1059_vm2 = vcmask 1043456   ;;  %vm10495_vm3 = vmmov 1  }
  0x3c   : > { %v9470_v5 = vpack.c.bf16 %v933_v4, %v932_v2  ;;  %s12124_s10 = smov (!%p908_p3, %s7601_s10), 1  ;;  %v9474_v8 = vpack.c.bf16 %v935_v7, %v934_v6  ;;  %v936_v11 = vld [vmem:[%s10533_s17] sm:$0xff]  ;;  %v942_v13 = vld [vmem:[%s10538_s21 + $0x10] sm:$0xff]  ;;  %10117 = vset.pattern.permute.xlu0 %v12080_v14  ;;  %10118 = vset.pattern.permute.xlu1 %v12080_v14  ;;  %v941_v15 = vld [vmem:[%s10538_s21 + $0x8] sm:$0xff]  ;;  %v12103_v29 = vmov 0  ;;  %vm1279_vm5 = vcmask 261120  }
  0x3d   : > { %9467 = vmatprep.subr.bf16.mxu0 %v9466_v3  ;;  %s8064_s0 = sshll.u32 %s12124_s10, 4  ;;  %v940_v12 = vld [vmem:[%s10538_s21] sm:$0xff]  ;;  %1038 = vperm.xlu1 %10118, %v942_v13   ;;  %v943_v16 = vld [vmem:[%s10538_s21 + $0x18] sm:$0xff]  ;;  %v1149_v18 = vld [vmem:[%s10543_s25 + $0x8] sm:$0xff]  ;;  %s12108_s15 = sld [smem:[#allocation4_spill]] }
  0x3e   : > { %9469 = vmatpush3.bf16.msra.mxu0 %v9466_v3  ;;  %s912_s11 = scalar_lea.vmem %s10518_s5, %s8064_s0  ;;  %1028 = vperm.xlu0 %10117, %v940_v12   ;;  %v1148_v17 = vld [vmem:[%s10543_s25] sm:$0xff]  ;;  %v1159_v21 = vld [vmem:[%s12102_s3 + $0x8] sm:$0xff]  ;;  %v1150_v22 = vld [vmem:[%s10543_s25 + $0x10] sm:$0xff]  ;;  %s12109_s16 = sld [smem:[#allocation5_spill]] }
  0x3f   : > { %9471 = vmatprep.subr.bf16.mxu0 %v9470_v5  ;;  %v923_v9 = vld [vmem:[%s912_s11] sm:$0xff]  ;;  %v924_v10 = vld [vmem:[%s912_s11 + $0x8] sm:$0xf]  ;;  %v9484_v19 = vpack.c.bf16 %v1149_v18, %v1148_v17  ;;  %v1151_v23 = vld [vmem:[%s10543_s25 + $0x18] sm:$0xff]  ;;  %s10498_s18 = smov 125   ;;  %s10499_s22 = smov 122  }
  0x40   : > { %8588 = vmatprep.mubr.msk.f32.mxu0 %vm944_vm0, %v923_v9  ;;  %v1158_v20 = vld [vmem:[%s12102_s3] sm:$0xff]  ;;  %v9488_v24 = vpack.c.bf16 %v1151_v23, %v1150_v22  ;;  %v1160_v25 = vld [vmem:[%s12102_s3 + $0x10] sm:$0xff]  ;;  %v1161_v26 = vld [vmem:[%s12102_s3 + $0x18] sm:$0xff]  ;;  %s10500_s23 = smov 119   ;;  %s10501_s26 = smov 116  }
  0x41   : > { %1043 = vperm.xlu1 %10118, %v943_v16   ;;  %9485 = vmatprep.subr.bf16.mxu1 %v9484_v19  ;;  %vm10701_vm4 = vmpackc.low %vm1059_vm2, %vm10495_vm3  ;;  %v937_v31 = vld [vmem:[%s10533_s17 + $0x8] sm:$0xff]  ;;  %v938_v32 = vld [vmem:[%s10533_s17 + $0x10] sm:$0xff]  ;;  %s12110_s28 = sld [smem:[#allocation6_spill]]  ;;  %s10502_s1 = smov 113  }
  0x42   : > { %9473 = vmatpush3.bf16.msra.mxu0 %v9470_v5  ;;  %1033 = vperm.xlu0 %10117, %v941_v15   ;;  %v12104_v29 = vsel %vm10701_vm4, 4294967295, %v12103_v29  ;;  %v939_v33 = vld [vmem:[%s10533_s17 + $0x18] sm:$0xff]  ;;  %v1152_v34 = vld [vmem:[%s10543_s25 + $0x20] sm:$0xff]  ;;  %v1153_v35 = vld [vmem:[%s10543_s25 + $0x28] sm:$0xff]  ;;  %s12112_s2 = sld [smem:[#allocation7_spill]]  ;;  %s12113_s0 = sld [smem:[#allocation10_spill]] }
  0x43   : > { %9475 = vmatprep.subr.bf16.mxu0 %v9474_v8  ;;  %9487 = vmatpush3.bf16.msra.mxu1 %v9484_v19  ;;  %12105 = vst [vmem:[#allocation15_spill] sm:$0xff] %v12104_v29  ;;  %v9492_v36 = vpack.c.bf16 %v1153_v35, %v1152_v34  ;;  %v1154_v49 = vld [vmem:[%s10548_s29] sm:$0xff]  ;;  %v1155_v56 = vld [vmem:[%s10548_s29 + $0x8] sm:$0xff]  ;;  %v1156_v57 = vld [vmem:[%s10548_s29 + $0x10] sm:$0xff]  ;;  %s12114_s11 = sld [smem:[#allocation8_spill]]  ;;  %s10508_s3 = smov 127  }
  0x44   : > { %9489 = vmatprep.subr.bf16.mxu1 %v9488_v24  ;;  %v1157_v58 = vld [vmem:[%s10548_s29 + $0x18] sm:$0xff] }
  0x45   : > { %1266 = vperm.xlu1 %10118, %v1159_v21  }
  0x46   : > { %9477 = vmatpush3.bf16.msra.mxu0 %v9474_v8  ;;  %1261 = vperm.xlu0 %10117, %v1158_v20   ;;  %v1386_v20 = vlaneseq }
  0x47   : > { %9491 = vmatpush3.bf16.msra.mxu1 %v9488_v24 }
  0x48   : > { %9493 = vmatprep.subr.bf16.mxu1 %v9492_v36  ;;  %v10770_v21 = vand.u32 127, %v1386_v20 }
  0x49   : > { %8589 = vmatmul.mubr.msk.f32.vlgmr.msra.gmra.mrb[0].mxu0 %vm944_vm0, %v924_v10  ;;  %1276 = vperm.xlu1 %10118, %v1161_v26  }
  0x4a   : > { %8595 = vmatprep.mubr.msk.f32.mxu0 %vm1046_vm1, %v936_v11  ;;  %1271 = vperm.xlu0 %10117, %v1160_v25   ;;  %vm1425_vm6 = vcmp.ge.s32.totalorder %v10770_v21, 8  ;;  %vm1427_vm7 = vcmp.ge.s32.totalorder %v10770_v21, 16  ;;  %vm1430_vm8 = vcmp.ge.s32.totalorder %v10770_v21, 24 }
  0x4b   : > { %9495 = vmatpush3.bf16.msra.mxu1 %v9492_v36  ;;  %v1426_v22 = vsel %vm1425_vm6, 1, %v12080_v14  ;;  %v10776_v23 = vsel %vm1427_vm7, 1, %v12080_v14  ;;  %v1431_v25 = vsel %vm1430_vm8, 1, %v12080_v14 }
  0x4c   : > { %v1429_v24 = vadd.s32 %v10776_v23, %v1426_v22 }
  0x4e   : > { %v1432_v26 = vadd.s32 %v1431_v25, %v1429_v24 }
  0x50   : > { %vm7629_vm9 = vcmp.eq.s32.totalorder %v1432_v26, 0  ;;  %vm7630_vm10 = vcmp.eq.s32.totalorder %v1432_v26, 1  ;;  %vm7631_vm11 = vcmp.eq.s32.totalorder %v1432_v26, 2  ;;  %vm7632_vm12 = vcmp.eq.s32.totalorder %v1432_v26, 3 }
  0xbc   : > { %v1039_v38 = vpop.permute.xlu1 %1038 }
  0xbd   : > { %v1029_v37 = vpop.permute.xlu0 %1028 }
  0xc0   : > { %v1044_v46 = vpop.permute.xlu1 %1043 }
  0xc1   : > { %v1034_v41 = vpop.permute.xlu0 %1033 }
  0xc4   : > { %v1267_v60 = vpop.permute.xlu1 %1266 }
  0xc5   : > { %v1262_v59 = vpop.permute.xlu0 %1261 }
  0xc8   : > { %v1277_v12 = vpop.permute.xlu1 %1276 }
  0xc9   : > { %v1272_v5 = vpop.permute.xlu0 %1271 }
 0x11c   : > { %v8590_v27 = vpop.f32.mrb[0].mxu0 }
 0x11d   : > { %v1017_v28 = vpop.f32.mrb[1].mxu0 }
 0x11e   : > { %v9478_v30 = vpack.c.bf16 %v8590_v27, %v1017_v28  ;;  %v12082_v27 = vmov 0.0  }
 0x11f   : > { %v1437_v28 = vsel %vm7629_vm9, 0.0026041667, %v12082_v27 }
 0x120   : > { %9480 = vmatprep.subr.msk.bf16.mxu0 %vm10701_vm4, %v9478_v30 }
 0x121   : > { %9483 = vmatpush3.bf16.msk.msra.mxu0 %vm10701_vm4, %v9478_v30 }
 0x124   : > { %8596 = vmatmul.mubr.msk.f32.vlgmr.msra.gmra.mrb[2].mxu0 %vm1046_vm1, %v937_v31 }
 0x125   : > { %8598 = vmatprep.mubr.msk.f32.mxu0 %vm1046_vm1, %v938_v32 }
 0x128   : > { %8599 = vmatmul.mubr.msk.f32.gmra.mrb[4].mxu0 %vm1046_vm1, %v939_v33 }
 0x129   : > { %8627 = vmatprep.mubr.msk.f32.mxu0 %vm1279_vm5, %v1154_v49 }
 0x1f7   : > { %v8597_v39 = vpop.f32.mrb[2].mxu0 }
 0x1f8   : > { %v1129_v40 = vpop.f32.mrb[3].mxu0  ;;  %v10719_v43 = vadd.f32 %v8597_v39, %v1034_v41  ;;  %v1438_v41 = vsel %vm7630_vm10, 0.0026041667, %v12082_v27 }
 0x1f9   : > { %v10717_v42 = vadd.f32 %v1129_v40, %v1029_v37 }
 0x1fb   : > { %v8600_v44 = vpop.f32.mrb[4].mxu0  ;;  %8613 = vmatprep.mubr.msk.f32.mxu1 %vm944_vm0, %v10717_v42 }
 0x1fc   : > { %v1139_v45 = vpop.f32.mrb[5].mxu0  ;;  %8614 = vmatmul.mubr.msk.f32.vlgmr.msra.gmra.mrb[0].mxu1 %vm944_vm0, %v10719_v43  ;;  %v10727_v48 = vadd.f32 %v8600_v44, %v1044_v46  ;;  %v1440_v46 = vsel %vm7632_vm12, 0.0026041667, %v12082_v27 }
 0x1fd   : > { %v10725_v47 = vadd.f32 %v1139_v45, %v1039_v38  ;;  %v1439_v45 = vsel %vm7631_vm11, 0.0026041667, %v12082_v27 }
 0x1ff   : > { %8616 = vmatprep.mubr.msk.f32.mxu1 %vm944_vm0, %v10725_v47 }
 0x200   : > { %8617 = vmatmul.mubr.msk.f32.gmra.mrb[2].mxu1 %vm944_vm0, %v10727_v48 }
 0x201   : > { %8641 = vmatprep.mubr.msk.f32.mxu1 %vm1279_vm5, %v1437_v28 }
 0x2cf   : > { %v8615_v50 = vpop.f32.mrb[0].mxu1 }
 0x2d0   : > { %v1240_v51 = vpop.f32.mrb[1].mxu1 }
 0x2d1   : > { %v9496_v52 = vpack.c.bf16 %v8615_v50, %v1240_v51 }
 0x2d3   : > { %v8618_v53 = vpop.f32.mrb[2].mxu1  ;;  %9497 = vmatprep.subr.bf16.mxu0 %v9496_v52 }
 0x2d4   : > { %v1250_v54 = vpop.f32.mrb[3].mxu1  ;;  %9499 = vmatpush3.bf16.msra.mxu0 %v9496_v52 }
 0x2d5   : > { %v9500_v55 = vpack.c.bf16 %v8618_v53, %v1250_v54 }
 0x2d7   : > { %9501 = vmatprep.subr.bf16.mxu0 %v9500_v55 }
 0x2d8   : > { %9503 = vmatpush3.bf16.msra.mxu0 %v9500_v55 }
 0x2db   : > { %8628 = vmatmul.mubr.msk.f32.vlgmr.msra.gmra.mrb[6].mxu0 %vm1279_vm5, %v1155_v56 }
 0x2dc   : > { %8630 = vmatprep.mubr.msk.f32.mxu0 %vm1279_vm5, %v1156_v57 }
 0x2df   : > { %8631 = vmatmul.mubr.msk.f32.gmra.mrb[8].mxu0 %vm1279_vm5, %v1157_v58 }
 0x2e0   : > { %8655 = vmatprep.mubr.msk.f32.mxu0 %vm1279_vm5, %v1437_v28 }
 0x3ae   : > { %v8629_v61 = vpop.f32.mrb[6].mxu0 }
 0x3af   : > { %v10741_v62 = vadd.f32 %v8629_v61, %v1267_v60  ;;  %v1358_v63 = vpop.f32.mrb[7].mxu0 }
 0x3b0   : > { %v10743_v0 = vadd.f32 %v1358_v63, %v1262_v59 }
 0x3b1   : > { %v1444_v1 = vsel %vm944_vm0, %v10741_v62, 0.0  ;;  %v1454_v4 = vmul.f32 %v10741_v62, %v10741_v62 }
 0x3b2   : > { %1445 = vadd.xlane.f32.xlu1 %v1444_v1  ;;  %v8632_v2 = vpop.f32.mrb[8].mxu0  ;;  %v1441_v3 = vsel %vm944_vm0, %v10743_v0, 0.0  ;;  %v1453_v11 = vmul.f32 %v10743_v0, %v10743_v0 }
 0x3b3   : > { %v1368_v6 = vpop.f32.mrb[9].mxu0  ;;  %1442 = vadd.xlane.f32.xlu0 %v1441_v3  ;;  %v1460_v9 = vsel %vm944_vm0, %v1454_v4, 0.0  ;;  %v10760_v13 = vadd.f32 %v8632_v2, %v1277_v12 }
 0x3b4   : > { %v10751_v7 = vadd.f32 %v1368_v6, %v1272_v5  ;;  %v1457_v16 = vsel %vm944_vm0, %v1453_v11, 0.0 }
 0x3b5   : > { %v1450_v17 = vsel %vm944_vm0, %v10760_v13, 0.0  ;;  %v1456_v18 = vmul.f32 %v10760_v13, %v10760_v13 }
 0x3b6   : > { %v1447_v8 = vsel %vm944_vm0, %v10751_v7, 0.0  ;;  %v1455_v10 = vmul.f32 %v10751_v7, %v10751_v7 }
 0x3b7   : > { %1448 = vadd.xlane.f32.xlu1 %v1447_v8  ;;  %1461 = vadd.xlane.f32.xlu0 %v1460_v9  ;;  %v1466_v19 = vsel %vm944_vm0, %v1456_v18, 0.0  ;;  %v1737_v18 = vmul.u32 2, %v10770_v21 }
 0x3b8   : > { %v1463_v15 = vsel %vm944_vm0, %v1455_v10, 0.0 }
 0x3b9   : > { %v1744_v24 = vadd.s32 1, %v1737_v18 }
 0x3bb   : > { %1464 = vadd.xlane.f32.xlu1 %v1463_v15  ;;  %1458 = vadd.xlane.f32.xlu0 %v1457_v16 }
 0x3bf   : > { %1451 = vadd.xlane.f32.xlu0 %v1450_v17  ;;  %v10794_v17 = vshrl.u32 %v1386_v20, 7  ;;  %v2058_v20 = vld [vmem:[%s10573_s24 + $0x10] sm:$0xff] }
 0x3c1   : > { %v10799_v22 = vadd.s32 8, %v10794_v17  ;;  %vm1738_vm13 = vcmp.ge.s32.totalorder %v10794_v17, %v1737_v18  ;;  %vm1745_vm15 = vcmp.le.s32.totalorder %v10794_v17, %v1744_v24  ;;  %v1389_v28 = vadd.s32 16, %v10794_v17 }
 0x3c2   : > { %vm10806_vm3 = vmand %vm1738_vm13, %vm1745_vm15 }
 0x3c3   : > { %1467 = vadd.xlane.f32.xlu0 %v1466_v19  ;;  %v2056_v19 = vld [vmem:[%s10573_s24] sm:$0xff]  ;;  %vm1739_vm14 = vcmp.ge.s32.totalorder %v10799_v22, %v1737_v18  ;;  %vm1746_vm2 = vcmp.le.s32.totalorder %v10799_v22, %v1744_v24  ;;  %vm1740_vm8 = vcmp.ge.s32.totalorder %v1389_v28, %v1737_v18  ;;  %vm1747_vm10 = vcmp.le.s32.totalorder %v1389_v28, %v1744_v24 }
 0x3c4   : > { %vm1752_vm6 = vmand %vm1739_vm14, %vm1746_vm2 }
 0x3c5   : > { %vm9520_vm7 = vmpackc.low %vm1752_vm6, %vm10806_vm3 }
 0x3c6   : > { %vm1753_vm12 = vmand %vm1740_vm8, %vm1747_vm10  ;;  %vm2064_vm10 = vcmask 195584  }
 0x43f   : > { %v1446_v30 = vpop.xlane.xlu1 %1445 }
 0x440   : > { %v1443_v31 = vpop.xlane.xlu0 %1442 }
 0x441   : > { %v9504_v32 = vpack.c.bf16 %v1446_v30, %v1443_v31  ;;  %v1390_v30 = vadd.s32 24, %v10794_v17  ;;  %v2057_v31 = vld [vmem:[%s10573_s24 + $0x8] sm:$0xff] }
 0x443   : > { %9505 = vmatprep.subr.bf16.mxu1 %v9504_v32  ;;  %vm1741_vm9 = vcmp.ge.s32.totalorder %v1390_v30, %v1737_v18  ;;  %vm1748_vm11 = vcmp.le.s32.totalorder %v1390_v30, %v1744_v24  ;;  %v2047_v30 = vld [vmem:[%s10563_s14 + $0x10] sm:$0xff] }
 0x444   : > { %9507 = vmatpush3.bf16.msra.mxu1 %v9504_v32  ;;  %v1462_v33 = vpop.xlane.xlu0 %1461  ;;  %v1449_v36 = vpop.xlane.xlu1 %1448  ;;  %v10497_v32 = vmov 0.5|0.5   ;;  %vm1754_vm13 = vmand %vm1741_vm9, %vm1748_vm11 }
 0x445   : > { %vm9524_vm14 = vmpackc.low %vm1754_vm13, %vm1753_vm12  ;;  %vm2484_vm12 = vcmask 523264  }
 0x448   : > { %v1459_v34 = vpop.xlane.xlu0 %1458  ;;  %v1465_v39 = vpop.xlane.xlu1 %1464 }
 0x449   : > { %v9512_v35 = vpack.c.bf16 %v1462_v33, %v1459_v34  ;;  %v2060_v33 = vld [vmem:[%s10573_s24 + $0x20] sm:$0xff]  ;;  %v1735_v34 = vadd.s32 32, %v10794_v17 }
 0x44b   : > { %9513 = vmatprep.subr.bf16.mxu0 %v9512_v35  ;;  %vm1742_vm15 = vcmp.ge.s32.totalorder %v1735_v34, %v1737_v18  ;;  %vm1749_vm3 = vcmp.le.s32.totalorder %v1735_v34, %v1744_v24  ;;  %v1861_v34 = vld [vmem:[%s10583_s6 + $0x8] sm:$0xff] }
 0x44c   : > { %9515 = vmatpush3.bf16.msra.mxu0 %v9512_v35  ;;  %v1452_v37 = vpop.xlane.xlu0 %1451  ;;  %v1736_v35 = vadd.s32 40, %v10794_v17 }
 0x44d   : > { %v9508_v38 = vpack.c.bf16 %v1452_v37, %v1449_v36  ;;  %v2059_v36 = vld [vmem:[%s10573_s24 + $0x18] sm:$0xff]  ;;  %v2062_v37 = vld [vmem:[%s10573_s24 + $0x30] sm:$0xff] }
 0x44e   : > { %vm1743_vm2 = vcmp.ge.s32.totalorder %v1736_v35, %v1737_v18  ;;  %vm1750_vm6 = vcmp.le.s32.totalorder %v1736_v35, %v1744_v24  ;;  %v1862_v35 = vld [vmem:[%s10583_s6 + $0x10] sm:$0xff] }
 0x44f   : > { %9509 = vmatprep.subr.bf16.mxu1 %v9508_v38  ;;  %vm1756_vm8 = vmand %vm1743_vm2, %vm1750_vm6  ;;  %vm4789_vm2 = vcmask 23552   ;;  %vm4754_vm6 = vcmp.ge.s32.totalorder %v10770_v21, 96 }
 0x450   : > { %9511 = vmatpush3.bf16.msra.mxu1 %v9508_v38  ;;  %v1468_v40 = vpop.xlane.xlu0 %1467  ;;  %v2061_v38 = vld [vmem:[%s10573_s24 + $0x28] sm:$0xff] }
 0x451   : > { %v9516_v44 = vpack.c.bf16 %v1468_v40, %v1465_v39  ;;  %9521 = vmatprep.subr.msk.bf16.mxu1 %vm9520_vm7, %v10497_v32  ;;  %v2063_v39 = vld [vmem:[%s10573_s24 + $0x38] sm:$0xff]  ;;  %v2045_v40 = vld [vmem:[%s10563_s14] sm:$0xff] }
 0x453   : > { %8642 = vmatmul.mubr.msk.f32.vlgmr.msra.gmra.mrb[4].mxu1 %vm1279_vm5, %v1438_v41  ;;  %9517 = vmatprep.subr.bf16.mxu0 %v9516_v44 }
 0x454   : > { %9519 = vmatpush3.bf16.msra.mxu0 %v9516_v44  ;;  %8644 = vmatprep.mubr.msk.f32.mxu1 %vm1279_vm5, %v1439_v45 }
 0x455   : > { %9523 = vmatpush3.bf16.msk.msra.mxu1 %vm9520_vm7, %v10497_v32  ;;  %vm1755_vm7 = vmand %vm1742_vm15, %vm1749_vm3  ;;  %vm4751_vm3 = vcmp.ge.s32.totalorder %v10770_v21, 64 }
 0x456   : > { %9525 = vmatprep.subr.msk.bf16.mxu1 %vm9524_vm14, %v10497_v32  ;;  %vm9528_vm9 = vmpackc.low %vm1756_vm8, %vm1755_vm7 }
 0x457   : > { %8645 = vmatmul.mubr.msk.f32.gmra.mrb[6].mxu1 %vm1279_vm5, %v1440_v46  ;;  %8656 = vmatmul.mubr.msk.f32.vlgmr.msra.gmra.mrb[10].mxu0 %vm1279_vm5, %v1438_v41  ;;  %v2046_v41 = vld [vmem:[%s10563_s14 + $0x8] sm:$0xff] }
 0x458   : > { %8658 = vmatprep.mubr.msk.f32.mxu0 %vm1279_vm5, %v1439_v45  ;;  %v9540_v44 = vpack.c.bf16 %v2046_v41, %v2045_v40  ;;  %v1867_v40 = vld [vmem:[%s10583_s6 + $0x38] sm:$0xff]  ;;  %v2048_v41 = vld [vmem:[%s10568_s19] sm:$0xff] }
 0x459   : > { %9527 = vmatpush3.bf16.msk.msra.mxu1 %vm9524_vm14, %v10497_v32 }
 0x45a   : > { %9529 = vmatprep.subr.msk.bf16.mxu1 %vm9528_vm9, %v10497_v32 }
 0x45b   : > { %8659 = vmatmul.mubr.msk.f32.gmra.mrb[12].mxu0 %vm1279_vm5, %v1440_v46 }
 0x45d   : > { %9531 = vmatpush3.bf16.msk.msra.mxu1 %vm9528_vm9, %v10497_v32 }
 0x45e   : > { %9541 = vmatprep.subr.bf16.mxu1 %v9540_v44 }
 0x526   : > { %v8643_v49 = vpop.f32.mrb[4].mxu1 }
 0x527   : > { %v1652_v50 = vmul.f32 %v8643_v49, %v8643_v49  ;;  %1670 = vperm.xlu0 %10117, %v8643_v49   ;;  %v1547_v51 = vpop.f32.mrb[5].mxu1 }
 0x528   : > { %v1651_v52 = vmul.f32 %v1547_v51, %v1547_v51  ;;  %1665 = vperm.xlu1 %10118, %v1547_v51  }
 0x52a   : > { %v8646_v53 = vpop.f32.mrb[6].mxu1  ;;  %v8657_v54 = vpop.f32.mrb[10].mxu0 }
 0x52b   : > { %v1654_v55 = vmul.f32 %v8646_v53, %v8646_v53  ;;  %v1656_v56 = vsub.f32 %v8657_v54, %v1652_v50  ;;  %v1557_v57 = vpop.f32.mrb[7].mxu1  ;;  %v1632_v58 = vpop.f32.mrb[11].mxu0  ;;  %v1378_v50 = vld [vmem:[%s10558_s8 + $0x8] sm:$0xff] }
 0x52c   : > { %v1653_v59 = vmul.f32 %v1557_v57, %v1557_v57  ;;  %v1655_v60 = vsub.f32 %v1632_v58, %v1651_v52  ;;  %1675 = vperm.xlu0 %10117, %v1557_v57   ;;  %v1377_v58 = vld [vmem:[%s10558_s8] sm:$0xff] }
 0x52d   : > { %v1660_v61 = vmax.f32 %v1656_v56, 0.0 }
 0x52e   : > { %v1659_v63 = vmax.f32 %v1655_v60, 0.0  ;;  %v8660_v1 = vpop.f32.mrb[12].mxu0 }
 0x52f   : > { %v1688_v2 = vadd.f32 1e-05, %v1660_v61  ;;  %v1658_v3 = vsub.f32 %v8660_v1, %v1654_v55  ;;  %v1642_v4 = vpop.f32.mrb[13].mxu0  ;;  %v7626_v55 = vld [vmem:[%s10558_s8 + $0x28] sm:$0xff]  ;;  %v1379_v61 = vld [vmem:[%s10558_s8 + $0x10] sm:$0xff] }
 0x530   : > { %v1657_v5 = vsub.f32 %v1642_v4, %v1653_v59  ;;  %v1687_v6 = vadd.f32 1e-05, %v1659_v63  ;;  %v7627_v4 = vld [vmem:[%s10558_s8 + $0x30] sm:$0xff] }
 0x531   : > { %10299 = vrsqrt.f32 %v1688_v2  ;;  %v1662_v10 = vmax.f32 %v1658_v3, 0.0 }
 0x532   : > { %v1661_v8 = vmax.f32 %v1657_v5, 0.0  ;;  %10301 = vrsqrt.f32 %v1687_v6 }
 0x533   : > { %v1690_v11 = vadd.f32 1e-05, %v1662_v10 }
 0x534   : > { %v1689_v9 = vadd.f32 1e-05, %v1661_v8 }
 0x536   : > { %10303 = vrsqrt.f32 %v1689_v9  ;;  %v1380_v9 = vld [vmem:[%s10558_s8 + $0x18] sm:$0xff] }
 0x537   : > { %10305 = vrsqrt.f32 %v1690_v11 }
 0x53b   : > { %v10300_v12 = vpop.eup %10299 }
 0x53c   : > { %1702 = vperm.xlu1 %10118, %v10300_v12   ;;  %v10302_v15 = vpop.eup %10301  ;;  %v7628_v12 = vld [vmem:[%s10558_s8 + $0x38] sm:$0xff] }
 0x540   : > { %v10304_v16 = vpop.eup %10303  ;;  %1697 = vperm.xlu1 %10118, %v10302_v15  }
 0x541   : > { %1707 = vperm.xlu0 %10117, %v10304_v16   ;;  %v10306_v26 = vpop.eup %10305 }
 0x544   : > { %1680 = vperm.xlu1 %10118, %v8646_v53  }
 0x545   : > { %2164 = vperm.xlu0 %10117, %v2056_v19  }
 0x548   : > { %1712 = vperm.xlu1 %10118, %v10306_v26  }
 0x549   : > { %2174 = vperm.xlu0 %10117, %v2058_v20  }
 0x54c   : > { %2169 = vperm.xlu1 %10118, %v2057_v31  }
 0x54d   : > { %2184 = vperm.xlu0 %10117, %v2060_v33  }
 0x550   : > { %2179 = vperm.xlu1 %10118, %v2059_v36   ;;  %v1863_v36 = vld [vmem:[%s10583_s6 + $0x18] sm:$0xff] }
 0x551   : > { %2194 = vperm.xlu0 %10117, %v2062_v37   ;;  %v1864_v37 = vld [vmem:[%s10583_s6 + $0x20] sm:$0xff] }
 0x554   : > { %2189 = vperm.xlu1 %10118, %v2061_v38   ;;  %v1865_v38 = vld [vmem:[%s10583_s6 + $0x28] sm:$0xff] }
 0x558   : > { %2199 = vperm.xlu1 %10118, %v2063_v39   ;;  %v1866_v39 = vld [vmem:[%s10583_s6 + $0x30] sm:$0xff] }
 0x5a6   : > { %v1671_v45 = vpop.permute.xlu0 %1670 }
 0x5a7   : > { %v1666_v46 = vpop.permute.xlu1 %1665  ;;  %v1684_v49 = vsub.f32 %v10741_v62, %v1671_v45  ;;  %v7625_v62 = vld [vmem:[%s10558_s8 + $0x20] sm:$0xff] }
 0x5a8   : > { %v1683_v54 = vsub.f32 %v10743_v0, %v1666_v46 }
 0x5ab   : > { %v1676_v52 = vpop.permute.xlu0 %1675 }
 0x5ac   : > { %v1685_v57 = vsub.f32 %v10751_v7, %v1676_v52  ;;  %v2049_v52 = vld [vmem:[%s10568_s19 + $0x8] sm:$0xff] }
 0x5bb   : > { %v1703_v51 = vpop.permute.xlu1 %1702 }
 0x5bc   : > { %v1716_v53 = vmul.f32 %v1703_v51, %v1684_v49 }
 0x5be   : > { %v1720_v56 = vmul.f32 %v1716_v53, %v1378_v50 }
 0x5bf   : > { %v1698_v59 = vpop.permute.xlu1 %1697 }
 0x5c0   : > { %v1715_v60 = vmul.f32 %v1698_v59, %v1683_v54  ;;  %v1708_v63 = vpop.permute.xlu0 %1707  ;;  %v1724_v1 = vadd.f32 %v7626_v55, %v1720_v56  ;;  %v2050_v54 = vld [vmem:[%s10568_s19 + $0x10] sm:$0xff]  ;;  %v2051_v56 = vld [vmem:[%s10568_s19 + $0x18] sm:$0xff] }
 0x5c1   : > { %v1717_v2 = vmul.f32 %v1708_v63, %v1685_v57  ;;  %v2052_v57 = vld [vmem:[%s10568_s19 + $0x20] sm:$0xff]  ;;  %v2054_v59 = vld [vmem:[%s10568_s19 + $0x30] sm:$0xff] }
 0x5c2   : > { %v1719_v3 = vmul.f32 %v1715_v60, %v1377_v58  ;;  %10307 = vtanh.f32 %v1724_v1  ;;  %v2053_v58 = vld [vmem:[%s10568_s19 + $0x28] sm:$0xff]  ;;  %v2055_v60 = vld [vmem:[%s10568_s19 + $0x38] sm:$0xff] }
 0x5c3   : > { %v1721_v5 = vmul.f32 %v1717_v2, %v1379_v61  ;;  %v1681_v6 = vpop.permute.xlu1 %1680 }
 0x5c4   : > { %v1723_v8 = vadd.f32 %v7625_v62, %v1719_v3  ;;  %v1686_v7 = vsub.f32 %v10760_v13, %v1681_v6 }
 0x5c5   : > { %v1725_v0 = vadd.f32 %v7627_v4, %v1721_v5  ;;  %v2165_v4 = vpop.permute.xlu0 %2164 }
 0x5c6   : > { %10309 = vtanh.f32 %v1723_v8 }
 0x5c7   : > { %10311 = vtanh.f32 %v1725_v0  ;;  %v1713_v10 = vpop.permute.xlu1 %1712 }
 0x5c8   : > { %v1718_v11 = vmul.f32 %v1713_v10, %v1686_v7 }
 0x5ca   : > { %v1722_v15 = vmul.f32 %v1718_v11, %v1380_v9 }
 0x5cb   : > { %v2170_v5 = vpop.permute.xlu1 %2169 }
 0x5cc   : > { %v1726_v16 = vadd.f32 %v7628_v12, %v1722_v15  ;;  %v10308_v18 = vpop.eup %10307  ;;  %v2175_v15 = vpop.permute.xlu0 %2174 }
 0x5cd   : > { %v1732_v25 = vadd.f32 %v10308_v18, %v10719_v43 }
 0x5ce   : > { %10313 = vtanh.f32 %v1726_v16 }
 0x5d0   : > { %v10310_v19 = vpop.eup %10309 }
 0x5d1   : > { %v10312_v24 = vpop.eup %10311  ;;  %v1731_v20 = vadd.f32 %v10310_v19, %v10717_v42  ;;  %v1860_v42 = vld [vmem:[%s10583_s6] sm:$0xff] }
 0x5d2   : > { %v1733_v26 = vadd.f32 %v10312_v24, %v10725_v47  ;;  %8687 = vmatprep.mubr.msk.f32.mxu0 %vm1279_vm5, %v1860_v42 }
 0x5d3   : > { %8673 = vmatprep.mubr.msk.f32.mxu1 %vm944_vm0, %v1731_v20 }
 0x5d4   : > { %8674 = vmatmul.mubr.msk.f32.vlgmr.msra.gmra.mrb[8].mxu1 %vm944_vm0, %v1732_v25 }
 0x5d5   : > { %8676 = vmatprep.mubr.msk.f32.mxu1 %vm944_vm0, %v1733_v26  ;;  %9543 = vmatpush3.bf16.msra.mxu1 %v9540_v44 }
 0x5d6   : > { %8703 = vmatprep.subr.mxu1 %v2047_v30 }
 0x5d8   : > { %v10314_v13 = vpop.eup %10313 }
 0x5d9   : > { %v1734_v28 = vadd.f32 %v10314_v13, %v10727_v48  ;;  %8704 = vmatpush3.msra.mxu1 %v2047_v30  ;;  %v2180_v30 = vpop.permute.xlu1 %2179 }
 0x5db   : > { %8677 = vmatmul.mubr.msk.f32.gmra.mrb[10].mxu1 %vm944_vm0, %v1734_v28  ;;  %v2185_v28 = vpop.permute.xlu0 %2184  ;;  %vm2406_vm0 = vcmp.ge.s32.totalorder %v10770_v21, 32 }
 0x6a7   : > { %v8675_v43 = vpop.f32.mrb[8].mxu1 }
 0x6a8   : > { %v1841_v47 = vpop.f32.mrb[9].mxu1 }
 0x6a9   : > { %v9532_v31 = vpack.c.bf16 %v8675_v43, %v1841_v47  ;;  %8705 = vmatprep.mubr.msk.f32.mxu1 %vm2064_vm10, %v1841_v47 }
 0x6aa   : > { %8706 = vmatmul.mubr.msk.f32.vlgmr.msra.gmra.mrb[12].mxu1 %vm2064_vm10, %v8675_v43 }
 0x6ab   : > { %9533 = vmatprep.subr.bf16.mxu0 %v9532_v31 }
 0x6ac   : > { %9535 = vmatpush3.bf16.msra.mxu0 %v9532_v31 }
 0x6ae   : > { %v8678_v48 = vpop.f32.mrb[10].mxu1 }
 0x6af   : > { %v1851_v32 = vpop.f32.mrb[11].mxu1 }
 0x6b0   : > { %v9536_v33 = vpack.c.bf16 %v8678_v48, %v1851_v32  ;;  %8708 = vmatprep.mubr.msk.f32.mxu1 %vm2064_vm10, %v1851_v32 }
 0x6b1   : > { %8709 = vmatmul.mubr.msk.f32.gmra.mrb[14].mxu1 %vm2064_vm10, %v8678_v48 }
 0x6b2   : > { %9537 = vmatprep.subr.bf16.mxu0 %v9536_v33 }
 0x6b3   : > { %9539 = vmatpush3.bf16.msra.mxu0 %v9536_v33 }
 0x6b6   : > { %8688 = vmatmul.mubr.msk.f32.vlgmr.msra.gmra.mrb[14].mxu0 %vm1279_vm5, %v1861_v34 }
 0x6b7   : > { %8690 = vmatprep.mubr.msk.f32.mxu0 %vm1279_vm5, %v1862_v35 }
 0x6ba   : > { %8691 = vmatmul.mubr.msk.f32.gmra.mrb[16].mxu0 %vm1279_vm5, %v1863_v36 }
 0x6bb   : > { %8693 = vmatprep.mubr.msk.f32.mxu0 %vm1279_vm5, %v1864_v37  ;;  %v2195_v37 = vpop.permute.xlu0 %2194 }
 0x6be   : > { %8694 = vmatmul.mubr.msk.f32.gmra.mrb[18].mxu0 %vm1279_vm5, %v1865_v38  ;;  %v2190_v38 = vpop.permute.xlu1 %2189 }
 0x6bf   : > { %8696 = vmatprep.mubr.msk.f32.mxu0 %vm1279_vm5, %v1866_v39 }
 0x6c2   : > { %8697 = vmatmul.mubr.msk.f32.gmra.mrb[20].mxu0 %vm1279_vm5, %v1867_v40 }
 0x6c3   : > { %8719 = vmatprep.mubr.msk.f32.mxu0 %vm1279_vm5, %v2048_v41 }
 0x77d   : > { %v8707_v44 = vpop.f32.mrb[12].mxu1 }
 0x77e   : > { %v2143_v45 = vpop.f32.mrb[13].mxu1 }
 0x77f   : > { %v9544_v46 = vpack.c.bf16 %v8707_v44, %v2143_v45 }
 0x781   : > { %9545 = vmatprep.subr.bf16.mxu0 %v9544_v46 }
 0x782   : > { %9547 = vmatpush3.bf16.msra.mxu0 %v9544_v46 }
 0x784   : > { %v8710_v49 = vpop.f32.mrb[14].mxu1 }
 0x785   : > { %v2153_v50 = vpop.f32.mrb[15].mxu1 }
 0x786   : > { %v9548_v51 = vpack.c.bf16 %v8710_v49, %v2153_v50 }
 0x788   : > { %9549 = vmatprep.subr.bf16.mxu0 %v9548_v51 }
 0x789   : > { %9551 = vmatpush3.bf16.msra.mxu0 %v9548_v51  ;;  %v10868_v53 = vpop.f32.mrb[14].mxu0  ;;  %v2200_v51 = vpop.permute.xlu1 %2199 }
 0x78a   : > { %v10871_v55 = vpop.f32.mrb[15].mxu0 }
 0x78c   : > { %8720 = vmatmul.mubr.msk.f32.vlgmr.msra.gmra.mrb[22].mxu0 %vm1279_vm5, %v2049_v52 }
 0x78d   : > { %8722 = vmatprep.mubr.msk.f32.mxu0 %vm1279_vm5, %v2050_v54  ;;  %v10885_v61 = vpop.f32.mrb[16].mxu0 }
 0x78e   : > { %v10887_v63 = vpop.f32.mrb[17].mxu0 }
 0x790   : > { %8723 = vmatmul.mubr.msk.f32.gmra.mrb[24].mxu0 %vm1279_vm5, %v2051_v56 }
 0x791   : > { %8725 = vmatprep.mubr.msk.f32.mxu0 %vm1279_vm5, %v2052_v57  ;;  %v10889_v1 = vpop.f32.mrb[18].mxu0 }
 0x792   : > { %v10891_v62 = vpop.f32.mrb[19].mxu0 }
 0x794   : > { %8726 = vmatmul.mubr.msk.f32.gmra.mrb[26].mxu0 %vm1279_vm5, %v2053_v58 }
 0x795   : > { %8728 = vmatprep.mubr.msk.f32.mxu0 %vm1279_vm5, %v2054_v59  ;;  %v10893_v2 = vpop.f32.mrb[20].mxu0 }
 0x796   : > { %v10895_v3 = vpop.f32.mrb[21].mxu0 }
 0x798   : > { %8729 = vmatmul.mubr.msk.f32.gmra.mrb[28].mxu0 %vm1279_vm5, %v2055_v60  ;;  %v10955_v60 = vsel %vm2406_vm0, 1, %v12080_v14  ;;  %vm2409_vm5 = vcmp.ge.s32.totalorder %v10770_v21, 48 }
 0x85f   : > { %v8721_v6 = vpop.f32.mrb[22].mxu0 }
 0x860   : > { %v10897_v8 = vadd.f32 %v8721_v6, %v2170_v5  ;;  %v2292_v0 = vpop.f32.mrb[23].mxu0  ;;  %v2410_v5 = vsel %vm2409_vm5, 1, %v12080_v14  ;;  %vm10505_vm5 = vmmov 0  }
 0x861   : > { %v10899_v7 = vadd.f32 %v2292_v0, %v2165_v4  ;;  %v2408_v4 = vadd.s32 %v10955_v60, %v10776_v23 }
 0x862   : > { %v2431_v9 = vsel %vm2064_vm10, %v10897_v8, 0.0  ;;  %v2453_v12 = vmul.f32 %v10897_v8, %v10897_v8 }
 0x863   : > { %2432 = vadd.xlane.f32.xlu1 %v2431_v9  ;;  %v8724_v10 = vpop.f32.mrb[24].mxu0  ;;  %v2428_v11 = vsel %vm2064_vm10, %v10899_v7, 0.0  ;;  %v2452_v25 = vmul.f32 %v10899_v7, %v10899_v7  ;;  %v10961_v6 = vadd.s32 %v2410_v5, %v2408_v4 }
 0x864   : > { %v2302_v16 = vpop.f32.mrb[25].mxu0  ;;  %2429 = vadd.xlane.f32.xlu0 %v2428_v11  ;;  %v2463_v24 = vsel %vm2064_vm10, %v2453_v12, 0.0  ;;  %v10916_v42 = vadd.f32 %v8724_v10, %v2180_v30 }
 0x865   : > { %v10907_v18 = vadd.f32 %v2302_v16, %v2175_v15  ;;  %v2460_v31 = vsel %vm2064_vm10, %v2452_v25, 0.0  ;;  %vm7679_vm11 = vcmp.eq.s32.totalorder %v10961_v6, 0  ;;  %vm7681_vm13 = vcmp.eq.s32.totalorder %v10961_v6, 1 }
 0x866   : > { %v2437_v33 = vsel %vm2064_vm10, %v10916_v42, 0.0  ;;  %v2455_v35 = vmul.f32 %v10916_v42, %v10916_v42  ;;  %v2420_v0 = vsel %vm7679_vm11, 0.0026041667, %v12082_v27  ;;  %vm7683_vm14 = vcmp.eq.s32.totalorder %v10961_v6, 2 }
 0x867   : > { %v8727_v19 = vpop.f32.mrb[26].mxu0  ;;  %v2434_v20 = vsel %vm2064_vm10, %v10907_v18, 0.0  ;;  %v2454_v26 = vmul.f32 %v10907_v18, %v10907_v18  ;;  %8747 = vmatprep.mubr.msk.f32.mxu1 %vm2484_vm12, %v2420_v0  ;;  %8775 = vmatprep.mubr.msk.f32.mxu0 %vm2484_vm12, %v2420_v0  ;;  %vm7685_vm15 = vcmp.eq.s32.totalorder %v10961_v6, 3  ;;  %v10506_v6 = vmov 0.125|0.125  }
 0x868   : > { %v2312_v13 = vpop.f32.mrb[27].mxu0  ;;  %2464 = vadd.xlane.f32.xlu0 %v2463_v24  ;;  %2435 = vadd.xlane.f32.xlu1 %v2434_v20  ;;  %v10930_v39 = vadd.f32 %v8727_v19, %v2190_v38  ;;  %v2469_v41 = vsel %vm2064_vm10, %v2455_v35, 0.0  ;;  %v2422_v38 = vsel %vm7681_vm13, 0.0026041667, %v12082_v27 }
 0x869   : > { %v10918_v43 = vadd.f32 %v2312_v13, %v2185_v28  ;;  %v2466_v48 = vsel %vm2064_vm10, %v2454_v26, 0.0 }
 0x86a   : > { %v2443_v45 = vsel %vm2064_vm10, %v10930_v39, 0.0  ;;  %v2457_v49 = vmul.f32 %v10930_v39, %v10930_v39 }
 0x86b   : > { %v8730_v47 = vpop.f32.mrb[28].mxu0  ;;  %v2440_v34 = vsel %vm2064_vm10, %v10918_v43, 0.0  ;;  %v2456_v36 = vmul.f32 %v10918_v43, %v10918_v43 }
 0x86c   : > { %v2322_v32 = vpop.f32.mrb[29].mxu0  ;;  %2461 = vadd.xlane.f32.xlu0 %v2460_v31  ;;  %2467 = vadd.xlane.f32.xlu1 %v2466_v48  ;;  %v10944_v52 = vadd.f32 %v8730_v47, %v2200_v51  ;;  %v2475_v54 = vsel %vm2064_vm10, %v2457_v49, 0.0 }
 0x86d   : > { %v10932_v40 = vadd.f32 %v2322_v32, %v2195_v37  ;;  %v2472_v44 = vsel %vm2064_vm10, %v2456_v36, 0.0 }
 0x86e   : > { %v2449_v57 = vsel %vm2064_vm10, %v10944_v52, 0.0  ;;  %v2459_v58 = vmul.f32 %v10944_v52, %v10944_v52 }
 0x86f   : > { %v2446_v46 = vsel %vm2064_vm10, %v10932_v40, 0.0  ;;  %v2458_v50 = vmul.f32 %v10932_v40, %v10932_v40 }
 0x870   : > { %2438 = vadd.xlane.f32.xlu0 %v2437_v33  ;;  %2441 = vadd.xlane.f32.xlu1 %v2440_v34  ;;  %v2481_v59 = vsel %vm2064_vm10, %v2459_v58, 0.0 }
 0x871   : > { %v2478_v56 = vsel %vm2064_vm10, %v2458_v50, 0.0 }
 0x874   : > { %2470 = vadd.xlane.f32.xlu0 %v2469_v41  ;;  %2473 = vadd.xlane.f32.xlu1 %v2472_v44  ;;  %v2424_v41 = vsel %vm7683_vm14, 0.0026041667, %v12082_v27  ;;  %v2426_v44 = vsel %vm7685_vm15, 0.0026041667, %v12082_v27 }
 0x878   : > { %2444 = vadd.xlane.f32.xlu0 %v2443_v45  ;;  %2447 = vadd.xlane.f32.xlu1 %v2446_v46 }
 0x87c   : > { %2476 = vadd.xlane.f32.xlu0 %v2475_v54  ;;  %2479 = vadd.xlane.f32.xlu1 %v2478_v56 }
 0x880   : > { %2450 = vadd.xlane.f32.xlu0 %v2449_v57 }
 0x884   : > { %2482 = vadd.xlane.f32.xlu0 %v2481_v59 }
 0x8f0   : > { %v2433_v9 = vpop.xlane.xlu1 %2432 }
 0x8f1   : > { %v2430_v10 = vpop.xlane.xlu0 %2429 }
 0x8f2   : > { %v9552_v23 = vpack.c.bf16 %v2433_v9, %v2430_v10 }
 0x8f4   : > { %9553 = vmatprep.subr.bf16.mxu1 %v9552_v23 }
 0x8f5   : > { %v2436_v11 = vpop.xlane.xlu1 %2435  ;;  %9555 = vmatpush3.bf16.msra.mxu1 %v9552_v23  ;;  %v2465_v12 = vpop.xlane.xlu0 %2464 }
 0x8f9   : > { %v2468_v15 = vpop.xlane.xlu1 %2467  ;;  %v2462_v16 = vpop.xlane.xlu0 %2461 }
 0x8fa   : > { %v9568_v19 = vpack.c.bf16 %v2465_v12, %v2462_v16 }
 0x8fc   : > { %9569 = vmatprep.subr.bf16.mxu0 %v9568_v19 }
 0x8fd   : > { %9571 = vmatpush3.bf16.msra.mxu0 %v9568_v19  ;;  %v2439_v24 = vpop.xlane.xlu0 %2438  ;;  %v2442_v25 = vpop.xlane.xlu1 %2441 }
 0x8fe   : > { %v9556_v20 = vpack.c.bf16 %v2439_v24, %v2436_v11 }
 0x900   : > { %9557 = vmatprep.subr.bf16.mxu1 %v9556_v20 }
 0x901   : > { %9559 = vmatpush3.bf16.msra.mxu1 %v9556_v20  ;;  %v2471_v26 = vpop.xlane.xlu0 %2470  ;;  %v2474_v28 = vpop.xlane.xlu1 %2473 }
 0x902   : > { %v9572_v13 = vpack.c.bf16 %v2471_v26, %v2468_v15 }
 0x904   : > { %9573 = vmatprep.subr.bf16.mxu0 %v9572_v13 }
 0x905   : > { %9575 = vmatpush3.bf16.msra.mxu0 %v9572_v13  ;;  %v2445_v30 = vpop.xlane.xlu0 %2444  ;;  %v2448_v32 = vpop.xlane.xlu1 %2447 }
 0x906   : > { %v9560_v47 = vpack.c.bf16 %v2445_v30, %v2442_v25 }
 0x908   : > { %9561 = vmatprep.subr.bf16.mxu1 %v9560_v47 }
 0x909   : > { %9563 = vmatpush3.bf16.msra.mxu1 %v9560_v47  ;;  %v2477_v31 = vpop.xlane.xlu0 %2476  ;;  %v2480_v35 = vpop.xlane.xlu1 %2479 }
 0x90a   : > { %v9576_v48 = vpack.c.bf16 %v2477_v31, %v2474_v28 }
 0x90c   : > { %9577 = vmatprep.subr.bf16.mxu0 %v9576_v48 }
 0x90d   : > { %9579 = vmatpush3.bf16.msra.mxu0 %v9576_v48  ;;  %v2451_v33 = vpop.xlane.xlu0 %2450 }
 0x90e   : > { %v9564_v34 = vpack.c.bf16 %v2451_v33, %v2448_v32 }
 0x910   : > { %9565 = vmatprep.subr.bf16.mxu1 %v9564_v34 }
 0x911   : > { %9567 = vmatpush3.bf16.msra.mxu1 %v9564_v34  ;;  %v2483_v36 = vpop.xlane.xlu0 %2482 }
 0x912   : > { %v9580_v37 = vpack.c.bf16 %v2483_v36, %v2480_v35 }
 0x914   : > { %8748 = vmatmul.mubr.msk.f32.vlgmr.msra.gmra.mrb[16].mxu1 %vm2484_vm12, %v2420_v0  ;;  %9581 = vmatprep.subr.bf16.mxu0 %v9580_v37 }
 0x915   : > { %9583 = vmatpush3.bf16.msra.mxu0 %v9580_v37  ;;  %8750 = vmatprep.mubr.msk.f32.mxu1 %vm2484_vm12, %v2422_v38 }
 0x918   : > { %8751 = vmatmul.mubr.msk.f32.gmra.mrb[18].mxu1 %vm2484_vm12, %v2422_v38  ;;  %8776 = vmatmul.mubr.msk.f32.vlgmr.msra.gmra.mrb[30].mxu0 %vm2484_vm12, %v2420_v0 }
 0x919   : > { %8753 = vmatprep.mubr.msk.f32.mxu1 %vm2484_vm12, %v2424_v41  ;;  %8778 = vmatprep.mubr.msk.f32.mxu0 %vm2484_vm12, %v2422_v38 }
 0x91c   : > { %8754 = vmatmul.mubr.msk.f32.gmra.mrb[20].mxu1 %vm2484_vm12, %v2424_v41  ;;  %8779 = vmatmul.mubr.msk.f32.gmra.mrb[32].mxu0 %vm2484_vm12, %v2422_v38 }
 0x91d   : > { %8756 = vmatprep.mubr.msk.f32.mxu1 %vm2484_vm12, %v2426_v44  ;;  %8781 = vmatprep.mubr.msk.f32.mxu0 %vm2484_vm12, %v2424_v41 }
 0x920   : > { %8757 = vmatmul.mubr.msk.f32.gmra.mrb[22].mxu1 %vm2484_vm12, %v2426_v44  ;;  %8782 = vmatmul.mubr.msk.f32.gmra.mrb[34].mxu0 %vm2484_vm12, %v2424_v41 }
 0x921   : > { %8784 = vmatprep.mubr.msk.f32.mxu0 %vm2484_vm12, %v2426_v44 }
 0x924   : > { %8785 = vmatmul.mubr.msk.f32.gmra.mrb[36].mxu0 %vm2484_vm12, %v2426_v44 }
 0x9e7   : > { %v8749_v45 = vpop.f32.mrb[16].mxu1 }
 0x9e8   : > { %v2720_v46 = vmul.f32 %v8749_v45, %v8749_v45  ;;  %2750 = vperm.xlu0 %10117, %v8749_v45   ;;  %v2575_v49 = vpop.f32.mrb[17].mxu1 }
 0x9e9   : > { %v2719_v50 = vmul.f32 %v2575_v49, %v2575_v49  ;;  %2745 = vperm.xlu1 %10118, %v2575_v49  }
 0x9eb   : > { %v8752_v51 = vpop.f32.mrb[18].mxu1  ;;  %v8777_v54 = vpop.f32.mrb[30].mxu0 }
 0x9ec   : > { %v2722_v56 = vmul.f32 %v8752_v51, %v8752_v51  ;;  %v2728_v57 = vsub.f32 %v8777_v54, %v2720_v46  ;;  %v2585_v58 = vpop.f32.mrb[19].mxu1  ;;  %v2680_v59 = vpop.f32.mrb[31].mxu0 }
 0x9ed   : > { %v2721_v4 = vmul.f32 %v2585_v58, %v2585_v58  ;;  %v2727_v5 = vsub.f32 %v2680_v59, %v2719_v50  ;;  %2760 = vperm.xlu1 %10118, %v8752_v51   ;;  %2755 = vperm.xlu0 %10117, %v2585_v58  }
 0x9ee   : > { %v2736_v0 = vmax.f32 %v2728_v57, 0.0 }
 0x9ef   : > { %v2735_v9 = vmax.f32 %v2727_v5, 0.0  ;;  %v8755_v10 = vpop.f32.mrb[20].mxu1  ;;  %v8780_v23 = vpop.f32.mrb[32].mxu0 }
 0x9f0   : > { %v2792_v11 = vadd.f32 1e-05, %v2736_v0  ;;  %v2724_v12 = vmul.f32 %v8755_v10, %v8755_v10  ;;  %v2730_v15 = vsub.f32 %v8780_v23, %v2722_v56  ;;  %v2595_v16 = vpop.f32.mrb[21].mxu1  ;;  %v2690_v19 = vpop.f32.mrb[33].mxu0  ;;  %v1868_v23 = vld [vmem:[%s10588_s12] sm:$0xff] }
 0x9f1   : > { %v2723_v24 = vmul.f32 %v2595_v16, %v2595_v16  ;;  %v2729_v20 = vsub.f32 %v2690_v19, %v2721_v4  ;;  %2770 = vperm.xlu1 %10118, %v8755_v10   ;;  %2765 = vperm.xlu0 %10117, %v2595_v16   ;;  %v2791_v25 = vadd.f32 1e-05, %v2735_v9  ;;  %v1869_v19 = vld [vmem:[%s10588_s12 + $0x8] sm:$0xff] }
 0x9f2   : > { %10315 = vrsqrt.f32 %v2792_v11  ;;  %v2738_v26 = vmax.f32 %v2730_v15, 0.0  ;;  %v2888_v15 = vld [vmem:[%s10593_s20 + $0x8] sm:$0xff] }
 0x9f3   : > { %v2737_v13 = vmax.f32 %v2729_v20, 0.0  ;;  %v8758_v28 = vpop.f32.mrb[22].mxu1  ;;  %v8783_v30 = vpop.f32.mrb[34].mxu0  ;;  %10317 = vrsqrt.f32 %v2791_v25  ;;  %v1871_v20 = vld [vmem:[%s10588_s12 + $0x18] sm:$0xff]  ;;  %v2889_v25 = vld [vmem:[%s10593_s20 + $0x10] sm:$0xff] }
 0x9f4   : > { %v2726_v47 = vmul.f32 %v8758_v28, %v8758_v28  ;;  %v2732_v31 = vsub.f32 %v8783_v30, %v2724_v12  ;;  %v2605_v48 = vpop.f32.mrb[23].mxu1  ;;  %v2700_v32 = vpop.f32.mrb[35].mxu0  ;;  %v2794_v36 = vadd.f32 1e-05, %v2738_v26  ;;  %v2887_v12 = vld [vmem:[%s10593_s20] sm:$0xff]  ;;  %v1875_v30 = vld [vmem:[%s10588_s12 + $0x38] sm:$0xff] }
 0x9f5   : > { %v2793_v33 = vadd.f32 1e-05, %v2737_v13  ;;  %v2725_v34 = vmul.f32 %v2605_v48, %v2605_v48  ;;  %v2731_v35 = vsub.f32 %v2700_v32, %v2723_v24  ;;  %2780 = vperm.xlu1 %10118, %v8758_v28   ;;  %2775 = vperm.xlu0 %10117, %v2605_v48   ;;  %v9584_v16 = vpack.c.bf16 %v2888_v15, %v2887_v12  ;;  %v1870_v24 = vld [vmem:[%s10588_s12 + $0x10] sm:$0xff]  ;;  %v1872_v26 = vld [vmem:[%s10588_s12 + $0x20] sm:$0xff]  ;;  %v1873_v13 = vld [vmem:[%s10588_s12 + $0x28] sm:$0xff] }
 0x9f6   : > { %v2740_v37 = vmax.f32 %v2732_v31, 0.0  ;;  %v1874_v28 = vld [vmem:[%s10588_s12 + $0x30] sm:$0xff]  ;;  %v2335_v15 = vld [vmem:[%s12108_s15 + $0x20] sm:$0xff] }
 0x9f7   : > { %10319 = vrsqrt.f32 %v2793_v33  ;;  %v2739_v38 = vmax.f32 %v2731_v35, 0.0  ;;  %v8786_v41 = vpop.f32.mrb[36].mxu0  ;;  %9585 = vmatprep.subr.bf16.mxu1 %v9584_v16 }
 0x9f8   : > { %v2734_v44 = vsub.f32 %v8786_v41, %v2726_v47  ;;  %v2710_v45 = vpop.f32.mrb[37].mxu0  ;;  %10321 = vrsqrt.f32 %v2794_v36  ;;  %v2796_v50 = vadd.f32 1e-05, %v2740_v37  ;;  %9587 = vmatpush3.bf16.msra.mxu1 %v9584_v16  ;;  %v2332_v37 = vld [vmem:[%s12108_s15 + $0x8] sm:$0xff] }
 0x9f9   : > { %v2795_v46 = vadd.f32 1e-05, %v2739_v38  ;;  %v2733_v49 = vsub.f32 %v2710_v45, %v2725_v34  ;;  %8791 = vmatprep.subr.mxu1 %v2889_v25 }
 0x9fa   : > { %v2742_v51 = vmax.f32 %v2734_v44, 0.0 }
 0x9fb   : > { %10323 = vrsqrt.f32 %v2795_v46  ;;  %v2741_v54 = vmax.f32 %v2733_v49, 0.0  ;;  %v7672_v46 = vld [vmem:[%s12108_s15 + $0x48] sm:$0xff] }
 0x9fc   : > { %v10316_v56 = vpop.eup %10315  ;;  %10325 = vrsqrt.f32 %v2796_v50  ;;  %v2798_v58 = vadd.f32 1e-05, %v2742_v51  ;;  %8792 = vmatpush3.msra.mxu1 %v2889_v25  ;;  %v2331_v51 = vld [vmem:[%s12108_s15] sm:$0xff] }
 0x9fd   : > { %v2797_v57 = vadd.f32 1e-05, %v2741_v54  ;;  %2814 = vperm.xlu1 %10118, %v10316_v56   ;;  %v10318_v59 = vpop.eup %10317 }
 0x9ff   : > { %10327 = vrsqrt.f32 %v2797_v57  ;;  %v2333_v57 = vld [vmem:[%s12108_s15 + $0x10] sm:$0xff] }
 0xa00   : > { %10329 = vrsqrt.f32 %v2798_v58 }
 0xa01   : > { %v10320_v4 = vpop.eup %10319  ;;  %2809 = vperm.xlu1 %10118, %v10318_v59  }
 0xa02   : > { %2819 = vperm.xlu0 %10117, %v10320_v4   ;;  %v10322_v5 = vpop.eup %10321 }
 0xa05   : > { %v10324_v0 = vpop.eup %10323  ;;  %2824 = vperm.xlu1 %10118, %v10322_v5  }
 0xa06   : > { %2829 = vperm.xlu0 %10117, %v10324_v0   ;;  %v10326_v9 = vpop.eup %10325 }
 0xa09   : > { %v10328_v10 = vpop.eup %10327  ;;  %2834 = vperm.xlu1 %10118, %v10326_v9   ;;  %v7673_v9 = vld [vmem:[%s12108_s15 + $0x50] sm:$0xff] }
 0xa0a   : > { %2839 = vperm.xlu0 %10117, %v10328_v10   ;;  %v10330_v11 = vpop.eup %10329 }
 0xa0d   : > { %2844 = vperm.xlu1 %10118, %v10330_v11  }
 0xa0e   : > { %1878 = vperm.xlu0 %10117, %v1868_v23   ;;  %v2334_v23 = vld [vmem:[%s12108_s15 + $0x18] sm:$0xff] }
 0xa11   : > { %1883 = vperm.xlu1 %10118, %v1869_v19  }
 0xa12   : > { %1888 = vperm.xlu0 %10117, %v1870_v24   ;;  %v7674_v24 = vld [vmem:[%s12108_s15 + $0x58] sm:$0xff] }
 0xa15   : > { %1893 = vperm.xlu1 %10118, %v1871_v20  }
 0xa16   : > { %1898 = vperm.xlu0 %10117, %v1872_v26   ;;  %v7675_v26 = vld [vmem:[%s12108_s15 + $0x60] sm:$0xff] }
 0xa19   : > { %1903 = vperm.xlu1 %10118, %v1873_v13  }
 0xa1a   : > { %1908 = vperm.xlu0 %10117, %v1874_v28   ;;  %v2336_v28 = vld [vmem:[%s12108_s15 + $0x28] sm:$0xff] }
 0xa1d   : > { %1913 = vperm.xlu1 %10118, %v1875_v30  }
 0xa67   : > { %v2751_v31 = vpop.permute.xlu0 %2750 }
 0xa68   : > { %v2746_v47 = vpop.permute.xlu1 %2745  ;;  %v2784_v36 = vsub.f32 %v10897_v8, %v2751_v31  ;;  %v7671_v8 = vld [vmem:[%s12108_s15 + $0x40] sm:$0xff] }
 0xa69   : > { %v2783_v45 = vsub.f32 %v10899_v7, %v2746_v47 }
 0xa6c   : > { %v2761_v48 = vpop.permute.xlu1 %2760  ;;  %v2756_v32 = vpop.permute.xlu0 %2755 }
 0xa6d   : > { %v2785_v50 = vsub.f32 %v10907_v18, %v2756_v32  ;;  %v2786_v5 = vsub.f32 %v10916_v42, %v2761_v48  ;;  %v2337_v48 = vld [vmem:[%s12108_s15 + $0x30] sm:$0xff] }
 0xa70   : > { %v2771_v33 = vpop.permute.xlu1 %2770  ;;  %v2766_v34 = vpop.permute.xlu0 %2765 }
 0xa71   : > { %v2787_v7 = vsub.f32 %v10918_v43, %v2766_v34  ;;  %v2788_v42 = vsub.f32 %v10930_v39, %v2771_v33 }
 0xa74   : > { %v2781_v35 = vpop.permute.xlu1 %2780  ;;  %v2776_v41 = vpop.permute.xlu0 %2775 }
 0xa75   : > { %v2789_v43 = vsub.f32 %v10932_v40, %v2776_v41  ;;  %v2790_v39 = vsub.f32 %v10944_v52, %v2781_v35  ;;  %v2338_v41 = vld [vmem:[%s12108_s15 + $0x38] sm:$0xff] }
 0xa7c   : > { %v2815_v38 = vpop.permute.xlu1 %2814 }
 0xa7d   : > { %v2848_v44 = vmul.f32 %v2815_v38, %v2784_v36  ;;  %v7676_v36 = vld [vmem:[%s12108_s15 + $0x68] sm:$0xff]  ;;  %v7677_v38 = vld [vmem:[%s12108_s15 + $0x70] sm:$0xff] }
 0xa7f   : > { %v2856_v49 = vmul.f32 %v2848_v44, %v2332_v37 }
 0xa80   : > { %v2810_v54 = vpop.permute.xlu1 %2809 }
 0xa81   : > { %v2847_v56 = vmul.f32 %v2810_v54, %v2783_v45  ;;  %v2820_v58 = vpop.permute.xlu0 %2819  ;;  %v2864_v59 = vadd.f32 %v7672_v46, %v2856_v49 }
 0xa82   : > { %v2849_v4 = vmul.f32 %v2820_v58, %v2785_v50 }
 0xa83   : > { %v2855_v0 = vmul.f32 %v2847_v56, %v2331_v51  ;;  %10331 = vtanh.f32 %v2864_v59  ;;  %v7678_v51 = vld [vmem:[%s12108_s15 + $0x78] sm:$0xff] }
 0xa84   : > { %v2857_v10 = vmul.f32 %v2849_v4, %v2333_v57  ;;  %v2825_v18 = vpop.permute.xlu1 %2824 }
 0xa85   : > { %v2863_v11 = vadd.f32 %v7671_v8, %v2855_v0  ;;  %v2850_v12 = vmul.f32 %v2825_v18, %v2786_v5  ;;  %v2830_v16 = vpop.permute.xlu0 %2829 }
 0xa86   : > { %v2865_v19 = vadd.f32 %v7673_v9, %v2857_v10  ;;  %v2851_v20 = vmul.f32 %v2830_v16, %v2787_v7 }
 0xa87   : > { %10333 = vtanh.f32 %v2863_v11  ;;  %v2858_v25 = vmul.f32 %v2850_v12, %v2334_v23 }
 0xa88   : > { %10335 = vtanh.f32 %v2865_v19  ;;  %v2859_v13 = vmul.f32 %v2851_v20, %v2335_v15  ;;  %v2835_v30 = vpop.permute.xlu1 %2834 }
 0xa89   : > { %v2866_v47 = vadd.f32 %v7674_v24, %v2858_v25  ;;  %v2852_v31 = vmul.f32 %v2835_v30, %v2788_v42  ;;  %v2840_v32 = vpop.permute.xlu0 %2839 }
 0xa8a   : > { %v2867_v34 = vadd.f32 %v7675_v26, %v2859_v13  ;;  %v2853_v37 = vmul.f32 %v2840_v32, %v2789_v43 }
 0xa8b   : > { %10337 = vtanh.f32 %v2866_v47  ;;  %v2860_v33 = vmul.f32 %v2852_v31, %v2336_v28 }
 0xa8c   : > { %10339 = vtanh.f32 %v2867_v34  ;;  %v2861_v40 = vmul.f32 %v2853_v37, %v2337_v48  ;;  %v2845_v44 = vpop.permute.xlu1 %2844  ;;  %v7727_v37 = vld [vmem:[%s12109_s16 + $0x80] sm:$0xff] }
 0xa8d   : > { %v2868_v45 = vadd.f32 %v7676_v36, %v2860_v33  ;;  %v2854_v46 = vmul.f32 %v2845_v44, %v2790_v39  ;;  %v1879_v49 = vpop.permute.xlu0 %1878  ;;  %v10332_v56 = vpop.eup %10331  ;;  %8861 = vmatprep.mubr.msk.f32.mxu0 %vm2484_vm12, %v7727_v37 }
 0xa8e   : > { %v2869_v50 = vadd.f32 %v7677_v38, %v2861_v40  ;;  %v2007_v57 = vadd.f32 %v10871_v55, %v1879_v49  ;;  %v3038_v49 = vld [vmem:[%s12109_s16 + $0x18] sm:$0xff] }
 0xa8f   : > { %10341 = vtanh.f32 %v2868_v45  ;;  %v2862_v54 = vmul.f32 %v2854_v46, %v2338_v41  ;;  %v3036_v45 = vld [vmem:[%s12109_s16 + $0x8] sm:$0xff]  ;;  %v3037_v46 = vld [vmem:[%s12109_s16 + $0x10] sm:$0xff] }
 0xa90   : > { %10343 = vtanh.f32 %v2869_v50  ;;  %v1884_v58 = vpop.permute.xlu1 %1883  ;;  %v3039_v50 = vld [vmem:[%s12109_s16 + $0x20] sm:$0xff] }
 0xa91   : > { %v10334_v52 = vpop.eup %10333  ;;  %v2870_v35 = vadd.f32 %v7678_v51, %v2862_v54  ;;  %v2012_v59 = vadd.f32 %v10868_v53, %v1884_v58  ;;  %v1889_v8 = vpop.permute.xlu0 %1888  ;;  %v3040_v51 = vld [vmem:[%s12109_s16 + $0x28] sm:$0xff]  ;;  %v3041_v54 = vld [vmem:[%s12109_s16 + $0x30] sm:$0xff] }
 0xa92   : > { %v10336_v4 = vpop.eup %10335  ;;  %v11032_v5 = vadd.f32 %v10334_v52, %v2007_v57  ;;  %v2017_v0 = vadd.f32 %v10887_v63, %v1889_v8  ;;  %v3043_v57 = vld [vmem:[%s12109_s16 + $0x40] sm:$0xff]  ;;  %v3044_v58 = vld [vmem:[%s12109_s16 + $0x48] sm:$0xff]  ;;  %v3045_v52 = vld [vmem:[%s12109_s16 + $0x50] sm:$0xff] }
 0xa93   : > { %10345 = vtanh.f32 %v2870_v35  ;;  %v11035_v9 = vadd.f32 %v10332_v56, %v2012_v59  ;;  %v3042_v56 = vld [vmem:[%s12109_s16 + $0x38] sm:$0xff]  ;;  %v3047_v59 = vld [vmem:[%s12109_s16 + $0x60] sm:$0xff]  ;;  %v3048_v8 = vld [vmem:[%s12109_s16 + $0x68] sm:$0xff] }
 0xa94   : > { %v11037_v7 = vadd.f32 %v10336_v4, %v2017_v0  ;;  %v1894_v10 = vpop.permute.xlu1 %1893  ;;  %8793 = vmatprep.mubr.msk.f32.mxu1 %vm2064_vm10, %v11032_v5  ;;  %v3046_v35 = vld [vmem:[%s12109_s16 + $0x58] sm:$0xff]  ;;  %v3049_v4 = vld [vmem:[%s12109_s16 + $0x70] sm:$0xff]  ;;  %v3019_v0 = vld [vmem:[%s12110_s28] sm:$0xff] }
 0xa95   : > { %v10338_v55 = vpop.eup %10337  ;;  %v2022_v23 = vadd.f32 %v10885_v61, %v1894_v10  ;;  %8794 = vmatmul.mubr.msk.f32.vlgmr.msra.gmra.mrb[24].mxu1 %vm2064_vm10, %v11035_v9  ;;  %v1899_v53 = vpop.permute.xlu0 %1898  ;;  %v3050_v10 = vld [vmem:[%s12109_s16 + $0x78] sm:$0xff] }
 0xa96   : > { %v10340_v18 = vpop.eup %10339  ;;  %v2027_v11 = vadd.f32 %v10891_v62, %v1899_v53  ;;  %8796 = vmatprep.mubr.msk.f32.mxu1 %vm2064_vm10, %v11037_v7  ;;  %v3023_v53 = vld [vmem:[%s12110_s28 + $0x20] sm:$0xff] }
 0xa97   : > { %v11047_v63 = vadd.f32 %v10338_v55, %v2022_v23  ;;  %v3021_v55 = vld [vmem:[%s12110_s28 + $0x10] sm:$0xff]  ;;  %v3020_v23 = vld [vmem:[%s12110_s28 + $0x8] sm:$0xff] }
 0xa98   : > { %v11049_v12 = vadd.f32 %v10340_v18, %v2027_v11  ;;  %v1904_v15 = vpop.permute.xlu1 %1903  ;;  %v3022_v18 = vld [vmem:[%s12110_s28 + $0x18] sm:$0xff]  ;;  %v3025_v11 = vld [vmem:[%s12110_s28 + $0x30] sm:$0xff] }
 0xa99   : > { %v10342_v16 = vpop.eup %10341  ;;  %v2032_v19 = vadd.f32 %v10889_v1, %v1904_v15  ;;  %8797 = vmatmul.mubr.msk.f32.gmra.mrb[26].mxu1 %vm2064_vm10, %v11047_v63  ;;  %v1909_v61 = vpop.permute.xlu0 %1908  ;;  %v3024_v15 = vld [vmem:[%s12110_s28 + $0x28] sm:$0xff] }
 0xa9a   : > { %v10344_v24 = vpop.eup %10343  ;;  %v2037_v20 = vadd.f32 %v10895_v3, %v1909_v61  ;;  %8799 = vmatprep.mubr.msk.f32.mxu1 %vm2064_vm10, %v11049_v12  ;;  %v3035_v3 = vld [vmem:[%s12109_s16] sm:$0xff]  ;;  %v3029_v61 = vld [vmem:[%s12110_s28 + $0x50] sm:$0xff] }
 0xa9b   : > { %v11057_v62 = vadd.f32 %v10342_v16, %v2032_v19  ;;  %v3027_v16 = vld [vmem:[%s12110_s28 + $0x40] sm:$0xff]  ;;  %v3026_v19 = vld [vmem:[%s12110_s28 + $0x38] sm:$0xff] }
 0xa9c   : > { %v11059_v42 = vadd.f32 %v10344_v24, %v2037_v20  ;;  %v1914_v25 = vpop.permute.xlu1 %1913  ;;  %v3028_v24 = vld [vmem:[%s12110_s28 + $0x48] sm:$0xff]  ;;  %v3031_v20 = vld [vmem:[%s12110_s28 + $0x60] sm:$0xff] }
 0xa9d   : > { %v10346_v26 = vpop.eup %10345  ;;  %v2042_v43 = vadd.f32 %v10893_v2, %v1914_v25  ;;  %8800 = vmatmul.mubr.msk.f32.gmra.mrb[28].mxu1 %vm2064_vm10, %v11057_v62  ;;  %v3030_v25 = vld [vmem:[%s12110_s28 + $0x58] sm:$0xff] }
 0xa9e   : > { %8802 = vmatprep.mubr.msk.f32.mxu1 %vm2064_vm10, %v11059_v42 }
 0xa9f   : > { %v11066_v1 = vadd.f32 %v10346_v26, %v2042_v43  ;;  %v3033_v26 = vld [vmem:[%s12110_s28 + $0x70] sm:$0xff]  ;;  %v3032_v43 = vld [vmem:[%s12110_s28 + $0x68] sm:$0xff] }
 0xaa1   : > { %8803 = vmatmul.mubr.msk.f32.gmra.mrb[30].mxu1 %vm2064_vm10, %v11066_v1 }
 0xaa2   : > { %8821 = vmatprep.mubr.msk.f32.mxu1 %vm2484_vm12, %v3035_v3  ;;  %v3034_v3 = vld [vmem:[%s12110_s28 + $0x78] sm:$0xff] }
 0xb68   : > { %v8795_v13 = vpop.f32.mrb[24].mxu1 }
 0xb69   : > { %v2980_v28 = vpop.f32.mrb[25].mxu1 }
 0xb6a   : > { %v11072_v30 = vpack.i.bf16 %v8795_v13, %v2980_v28  ;;  %v9588_v2 = vpack.c.bf16 %v8795_v13, %v2980_v28 }
 0xb6c   : > { %10120 = vrot.lane.b32.xlu0 %v11072_v30, %s10498_s18  ;;  %v8798_v47 = vpop.f32.mrb[26].mxu1  ;;  %9589 = vmatprep.subr.bf16.mxu1 %v9588_v2 }
 0xb6d   : > { %v2990_v31 = vpop.f32.mrb[27].mxu1  ;;  %9591 = vmatpush3.bf16.msra.mxu1 %v9588_v2 }
 0xb6e   : > { %v11076_v48 = vpack.i.bf16 %v8798_v47, %v2990_v31  ;;  %v9592_v32 = vpack.c.bf16 %v8798_v47, %v2990_v31 }
 0xb70   : > { %10125 = vrot.lane.b32.xlu1 %v11076_v48, %s10498_s18  ;;  %v8801_v34 = vpop.f32.mrb[28].mxu1  ;;  %9593 = vmatprep.subr.bf16.mxu1 %v9592_v32 }
 0xb71   : > { %v3000_v36 = vpop.f32.mrb[29].mxu1  ;;  %9595 = vmatpush3.bf16.msra.mxu1 %v9592_v32 }
 0xb72   : > { %v10129_v39 = vpack.i.bf16 %v8801_v34, %v3000_v36  ;;  %v9596_v33 = vpack.c.bf16 %v8801_v34, %v3000_v36 }
 0xb74   : > { %10130 = vrot.lane.b32.xlu0 %v10129_v39, %s10498_s18  ;;  %v8804_v38 = vpop.f32.mrb[30].mxu1  ;;  %9597 = vmatprep.subr.bf16.mxu1 %v9596_v33 }
 0xb75   : > { %v3010_v40 = vpop.f32.mrb[31].mxu1  ;;  %9599 = vmatpush3.bf16.msra.mxu1 %v9596_v33 }
 0xb76   : > { %v10134_v41 = vpack.i.bf16 %v8804_v38, %v3010_v40  ;;  %v9600_v44 = vpack.c.bf16 %v8804_v38, %v3010_v40 }
 0xb78   : > { %10140 = vrot.lane.b32.xlu0 %v11072_v30, %s10499_s22  ;;  %10135 = vrot.lane.b32.xlu1 %v10134_v41, %s10498_s18 }
 0xb79   : > { %9601 = vmatprep.subr.bf16.mxu1 %v9600_v44 }
 0xb7a   : > { %9603 = vmatpush3.bf16.msra.mxu1 %v9600_v44 }
 0xb7c   : > { %10150 = vrot.lane.b32.xlu0 %v10129_v39, %s10499_s22  ;;  %10145 = vrot.lane.b32.xlu1 %v11076_v48, %s10499_s22 }
 0xb7d   : > { %8822 = vmatmul.mubr.msk.f32.vlgmr.msra.gmra.mrb[32].mxu1 %vm2484_vm12, %v3036_v45 }
 0xb7e   : > { %8824 = vmatprep.mubr.msk.f32.mxu1 %vm2484_vm12, %v3037_v46 }
 0xb80   : > { %10160 = vrot.lane.b32.xlu0 %v11072_v30, %s10500_s23  ;;  %10155 = vrot.lane.b32.xlu1 %v10134_v41, %s10499_s22 }
 0xb81   : > { %8825 = vmatmul.mubr.msk.f32.gmra.mrb[34].mxu1 %vm2484_vm12, %v3038_v49 }
 0xb82   : > { %8827 = vmatprep.mubr.msk.f32.mxu1 %vm2484_vm12, %v3039_v50 }
 0xb84   : > { %10170 = vrot.lane.b32.xlu0 %v10129_v39, %s10500_s23  ;;  %10165 = vrot.lane.b32.xlu1 %v11076_v48, %s10500_s23 }
 0xb85   : > { %8828 = vmatmul.mubr.msk.f32.gmra.mrb[36].mxu1 %vm2484_vm12, %v3040_v51 }
 0xb86   : > { %8830 = vmatprep.mubr.msk.f32.mxu1 %vm2484_vm12, %v3041_v54 }
 0xb88   : > { %10180 = vrot.lane.b32.xlu0 %v11072_v30, %s10501_s26  ;;  %10175 = vrot.lane.b32.xlu1 %v10134_v41, %s10500_s23  ;;  %s12115_s23 = sld [smem:[#allocation11_spill]] }
 0xb89   : > { %8831 = vmatmul.mubr.msk.f32.gmra.mrb[38].mxu1 %vm2484_vm12, %v3042_v56 }
 0xb8a   : > { %8833 = vmatprep.mubr.msk.f32.mxu1 %vm2484_vm12, %v3043_v57  ;;  %v7728_v57 = vld [vmem:[%s12109_s16 + $0x88] sm:$0xff] }
 0xb8c   : > { %10190 = vrot.lane.b32.xlu0 %v10129_v39, %s10501_s26  ;;  %10185 = vrot.lane.b32.xlu1 %v11076_v48, %s10501_s26 }
 0xb8d   : > { %8834 = vmatmul.mubr.msk.f32.gmra.mrb[40].mxu1 %vm2484_vm12, %v3044_v58  ;;  %v7729_v58 = vld [vmem:[%s12109_s16 + $0x90] sm:$0xff] }
 0xb8e   : > { %8836 = vmatprep.mubr.msk.f32.mxu1 %vm2484_vm12, %v3045_v52 }
 0xb90   : > { %10200 = vrot.lane.b32.xlu0 %v11072_v30, %s10502_s1  ;;  %10195 = vrot.lane.b32.xlu1 %v10134_v41, %s10501_s26  ;;  %s12116_s26 = sld [smem:[#allocation12_spill]] }
 0xb91   : > { %8837 = vmatmul.mubr.msk.f32.gmra.mrb[42].mxu1 %vm2484_vm12, %v3046_v35 }
 0xb92   : > { %8839 = vmatprep.mubr.msk.f32.mxu1 %vm2484_vm12, %v3047_v59 }
 0xb94   : > { %10210 = vrot.lane.b32.xlu0 %v10129_v39, %s10502_s1  ;;  %10205 = vrot.lane.b32.xlu1 %v11076_v48, %s10502_s1 }
 0xb95   : > { %8840 = vmatmul.mubr.msk.f32.gmra.mrb[44].mxu1 %vm2484_vm12, %v3048_v8 }
 0xb96   : > { %8842 = vmatprep.mubr.msk.f32.mxu1 %vm2484_vm12, %v3049_v4  ;;  %v7730_v4 = vld [vmem:[%s12109_s16 + $0x98] sm:$0xff] }
 0xb98   : > { %3246 = vperm.xlu0 %10117, %v3019_v0   ;;  %10215 = vrot.lane.b32.xlu1 %v10134_v41, %s10502_s1  ;;  %v7731_v0 = vld [vmem:[%s12109_s16 + $0xa0] sm:$0xff] }
 0xb99   : > { %8843 = vmatmul.mubr.msk.f32.gmra.mrb[46].mxu1 %vm2484_vm12, %v3050_v10 }
 0xb9c   : > { %3256 = vperm.xlu0 %10117, %v3021_v55   ;;  %3251 = vperm.xlu1 %10118, %v3020_v23  }
 0xba0   : > { %3266 = vperm.xlu0 %10117, %v3023_v53   ;;  %3261 = vperm.xlu1 %10118, %v3022_v18   ;;  %v7732_v18 = vld [vmem:[%s12109_s16 + $0xa8] sm:$0xff] }
 0xba4   : > { %3276 = vperm.xlu0 %10117, %v3025_v11   ;;  %3271 = vperm.xlu1 %10118, %v3024_v15   ;;  %v7733_v11 = vld [vmem:[%s12109_s16 + $0xb0] sm:$0xff] }
 0xba8   : > { %3286 = vperm.xlu0 %10117, %v3027_v16   ;;  %3281 = vperm.xlu1 %10118, %v3026_v19  }
 0xbac   : > { %3296 = vperm.xlu0 %10117, %v3029_v61   ;;  %3291 = vperm.xlu1 %10118, %v3028_v24   ;;  %v7734_v61 = vld [vmem:[%s12109_s16 + $0xb8] sm:$0xff]  ;;  %v7735_v24 = vld [vmem:[%s12109_s16 + $0xc0] sm:$0xff] }
 0xbb0   : > { %3306 = vperm.xlu0 %10117, %v3031_v20   ;;  %3301 = vperm.xlu1 %10118, %v3030_v25   ;;  %v7736_v25 = vld [vmem:[%s12109_s16 + $0xc8] sm:$0xff] }
 0xbb4   : > { %3316 = vperm.xlu0 %10117, %v3033_v26   ;;  %3311 = vperm.xlu1 %10118, %v3032_v43   ;;  %v7737_v26 = vld [vmem:[%s12109_s16 + $0xd0] sm:$0xff]  ;;  %v7738_v43 = vld [vmem:[%s12109_s16 + $0xd8] sm:$0xff] }
 0xbb8   : > { %3321 = vperm.xlu1 %10118, %v3034_v3   ;;  %v7739_v3 = vld [vmem:[%s12109_s16 + $0xe0] sm:$0xff] }
 0xbde   : > { %v10121_v13 = vpop.permute.xlu0 %10120 }
 0xbdf   : > { %v10123_v28 = vunpack.i.h.bf16 %v10121_v13  ;;  %v10122_v30 = vunpack.i.l.bf16 %v10121_v13  ;;  %v7740_v13 = vld [vmem:[%s12109_s16 + $0xe8] sm:$0xff] }
 0xbe1   : > { %v9604_v2 = vpack.c.bf16 %v10123_v28, %v10122_v30  ;;  %v7741_v28 = vld [vmem:[%s12109_s16 + $0xf0] sm:$0xff] }
 0xbe2   : > { %v10126_v47 = vpop.permute.xlu1 %10125 }
 0xbe3   : > { %v10128_v31 = vunpack.i.h.bf16 %v10126_v47  ;;  %v10127_v48 = vunpack.i.l.bf16 %v10126_v47  ;;  %9605 = vmatprep.subr.bf16.mxu0 %v9604_v2  ;;  %v7759_v47 = vld [vmem:[%s12109_s16 + $0x100] sm:$0xff] }
 0xbe4   : > { %9607 = vmatpush3.bf16.msra.mxu0 %v9604_v2  ;;  %v7742_v2 = vld [vmem:[%s12109_s16 + $0xf8] sm:$0xff] }
 0xbe5   : > { %v9608_v32 = vpack.c.bf16 %v10128_v31, %v10127_v48 }
 0xbe6   : > { %v10131_v34 = vpop.permute.xlu0 %10130 }
 0xbe7   : > { %v10133_v36 = vunpack.i.h.bf16 %v10131_v34  ;;  %v10132_v37 = vunpack.i.l.bf16 %v10131_v34  ;;  %9609 = vmatprep.subr.bf16.mxu0 %v9608_v32  ;;  %v7760_v34 = vld [vmem:[%s12109_s16 + $0x108] sm:$0xff] }
 0xbe8   : > { %9611 = vmatpush3.bf16.msra.mxu0 %v9608_v32 }
 0xbe9   : > { %v9612_v39 = vpack.c.bf16 %v10133_v36, %v10132_v37  ;;  %v7761_v36 = vld [vmem:[%s12109_s16 + $0x110] sm:$0xff] }
 0xbea   : > { %v10136_v33 = vpop.permute.xlu1 %10135  ;;  %v10141_v38 = vpop.permute.xlu0 %10140 }
 0xbeb   : > { %v10138_v40 = vunpack.i.h.bf16 %v10136_v33  ;;  %v10137_v41 = vunpack.i.l.bf16 %v10136_v33  ;;  %v10143_v44 = vunpack.i.h.bf16 %v10141_v38  ;;  %v10142_v45 = vunpack.i.l.bf16 %v10141_v38  ;;  %9613 = vmatprep.subr.bf16.mxu0 %v9612_v39 }
 0xbec   : > { %9615 = vmatpush3.bf16.msra.mxu0 %v9612_v39 }
 0xbed   : > { %v9616_v46 = vpack.c.bf16 %v10138_v40, %v10137_v41  ;;  %v9620_v54 = vpack.c.bf16 %v10143_v44, %v10142_v45  ;;  %v7762_v40 = vld [vmem:[%s12109_s16 + $0x118] sm:$0xff]  ;;  %v7763_v41 = vld [vmem:[%s12109_s16 + $0x120] sm:$0xff] }
 0xbee   : > { %v10146_v49 = vpop.permute.xlu1 %10145  ;;  %v10151_v56 = vpop.permute.xlu0 %10150 }
 0xbef   : > { %v10148_v50 = vunpack.i.h.bf16 %v10146_v49  ;;  %v10147_v51 = vunpack.i.l.bf16 %v10146_v49  ;;  %9617 = vmatprep.subr.bf16.mxu0 %v9616_v46  ;;  %v10153_v52 = vunpack.i.h.bf16 %v10151_v56  ;;  %v10152_v35 = vunpack.i.l.bf16 %v10151_v56 }
 0xbf0   : > { %9619 = vmatpush3.bf16.msra.mxu0 %v9616_v46 }
 0xbf1   : > { %9621 = vmatprep.subr.bf16.mxu0 %v9620_v54  ;;  %v9624_v59 = vpack.c.bf16 %v10148_v50, %v10147_v51  ;;  %v9628_v23 = vpack.c.bf16 %v10153_v52, %v10152_v35  ;;  %v7764_v50 = vld [vmem:[%s12109_s16 + $0x128] sm:$0xff]  ;;  %v7765_v51 = vld [vmem:[%s12109_s16 + $0x130] sm:$0xff]  ;;  %v7767_v52 = vld [vmem:[%s12109_s16 + $0x140] sm:$0xff] }
 0xbf2   : > { %v10156_v8 = vpop.permute.xlu1 %10155  ;;  %v10161_v53 = vpop.permute.xlu0 %10160 }
 0xbf3   : > { %8862 = vmatmul.mubr.msk.f32.vlgmr.msra.gmra.mrb[38].mxu0 %vm2484_vm12, %v7728_v57  ;;  %v10158_v10 = vunpack.i.h.bf16 %v10156_v8  ;;  %v10157_v55 = vunpack.i.l.bf16 %v10156_v8  ;;  %v10163_v15 = vunpack.i.h.bf16 %v10161_v53  ;;  %v10162_v16 = vunpack.i.l.bf16 %v10161_v53  ;;  %v7769_v8 = vld [vmem:[%s12109_s16 + $0x150] sm:$0xff]  ;;  %v7774_v53 = vld [vmem:[%s12109_s16 + $0x178] sm:$0xff] }
 0xbf4   : > { %9623 = vmatpush3.bf16.msra.mxu0 %v9620_v54  ;;  %8864 = vmatprep.mubr.msk.f32.mxu0 %vm2484_vm12, %v7729_v58  ;;  %v7766_v58 = vld [vmem:[%s12109_s16 + $0x138] sm:$0xff] }
 0xbf5   : > { %9625 = vmatprep.subr.bf16.mxu0 %v9624_v59  ;;  %v9632_v19 = vpack.c.bf16 %v10158_v10, %v10157_v55  ;;  %v9636_v20 = vpack.c.bf16 %v10163_v15, %v10162_v16  ;;  %v7772_v10 = vld [vmem:[%s12109_s16 + $0x168] sm:$0xff]  ;;  %v7773_v55 = vld [vmem:[%s12109_s16 + $0x170] sm:$0xff] }
 0xbf6   : > { %v10166_v30 = vpop.permute.xlu1 %10165  ;;  %v10171_v32 = vpop.permute.xlu0 %10170 }
 0xbf7   : > { %8865 = vmatmul.mubr.msk.f32.gmra.mrb[40].mxu0 %vm2484_vm12, %v7730_v4  ;;  %v10168_v31 = vunpack.i.h.bf16 %v10166_v30  ;;  %v10167_v48 = vunpack.i.l.bf16 %v10166_v30  ;;  %v10173_v37 = vunpack.i.h.bf16 %v10171_v32  ;;  %v10172_v39 = vunpack.i.l.bf16 %v10171_v32  ;;  %v7770_v4 = vld [vmem:[%s12109_s16 + $0x158] sm:$0xff] }
 0xbf8   : > { %9627 = vmatpush3.bf16.msra.mxu0 %v9624_v59  ;;  %8867 = vmatprep.mubr.msk.f32.mxu0 %vm2484_vm12, %v7731_v0  ;;  %v7768_v59 = vld [vmem:[%s12109_s16 + $0x148] sm:$0xff]  ;;  %v7771_v0 = vld [vmem:[%s12109_s16 + $0x160] sm:$0xff] }
 0xbf9   : > { %9629 = vmatprep.subr.bf16.mxu0 %v9628_v23  ;;  %v9640_v33 = vpack.c.bf16 %v10168_v31, %v10167_v48  ;;  %v9644_v46 = vpack.c.bf16 %v10173_v37, %v10172_v39  ;;  %v7797_v31 = vld [vmem:[%s12109_s16 + $0x1b0] sm:$0xff]  ;;  %v7799_v37 = vld [vmem:[%s12109_s16 + $0x1c0] sm:$0xff] }
 0xbfa   : > { %v10176_v38 = vpop.permute.xlu1 %10175  ;;  %v10181_v49 = vpop.permute.xlu0 %10180 }
 0xbfb   : > { %8868 = vmatmul.mubr.msk.f32.gmra.mrb[42].mxu0 %vm2484_vm12, %v7732_v18  ;;  %v10178_v44 = vunpack.i.h.bf16 %v10176_v38  ;;  %v10177_v45 = vunpack.i.l.bf16 %v10176_v38  ;;  %v10183_v54 = vunpack.i.h.bf16 %v10181_v49  ;;  %v10182_v56 = vunpack.i.l.bf16 %v10181_v49  ;;  %v7791_v18 = vld [vmem:[%s12109_s16 + $0x180] sm:$0xff]  ;;  %v7801_v38 = vld [vmem:[%s12109_s16 + $0x1d0] sm:$0xff]  ;;  %v7806_v49 = vld [vmem:[%s12109_s16 + $0x1f8] sm:$0xff] }
 0xbfc   : > { %9631 = vmatpush3.bf16.msra.mxu0 %v9628_v23  ;;  %8870 = vmatprep.mubr.msk.f32.mxu0 %vm2484_vm12, %v7733_v11 }
 0xbfd   : > { %9633 = vmatprep.subr.bf16.mxu0 %v9632_v19  ;;  %v9648_v57 = vpack.c.bf16 %v10178_v44, %v10177_v45  ;;  %v9652_v35 = vpack.c.bf16 %v10183_v54, %v10182_v56  ;;  %v7804_v44 = vld [vmem:[%s12109_s16 + $0x1e8] sm:$0xff]  ;;  %v7805_v45 = vld [vmem:[%s12109_s16 + $0x1f0] sm:$0xff] }
 0xbfe   : > { %v10186_v23 = vpop.permute.xlu1 %10185  ;;  %v10191_v16 = vpop.permute.xlu0 %10190 }
 0xbff   : > { %8871 = vmatmul.mubr.msk.f32.gmra.mrb[44].mxu0 %vm2484_vm12, %v7734_v61  ;;  %v10188_v11 = vunpack.i.h.bf16 %v10186_v23  ;;  %v10187_v15 = vunpack.i.l.bf16 %v10186_v23  ;;  %v7793_v61 = vld [vmem:[%s12109_s16 + $0x190] sm:$0xff] }
 0xc00   : > { %9635 = vmatpush3.bf16.msra.mxu0 %v9632_v19  ;;  %8873 = vmatprep.mubr.msk.f32.mxu0 %vm2484_vm12, %v7735_v24  ;;  %v7792_v19 = vld [vmem:[%s12109_s16 + $0x188] sm:$0xff]  ;;  %v10193_v24 = vunpack.i.h.bf16 %v10191_v16 }
 0xc01   : > { %9637 = vmatprep.subr.bf16.mxu0 %v9636_v20 }
 0xc03   : > { %8874 = vmatmul.mubr.msk.f32.gmra.mrb[46].mxu0 %vm2484_vm12, %v7736_v25  ;;  %v9656_v25 = vpack.c.bf16 %v10188_v11, %v10187_v15 }
 0xc04   : > { %8876 = vmatprep.mubr.msk.f32.mxu0 %vm2484_vm12, %v7737_v26  ;;  %v10196_v26 = vpop.permute.xlu1 %10195 }
 0xc07   : > { %8877 = vmatmul.mubr.msk.f32.gmra.mrb[48].mxu0 %vm2484_vm12, %v7738_v43  ;;  %v7794_v43 = vld [vmem:[%s12109_s16 + $0x198] sm:$0xff] }
 0xc08   : > { %8879 = vmatprep.mubr.msk.f32.mxu0 %vm2484_vm12, %v7739_v3  ;;  %v7795_v3 = vld [vmem:[%s12109_s16 + $0x1a0] sm:$0xff] }
 0xc0b   : > { %8880 = vmatmul.mubr.msk.f32.gmra.mrb[50].mxu0 %vm2484_vm12, %v7740_v13  ;;  %v10198_v13 = vunpack.i.h.bf16 %v10196_v26 }
 0xc0c   : > { %8882 = vmatprep.mubr.msk.f32.mxu0 %vm2484_vm12, %v7741_v28  ;;  %v10197_v28 = vunpack.i.l.bf16 %v10196_v26  ;;  %v7830_v26 = vld [vmem:[%s12109_s16 + $0x238] sm:$0xff] }
 0xc0f   : > { %8883 = vmatmul.mubr.msk.f32.gmra.mrb[52].mxu0 %vm2484_vm12, %v7742_v2  ;;  %v10201_v2 = vpop.permute.xlu0 %10200 }
 0xc10   : > { %8901 = vmatprep.mubr.msk.f32.mxu0 %vm2484_vm12, %v7759_v47  ;;  %v7796_v47 = vld [vmem:[%s12109_s16 + $0x1a8] sm:$0xff]  ;;  %v10203_v48 = vunpack.i.h.bf16 %v10201_v2  ;;  %v10202_v32 = vunpack.i.l.bf16 %v10201_v2  ;;  %v7833_v2 = vld [vmem:[%s12109_s16 + $0x250] sm:$0xff] }
 0xc12   : > { %v9668_v39 = vpack.c.bf16 %v10203_v48, %v10202_v32  ;;  %v7835_v32 = vld [vmem:[%s12109_s16 + $0x260] sm:$0xff] }
 0xc13   : > { %8902 = vmatmul.mubr.msk.f32.vlgmr.msra.gmra.mrb[38].mxu0 %vm2484_vm12, %v7760_v34  ;;  %v9664_v34 = vpack.c.bf16 %v10198_v13, %v10197_v28  ;;  %v10211_v56 = vpop.permute.xlu0 %10210  ;;  %v7832_v28 = vld [vmem:[%s12109_s16 + $0x248] sm:$0xff] }
 0xc14   : > { %9639 = vmatpush3.bf16.msra.mxu0 %v9636_v20  ;;  %8904 = vmatprep.mubr.msk.f32.mxu0 %vm2484_vm12, %v7761_v36  ;;  %v10192_v20 = vunpack.i.l.bf16 %v10191_v16  ;;  %v7798_v36 = vld [vmem:[%s12109_s16 + $0x1b8] sm:$0xff] }
 0xc15   : > { %9641 = vmatprep.subr.bf16.mxu0 %v9640_v33 }
 0xc16   : > { %v9660_v30 = vpack.c.bf16 %v10193_v24, %v10192_v20  ;;  %v7829_v24 = vld [vmem:[%s12109_s16 + $0x230] sm:$0xff] }
 0xc17   : > { %8905 = vmatmul.mubr.msk.f32.gmra.mrb[40].mxu0 %vm2484_vm12, %v7762_v40  ;;  %v7802_v40 = vld [vmem:[%s12109_s16 + $0x1d8] sm:$0xff] }
 0xc18   : > { %9643 = vmatpush3.bf16.msra.mxu0 %v9640_v33  ;;  %8907 = vmatprep.mubr.msk.f32.mxu0 %vm2484_vm12, %v7763_v41  ;;  %v7800_v33 = vld [vmem:[%s12109_s16 + $0x1c8] sm:$0xff]  ;;  %v7803_v41 = vld [vmem:[%s12109_s16 + $0x1e0] sm:$0xff] }
 0xc19   : > { %9645 = vmatprep.subr.bf16.mxu0 %v9644_v46 }
 0xc1b   : > { %8908 = vmatmul.mubr.msk.f32.gmra.mrb[42].mxu0 %vm2484_vm12, %v7764_v50  ;;  %v7823_v50 = vld [vmem:[%s12109_s16 + $0x200] sm:$0xff] }
 0xc1c   : > { %9647 = vmatpush3.bf16.msra.mxu0 %v9644_v46  ;;  %8910 = vmatprep.mubr.msk.f32.mxu0 %vm2484_vm12, %v7765_v51  ;;  %v10206_v46 = vpop.permute.xlu1 %10205 }
 0xc1d   : > { %9649 = vmatprep.subr.bf16.mxu0 %v9648_v57  ;;  %v10208_v51 = vunpack.i.h.bf16 %v10206_v46  ;;  %v10207_v54 = vunpack.i.l.bf16 %v10206_v46  ;;  %v7858_v46 = vld [vmem:[%s12109_s16 + $0x298] sm:$0xff] }
 0xc1f   : > { %8911 = vmatmul.mubr.msk.f32.gmra.mrb[44].mxu0 %vm2484_vm12, %v7766_v58  ;;  %v7824_v58 = vld [vmem:[%s12109_s16 + $0x208] sm:$0xff] }
 0xc20   : > { %9651 = vmatpush3.bf16.msra.mxu0 %v9648_v57  ;;  %8913 = vmatprep.mubr.msk.f32.mxu0 %vm2484_vm12, %v7767_v52 }
 0xc21   : > { %9653 = vmatprep.subr.bf16.mxu0 %v9652_v35 }
 0xc23   : > { %8914 = vmatmul.mubr.msk.f32.gmra.mrb[46].mxu0 %vm2484_vm12, %v7768_v59  ;;  %v10213_v59 = vunpack.i.h.bf16 %v10211_v56 }
 0xc24   : > { %8916 = vmatprep.mubr.msk.f32.mxu0 %vm2484_vm12, %v7769_v8  ;;  %v10212_v8 = vunpack.i.l.bf16 %v10211_v56  ;;  %v7863_v56 = vld [vmem:[%s12109_s16 + $0x2c0] sm:$0xff] }
 0xc26   : > { %v9676_v15 = vpack.c.bf16 %v10213_v59, %v10212_v8  ;;  %v7866_v59 = vld [vmem:[%s12109_s16 + $0x2d8] sm:$0xff]  ;;  %v7867_v8 = vld [vmem:[%s12109_s16 + $0x2e0] sm:$0xff] }
 0xc27   : > { %8917 = vmatmul.mubr.msk.f32.gmra.mrb[48].mxu0 %vm2484_vm12, %v7770_v4  ;;  %v9672_v4 = vpack.c.bf16 %v10208_v51, %v10207_v54  ;;  %v7861_v51 = vld [vmem:[%s12109_s16 + $0x2b0] sm:$0xff]  ;;  %v7862_v54 = vld [vmem:[%s12109_s16 + $0x2b8] sm:$0xff] }
 0xc28   : > { %8919 = vmatprep.mubr.msk.f32.mxu0 %vm2484_vm12, %v7771_v0  ;;  %v10216_v0 = vpop.permute.xlu1 %10215 }
 0xc29   : > { %v10217_v11 = vunpack.i.l.bf16 %v10216_v0 }
 0xc2b   : > { %8920 = vmatmul.mubr.msk.f32.gmra.mrb[50].mxu0 %vm2484_vm12, %v7772_v10 }
 0xc2c   : > { %8922 = vmatprep.mubr.msk.f32.mxu0 %vm2484_vm12, %v7773_v55  ;;  %v7826_v55 = vld [vmem:[%s12109_s16 + $0x218] sm:$0xff] }
 0xc2f   : > { %8923 = vmatmul.mubr.msk.f32.gmra.mrb[52].mxu0 %vm2484_vm12, %v7774_v53  ;;  %v7827_v53 = vld [vmem:[%s12109_s16 + $0x220] sm:$0xff] }
 0xc30   : > { %8941 = vmatprep.mubr.msk.f32.mxu0 %vm2484_vm12, %v7791_v18  ;;  %v10218_v18 = vunpack.i.h.bf16 %v10216_v0  ;;  %v7869_v0 = vld [vmem:[%s12109_s16 + $0x2f0] sm:$0xff] }
 0xc32   : > { %v9680_v20 = vpack.c.bf16 %v10218_v18, %v10217_v11  ;;  %v3247_v18 = vpop.permute.xlu0 %3246 }
 0xc33   : > { %8942 = vmatmul.mubr.msk.f32.vlgmr.msra.gmra.mrb[38].mxu0 %vm2484_vm12, %v7792_v19  ;;  %v7828_v19 = vld [vmem:[%s12109_s16 + $0x228] sm:$0xff] }
 0xc34   : > { %9655 = vmatpush3.bf16.msra.mxu0 %v9652_v35  ;;  %8944 = vmatprep.mubr.msk.f32.mxu0 %vm2484_vm12, %v7793_v61  ;;  %v7825_v35 = vld [vmem:[%s12109_s16 + $0x210] sm:$0xff] }
 0xc35   : > { %9657 = vmatprep.subr.bf16.mxu0 %v9656_v25 }
 0xc37   : > { %8945 = vmatmul.mubr.msk.f32.gmra.mrb[40].mxu0 %vm2484_vm12, %v7794_v43 }
 0xc38   : > { %9659 = vmatpush3.bf16.msra.mxu0 %v9656_v25  ;;  %8947 = vmatprep.mubr.msk.f32.mxu0 %vm2484_vm12, %v7795_v3  ;;  %v7831_v3 = vld [vmem:[%s12109_s16 + $0x240] sm:$0xff] }
 0xc39   : > { %9661 = vmatprep.subr.bf16.mxu0 %v9660_v30 }
 0xc3b   : > { %8948 = vmatmul.mubr.msk.f32.gmra.mrb[42].mxu0 %vm2484_vm12, %v7796_v47 }
 0xc3c   : > { %9663 = vmatpush3.bf16.msra.mxu0 %v9660_v30  ;;  %8950 = vmatprep.mubr.msk.f32.mxu0 %vm2484_vm12, %v7797_v31  ;;  %v7834_v31 = vld [vmem:[%s12109_s16 + $0x258] sm:$0xff] }
 0xc3d   : > { %9665 = vmatprep.subr.bf16.mxu0 %v9664_v34 }
 0xc3f   : > { %8951 = vmatmul.mubr.msk.f32.gmra.mrb[44].mxu0 %vm2484_vm12, %v7798_v36  ;;  %v7836_v36 = vld [vmem:[%s12109_s16 + $0x268] sm:$0xff] }
 0xc40   : > { %9667 = vmatpush3.bf16.msra.mxu0 %v9664_v34  ;;  %8953 = vmatprep.mubr.msk.f32.mxu0 %vm2484_vm12, %v7799_v37 }
 0xc41   : > { %9669 = vmatprep.subr.bf16.mxu0 %v9668_v39 }
 0xc43   : > { %8954 = vmatmul.mubr.msk.f32.gmra.mrb[46].mxu0 %vm2484_vm12, %v7800_v33 }
 0xc44   : > { %8956 = vmatprep.mubr.msk.f32.mxu0 %vm2484_vm12, %v7801_v38  ;;  %v7838_v38 = vld [vmem:[%s12109_s16 + $0x278] sm:$0xff] }
 0xc47   : > { %8957 = vmatmul.mubr.msk.f32.gmra.mrb[48].mxu0 %vm2484_vm12, %v7802_v40 }
 0xc48   : > { %8959 = vmatprep.mubr.msk.f32.mxu0 %vm2484_vm12, %v7803_v41  ;;  %v7855_v41 = vld [vmem:[%s12109_s16 + $0x280] sm:$0xff] }
 0xc4b   : > { %8960 = vmatmul.mubr.msk.f32.gmra.mrb[50].mxu0 %vm2484_vm12, %v7804_v44  ;;  %v7856_v44 = vld [vmem:[%s12109_s16 + $0x288] sm:$0xff] }
 0xc4c   : > { %8962 = vmatprep.mubr.msk.f32.mxu0 %vm2484_vm12, %v7805_v45  ;;  %v7857_v45 = vld [vmem:[%s12109_s16 + $0x290] sm:$0xff] }
 0xc4f   : > { %8963 = vmatmul.mubr.msk.f32.gmra.mrb[52].mxu0 %vm2484_vm12, %v7806_v49  ;;  %v7859_v49 = vld [vmem:[%s12109_s16 + $0x2a0] sm:$0xff] }
 0xc50   : > { %v11237_v57 = vpop.f32.mrb[32].mxu1  ;;  %8981 = vmatprep.mubr.msk.f32.mxu0 %vm2484_vm12, %v7823_v50  ;;  %v7860_v50 = vld [vmem:[%s12109_s16 + $0x2a8] sm:$0xff] }
 0xc51   : > { %v11241_v52 = vpop.f32.mrb[33].mxu1 }
 0xc53   : > { %8982 = vmatmul.mubr.msk.f32.vlgmr.msra.gmra.mrb[38].mxu0 %vm2484_vm12, %v7824_v58  ;;  %v7864_v58 = vld [vmem:[%s12109_s16 + $0x2c8] sm:$0xff] }
 0xc54   : > { %v11245_v10 = vpop.f32.mrb[34].mxu1  ;;  %9671 = vmatpush3.bf16.msra.mxu0 %v9668_v39  ;;  %8984 = vmatprep.mubr.msk.f32.mxu0 %vm2484_vm12, %v7825_v35  ;;  %v7837_v39 = vld [vmem:[%s12109_s16 + $0x270] sm:$0xff] }
 0xc55   : > { %v11249_v23 = vpop.f32.mrb[35].mxu1  ;;  %9673 = vmatprep.subr.bf16.mxu0 %v9672_v4  ;;  %v7865_v35 = vld [vmem:[%s12109_s16 + $0x2d0] sm:$0xff] }
 0xc57   : > { %8985 = vmatmul.mubr.msk.f32.gmra.mrb[40].mxu0 %vm2484_vm12, %v7826_v55  ;;  %v7870_v55 = vld [vmem:[%s12109_s16 + $0x2f8] sm:$0xff] }
 0xc58   : > { %v11253_v16 = vpop.f32.mrb[36].mxu1  ;;  %9675 = vmatpush3.bf16.msra.mxu0 %v9672_v4  ;;  %8987 = vmatprep.mubr.msk.f32.mxu0 %vm2484_vm12, %v7827_v53  ;;  %v7868_v4 = vld [vmem:[%s12109_s16 + $0x2e8] sm:$0xff]  ;;  %v3252_v53 = vpop.permute.xlu1 %3251 }
 0xc59   : > { %v11257_v61 = vpop.f32.mrb[37].mxu1  ;;  %9677 = vmatprep.subr.bf16.mxu0 %v9676_v15 }
 0xc5b   : > { %8988 = vmatmul.mubr.msk.f32.gmra.mrb[42].mxu0 %vm2484_vm12, %v7828_v19 }
 0xc5c   : > { %v11261_v25 = vpop.f32.mrb[38].mxu1  ;;  %9679 = vmatpush3.bf16.msra.mxu0 %v9676_v15  ;;  %8990 = vmatprep.mubr.msk.f32.mxu0 %vm2484_vm12, %v7829_v24  ;;  %v3262_v11 = vpop.permute.xlu1 %3261 }
 0xc5d   : > { %v11265_v43 = vpop.f32.mrb[39].mxu1  ;;  %9681 = vmatprep.subr.bf16.mxu0 %v9680_v20  ;;  %v3257_v15 = vpop.permute.xlu0 %3256 }
 0xc5f   : > { %8991 = vmatmul.mubr.msk.f32.gmra.mrb[44].mxu0 %vm2484_vm12, %v7830_v26  ;;  %v3324_v26 = vadd.f32 %v3247_v18, %v11241_v52 }
 0xc60   : > { %v11269_v13 = vpop.f32.mrb[40].mxu1  ;;  %9683 = vmatpush3.bf16.msra.mxu0 %v9680_v20  ;;  %8993 = vmatprep.mubr.msk.f32.mxu0 %vm2484_vm12, %v7831_v3  ;;  %v3272_v19 = vpop.permute.xlu1 %3271  ;;  %v3325_v20 = vadd.f32 %v11237_v57, %v3252_v53 }
 0xc61   : > { %v11273_v30 = vpop.f32.mrb[41].mxu1  ;;  %v3267_v24 = vpop.permute.xlu0 %3266 }
 0xc63   : > { %8994 = vmatmul.mubr.msk.f32.gmra.mrb[46].mxu0 %vm2484_vm12, %v7832_v28 }
 0xc64   : > { %v11277_v47 = vpop.f32.mrb[42].mxu1  ;;  %8996 = vmatprep.mubr.msk.f32.mxu0 %vm2484_vm12, %v7833_v2 }
 0xc65   : > { %v11281_v48 = vpop.f32.mrb[43].mxu1 }
 0xc67   : > { %8997 = vmatmul.mubr.msk.f32.gmra.mrb[48].mxu0 %vm2484_vm12, %v7834_v31  ;;  %v3282_v31 = vpop.permute.xlu1 %3281 }
 0xc68   : > { %v11285_v34 = vpop.f32.mrb[44].mxu1  ;;  %8999 = vmatprep.mubr.msk.f32.mxu0 %vm2484_vm12, %v7835_v32 }
 0xc69   : > { %v11289_v37 = vpop.f32.mrb[45].mxu1 }
 0xc6b   : > { %9000 = vmatmul.mubr.msk.f32.gmra.mrb[50].mxu0 %vm2484_vm12, %v7836_v36  ;;  %v3277_v36 = vpop.permute.xlu0 %3276 }
 0xc6c   : > { %v11293_v33 = vpop.f32.mrb[46].mxu1  ;;  %9002 = vmatprep.mubr.msk.f32.mxu0 %vm2484_vm12, %v7837_v39  ;;  %v3327_v39 = vadd.f32 %v11245_v10, %v3262_v11 }
 0xc6d   : > { %v11297_v40 = vpop.f32.mrb[47].mxu1 }
 0xc6f   : > { %9003 = vmatmul.mubr.msk.f32.gmra.mrb[52].mxu0 %vm2484_vm12, %v7838_v38 }
 0xc70   : > { %9021 = vmatprep.mubr.msk.f32.mxu0 %vm2484_vm12, %v7855_v41  ;;  %v3326_v41 = vadd.f32 %v3257_v15, %v11249_v23 }
 0xc73   : > { %9022 = vmatmul.mubr.msk.f32.vlgmr.msra.gmra.mrb[38].mxu0 %vm2484_vm12, %v7856_v44 }
 0xc74   : > { %9024 = vmatprep.mubr.msk.f32.mxu0 %vm2484_vm12, %v7857_v45 }
 0xc77   : > { %9025 = vmatmul.mubr.msk.f32.gmra.mrb[40].mxu0 %vm2484_vm12, %v7858_v46 }
 0xc78   : > { %9027 = vmatprep.mubr.msk.f32.mxu0 %vm2484_vm12, %v7859_v49  ;;  %v3329_v49 = vadd.f32 %v11253_v16, %v3272_v19 }
 0xc7b   : > { %9028 = vmatmul.mubr.msk.f32.gmra.mrb[42].mxu0 %vm2484_vm12, %v7860_v50  ;;  %v3292_v50 = vpop.permute.xlu1 %3291 }
 0xc7c   : > { %9030 = vmatprep.mubr.msk.f32.mxu0 %vm2484_vm12, %v7861_v51  ;;  %v3328_v51 = vadd.f32 %v3267_v24, %v11257_v61 }
 0xc7f   : > { %9031 = vmatmul.mubr.msk.f32.gmra.mrb[44].mxu0 %vm2484_vm12, %v7862_v54  ;;  %v3287_v54 = vpop.permute.xlu0 %3286  ;;  %v3302_v53 = vpop.permute.xlu1 %3301 }
 0xc80   : > { %9033 = vmatprep.mubr.msk.f32.mxu0 %vm2484_vm12, %v7863_v56 }
 0xc83   : > { %9034 = vmatmul.mubr.msk.f32.gmra.mrb[46].mxu0 %vm2484_vm12, %v7864_v58  ;;  %v3297_v11 = vpop.permute.xlu0 %3296 }
 0xc84   : > { %9036 = vmatprep.mubr.msk.f32.mxu0 %vm2484_vm12, %v7865_v35 }
 0xc87   : > { %9037 = vmatmul.mubr.msk.f32.gmra.mrb[48].mxu0 %vm2484_vm12, %v7866_v59  ;;  %v3331_v59 = vadd.f32 %v11261_v25, %v3282_v31  ;;  %v3333_v25 = vadd.f32 %v11269_v13, %v3292_v50  ;;  %v3312_v31 = vpop.permute.xlu1 %3311  ;;  %v3334_v13 = vadd.f32 %v3297_v11, %v11281_v48 }
 0xc88   : > { %9039 = vmatprep.mubr.msk.f32.mxu0 %vm2484_vm12, %v7867_v8  ;;  %v3330_v8 = vadd.f32 %v3277_v36, %v11265_v43  ;;  %v3332_v43 = vadd.f32 %v3287_v54, %v11273_v30 }
 0xc8b   : > { %9040 = vmatmul.mubr.msk.f32.gmra.mrb[50].mxu0 %vm2484_vm12, %v7868_v4 }
 0xc8c   : > { %9042 = vmatprep.mubr.msk.f32.mxu0 %vm2484_vm12, %v7869_v0 }
 0xc8f   : > { %9043 = vmatmul.mubr.msk.f32.gmra.mrb[52].mxu0 %vm2484_vm12, %v7870_v55 }
 0xd46   : > { %v9023_v3 = vpop.f32.mrb[38].mxu0 }
 0xd47   : > { %v11334_v28 = vadd.f32 %v9023_v3, %v3325_v20  ;;  %v4503_v2 = vpop.f32.mrb[39].mxu0 }
 0xd48   : > { %v11336_v32 = vadd.f32 %v4503_v2, %v3324_v26  ;;  %v3335_v2 = vadd.f32 %v11277_v47, %v3302_v53  ;;  %v3337_v47 = vadd.f32 %v11285_v34, %v3312_v31  ;;  %v4752_v31 = vsel %vm4751_vm3, 1, %v12080_v14 }
 0xd49   : > { %v4793_v38 = vsel %vm4789_vm2, %v11334_v28, 0.0  ;;  %vm6885_vm3 = vcmp.ge.s32.totalorder %v10770_v21, 6 }
 0xd4a   : > { %4794 = vadd.xlane.f32.xlu1 %v4793_v38  ;;  %v9026_v57 = vpop.f32.mrb[40].mxu0  ;;  %v4790_v52 = vsel %vm4789_vm2, %v11336_v32, 0.0  ;;  %v3307_v38 = vpop.permute.xlu0 %3306 }
 0xd4b   : > { %v11344_v44 = vadd.f32 %v9026_v57, %v3327_v39  ;;  %4791 = vadd.xlane.f32.xlu0 %v4790_v52  ;;  %v4513_v45 = vpop.f32.mrb[41].mxu0 }
 0xd4c   : > { %v11346_v46 = vadd.f32 %v4513_v45, %v3326_v41  ;;  %v3336_v45 = vadd.f32 %v3307_v38, %v11289_v37  ;;  %v4753_v38 = vadd.s32 %v4752_v31, %v10955_v60 }
 0xd4d   : > { %v4799_v10 = vsel %vm4789_vm2, %v11344_v44, 0.0 }
 0xd4e   : > { %v9029_v23 = vpop.f32.mrb[42].mxu0  ;;  %v4796_v16 = vsel %vm4789_vm2, %v11346_v46, 0.0 }
 0xd4f   : > { %v11352_v56 = vadd.f32 %v9029_v23, %v3329_v49  ;;  %4800 = vadd.xlane.f32.xlu0 %v4799_v10  ;;  %v4523_v58 = vpop.f32.mrb[43].mxu0  ;;  %v3322_v23 = vpop.permute.xlu1 %3321 }
 0xd50   : > { %v11354_v35 = vadd.f32 %v4523_v58, %v3328_v51  ;;  %v3317_v58 = vpop.permute.xlu0 %3316  ;;  %v3339_v34 = vadd.f32 %v11293_v33, %v3322_v23 }
 0xd51   : > { %v4805_v19 = vsel %vm4789_vm2, %v11352_v56, 0.0  ;;  %v3338_v37 = vadd.f32 %v3317_v58, %v11297_v40  ;;  %v4838_v40 = vmul.f32 %v11336_v32, %v11336_v32 }
 0xd52   : > { %v9032_v4 = vpop.f32.mrb[44].mxu0  ;;  %v4802_v0 = vsel %vm4789_vm2, %v11354_v35, 0.0 }
 0xd53   : > { %v11362_v61 = vadd.f32 %v9032_v4, %v3331_v59  ;;  %4797 = vadd.xlane.f32.xlu0 %v4796_v16  ;;  %4803 = vadd.xlane.f32.xlu1 %v4802_v0  ;;  %v4533_v55 = vpop.f32.mrb[45].mxu0 }
 0xd54   : > { %v11364_v18 = vadd.f32 %v4533_v55, %v3330_v8 }
 0xd55   : > { %v4811_v36 = vsel %vm4789_vm2, %v11362_v61, 0.0 }
 0xd56   : > { %v9035_v15 = vpop.f32.mrb[46].mxu0  ;;  %v4808_v24 = vsel %vm4789_vm2, %v11364_v18, 0.0 }
 0xd57   : > { %v11372_v20 = vadd.f32 %v9035_v15, %v3333_v25  ;;  %4806 = vadd.xlane.f32.xlu0 %v4805_v19  ;;  %4809 = vadd.xlane.f32.xlu1 %v4808_v24  ;;  %v4543_v26 = vpop.f32.mrb[47].mxu0  ;;  %v4854_v25 = vsel %vm4789_vm2, %v4838_v40, 0.0  ;;  %v4840_v15 = vmul.f32 %v11346_v46, %v11346_v46 }
 0xd58   : > { %v11374_v3 = vadd.f32 %v4543_v26, %v3332_v43  ;;  %v4839_v43 = vmul.f32 %v11334_v28, %v11334_v28  ;;  %v4841_v26 = vmul.f32 %v11344_v44, %v11344_v44 }
 0xd59   : > { %v4817_v49 = vsel %vm4789_vm2, %v11372_v20, 0.0  ;;  %v4860_v24 = vsel %vm4789_vm2, %v4840_v15, 0.0  ;;  %v4847_v23 = vmul.f32 %v11372_v20, %v11372_v20 }
 0xd5a   : > { %v9038_v30 = vpop.f32.mrb[48].mxu0  ;;  %v4814_v39 = vsel %vm4789_vm2, %v11374_v3, 0.0  ;;  %v4857_v19 = vsel %vm4789_vm2, %v4839_v43, 0.0 }
 0xd5b   : > { %v11382_v41 = vadd.f32 %v9038_v30, %v3335_v2  ;;  %4812 = vadd.xlane.f32.xlu0 %v4811_v36  ;;  %4815 = vadd.xlane.f32.xlu1 %v4814_v39  ;;  %v4553_v57 = vpop.f32.mrb[49].mxu0  ;;  %v4842_v2 = vmul.f32 %v11354_v35, %v11354_v35  ;;  %v4843_v36 = vmul.f32 %v11352_v56, %v11352_v56 }
 0xd5c   : > { %v11384_v52 = vadd.f32 %v4553_v57, %v3334_v13  ;;  %v4863_v13 = vsel %vm4789_vm2, %v4841_v26, 0.0  ;;  %v4844_v39 = vmul.f32 %v11364_v18, %v11364_v18  ;;  %v4755_v57 = vsel %vm4754_vm6, 1, %v12080_v14 }
 0xd5d   : > { %v4823_v8 = vsel %vm4789_vm2, %v11382_v41, 0.0  ;;  %v4866_v30 = vsel %vm4789_vm2, %v4842_v2, 0.0  ;;  %vm6867_vm6 = vcmp.ge.s32.totalorder %v10794_v17, 3 }
 0xd5e   : > { %v9041_v48 = vpop.f32.mrb[50].mxu0  ;;  %v4820_v10 = vsel %vm4789_vm2, %v11384_v52, 0.0  ;;  %v4848_v58 = vmul.f32 %v11384_v52, %v11384_v52 }
 0xd5f   : > { %v11392_v50 = vadd.f32 %v9041_v48, %v3337_v47  ;;  %4818 = vadd.xlane.f32.xlu0 %v4817_v49  ;;  %4821 = vadd.xlane.f32.xlu1 %v4820_v10  ;;  %v4563_v51 = vpop.f32.mrb[51].mxu0  ;;  %v4869_v47 = vsel %vm4789_vm2, %v4843_v36, 0.0  ;;  %v4845_v48 = vmul.f32 %v11362_v61, %v11362_v61  ;;  %v4846_v49 = vmul.f32 %v11374_v3, %v11374_v3 }
 0xd60   : > { %v11394_v54 = vadd.f32 %v4563_v51, %v3336_v45  ;;  %v4872_v45 = vsel %vm4789_vm2, %v4844_v39, 0.0  ;;  %v11442_v10 = vadd.s32 %v4755_v57, %v4753_v38 }
 0xd61   : > { %v4829_v53 = vsel %vm4789_vm2, %v11392_v50, 0.0  ;;  %v4875_v51 = vsel %vm4789_vm2, %v4845_v48, 0.0  ;;  %v4878_v60 = vsel %vm4789_vm2, %v4846_v49, 0.0 }
 0xd62   : > { %v9044_v59 = vpop.f32.mrb[52].mxu0  ;;  %v4826_v4 = vsel %vm4789_vm2, %v11394_v54, 0.0  ;;  %vm7903_vm7 = vcmp.eq.s32.totalorder %v11442_v10, 0  ;;  %vm7907_vm8 = vcmp.eq.s32.totalorder %v11442_v10, 1  ;;  %vm7911_vm9 = vcmp.eq.s32.totalorder %v11442_v10, 2 }
 0xd63   : > { %v11402_v16 = vadd.f32 %v9044_v59, %v3339_v34  ;;  %4824 = vadd.xlane.f32.xlu0 %v4823_v8  ;;  %4827 = vadd.xlane.f32.xlu1 %v4826_v4  ;;  %v4573_v0 = vpop.f32.mrb[53].mxu0  ;;  %v4881_v34 = vsel %vm4789_vm2, %v4847_v23, 0.0  ;;  %v4849_v59 = vmul.f32 %v11382_v41, %v11382_v41  ;;  %v4850_v8 = vmul.f32 %v11394_v54, %v11394_v54 }
 0xd64   : > { %v11404_v55 = vadd.f32 %v4573_v0, %v3338_v37  ;;  %v4884_v37 = vsel %vm4789_vm2, %v4848_v58, 0.0  ;;  %v10503_v4 = vmov 0.010416667   ;;  %vm7915_vm0 = vcmp.eq.s32.totalorder %v11442_v10, 3 }
 0xd65   : > { %v4835_v11 = vsel %vm4789_vm2, %v11402_v16, 0.0  ;;  %9077 = vmatprep.mubr.msk.f32.mxu1 %vm7903_vm7, %v10503_v4  ;;  %v4887_v0 = vsel %vm4789_vm2, %v4849_v59, 0.0  ;;  %v4853_v43 = vmul.f32 %v11402_v16, %v11402_v16 }
 0xd66   : > { %v4832_v33 = vsel %vm4789_vm2, %v11404_v55, 0.0  ;;  %v4852_v40 = vmul.f32 %v11404_v55, %v11404_v55 }
 0xd67   : > { %4830 = vadd.xlane.f32.xlu0 %v4829_v53  ;;  %4833 = vadd.xlane.f32.xlu1 %v4832_v33  ;;  %v4890_v53 = vsel %vm4789_vm2, %v4850_v8, 0.0  ;;  %v4851_v33 = vmul.f32 %v11392_v50, %v11392_v50  ;;  %v4899_v15 = vsel %vm4789_vm2, %v4853_v43, 0.0 }
 0xd6b   : > { %4836 = vadd.xlane.f32.xlu0 %v4835_v11  ;;  %4855 = vadd.xlane.f32.xlu1 %v4854_v25  ;;  %v4893_v11 = vsel %vm4789_vm2, %v4851_v33, 0.0  ;;  %v4896_v25 = vsel %vm4789_vm2, %v4852_v40, 0.0 }
 0xd6f   : > { %4858 = vadd.xlane.f32.xlu0 %v4857_v19  ;;  %4861 = vadd.xlane.f32.xlu1 %v4860_v24 }
 0xd73   : > { %4864 = vadd.xlane.f32.xlu0 %v4863_v13  ;;  %4867 = vadd.xlane.f32.xlu1 %v4866_v30 }
 0xd77   : > { %4870 = vadd.xlane.f32.xlu0 %v4869_v47  ;;  %4873 = vadd.xlane.f32.xlu1 %v4872_v45 }
 0xd7b   : > { %4876 = vadd.xlane.f32.xlu0 %v4875_v51  ;;  %4879 = vadd.xlane.f32.xlu1 %v4878_v60 }
 0xd7f   : > { %4882 = vadd.xlane.f32.xlu0 %v4881_v34  ;;  %4885 = vadd.xlane.f32.xlu1 %v4884_v37 }
 0xd83   : > { %4888 = vadd.xlane.f32.xlu0 %v4887_v0  ;;  %4891 = vadd.xlane.f32.xlu1 %v4890_v53 }
 0xd87   : > { %4894 = vadd.xlane.f32.xlu0 %v4893_v11  ;;  %4897 = vadd.xlane.f32.xlu1 %v4896_v25 }
 0xd8b   : > { %4900 = vadd.xlane.f32.xlu0 %v4899_v15 }
 0xdd7   : > { %v4795_v19 = vpop.xlane.xlu1 %4794 }
 0xdd8   : > { %v4792_v24 = vpop.xlane.xlu0 %4791 }
 0xdd9   : > { %v9684_v26 = vpack.c.bf16 %v4795_v19, %v4792_v24 }
 0xddb   : > { %9685 = vmatprep.subr.bf16.mxu1 %v9684_v26 }
 0xddc   : > { %9687 = vmatpush3.bf16.msra.mxu1 %v9684_v26  ;;  %v4801_v2 = vpop.xlane.xlu0 %4800 }
 0xde0   : > { %v4798_v31 = vpop.xlane.xlu0 %4797  ;;  %v4804_v13 = vpop.xlane.xlu1 %4803 }
 0xde1   : > { %v9688_v30 = vpack.c.bf16 %v4801_v2, %v4798_v31 }
 0xde3   : > { %9689 = vmatprep.subr.bf16.mxu1 %v9688_v30 }
 0xde4   : > { %9691 = vmatpush3.bf16.msra.mxu1 %v9688_v30  ;;  %v4807_v36 = vpop.xlane.xlu0 %4806  ;;  %v4810_v39 = vpop.xlane.xlu1 %4809 }
 0xde5   : > { %v9692_v38 = vpack.c.bf16 %v4807_v36, %v4804_v13 }
 0xde7   : > { %9693 = vmatprep.subr.bf16.mxu1 %v9692_v38 }
 0xde8   : > { %9695 = vmatpush3.bf16.msra.mxu1 %v9692_v38  ;;  %v4813_v57 = vpop.xlane.xlu0 %4812  ;;  %v4816_v47 = vpop.xlane.xlu1 %4815 }
 0xde9   : > { %v9696_v45 = vpack.c.bf16 %v4813_v57, %v4810_v39 }
 0xdeb   : > { %9697 = vmatprep.subr.bf16.mxu1 %v9696_v45 }
 0xdec   : > { %9699 = vmatpush3.bf16.msra.mxu1 %v9696_v45  ;;  %v4819_v48 = vpop.xlane.xlu0 %4818  ;;  %v4822_v49 = vpop.xlane.xlu1 %4821 }
 0xded   : > { %v9700_v51 = vpack.c.bf16 %v4819_v48, %v4816_v47 }
 0xdef   : > { %9701 = vmatprep.subr.bf16.mxu1 %v9700_v51 }
 0xdf0   : > { %9703 = vmatpush3.bf16.msra.mxu1 %v9700_v51  ;;  %v4825_v60 = vpop.xlane.xlu0 %4824  ;;  %v4828_v23 = vpop.xlane.xlu1 %4827 }
 0xdf1   : > { %v9704_v58 = vpack.c.bf16 %v4825_v60, %v4822_v49 }
 0xdf3   : > { %9705 = vmatprep.subr.bf16.mxu1 %v9704_v58 }
 0xdf4   : > { %9707 = vmatpush3.bf16.msra.mxu1 %v9704_v58  ;;  %v4831_v34 = vpop.xlane.xlu0 %4830  ;;  %v4834_v37 = vpop.xlane.xlu1 %4833 }
 0xdf5   : > { %v9708_v59 = vpack.c.bf16 %v4831_v34, %v4828_v23 }
 0xdf7   : > { %9709 = vmatprep.subr.bf16.mxu1 %v9708_v59 }
 0xdf8   : > { %9711 = vmatpush3.bf16.msra.mxu1 %v9708_v59  ;;  %v4837_v8 = vpop.xlane.xlu0 %4836  ;;  %v4856_v0 = vpop.xlane.xlu1 %4855 }
 0xdf9   : > { %v9712_v53 = vpack.c.bf16 %v4837_v8, %v4834_v37 }
 0xdfb   : > { %9713 = vmatprep.subr.bf16.mxu1 %v9712_v53 }
 0xdfc   : > { %v4859_v33 = vpop.xlane.xlu0 %4858  ;;  %9715 = vmatpush3.bf16.msra.mxu1 %v9712_v53  ;;  %v4862_v40 = vpop.xlane.xlu1 %4861 }
 0xdfd   : > { %v9716_v11 = vpack.c.bf16 %v4859_v33, %v4856_v0 }
 0xdff   : > { %9078 = vmatmul.mubr.msk.f32.vlgmr.msra.gmra.mrb[48].mxu1 %vm7903_vm7, %v10503_v4  ;;  %9717 = vmatprep.subr.bf16.mxu1 %v9716_v11 }
 0xe00   : > { %v4865_v25 = vpop.xlane.xlu0 %4864  ;;  %9719 = vmatpush3.bf16.msra.mxu1 %v9716_v11  ;;  %v4868_v43 = vpop.xlane.xlu1 %4867  ;;  %9080 = vmatprep.mubr.msk.f32.mxu1 %vm7903_vm7, %v10503_v4 }
 0xe01   : > { %v9720_v15 = vpack.c.bf16 %v4865_v25, %v4862_v40 }
 0xe03   : > { %9081 = vmatmul.mubr.msk.f32.gmra.mrb[50].mxu1 %vm7903_vm7, %v10503_v4  ;;  %9721 = vmatprep.subr.bf16.mxu1 %v9720_v15 }
 0xe04   : > { %v4871_v19 = vpop.xlane.xlu0 %4870  ;;  %9723 = vmatpush3.bf16.msra.mxu1 %v9720_v15  ;;  %v4874_v24 = vpop.xlane.xlu1 %4873  ;;  %9083 = vmatprep.mubr.msk.f32.mxu1 %vm7907_vm8, %v10503_v4 }
 0xe05   : > { %v9724_v26 = vpack.c.bf16 %v4871_v19, %v4868_v43 }
 0xe07   : > { %9084 = vmatmul.mubr.msk.f32.gmra.mrb[52].mxu1 %vm7907_vm8, %v10503_v4  ;;  %9725 = vmatprep.subr.bf16.mxu1 %v9724_v26 }
 0xe08   : > { %v4877_v2 = vpop.xlane.xlu0 %4876  ;;  %9727 = vmatpush3.bf16.msra.mxu1 %v9724_v26  ;;  %v4880_v31 = vpop.xlane.xlu1 %4879  ;;  %9086 = vmatprep.mubr.msk.f32.mxu1 %vm7907_vm8, %v10503_v4 }
 0xe09   : > { %v9728_v13 = vpack.c.bf16 %v4877_v2, %v4874_v24 }
 0xe0b   : > { %9087 = vmatmul.mubr.msk.f32.gmra.mrb[54].mxu1 %vm7907_vm8, %v10503_v4  ;;  %9729 = vmatprep.subr.bf16.mxu1 %v9728_v13 }
 0xe0c   : > { %v4883_v30 = vpop.xlane.xlu0 %4882  ;;  %9731 = vmatpush3.bf16.msra.mxu1 %v9728_v13  ;;  %v4886_v36 = vpop.xlane.xlu1 %4885  ;;  %9089 = vmatprep.mubr.msk.f32.mxu1 %vm7911_vm9, %v10503_v4 }
 0xe0d   : > { %v9732_v39 = vpack.c.bf16 %v4883_v30, %v4880_v31 }
 0xe0f   : > { %9090 = vmatmul.mubr.msk.f32.gmra.mrb[56].mxu1 %vm7911_vm9, %v10503_v4  ;;  %9733 = vmatprep.subr.bf16.mxu1 %v9732_v39 }
 0xe10   : > { %v4889_v38 = vpop.xlane.xlu0 %4888  ;;  %9735 = vmatpush3.bf16.msra.mxu1 %v9732_v39  ;;  %9092 = vmatprep.mubr.msk.f32.mxu1 %vm7911_vm9, %v10503_v4  ;;  %v4892_v47 = vpop.xlane.xlu1 %4891 }
 0xe11   : > { %v9736_v57 = vpack.c.bf16 %v4889_v38, %v4886_v36 }
 0xe13   : > { %9093 = vmatmul.mubr.msk.f32.gmra.mrb[58].mxu1 %vm7911_vm9, %v10503_v4  ;;  %9737 = vmatprep.subr.bf16.mxu1 %v9736_v57 }
 0xe14   : > { %v4895_v45 = vpop.xlane.xlu0 %4894  ;;  %9739 = vmatpush3.bf16.msra.mxu1 %v9736_v57  ;;  %9095 = vmatprep.mubr.msk.f32.mxu1 %vm7915_vm0, %v10503_v4  ;;  %v4898_v49 = vpop.xlane.xlu1 %4897 }
 0xe15   : > { %v9740_v48 = vpack.c.bf16 %v4895_v45, %v4892_v47 }
 0xe17   : > { %9096 = vmatmul.mubr.msk.f32.gmra.mrb[60].mxu1 %vm7915_vm0, %v10503_v4  ;;  %9741 = vmatprep.subr.bf16.mxu1 %v9740_v48 }
 0xe18   : > { %v4901_v51 = vpop.xlane.xlu0 %4900  ;;  %9743 = vmatpush3.bf16.msra.mxu1 %v9740_v48  ;;  %9098 = vmatprep.mubr.msk.f32.mxu1 %vm7915_vm0, %v10503_v4 }
 0xe19   : > { %v9744_v60 = vpack.c.bf16 %v4901_v51, %v4898_v49 }
 0xe1b   : > { %9099 = vmatmul.mubr.msk.f32.gmra.mrb[62].mxu1 %vm7915_vm0, %v10503_v4  ;;  %9745 = vmatprep.subr.bf16.mxu1 %v9744_v60 }
 0xe1c   : > { %9747 = vmatpush3.bf16.msra.mxu1 %v9744_v60  ;;  %9133 = vmatprep.mubr.msk.f32.mxu1 %vm7903_vm7, %v10503_v4 }
 0xe1f   : > { %9134 = vmatmul.mubr.msk.f32.vlgmr.msra.gmra.mrb[64].mxu1 %vm7903_vm7, %v10503_v4 }
 0xe20   : > { %9136 = vmatprep.mubr.msk.f32.mxu1 %vm7903_vm7, %v10503_v4 }
 0xe23   : > { %9137 = vmatmul.mubr.msk.f32.gmra.mrb[66].mxu1 %vm7903_vm7, %v10503_v4  ;;  %vm6871_vm7 = vcmp.ge.s32.totalorder %v10794_v17, 6 }
 0xe24   : > { %9139 = vmatprep.mubr.msk.f32.mxu1 %vm7907_vm8, %v10503_v4 }
 0xe27   : > { %9140 = vmatmul.mubr.msk.f32.gmra.mrb[68].mxu1 %vm7907_vm8, %v10503_v4 }
 0xe28   : > { %9142 = vmatprep.mubr.msk.f32.mxu1 %vm7907_vm8, %v10503_v4 }
 0xe2b   : > { %9143 = vmatmul.mubr.msk.f32.gmra.mrb[70].mxu1 %vm7907_vm8, %v10503_v4  ;;  %vm6888_vm8 = vcmp.ge.s32.totalorder %v10770_v21, 9 }
 0xe2c   : > { %9145 = vmatprep.mubr.msk.f32.mxu1 %vm7911_vm9, %v10503_v4 }
 0xe2f   : > { %9146 = vmatmul.mubr.msk.f32.gmra.mrb[72].mxu1 %vm7911_vm9, %v10503_v4 }
 0xe30   : > { %9148 = vmatprep.mubr.msk.f32.mxu1 %vm7911_vm9, %v10503_v4 }
 0xe33   : > { %9149 = vmatmul.mubr.msk.f32.gmra.mrb[74].mxu1 %vm7911_vm9, %v10503_v4 }
 0xe34   : > { %9151 = vmatprep.mubr.msk.f32.mxu1 %vm7915_vm0, %v10503_v4 }
 0xe37   : > { %9152 = vmatmul.mubr.msk.f32.gmra.mrb[76].mxu1 %vm7915_vm0, %v10503_v4 }
 0xe38   : > { %9154 = vmatprep.mubr.msk.f32.mxu1 %vm7915_vm0, %v10503_v4 }
 0xe3b   : > { %9155 = vmatmul.mubr.msk.f32.gmra.mrb[78].mxu1 %vm7915_vm0, %v10503_v4  ;;  %vm6878_vm0 = vcmp.ge.s32.totalorder %v10799_v22, 9 }
 0xed2   : > { %v9079_v23 = vpop.f32.mrb[48].mxu1 }
 0xed3   : > { %5247 = vperm.xlu0 %10117, %v9079_v23   ;;  %v4968_v58 = vpop.f32.mrb[49].mxu1  ;;  %v5193_v19 = vmul.f32 %v9079_v23, %v9079_v23 }
 0xed4   : > { %5242 = vperm.xlu1 %10118, %v4968_v58   ;;  %v5192_v24 = vmul.f32 %v4968_v58, %v4968_v58 }
 0xed6   : > { %v9082_v34 = vpop.f32.mrb[50].mxu1 }
 0xed7   : > { %v4978_v37 = vpop.f32.mrb[51].mxu1  ;;  %v5195_v30 = vmul.f32 %v9082_v34, %v9082_v34 }
 0xed8   : > { %5257 = vperm.xlu1 %10118, %v9082_v34   ;;  %5252 = vperm.xlu0 %10117, %v4978_v37   ;;  %v5194_v39 = vmul.f32 %v4978_v37, %v4978_v37 }
 0xeda   : > { %v9085_v59 = vpop.f32.mrb[52].mxu1 }
 0xedb   : > { %v4988_v8 = vpop.f32.mrb[53].mxu1  ;;  %v5197_v51 = vmul.f32 %v9085_v59, %v9085_v59 }
 0xedc   : > { %5267 = vperm.xlu1 %10118, %v9085_v59   ;;  %5262 = vperm.xlu0 %10117, %v4988_v8   ;;  %v5196_v27 = vmul.f32 %v4988_v8, %v4988_v8 }
 0xede   : > { %v9088_v0 = vpop.f32.mrb[54].mxu1 }
 0xedf   : > { %v4998_v53 = vpop.f32.mrb[55].mxu1  ;;  %v5199_v34 = vmul.f32 %v9088_v0, %v9088_v0 }
 0xee0   : > { %5277 = vperm.xlu1 %10118, %v9088_v0   ;;  %5272 = vperm.xlu0 %10117, %v4998_v53  }
 0xee2   : > { %v9091_v33 = vpop.f32.mrb[56].mxu1 }
 0xee3   : > { %v5008_v40 = vpop.f32.mrb[57].mxu1 }
 0xee4   : > { %5287 = vperm.xlu1 %10118, %v9091_v33   ;;  %5282 = vperm.xlu0 %10117, %v5008_v40  }
 0xee6   : > { %v11567_v10 = vpop.f32.mrb[58].mxu1 }
 0xee7   : > { %v11569_v4 = vpop.f32.mrb[59].mxu1 }
 0xee8   : > { %5297 = vperm.xlu1 %10118, %v11567_v10   ;;  %5292 = vperm.xlu0 %10117, %v11569_v4  }
 0xeea   : > { %v11573_v11 = vpop.f32.mrb[60].mxu1 }
 0xeeb   : > { %v11575_v25 = vpop.f32.mrb[61].mxu1 }
 0xeec   : > { %5307 = vperm.xlu1 %10118, %v11573_v11   ;;  %5302 = vperm.xlu0 %10117, %v11575_v25  }
 0xeee   : > { %v11579_v43 = vpop.f32.mrb[62].mxu1 }
 0xeef   : > { %v11581_v15 = vpop.f32.mrb[63].mxu1 }
 0xef0   : > { %5317 = vperm.xlu1 %10118, %v11579_v43   ;;  %5312 = vperm.xlu0 %10117, %v11581_v15  }
 0xef2   : > { %v9135_v26 = vpop.f32.mrb[64].mxu1 }
 0xef3   : > { %v5209_v2 = vsub.f32 %v9135_v26, %v5193_v19  ;;  %v5113_v31 = vpop.f32.mrb[65].mxu1 }
 0xef4   : > { %v5208_v13 = vsub.f32 %v5113_v31, %v5192_v24  ;;  %v5198_v31 = vmul.f32 %v4998_v53, %v4998_v53 }
 0xef5   : > { %v5225_v36 = vmax.f32 %v5209_v2, 0.0 }
 0xef6   : > { %v5224_v38 = vmax.f32 %v5208_v13, 0.0  ;;  %v9138_v57 = vpop.f32.mrb[66].mxu1 }
 0xef7   : > { %v5337_v47 = vadd.f32 1e-05, %v5225_v36  ;;  %v5211_v45 = vsub.f32 %v9138_v57, %v5195_v30  ;;  %v5123_v48 = vpop.f32.mrb[67].mxu1  ;;  %v5201_v57 = vmul.f32 %v9091_v33, %v9091_v33  ;;  %v5202_v33 = vmul.f32 %v11569_v4, %v11569_v4 }
 0xef8   : > { %v5210_v49 = vsub.f32 %v5123_v48, %v5194_v39  ;;  %v5336_v60 = vadd.f32 1e-05, %v5224_v38  ;;  %v5204_v4 = vmul.f32 %v11575_v25, %v11575_v25  ;;  %v5206_v25 = vmul.f32 %v11581_v15, %v11581_v15 }
 0xef9   : > { %10347 = vrsqrt.f32 %v5337_v47  ;;  %v5227_v14 = vmax.f32 %v5211_v45, 0.0  ;;  %v5200_v45 = vmul.f32 %v5008_v40, %v5008_v40 }
 0xefa   : > { %v5226_v23 = vmax.f32 %v5210_v49, 0.0  ;;  %v9141_v58 = vpop.f32.mrb[68].mxu1  ;;  %10349 = vrsqrt.f32 %v5336_v60 }
 0xefb   : > { %v5213_v29 = vsub.f32 %v9141_v58, %v5197_v51  ;;  %v5133_v19 = vpop.f32.mrb[69].mxu1  ;;  %v5339_v37 = vadd.f32 1e-05, %v5227_v14  ;;  %v5203_v51 = vmul.f32 %v11567_v10, %v11567_v10 }
 0xefc   : > { %v5338_v26 = vadd.f32 1e-05, %v5226_v23  ;;  %v5212_v24 = vsub.f32 %v5133_v19, %v5196_v27 }
 0xefd   : > { %v5229_v2 = vmax.f32 %v5213_v29, 0.0 }
 0xefe   : > { %10351 = vrsqrt.f32 %v5338_v26  ;;  %v5228_v13 = vmax.f32 %v5212_v24, 0.0  ;;  %v9144_v30 = vpop.f32.mrb[70].mxu1 }
 0xeff   : > { %v5215_v36 = vsub.f32 %v9144_v30, %v5199_v34  ;;  %v5143_v59 = vpop.f32.mrb[71].mxu1  ;;  %10353 = vrsqrt.f32 %v5339_v37  ;;  %v5341_v8 = vadd.f32 1e-05, %v5229_v2 }
 0xf00   : > { %v5340_v39 = vadd.f32 1e-05, %v5228_v13  ;;  %v5214_v38 = vsub.f32 %v5143_v59, %v5198_v31  ;;  %v5205_v31 = vmul.f32 %v11573_v11, %v11573_v11  ;;  %v5207_v11 = vmul.f32 %v11579_v43, %v11579_v43 }
 0xf01   : > { %v5231_v47 = vmax.f32 %v5215_v36, 0.0 }
 0xf02   : > { %10355 = vrsqrt.f32 %v5340_v39  ;;  %v5230_v48 = vmax.f32 %v5214_v38, 0.0  ;;  %v9147_v27 = vpop.f32.mrb[72].mxu1 }
 0xf03   : > { %v10348_v0 = vpop.eup %10347  ;;  %v5217_v49 = vsub.f32 %v9147_v27, %v5201_v57  ;;  %v5153_v14 = vpop.f32.mrb[73].mxu1  ;;  %10357 = vrsqrt.f32 %v5341_v8  ;;  %v5343_v60 = vadd.f32 1e-05, %v5231_v47 }
 0xf04   : > { %v5342_v29 = vadd.f32 1e-05, %v5230_v48  ;;  %v5216_v53 = vsub.f32 %v5153_v14, %v5200_v45  ;;  %5375 = vperm.xlu1 %10118, %v10348_v0   ;;  %v10350_v19 = vpop.eup %10349 }
 0xf05   : > { %v5233_v23 = vmax.f32 %v5217_v49, 0.0 }
 0xf06   : > { %10359 = vrsqrt.f32 %v5342_v29  ;;  %v5232_v40 = vmax.f32 %v5216_v53, 0.0  ;;  %v9150_v58 = vpop.f32.mrb[74].mxu1 }
 0xf07   : > { %v5219_v26 = vsub.f32 %v9150_v58, %v5203_v51  ;;  %v5163_v24 = vpop.f32.mrb[75].mxu1  ;;  %10361 = vrsqrt.f32 %v5343_v60  ;;  %v5345_v10 = vadd.f32 1e-05, %v5233_v23 }
 0xf08   : > { %v10352_v34 = vpop.eup %10351  ;;  %v5344_v37 = vadd.f32 1e-05, %v5232_v40  ;;  %v5218_v2 = vsub.f32 %v5163_v24, %v5202_v33  ;;  %5370 = vperm.xlu1 %10118, %v10350_v19  }
 0xf09   : > { %v5235_v13 = vmax.f32 %v5219_v26, 0.0  ;;  %5380 = vperm.xlu0 %10117, %v10352_v34   ;;  %v10354_v59 = vpop.eup %10353 }
 0xf0a   : > { %10363 = vrsqrt.f32 %v5344_v37  ;;  %v5234_v30 = vmax.f32 %v5218_v2, 0.0  ;;  %v9153_v36 = vpop.f32.mrb[76].mxu1  ;;  %v10504_v37 = vmov 0.0|0.0  }
 0xf0b   : > { %v5221_v39 = vsub.f32 %v9153_v36, %v5205_v31  ;;  %v5173_v38 = vpop.f32.mrb[77].mxu1  ;;  %10365 = vrsqrt.f32 %v5345_v10  ;;  %v5347_v45 = vadd.f32 1e-05, %v5235_v13  ;;  %9748 = vmatprep.subr.bf16.mxu1 %v10504_v37 }
 0xf0c   : > { %v10356_v57 = vpop.eup %10355  ;;  %v5346_v8 = vadd.f32 1e-05, %v5234_v30  ;;  %v5220_v47 = vsub.f32 %v5173_v38, %v5204_v4  ;;  %5385 = vperm.xlu1 %10118, %v10354_v59   ;;  %v12111_v4 = vmov 0.0  }
 0xf0d   : > { %v5237_v48 = vmax.f32 %v5221_v39, 0.0  ;;  %5390 = vperm.xlu0 %10117, %v10356_v57   ;;  %v10358_v49 = vpop.eup %10357  ;;  %9189 = vmatprep.mubr.msk.f32.mxu1 %vm10505_vm5, %v12111_v4 }
 0xf0e   : > { %10367 = vrsqrt.f32 %v5346_v8  ;;  %v5236_v27 = vmax.f32 %v5220_v47, 0.0  ;;  %v9156_v0 = vpop.f32.mrb[78].mxu1 }
 0xf0f   : > { %v5223_v14 = vsub.f32 %v9156_v0, %v5207_v11  ;;  %v5183_v29 = vpop.f32.mrb[79].mxu1  ;;  %10369 = vrsqrt.f32 %v5347_v45  ;;  %v5349_v23 = vadd.f32 1e-05, %v5237_v48 }
 0xf10   : > { %v10360_v53 = vpop.eup %10359  ;;  %v5348_v51 = vadd.f32 1e-05, %v5236_v27  ;;  %v5222_v60 = vsub.f32 %v5183_v29, %v5206_v25  ;;  %5395 = vperm.xlu1 %10118, %v10358_v49   ;;  %v4599_v29 = vld [vmem:[%s12112_s2 + $0x8] sm:$0xff] }
 0xf11   : > { %v5239_v43 = vmax.f32 %v5223_v14, 0.0  ;;  %5400 = vperm.xlu0 %10117, %v10360_v53   ;;  %v10362_v40 = vpop.eup %10361 }
 0xf12   : > { %10371 = vrsqrt.f32 %v5348_v51  ;;  %v5238_v33 = vmax.f32 %v5222_v60, 0.0 }
 0xf13   : > { %10373 = vrsqrt.f32 %v5349_v23  ;;  %v5351_v15 = vadd.f32 1e-05, %v5239_v43  ;;  %v7888_v43 = vld [vmem:[%s12112_s2 + $0x88] sm:$0xff] }
 0xf14   : > { %v10364_v58 = vpop.eup %10363  ;;  %v5350_v19 = vadd.f32 1e-05, %v5238_v33  ;;  %5405 = vperm.xlu1 %10118, %v10362_v40  }
 0xf15   : > { %5410 = vperm.xlu0 %10117, %v10364_v58   ;;  %v10366_v26 = vpop.eup %10365  ;;  %v4598_v58 = vld [vmem:[%s12112_s2] sm:$0xff] }
 0xf16   : > { %10375 = vrsqrt.f32 %v5350_v19 }
 0xf17   : > { %10377 = vrsqrt.f32 %v5351_v15 }
 0xf18   : > { %v10368_v24 = vpop.eup %10367  ;;  %5415 = vperm.xlu1 %10118, %v10366_v26   ;;  %v4600_v26 = vld [vmem:[%s12112_s2 + $0x10] sm:$0xff] }
 0xf19   : > { %5420 = vperm.xlu0 %10117, %v10368_v24   ;;  %v10370_v34 = vpop.eup %10369 }
 0xf1c   : > { %v10372_v2 = vpop.eup %10371  ;;  %5425 = vperm.xlu1 %10118, %v10370_v34   ;;  %v7887_v34 = vld [vmem:[%s12112_s2 + $0x80] sm:$0xff] }
 0xf1d   : > { %5430 = vperm.xlu0 %10117, %v10372_v2   ;;  %v10374_v31 = vpop.eup %10373 }
 0xf20   : > { %v10376_v10 = vpop.eup %10375  ;;  %5435 = vperm.xlu1 %10118, %v10374_v31  }
 0xf21   : > { %5440 = vperm.xlu0 %10117, %v10376_v10   ;;  %v10378_v13 = vpop.eup %10377 }
 0xf24   : > { %5445 = vperm.xlu1 %10118, %v10378_v13   ;;  %v7889_v13 = vld [vmem:[%s12112_s2 + $0x90] sm:$0xff] }
 0xf52   : > { %v5248_v36 = vpop.permute.xlu0 %5247 }
 0xf53   : > { %v5243_v30 = vpop.permute.xlu1 %5242  ;;  %v5321_v14 = vsub.f32 %v11334_v28, %v5248_v36  ;;  %v4601_v36 = vld [vmem:[%s12112_s2 + $0x18] sm:$0xff] }
 0xf54   : > { %v5320_v23 = vsub.f32 %v11336_v32, %v5243_v30 }
 0xf57   : > { %v5258_v59 = vpop.permute.xlu1 %5257  ;;  %v5253_v39 = vpop.permute.xlu0 %5252 }
 0xf58   : > { %v5322_v40 = vsub.f32 %v11346_v46, %v5253_v39  ;;  %v5323_v31 = vsub.f32 %v11344_v44, %v5258_v59 }
 0xf5b   : > { %v5268_v38 = vpop.permute.xlu1 %5267  ;;  %v5263_v57 = vpop.permute.xlu0 %5262 }
 0xf5c   : > { %v5324_v32 = vsub.f32 %v11354_v35, %v5263_v57  ;;  %v5325_v44 = vsub.f32 %v11352_v56, %v5268_v38 }
 0xf5f   : > { %v11600_v8 = vpop.permute.xlu1 %5277  ;;  %v5273_v47 = vpop.permute.xlu0 %5272 }
 0xf60   : > { %v5326_v35 = vsub.f32 %v11364_v18, %v5273_v47  ;;  %v5327_v38 = vsub.f32 %v11362_v61, %v11600_v8  ;;  %v7893_v18 = vld [vmem:[%s12112_s2 + $0xb0] sm:$0xff] }
 0xf63   : > { %v11602_v11 = vpop.permute.xlu1 %5287  ;;  %v11604_v45 = vpop.permute.xlu0 %5282 }
 0xf64   : > { %v5328_v47 = vsub.f32 %v11374_v3, %v11604_v45  ;;  %v5329_v8 = vsub.f32 %v11372_v20, %v11602_v11  ;;  %v7895_v3 = vld [vmem:[%s12112_s2 + $0xc0] sm:$0xff]  ;;  %v7896_v11 = vld [vmem:[%s12112_s2 + $0xc8] sm:$0xff] }
 0xf67   : > { %v11606_v48 = vpop.permute.xlu1 %5297  ;;  %v11608_v25 = vpop.permute.xlu0 %5292 }
 0xf6b   : > { %v11610_v27 = vpop.permute.xlu1 %5307  ;;  %v11612_v0 = vpop.permute.xlu0 %5302 }
 0xf6f   : > { %v11614_v49 = vpop.permute.xlu1 %5317  ;;  %v11618_v51 = vpop.permute.xlu0 %5312 }
 0xf83   : > { %v5376_v53 = vpop.permute.xlu1 %5375 }
 0xf84   : > { %v5449_v60 = vmul.f32 %v5376_v53, %v5321_v14 }
 0xf86   : > { %v5465_v33 = vmul.f32 %v5449_v60, %v4599_v29  ;;  %v4602_v29 = vld [vmem:[%s12112_s2 + $0x20] sm:$0xff] }
 0xf87   : > { %v5371_v19 = vpop.permute.xlu1 %5370 }
 0xf88   : > { %v5448_v15 = vmul.f32 %v5371_v19, %v5320_v23  ;;  %v5381_v24 = vpop.permute.xlu0 %5380  ;;  %v5481_v28 = vadd.f32 %v7888_v43, %v5465_v33  ;;  %v7890_v23 = vld [vmem:[%s12112_s2 + $0x98] sm:$0xff]  ;;  %v7891_v33 = vld [vmem:[%s12112_s2 + $0xa0] sm:$0xff] }
 0xf89   : > { %v5450_v2 = vmul.f32 %v5381_v24, %v5322_v40  ;;  %v4603_v40 = vld [vmem:[%s12112_s2 + $0x28] sm:$0xff] }
 0xf8a   : > { %v5464_v10 = vmul.f32 %v5448_v15, %v4598_v58  ;;  %10379 = vtanh.f32 %v5481_v28 }
 0xf8b   : > { %v5466_v30 = vmul.f32 %v5450_v2, %v4600_v26  ;;  %v5386_v46 = vpop.permute.xlu1 %5385  ;;  %v4604_v26 = vld [vmem:[%s12112_s2 + $0x30] sm:$0xff] }
 0xf8c   : > { %v5480_v39 = vadd.f32 %v7887_v34, %v5464_v10  ;;  %v5451_v14 = vmul.f32 %v5386_v46, %v5323_v31  ;;  %v5391_v53 = vpop.permute.xlu0 %5390  ;;  %v7892_v34 = vld [vmem:[%s12112_s2 + $0xa8] sm:$0xff]  ;;  %v4605_v10 = vld [vmem:[%s12112_s2 + $0x38] sm:$0xff] }
 0xf8d   : > { %v5482_v60 = vadd.f32 %v7889_v13, %v5466_v30  ;;  %v5452_v43 = vmul.f32 %v5391_v53, %v5324_v32  ;;  %v5330_v53 = vsub.f32 %v11384_v52, %v11608_v25  ;;  %v7897_v25 = vld [vmem:[%s12112_s2 + $0xd0] sm:$0xff] }
 0xf8e   : > { %10381 = vtanh.f32 %v5480_v39  ;;  %v5467_v59 = vmul.f32 %v5451_v14, %v4601_v36  ;;  %v4606_v36 = vld [vmem:[%s12112_s2 + $0x40] sm:$0xff]  ;;  %v7894_v14 = vld [vmem:[%s12112_s2 + $0xb8] sm:$0xff] }
 0xf8f   : > { %v5468_v57 = vmul.f32 %v5452_v43, %v4602_v29  ;;  %v5396_v58 = vpop.permute.xlu1 %5395  ;;  %10383 = vtanh.f32 %v5482_v60 }
 0xf90   : > { %v5483_v19 = vadd.f32 %v7890_v23, %v5467_v59  ;;  %v5453_v15 = vmul.f32 %v5396_v58, %v5325_v44  ;;  %v5401_v24 = vpop.permute.xlu0 %5400  ;;  %v4607_v23 = vld [vmem:[%s12112_s2 + $0x48] sm:$0xff] }
 0xf91   : > { %v5484_v28 = vadd.f32 %v7891_v33, %v5468_v57  ;;  %v5454_v56 = vmul.f32 %v5401_v24, %v5326_v35  ;;  %v4608_v35 = vld [vmem:[%s12112_s2 + $0x50] sm:$0xff] }
 0xf92   : > { %10385 = vtanh.f32 %v5483_v19  ;;  %v5469_v2 = vmul.f32 %v5453_v15, %v4603_v40  ;;  %v5331_v19 = vsub.f32 %v11382_v41, %v11606_v48  ;;  %v7898_v48 = vld [vmem:[%s12112_s2 + $0xd8] sm:$0xff] }
 0xf93   : > { %v5470_v31 = vmul.f32 %v5454_v56, %v4604_v26  ;;  %v5406_v13 = vpop.permute.xlu1 %5405  ;;  %10387 = vtanh.f32 %v5484_v28  ;;  %v5332_v26 = vsub.f32 %v11394_v54, %v11612_v0  ;;  %v4609_v28 = vld [vmem:[%s12112_s2 + $0x58] sm:$0xff]  ;;  %v5333_v54 = vsub.f32 %v11392_v50, %v11610_v27  ;;  %v7900_v27 = vld [vmem:[%s12112_s2 + $0xe8] sm:$0xff] }
 0xf94   : > { %v5485_v32 = vadd.f32 %v7892_v34, %v5469_v2  ;;  %v5455_v30 = vmul.f32 %v5406_v13, %v5327_v38  ;;  %v5411_v46 = vpop.permute.xlu0 %5410  ;;  %v10380_v45 = vpop.eup %10379  ;;  %v7899_v13 = vld [vmem:[%s12112_s2 + $0xe0] sm:$0xff] }
 0xf95   : > { %v5486_v39 = vadd.f32 %v7893_v18, %v5470_v31  ;;  %v5456_v61 = vmul.f32 %v5411_v46, %v5328_v47  ;;  %v4610_v18 = vld [vmem:[%s12112_s2 + $0x60] sm:$0xff]  ;;  %v4611_v46 = vld [vmem:[%s12112_s2 + $0x68] sm:$0xff] }
 0xf96   : > { %10389 = vtanh.f32 %v5485_v32  ;;  %v5471_v29 = vmul.f32 %v5455_v30, %v4605_v10  ;;  %v5334_v30 = vsub.f32 %v11404_v55, %v11618_v51  ;;  %v5335_v55 = vsub.f32 %v11402_v16, %v11614_v49 }
 0xf97   : > { %v5472_v60 = vmul.f32 %v5456_v61, %v4606_v36  ;;  %v5416_v43 = vpop.permute.xlu1 %5415  ;;  %10391 = vtanh.f32 %v5486_v39 }
 0xf98   : > { %v10382_v44 = vpop.eup %10381  ;;  %v5487_v59 = vadd.f32 %v7894_v14, %v5471_v29  ;;  %v5457_v33 = vmul.f32 %v5416_v43, %v5329_v8  ;;  %v5421_v57 = vpop.permute.xlu0 %5420  ;;  %v4612_v29 = vld [vmem:[%s12112_s2 + $0x70] sm:$0xff] }
 0xf99   : > { %v5488_v20 = vadd.f32 %v7895_v3, %v5472_v60  ;;  %v5458_v40 = vmul.f32 %v5421_v57, %v5330_v53  ;;  %v9749_v58 = vpack.c.bf16 %v10380_v45, %v10382_v44  ;;  %v10384_v15 = vpop.eup %10383  ;;  %v7901_v60 = vld [vmem:[%s12112_s2 + $0xf0] sm:$0xff]  ;;  %v4613_v44 = vld [vmem:[%s12112_s2 + $0x78] sm:$0xff] }
 0xf9a   : > { %10393 = vtanh.f32 %v5487_v59  ;;  %v5473_v52 = vmul.f32 %v5457_v33, %v4607_v23 }
 0xf9b   : > { %v5474_v24 = vmul.f32 %v5458_v40, %v4608_v35  ;;  %9750 = vmatpush3.bf16.msra.mxu1 %v9749_v58  ;;  %v5426_v34 = vpop.permute.xlu1 %5425  ;;  %10395 = vtanh.f32 %v5488_v20 }
 0xf9c   : > { %v10386_v56 = vpop.eup %10385  ;;  %v5489_v38 = vadd.f32 %v7896_v11, %v5473_v52  ;;  %v5459_v2 = vmul.f32 %v5426_v34, %v5331_v19  ;;  %v5431_v47 = vpop.permute.xlu0 %5430  ;;  %9751 = vmatprep.subr.bf16.mxu1 %v10504_v37  ;;  %v7902_v11 = vld [vmem:[%s12112_s2 + $0xf8] sm:$0xff]  ;;  %s12119_s2 = sld [smem:[#allocation14_spill]] }
 0xf9d   : > { %v5490_v41 = vadd.f32 %v7897_v25, %v5474_v24  ;;  %v5460_v31 = vmul.f32 %v5431_v47, %v5332_v26  ;;  %v9752_v10 = vpack.c.bf16 %v10386_v56, %v10384_v15  ;;  %v10388_v32 = vpop.eup %10387  ;;  %v5634_v56 = vld [vmem:[%s12113_s0] sm:$0xff] }
 0xf9e   : > { %10397 = vtanh.f32 %v5489_v38  ;;  %v5475_v0 = vmul.f32 %v5459_v2, %v4609_v28  ;;  %v5635_v38 = vld [vmem:[%s12113_s0 + $0x8] sm:$0xff] }
 0xf9f   : > { %v5476_v36 = vmul.f32 %v5460_v31, %v4610_v18  ;;  %9753 = vmatpush3.bf16.msra.mxu1 %v9752_v10  ;;  %v5436_v39 = vpop.permute.xlu1 %5435  ;;  %10399 = vtanh.f32 %v5490_v41  ;;  %v9772_v47 = vpack.c.bf16 %v5635_v38, %v5634_v56  ;;  %v5636_v31 = vld [vmem:[%s12113_s0 + $0x10] sm:$0xff]  ;;  %v5513_v10 = vld [vmem:[%s12114_s11 + $0x8] sm:$0xff]  ;;  %s12118_s0 = sld [smem:[#allocation9_spill]] }
 0xfa0   : > { %v10390_v14 = vpop.eup %10389  ;;  %v5491_v61 = vadd.f32 %v7898_v48, %v5475_v0  ;;  %v5461_v8 = vmul.f32 %v5436_v39, %v5333_v54  ;;  %v5441_v3 = vpop.permute.xlu0 %5440  ;;  %9754 = vmatprep.subr.bf16.mxu1 %v10504_v37  ;;  %v5512_v48 = vld [vmem:[%s12114_s11] sm:$0xff]  ;;  %v5514_v54 = vld [vmem:[%s12114_s11 + $0x10] sm:$0xff] }
 0xfa1   : > { %v5492_v50 = vadd.f32 %v7899_v13, %v5476_v36  ;;  %v5462_v45 = vmul.f32 %v5441_v3, %v5334_v30  ;;  %v9755_v53 = vpack.c.bf16 %v10390_v14, %v10388_v32  ;;  %v10392_v23 = vpop.eup %10391  ;;  %v5750_v30 = vld [vmem:[%s12115_s23] sm:$0xff] }
 0xfa2   : > { %10401 = vtanh.f32 %v5491_v61  ;;  %v5477_v51 = vmul.f32 %v5461_v8, %v4611_v46 }
 0xfa3   : > { %v5478_v43 = vmul.f32 %v5462_v45, %v4612_v29  ;;  %9756 = vmatpush3.bf16.msra.mxu1 %v9755_v53  ;;  %v5446_v59 = vpop.permute.xlu1 %5445  ;;  %10403 = vtanh.f32 %v5492_v50 }
 0xfa4   : > { %v10394_v33 = vpop.eup %10393  ;;  %v5493_v35 = vadd.f32 %v7900_v27, %v5477_v51  ;;  %v5463_v57 = vmul.f32 %v5446_v59, %v5335_v55  ;;  %9757 = vmatprep.subr.bf16.mxu1 %v10504_v37  ;;  %v5751_v59 = vld [vmem:[%s12115_s23 + $0x8] sm:$0xff] }
 0xfa5   : > { %v5494_v20 = vadd.f32 %v7901_v60, %v5478_v43  ;;  %v9758_v40 = vpack.c.bf16 %v10394_v33, %v10392_v23  ;;  %v10396_v16 = vpop.eup %10395  ;;  %v5752_v33 = vld [vmem:[%s12115_s23 + $0x10] sm:$0xff] }
 0xfa6   : > { %10405 = vtanh.f32 %v5493_v35  ;;  %v5479_v58 = vmul.f32 %v5463_v57, %v4613_v44  ;;  %v5742_v35 = vld [vmem:[%s12116_s26] sm:$0xff]  ;;  %v5753_v57 = vld [vmem:[%s12115_s23 + $0x18] sm:$0xff] }
 0xfa7   : > { %9759 = vmatpush3.bf16.msra.mxu1 %v9758_v40  ;;  %10407 = vtanh.f32 %v5494_v20  ;;  %v5754_v20 = vld [vmem:[%s12115_s23 + $0x20] sm:$0xff]  ;;  %v5743_v40 = vld [vmem:[%s12116_s26 + $0x8] sm:$0xff] }
 0xfa8   : > { %v10398_v49 = vpop.eup %10397  ;;  %v5495_v19 = vadd.f32 %v7902_v11, %v5479_v58  ;;  %9760 = vmatprep.subr.bf16.mxu1 %v10504_v37  ;;  %v5744_v11 = vld [vmem:[%s12116_s26 + $0x10] sm:$0xff]  ;;  %v5755_v58 = vld [vmem:[%s12115_s23 + $0x28] sm:$0xff] }
 0xfa9   : > { %v9761_v52 = vpack.c.bf16 %v10398_v49, %v10396_v16  ;;  %v10400_v25 = vpop.eup %10399  ;;  %v5756_v16 = vld [vmem:[%s12115_s23 + $0x30] sm:$0xff]  ;;  %v5746_v49 = vld [vmem:[%s12116_s26 + $0x20] sm:$0xff] }
 0xfaa   : > { %10409 = vtanh.f32 %v5495_v19  ;;  %v5745_v19 = vld [vmem:[%s12116_s26 + $0x18] sm:$0xff] }
 0xfab   : > { %9762 = vmatpush3.bf16.msra.mxu1 %v9761_v52  ;;  %v5757_v52 = vld [vmem:[%s12115_s23 + $0x38] sm:$0xff] }
 0xfac   : > { %v10402_v15 = vpop.eup %10401  ;;  %9763 = vmatprep.subr.bf16.mxu1 %v10504_v37 }
 0xfad   : > { %v9764_v26 = vpack.c.bf16 %v10402_v15, %v10400_v25  ;;  %v10404_v24 = vpop.eup %10403  ;;  %v7967_v25 = vld [vmem:[%s12115_s23 + $0x40] sm:$0xff]  ;;  %v5748_v15 = vld [vmem:[%s12116_s26 + $0x30] sm:$0xff] }
 0xfaf   : > { %9765 = vmatpush3.bf16.msra.mxu1 %v9764_v26  ;;  %v5747_v26 = vld [vmem:[%s12116_s26 + $0x28] sm:$0xff] }
 0xfb0   : > { %v10406_v28 = vpop.eup %10405  ;;  %9766 = vmatprep.subr.bf16.mxu1 %v10504_v37 }
 0xfb1   : > { %v9767_v34 = vpack.c.bf16 %v10406_v28, %v10404_v24  ;;  %v10408_v2 = vpop.eup %10407  ;;  %v5749_v24 = vld [vmem:[%s12116_s26 + $0x38] sm:$0xff] }
 0xfb3   : > { %9768 = vmatpush3.bf16.msra.mxu1 %v9767_v34 }
 0xfb4   : > { %v10410_v18 = vpop.eup %10409  ;;  %9769 = vmatprep.subr.bf16.mxu1 %v10504_v37 }
 0xfb5   : > { %v9770_v41 = vpack.c.bf16 %v10410_v18, %v10408_v2 }
 0xfb7   : > { %9771 = vmatpush3.bf16.msra.mxu1 %v9770_v41 }
 0xfb8   : > { %9773 = vmatprep.subr.bf16.mxu1 %v9772_v47 }
 0xfba   : > { %9190 = vmatmul.mubr.f32.vlgmr.msra.gmra.mrb[80].mxu1 %v5512_v48 }
 0xfbb   : > { %9192 = vmatprep.mubr.msk.f32.mxu1 %vm10505_vm5, %v12111_v4  ;;  %9775 = vmatpush3.bf16.msra.mxu1 %v9772_v47 }
 0xfbc   : > { %9202 = vmatprep.subr.mxu1 %v5636_v31 }
 0xfbe   : > { %9193 = vmatmul.mubr.f32.gmra.mrb[82].mxu1 %v5513_v10 }
 0xfbf   : > { %9195 = vmatprep.mubr.msk.f32.mxu1 %vm10505_vm5, %v12111_v4  ;;  %9203 = vmatpush3.msra.mxu1 %v5636_v31 }
 0xfc2   : > { %9196 = vmatmul.mubr.f32.gmra.mrb[84].mxu1 %v5514_v54 }
 0xfc3   : > { %9204 = vmatprep.mubr.msk.f32.mxu1 %vm2064_vm10, %v11032_v5 }
 0xfc6   : > { %9205 = vmatmul.mubr.msk.f32.vlgmr.msra.gmra.mrb[86].mxu1 %vm2064_vm10, %v11035_v9 }
 0xfc7   : > { %9207 = vmatprep.mubr.msk.f32.mxu1 %vm2064_vm10, %v11037_v7 }
 0xfca   : > { %9208 = vmatmul.mubr.msk.f32.gmra.mrb[88].mxu1 %vm2064_vm10, %v11047_v63 }
 0xfcb   : > { %9210 = vmatprep.mubr.msk.f32.mxu1 %vm2064_vm10, %v11049_v12 }
 0xfce   : > { %9211 = vmatmul.mubr.msk.f32.gmra.mrb[90].mxu1 %vm2064_vm10, %v11057_v62 }
 0xfcf   : > { %9213 = vmatprep.mubr.msk.f32.mxu1 %vm2064_vm10, %v11059_v42 }
 0xfd2   : > { %9214 = vmatmul.mubr.msk.f32.gmra.mrb[92].mxu1 %vm2064_vm10, %v11066_v1 }
 0xfd3   : > { %9232 = vmatprep.mubr.msk.f32.mxu1 %vm2484_vm12, %v5750_v30 }
0x108d   : > { %v11708_v37 = vpop.f32.mrb[80].mxu1 }
0x108e   : > { %v9191_v0 = vpop.f32.mrb[81].mxu1 }
0x1091   : > { %v11710_v13 = vpop.f32.mrb[82].mxu1 }
0x1092   : > { %v9194_v32 = vpop.f32.mrb[83].mxu1 }
0x1095   : > { %v11714_v36 = vpop.f32.mrb[84].mxu1 }
0x1096   : > { %v9197_v46 = vpop.f32.mrb[85].mxu1 }
0x1099   : > { %v9206_v39 = vpop.f32.mrb[86].mxu1 }
0x109a   : > { %v5703_v14 = vpop.f32.mrb[87].mxu1 }
0x109b   : > { %v10239_v61 = vpack.i.bf16 %v9206_v39, %v5703_v14  ;;  %v9776_v8 = vpack.c.bf16 %v9206_v39, %v5703_v14 }
0x109d   : > { %10220 = vrot.lane.b32.xlu0 %v10239_v61, %s10498_s18  ;;  %v9209_v29 = vpop.f32.mrb[88].mxu1  ;;  %9777 = vmatprep.subr.bf16.mxu1 %v9776_v8 }
0x109e   : > { %v5713_v3 = vpop.f32.mrb[89].mxu1  ;;  %9779 = vmatpush3.bf16.msra.mxu1 %v9776_v8 }
0x109f   : > { %v10244_v50 = vpack.i.bf16 %v9209_v29, %v5713_v3  ;;  %v9780_v27 = vpack.c.bf16 %v9209_v29, %v5713_v3 }
0x10a1   : > { %10225 = vrot.lane.b32.xlu1 %v10244_v50, %s10498_s18  ;;  %v9212_v45 = vpop.f32.mrb[90].mxu1  ;;  %9781 = vmatprep.subr.bf16.mxu1 %v9780_v27 }
0x10a2   : > { %v5723_v53 = vpop.f32.mrb[91].mxu1  ;;  %9783 = vmatpush3.bf16.msra.mxu1 %v9780_v27 }
0x10a3   : > { %v10249_v55 = vpack.i.bf16 %v9212_v45, %v5723_v53  ;;  %v9784_v51 = vpack.c.bf16 %v9212_v45, %v5723_v53  ;;  %v7968_v45 = vld [vmem:[%s12115_s23 + $0x48] sm:$0xff]  ;;  %v7969_v53 = vld [vmem:[%s12115_s23 + $0x50] sm:$0xff] }
0x10a5   : > { %10230 = vrot.lane.b32.xlu0 %v10249_v55, %s10498_s18  ;;  %v9215_v60 = vpop.f32.mrb[92].mxu1  ;;  %9785 = vmatprep.subr.bf16.mxu1 %v9784_v51 }
0x10a6   : > { %v5733_v23 = vpop.f32.mrb[93].mxu1  ;;  %9787 = vmatpush3.bf16.msra.mxu1 %v9784_v51 }
0x10a7   : > { %v10254_v43 = vpack.i.bf16 %v9215_v60, %v5733_v23  ;;  %v9788_v44 = vpack.c.bf16 %v9215_v60, %v5733_v23 }
0x10a9   : > { %10240 = vrot.lane.b32.xlu0 %v10239_v61, %s10499_s22  ;;  %10235 = vrot.lane.b32.xlu1 %v10254_v43, %s10498_s18  ;;  %s12117_s18 = sld [smem:[#allocation2_spill]] }
0x10aa   : > { %9789 = vmatprep.subr.bf16.mxu1 %v9788_v44 }
0x10ab   : > { %9791 = vmatpush3.bf16.msra.mxu1 %v9788_v44  ;;  %v7971_v44 = vld [vmem:[%s12115_s23 + $0x60] sm:$0xff] }
0x10ad   : > { %10250 = vrot.lane.b32.xlu0 %v10249_v55, %s10499_s22  ;;  %10245 = vrot.lane.b32.xlu1 %v10244_v50, %s10499_s22 }
0x10ae   : > { %9233 = vmatmul.mubr.msk.f32.vlgmr.msra.gmra.mrb[94].mxu1 %vm2484_vm12, %v5751_v59 }
0x10af   : > { %9235 = vmatprep.mubr.msk.f32.mxu1 %vm2484_vm12, %v5752_v33 }
0x10b1   : > { %5889 = vperm.xlu0 %10117, %v5742_v35   ;;  %10255 = vrot.lane.b32.xlu1 %v10254_v43, %s10499_s22  ;;  %v7970_v43 = vld [vmem:[%s12115_s23 + $0x58] sm:$0xff]  ;;  %s10062_s22 = smul.u32 40, %s12124_s10 }
0x10b2   : > { %9236 = vmatmul.mubr.msk.f32.gmra.mrb[96].mxu1 %vm2484_vm12, %v5753_v57  ;;  %v7972_v57 = vld [vmem:[%s12115_s23 + $0x68] sm:$0xff] }
0x10b3   : > { %9238 = vmatprep.mubr.msk.f32.mxu1 %vm2484_vm12, %v5754_v20  ;;  %v7973_v20 = vld [vmem:[%s12115_s23 + $0x70] sm:$0xff]  ;;  %s11892_s1 = scalar_lea.vmem %s12117_s18, %s10062_s22  ;;  %s10509_s18 = smov 126  }
0x10b4   : > { %s12120_s22 = sld [smem:[#allocation13_spill]] }
0x10b5   : > { %5899 = vperm.xlu0 %10117, %v5744_v11   ;;  %5894 = vperm.xlu1 %10118, %v5743_v40   ;;  %v7974_v40 = vld [vmem:[%s12115_s23 + $0x78] sm:$0xff] }
0x10b6   : > { %9239 = vmatmul.mubr.msk.f32.gmra.mrb[98].mxu1 %vm2484_vm12, %v5755_v58  ;;  %v7983_v58 = vld [vmem:[%s12115_s23 + $0x80] sm:$0xff] }
0x10b7   : > { %9241 = vmatprep.mubr.msk.f32.mxu1 %vm2484_vm12, %v5756_v16  ;;  %v7984_v16 = vld [vmem:[%s12115_s23 + $0x88] sm:$0xff] }
0x10b9   : > { %5909 = vperm.xlu0 %10117, %v5746_v49   ;;  %5904 = vperm.xlu1 %10118, %v5745_v19   ;;  %v7985_v49 = vld [vmem:[%s12115_s23 + $0x90] sm:$0xff]  ;;  %v7986_v19 = vld [vmem:[%s12115_s23 + $0x98] sm:$0xff] }
0x10ba   : > { %9242 = vmatmul.mubr.msk.f32.gmra.mrb[100].mxu1 %vm2484_vm12, %v5757_v52  ;;  %v7987_v52 = vld [vmem:[%s12115_s23 + $0xa0] sm:$0xff] }
0x10bb   : > { %9260 = vmatprep.mubr.msk.f32.mxu1 %vm2484_vm12, %v7967_v25  ;;  %v7988_v25 = vld [vmem:[%s12115_s23 + $0xa8] sm:$0xff] }
0x10bd   : > { %5919 = vperm.xlu0 %10117, %v5748_v15   ;;  %5914 = vperm.xlu1 %10118, %v5747_v26   ;;  %v7989_v15 = vld [vmem:[%s12115_s23 + $0xb0] sm:$0xff]  ;;  %v7990_v26 = vld [vmem:[%s12115_s23 + $0xb8] sm:$0xff] }
0x10c1   : > { %5924 = vperm.xlu1 %10118, %v5749_v24  }
0x110f   : > { %v10221_v28 = vpop.permute.xlu0 %10220 }
0x1110   : > { %v10223_v34 = vunpack.i.h.bf16 %v10221_v28  ;;  %v10222_v56 = vunpack.i.l.bf16 %v10221_v28 }
0x1112   : > { %v9792_v38 = vpack.c.bf16 %v10223_v34, %v10222_v56 }
0x1113   : > { %v10226_v2 = vpop.permute.xlu1 %10225 }
0x1114   : > { %v10228_v18 = vunpack.i.h.bf16 %v10226_v2  ;;  %v10227_v47 = vunpack.i.l.bf16 %v10226_v2  ;;  %9793 = vmatprep.subr.bf16.mxu1 %v9792_v38 }
0x1115   : > { %9795 = vmatpush3.bf16.msra.mxu1 %v9792_v38 }
0x1116   : > { %v9796_v41 = vpack.c.bf16 %v10228_v18, %v10227_v47 }
0x1117   : > { %v10231_v48 = vpop.permute.xlu0 %10230 }
0x1118   : > { %v10233_v31 = vunpack.i.h.bf16 %v10231_v48  ;;  %v10232_v10 = vunpack.i.l.bf16 %v10231_v48  ;;  %9797 = vmatprep.subr.bf16.mxu1 %v9796_v41 }
0x1119   : > { %9799 = vmatpush3.bf16.msra.mxu1 %v9796_v41 }
0x111a   : > { %v9800_v54 = vpack.c.bf16 %v10233_v31, %v10232_v10 }
0x111b   : > { %v10241_v0 = vpop.permute.xlu0 %10240  ;;  %v10236_v32 = vpop.permute.xlu1 %10235 }
0x111c   : > { %v10243_v30 = vunpack.i.h.bf16 %v10241_v0  ;;  %v10242_v46 = vunpack.i.l.bf16 %v10241_v0  ;;  %v10238_v39 = vunpack.i.h.bf16 %v10236_v32  ;;  %v10237_v14 = vunpack.i.l.bf16 %v10236_v32  ;;  %9801 = vmatprep.subr.bf16.mxu1 %v9800_v54 }
0x111d   : > { %9803 = vmatpush3.bf16.msra.mxu1 %v9800_v54 }
0x111e   : > { %v9804_v61 = vpack.c.bf16 %v10238_v39, %v10237_v14  ;;  %v9808_v29 = vpack.c.bf16 %v10243_v30, %v10242_v46 }
0x111f   : > { %v10246_v8 = vpop.permute.xlu1 %10245  ;;  %v10251_v27 = vpop.permute.xlu0 %10250 }
0x1120   : > { %v10248_v3 = vunpack.i.h.bf16 %v10246_v8  ;;  %v10247_v50 = vunpack.i.l.bf16 %v10246_v8  ;;  %9805 = vmatprep.subr.bf16.mxu1 %v9804_v61  ;;  %v10253_v55 = vunpack.i.h.bf16 %v10251_v27  ;;  %v10252_v51 = vunpack.i.l.bf16 %v10251_v27 }
0x1121   : > { %9807 = vmatpush3.bf16.msra.mxu1 %v9804_v61 }
0x1122   : > { %9809 = vmatprep.subr.bf16.mxu1 %v9808_v29  ;;  %v9812_v60 = vpack.c.bf16 %v10248_v3, %v10247_v50  ;;  %v9816_v59 = vpack.c.bf16 %v10253_v55, %v10252_v51 }
0x1123   : > { %v10256_v23 = vpop.permute.xlu1 %10255 }
0x1124   : > { %9261 = vmatmul.mubr.msk.f32.vlgmr.msra.gmra.mrb[94].mxu1 %vm2484_vm12, %v7968_v45  ;;  %v10258_v33 = vunpack.i.h.bf16 %v10256_v23  ;;  %v10257_v35 = vunpack.i.l.bf16 %v10256_v23 }
0x1125   : > { %9811 = vmatpush3.bf16.msra.mxu1 %v9808_v29  ;;  %9263 = vmatprep.mubr.msk.f32.mxu1 %vm2484_vm12, %v7969_v53 }
0x1126   : > { %9813 = vmatprep.subr.bf16.mxu1 %v9812_v60  ;;  %v9820_v11 = vpack.c.bf16 %v10258_v33, %v10257_v35 }
0x1128   : > { %9264 = vmatmul.mubr.msk.f32.gmra.mrb[96].mxu1 %vm2484_vm12, %v7970_v43 }
0x1129   : > { %9815 = vmatpush3.bf16.msra.mxu1 %v9812_v60  ;;  %9266 = vmatprep.mubr.msk.f32.mxu1 %vm2484_vm12, %v7971_v44 }
0x112a   : > { %9817 = vmatprep.subr.bf16.mxu1 %v9816_v59 }
0x112c   : > { %9267 = vmatmul.mubr.msk.f32.gmra.mrb[98].mxu1 %vm2484_vm12, %v7972_v57 }
0x112d   : > { %9819 = vmatpush3.bf16.msra.mxu1 %v9816_v59  ;;  %9269 = vmatprep.mubr.msk.f32.mxu1 %vm2484_vm12, %v7973_v20 }
0x112e   : > { %9821 = vmatprep.subr.bf16.mxu1 %v9820_v11 }
0x1130   : > { %9270 = vmatmul.mubr.msk.f32.gmra.mrb[100].mxu1 %vm2484_vm12, %v7974_v40  ;;  %v5890_v24 = vpop.permute.xlu0 %5889 }
0x1131   : > { %9823 = vmatpush3.bf16.msra.mxu1 %v9820_v11  ;;  %9288 = vmatprep.mubr.msk.f32.mxu1 %vm2484_vm12, %v7983_v58 }
0x1134   : > { %9289 = vmatmul.mubr.msk.f32.vlgmr.msra.gmra.mrb[94].mxu1 %vm2484_vm12, %v7984_v16  ;;  %v5895_v28 = vpop.permute.xlu1 %5894  ;;  %v5900_v56 = vpop.permute.xlu0 %5899 }
0x1135   : > { %9291 = vmatprep.mubr.msk.f32.mxu1 %vm2484_vm12, %v7985_v49 }
0x1138   : > { %9292 = vmatmul.mubr.msk.f32.gmra.mrb[96].mxu1 %vm2484_vm12, %v7986_v19  ;;  %v5905_v47 = vpop.permute.xlu1 %5904  ;;  %v5910_v0 = vpop.permute.xlu0 %5909 }
0x1139   : > { %9294 = vmatprep.mubr.msk.f32.mxu1 %vm2484_vm12, %v7987_v52 }
0x113c   : > { %9295 = vmatmul.mubr.msk.f32.gmra.mrb[98].mxu1 %vm2484_vm12, %v7988_v25  ;;  %v5915_v39 = vpop.permute.xlu1 %5914  ;;  %v5920_v27 = vpop.permute.xlu0 %5919 }
0x113d   : > { %9297 = vmatprep.mubr.msk.f32.mxu1 %vm2484_vm12, %v7989_v15 }
0x1140   : > { %9298 = vmatmul.mubr.msk.f32.gmra.mrb[100].mxu1 %vm2484_vm12, %v7990_v26  ;;  %v5925_v55 = vpop.permute.xlu1 %5924 }
0x1207   : > { %v9290_v34 = vpop.f32.mrb[94].mxu1 }
0x1208   : > { %v11778_v38 = vadd.f32 %v9290_v34, %v5895_v28  ;;  %v6236_v2 = vpop.f32.mrb[95].mxu1 }
0x1209   : > { %v11780_v18 = vadd.f32 %v6236_v2, %v5890_v24  ;;  %v6300_v24 = vsel %vm7679_vm11, 0.020833334, %v12111_v4  ;;  %vm8028_vm11 = vcmp.eq.s32.totalorder %v10770_v21, 0 }
0x120a   : > { %v6311_v41 = vsel %vm4789_vm2, %v11778_v38, 0.0  ;;  %v6333_v33 = vmul.f32 %v11778_v38, %v11778_v38  ;;  %9316 = vmatprep.mubr.msk.f32.mxu1 %vm2484_vm12, %v6300_v24 }
0x120b   : > { %6312 = vadd.xlane.f32.xlu1 %v6311_v41  ;;  %v9293_v48 = vpop.f32.mrb[96].mxu1  ;;  %v6308_v31 = vsel %vm4789_vm2, %v11780_v18, 0.0  ;;  %v6332_v43 = vmul.f32 %v11780_v18, %v11780_v18 }
0x120c   : > { %v11786_v10 = vadd.f32 %v9293_v48, %v5905_v47  ;;  %6309 = vadd.xlane.f32.xlu0 %v6308_v31  ;;  %v6246_v54 = vpop.f32.mrb[97].mxu1  ;;  %v6343_v57 = vsel %vm4789_vm2, %v6333_v33, 0.0 }
0x120d   : > { %v11790_v30 = vadd.f32 %v6246_v54, %v5900_v56  ;;  %v6340_v59 = vsel %vm4789_vm2, %v6332_v43, 0.0 }
0x120e   : > { %v6317_v32 = vsel %vm4789_vm2, %v11786_v10, 0.0  ;;  %v6335_v11 = vmul.f32 %v11786_v10, %v11786_v10 }
0x120f   : > { %v9296_v46 = vpop.f32.mrb[98].mxu1  ;;  %v6314_v3 = vsel %vm4789_vm2, %v11790_v30, 0.0  ;;  %v6334_v35 = vmul.f32 %v11790_v30, %v11790_v30 }
0x1210   : > { %6318 = vadd.xlane.f32.xlu0 %v6317_v32  ;;  %v6256_v14 = vpop.f32.mrb[99].mxu1  ;;  %v11794_v8 = vadd.f32 %v9296_v46, %v5915_v39  ;;  %v6349_v58 = vsel %vm4789_vm2, %v6335_v11, 0.0 }
0x1211   : > { %v11792_v61 = vadd.f32 %v6256_v14, %v5910_v0  ;;  %v6346_v20 = vsel %vm4789_vm2, %v6334_v35, 0.0 }
0x1212   : > { %v6323_v60 = vsel %vm4789_vm2, %v11794_v8, 0.0  ;;  %v6337_v49 = vmul.f32 %v11794_v8, %v11794_v8 }
0x1213   : > { %v9299_v29 = vpop.f32.mrb[100].mxu1  ;;  %v6320_v50 = vsel %vm4789_vm2, %v11792_v61, 0.0  ;;  %v6336_v40 = vmul.f32 %v11792_v61, %v11792_v61 }
0x1214   : > { %6315 = vadd.xlane.f32.xlu0 %v6314_v3  ;;  %6321 = vadd.xlane.f32.xlu1 %v6320_v50  ;;  %v6266_v45 = vpop.f32.mrb[101].mxu1  ;;  %v11802_v51 = vadd.f32 %v9299_v29, %v5925_v55  ;;  %v6355_v52 = vsel %vm4789_vm2, %v6337_v49, 0.0  ;;  %v6302_v50 = vsel %vm7681_vm13, 0.020833334, %v12111_v4  ;;  %v6304_v55 = vsel %vm7683_vm14, 0.020833334, %v12111_v4 }
0x1215   : > { %v11800_v53 = vadd.f32 %v6266_v45, %v5920_v27  ;;  %v6352_v16 = vsel %vm4789_vm2, %v6336_v40, 0.0  ;;  %vm8029_vm13 = vcmp.eq.s32.totalorder %v10770_v21, 1 }
0x1216   : > { %v6329_v44 = vsel %vm4789_vm2, %v11802_v51, 0.0  ;;  %v6339_v15 = vmul.f32 %v11802_v51, %v11802_v51  ;;  %vm9878_vm14 = vmpackc.low %vm8029_vm13, %vm8028_vm11 }
0x1217   : > { %v6326_v23 = vsel %vm4789_vm2, %v11800_v53, 0.0  ;;  %v6338_v19 = vmul.f32 %v11800_v53, %v11800_v53 }
0x1218   : > { %6324 = vadd.xlane.f32.xlu0 %v6323_v60  ;;  %6327 = vadd.xlane.f32.xlu1 %v6326_v23  ;;  %v6361_v26 = vsel %vm4789_vm2, %v6339_v15, 0.0 }
0x1219   : > { %v6358_v25 = vsel %vm4789_vm2, %v6338_v19, 0.0 }
0x121c   : > { %6330 = vadd.xlane.f32.xlu0 %v6329_v44  ;;  %6341 = vadd.xlane.f32.xlu1 %v6340_v59  ;;  %v6306_v44 = vsel %vm7685_vm15, 0.020833334, %v12111_v4  ;;  %vm8030_vm15 = vcmp.eq.s32.totalorder %v10770_v21, 2 }
0x1220   : > { %6344 = vadd.xlane.f32.xlu0 %v6343_v57  ;;  %6347 = vadd.xlane.f32.xlu1 %v6346_v20  ;;  %v10507_v57 = vmov 0.125  }
0x1224   : > { %6350 = vadd.xlane.f32.xlu0 %v6349_v58  ;;  %6353 = vadd.xlane.f32.xlu1 %v6352_v16 }
0x1228   : > { %6356 = vadd.xlane.f32.xlu0 %v6355_v52  ;;  %6359 = vadd.xlane.f32.xlu1 %v6358_v25 }
0x122c   : > { %6362 = vadd.xlane.f32.xlu0 %v6361_v26 }
0x1298   : > { %v6313_v28 = vpop.xlane.xlu1 %6312 }
0x1299   : > { %v6310_v34 = vpop.xlane.xlu0 %6309 }
0x129a   : > { %v9824_v56 = vpack.c.bf16 %v6313_v28, %v6310_v34 }
0x129c   : > { %9825 = vmatprep.subr.bf16.mxu1 %v9824_v56 }
0x129d   : > { %9827 = vmatpush3.bf16.msra.mxu1 %v9824_v56  ;;  %v6319_v2 = vpop.xlane.xlu0 %6318 }
0x12a1   : > { %v6316_v47 = vpop.xlane.xlu0 %6315  ;;  %v6322_v41 = vpop.xlane.xlu1 %6321 }
0x12a2   : > { %v9828_v48 = vpack.c.bf16 %v6319_v2, %v6316_v47 }
0x12a4   : > { %9829 = vmatprep.subr.bf16.mxu1 %v9828_v48 }
0x12a5   : > { %9831 = vmatpush3.bf16.msra.mxu1 %v9828_v48  ;;  %v6325_v31 = vpop.xlane.xlu0 %6324  ;;  %v6328_v54 = vpop.xlane.xlu1 %6327 }
0x12a6   : > { %v9832_v0 = vpack.c.bf16 %v6325_v31, %v6322_v41 }
0x12a8   : > { %9833 = vmatprep.subr.bf16.mxu1 %v9832_v0 }
0x12a9   : > { %9835 = vmatpush3.bf16.msra.mxu1 %v9832_v0  ;;  %v6331_v32 = vpop.xlane.xlu0 %6330  ;;  %v6342_v46 = vpop.xlane.xlu1 %6341 }
0x12aa   : > { %v9836_v39 = vpack.c.bf16 %v6331_v32, %v6328_v54 }
0x12ac   : > { %9837 = vmatprep.subr.bf16.mxu1 %v9836_v39 }
0x12ad   : > { %v6345_v14 = vpop.xlane.xlu0 %6344  ;;  %9839 = vmatpush3.bf16.msra.mxu1 %v9836_v39  ;;  %v6348_v29 = vpop.xlane.xlu1 %6347 }
0x12ae   : > { %v9840_v3 = vpack.c.bf16 %v6345_v14, %v6342_v46 }
0x12b0   : > { %9317 = vmatmul.mubr.msk.f32.vlgmr.msra.gmra.mrb[102].mxu1 %vm2484_vm12, %v6300_v24  ;;  %9841 = vmatprep.subr.bf16.mxu1 %v9840_v3 }
0x12b1   : > { %v6351_v27 = vpop.xlane.xlu0 %6350  ;;  %9843 = vmatpush3.bf16.msra.mxu1 %v9840_v3  ;;  %9319 = vmatprep.mubr.msk.f32.mxu1 %vm2484_vm12, %v6302_v50  ;;  %v6354_v60 = vpop.xlane.xlu1 %6353 }
0x12b2   : > { %v9844_v45 = vpack.c.bf16 %v6351_v27, %v6348_v29 }
0x12b4   : > { %9320 = vmatmul.mubr.msk.f32.gmra.mrb[104].mxu1 %vm2484_vm12, %v6302_v50  ;;  %9845 = vmatprep.subr.bf16.mxu1 %v9844_v45 }
0x12b5   : > { %v6357_v23 = vpop.xlane.xlu0 %6356  ;;  %9847 = vmatpush3.bf16.msra.mxu1 %v9844_v45  ;;  %9322 = vmatprep.mubr.msk.f32.mxu1 %vm2484_vm12, %v6304_v55  ;;  %v6360_v59 = vpop.xlane.xlu1 %6359 }
0x12b6   : > { %v9848_v43 = vpack.c.bf16 %v6357_v23, %v6354_v60 }
0x12b8   : > { %9323 = vmatmul.mubr.msk.f32.gmra.mrb[106].mxu1 %vm2484_vm12, %v6304_v55  ;;  %9849 = vmatprep.subr.bf16.mxu1 %v9848_v43 }
0x12b9   : > { %v6363_v33 = vpop.xlane.xlu0 %6362  ;;  %9851 = vmatpush3.bf16.msra.mxu1 %v9848_v43  ;;  %9325 = vmatprep.mubr.msk.f32.mxu1 %vm2484_vm12, %v6306_v44 }
0x12ba   : > { %v9852_v35 = vpack.c.bf16 %v6363_v33, %v6360_v59 }
0x12bc   : > { %9326 = vmatmul.mubr.msk.f32.gmra.mrb[108].mxu1 %vm2484_vm12, %v6306_v44  ;;  %9853 = vmatprep.subr.bf16.mxu1 %v9852_v35 }
0x12bd   : > { %9855 = vmatpush3.bf16.msra.mxu1 %v9852_v35  ;;  %9344 = vmatprep.mubr.msk.f32.mxu1 %vm2484_vm12, %v6300_v24 }
0x12be   : > { %9879 = vmatprep.subr.msk.bf16.mxu1 %vm9878_vm14, %v10506_v6 }
0x12c0   : > { %9345 = vmatmul.mubr.msk.f32.vlgmr.msra.gmra.mrb[110].mxu1 %vm2484_vm12, %v6300_v24 }
0x12c1   : > { %9347 = vmatprep.mubr.msk.f32.mxu1 %vm2484_vm12, %v6302_v50  ;;  %9881 = vmatpush3.bf16.msk.msra.mxu1 %vm9878_vm14, %v10506_v6 }
0x12c2   : > { %9386 = vmatprep.subr.msk.mxu1 %vm8030_vm15, %v10507_v57 }
0x12c4   : > { %9348 = vmatmul.mubr.msk.f32.gmra.mrb[112].mxu1 %vm2484_vm12, %v6302_v50 }
0x12c5   : > { %9350 = vmatprep.mubr.msk.f32.mxu1 %vm2484_vm12, %v6304_v55  ;;  %9387 = vmatpush3.msk.msra.mxu1 %vm8030_vm15, %v10507_v57 }
0x12c8   : > { %9351 = vmatmul.mubr.msk.f32.gmra.mrb[114].mxu1 %vm2484_vm12, %v6304_v55 }
0x12c9   : > { %9353 = vmatprep.mubr.msk.f32.mxu1 %vm2484_vm12, %v6306_v44 }
0x12cc   : > { %9354 = vmatmul.mubr.msk.f32.gmra.mrb[116].mxu1 %vm2484_vm12, %v6306_v44 }
0x12cd   : > { %9388 = vmatprep.mubr.msk.f32.mxu1 %vm2064_vm10, %v11032_v5 }
0x12d0   : > { %9389 = vmatmul.mubr.msk.f32.vlgmr.msra.gmra.mrb[118].mxu1 %vm2064_vm10, %v11035_v9 }
0x12d1   : > { %9391 = vmatprep.mubr.msk.f32.mxu1 %vm2064_vm10, %v11037_v7 }
0x12d4   : > { %9392 = vmatmul.mubr.msk.f32.gmra.mrb[120].mxu1 %vm2064_vm10, %v11047_v63 }
0x12d5   : > { %9394 = vmatprep.mubr.msk.f32.mxu1 %vm2064_vm10, %v11049_v12 }
0x12d8   : > { %9395 = vmatmul.mubr.msk.f32.gmra.mrb[122].mxu1 %vm2064_vm10, %v11057_v62 }
0x12d9   : > { %9397 = vmatprep.mubr.msk.f32.mxu1 %vm2064_vm10, %v11059_v42 }
0x12dc   : > { %9398 = vmatmul.mubr.msk.f32.gmra.mrb[124].mxu1 %vm2064_vm10, %v11066_v1  ;;  %vm6883_vm10 = vcmp.ge.s32.totalorder %v10770_v21, 3 }
0x1383   : > { %v9318_v5 = vpop.f32.mrb[102].mxu1 }
0x1384   : > { %6629 = vperm.xlu0 %10117, %v9318_v5   ;;  %v6454_v9 = vpop.f32.mrb[103].mxu1  ;;  %v6599_v42 = vmul.f32 %v9318_v5, %v9318_v5 }
0x1385   : > { %6624 = vperm.xlu1 %10118, %v6454_v9   ;;  %v6598_v40 = vmul.f32 %v6454_v9, %v6454_v9 }
0x1387   : > { %v9321_v7 = vpop.f32.mrb[104].mxu1 }
0x1388   : > { %v6464_v20 = vpop.f32.mrb[105].mxu1  ;;  %v6601_v19 = vmul.f32 %v9321_v7, %v9321_v7 }
0x1389   : > { %6639 = vperm.xlu1 %10118, %v9321_v7   ;;  %6634 = vperm.xlu0 %10117, %v6464_v20   ;;  %v6600_v25 = vmul.f32 %v6464_v20, %v6464_v20 }
0x138b   : > { %v9324_v63 = vpop.f32.mrb[106].mxu1 }
0x138c   : > { %v6474_v11 = vpop.f32.mrb[107].mxu1  ;;  %v6603_v2 = vmul.f32 %v9324_v63, %v9324_v63 }
0x138d   : > { %6649 = vperm.xlu1 %10118, %v9324_v63   ;;  %6644 = vperm.xlu0 %10117, %v6474_v11   ;;  %v6602_v48 = vmul.f32 %v6474_v11, %v6474_v11 }
0x138f   : > { %v9327_v12 = vpop.f32.mrb[108].mxu1 }
0x1390   : > { %v6484_v62 = vpop.f32.mrb[109].mxu1  ;;  %v6605_v14 = vmul.f32 %v9327_v12, %v9327_v12 }
0x1391   : > { %6659 = vperm.xlu1 %10118, %v9327_v12   ;;  %6654 = vperm.xlu0 %10117, %v6484_v62   ;;  %v6604_v50 = vmul.f32 %v6484_v62, %v6484_v62 }
0x1393   : > { %v9346_v58 = vpop.f32.mrb[110].mxu1 }
0x1394   : > { %v6607_v1 = vsub.f32 %v9346_v58, %v6599_v42  ;;  %v6559_v16 = vpop.f32.mrb[111].mxu1 }
0x1395   : > { %v6606_v49 = vsub.f32 %v6559_v16, %v6598_v40 }
0x1396   : > { %v6615_v52 = vmax.f32 %v6607_v1, 0.0 }
0x1397   : > { %v6614_v15 = vmax.f32 %v6606_v49, 0.0  ;;  %v9349_v26 = vpop.f32.mrb[112].mxu1 }
0x1398   : > { %v6671_v24 = vadd.f32 1e-05, %v6615_v52  ;;  %v6609_v28 = vsub.f32 %v9349_v26, %v6601_v19  ;;  %v6569_v34 = vpop.f32.mrb[113].mxu1 }
0x1399   : > { %v6608_v56 = vsub.f32 %v6569_v34, %v6600_v25  ;;  %v6670_v47 = vadd.f32 1e-05, %v6614_v15 }
0x139a   : > { %10411 = vrsqrt.f32 %v6671_v24  ;;  %v6617_v41 = vmax.f32 %v6609_v28, 0.0 }
0x139b   : > { %v6616_v31 = vmax.f32 %v6608_v56, 0.0  ;;  %v9352_v54 = vpop.f32.mrb[114].mxu1  ;;  %10413 = vrsqrt.f32 %v6670_v47  ;;  %v6760_v56 = vld [vmem:[%s10648_s9] sm:$0xff]  ;;  %v6761_v47 = vld [vmem:[%s10648_s9 + $0x8] sm:$0xf] }
0x139c   : > { %v6611_v0 = vsub.f32 %v9352_v54, %v6603_v2  ;;  %v6579_v32 = vpop.f32.mrb[115].mxu1  ;;  %v6673_v29 = vadd.f32 1e-05, %v6617_v41  ;;  %v928_v41 = vld [vmem:[%s11892_s1 + $0x18] sm:$0xff]  ;;  %v6758_v54 = vld [vmem:[%s12119_s2] sm:$0xff] }
0x139d   : > { %v6672_v46 = vadd.f32 1e-05, %v6616_v31  ;;  %v6610_v39 = vsub.f32 %v6579_v32, %v6602_v48  ;;  %v929_v48 = vld [vmem:[%s11892_s1 + $0x20] sm:$0xf]  ;;  %9372 = vmatprep.mubr.msk.f32.mxu0 %vm2484_vm12, %v6758_v54  ;;  %v5517_v32 = vld [vmem:[%s12118_s0 + $0x10] sm:$0xff] }
0x139e   : > { %v6619_v3 = vmax.f32 %v6611_v0, 0.0  ;;  %v5515_v31 = vld [vmem:[%s12118_s0] sm:$0xff]  ;;  %v5516_v0 = vld [vmem:[%s12118_s0 + $0x8] sm:$0xff] }
0x139f   : > { %10415 = vrsqrt.f32 %v6672_v46  ;;  %v6618_v27 = vmax.f32 %v6610_v39, 0.0  ;;  %v9355_v45 = vpop.f32.mrb[116].mxu1  ;;  %v925_v46 = vld [vmem:[%s11892_s1] sm:$0xff]  ;;  %v926_v39 = vld [vmem:[%s11892_s1 + $0x8] sm:$0xff] }
0x13a0   : > { %v6613_v55 = vsub.f32 %v9355_v45, %v6605_v14  ;;  %v6589_v60 = vpop.f32.mrb[117].mxu1  ;;  %10417 = vrsqrt.f32 %v6673_v29  ;;  %v6675_v44 = vadd.f32 1e-05, %v6619_v3  ;;  %v927_v14 = vld [vmem:[%s11892_s1 + $0x10] sm:$0xff] }
0x13a1   : > { %v6674_v23 = vadd.f32 1e-05, %v6618_v27  ;;  %v6612_v43 = vsub.f32 %v6589_v60, %v6604_v50 }
0x13a2   : > { %v6621_v59 = vmax.f32 %v6613_v55, 0.0 }
0x13a3   : > { %10419 = vrsqrt.f32 %v6674_v23  ;;  %v6620_v33 = vmax.f32 %v6612_v43, 0.0  ;;  %v9390_v35 = vpop.f32.mrb[118].mxu1  ;;  %v6284_v43 = vld [vmem:[%s12120_s22 + $0x8] sm:$0xff] }
0x13a4   : > { %v10412_v6 = vpop.eup %10411  ;;  %v7059_v57 = vpop.f32.mrb[119].mxu1  ;;  %10421 = vrsqrt.f32 %v6675_v44  ;;  %v6677_v20 = vadd.f32 1e-05, %v6621_v59 }
0x13a5   : > { %v6676_v5 = vadd.f32 1e-05, %v6620_v33  ;;  %v10279_v9 = vpack.i.bf16 %v9390_v35, %v7059_v57  ;;  %v11881_v7 = vpack.c.bf16 %v9390_v35, %v7059_v57  ;;  %6693 = vperm.xlu1 %10118, %v10412_v6   ;;  %v10414_v11 = vpop.eup %10413  ;;  %v8000_v6 = vld [vmem:[%s12120_s22 + $0x48] sm:$0xff] }
0x13a7   : > { %10423 = vrsqrt.f32 %v6676_v5  ;;  %v9393_v63 = vpop.f32.mrb[120].mxu1 }
0x13a8   : > { %v7069_v12 = vpop.f32.mrb[121].mxu1  ;;  %10425 = vrsqrt.f32 %v6677_v20 }
0x13a9   : > { %v10416_v62 = vpop.eup %10415  ;;  %v10284_v42 = vpack.i.bf16 %v9393_v63, %v7069_v12  ;;  %v11883_v40 = vpack.c.bf16 %v9393_v63, %v7069_v12  ;;  %6688 = vperm.xlu1 %10118, %v10414_v11   ;;  %v6285_v11 = vld [vmem:[%s12120_s22 + $0x10] sm:$0xff] }
0x13aa   : > { %6698 = vperm.xlu0 %10117, %v10416_v62   ;;  %v10418_v1 = vpop.eup %10417 }
0x13ab   : > { %v9396_v58 = vpop.f32.mrb[122].mxu1 }
0x13ac   : > { %v7079_v16 = vpop.f32.mrb[123].mxu1 }
0x13ad   : > { %v10420_v49 = vpop.eup %10419  ;;  %v10289_v19 = vpack.i.bf16 %v9396_v58, %v7079_v16  ;;  %v11885_v52 = vpack.c.bf16 %v9396_v58, %v7079_v16  ;;  %6703 = vperm.xlu1 %10118, %v10418_v1   ;;  %v8001_v16 = vld [vmem:[%s12120_s22 + $0x50] sm:$0xff] }
0x13ae   : > { %6708 = vperm.xlu0 %10117, %v10420_v49   ;;  %v10422_v15 = vpop.eup %10421 }
0x13af   : > { %v9399_v25 = vpop.f32.mrb[124].mxu1 }
0x13b0   : > { %v7089_v26 = vpop.f32.mrb[125].mxu1 }
0x13b1   : > { %v10424_v24 = vpop.eup %10423  ;;  %v10294_v28 = vpack.i.bf16 %v9399_v25, %v7089_v26  ;;  %v11888_v34 = vpack.c.bf16 %v9399_v25, %v7089_v26  ;;  %6713 = vperm.xlu1 %10118, %v10422_v15   ;;  %v6287_v26 = vld [vmem:[%s12120_s22 + $0x20] sm:$0xff] }
0x13b2   : > { %6718 = vperm.xlu0 %10117, %v10424_v24   ;;  %v10426_v2 = vpop.eup %10425 }
0x13b5   : > { %6723 = vperm.xlu1 %10118, %v10426_v2  }
0x13b6   : > { %6764 = vperm.xlu0 %10117, %v6760_v56   ;;  %v8002_v56 = vld [vmem:[%s12120_s22 + $0x58] sm:$0xff] }
0x13b9   : > { %6769 = vperm.xlu1 %10118, %v6761_v47  }
0x13ba   : > { %6857 = vperm.xlu0 %10117, %v928_v41   ;;  %v8003_v41 = vld [vmem:[%s12120_s22 + $0x60] sm:$0xff] }
0x13bd   : > { %6862 = vperm.xlu1 %10118, %v929_v48  }
0x13be   : > { %10260 = vrot.lane.b32.xlu0 %v10279_v9, %s10508_s3 }
0x13c1   : > { %10265 = vrot.lane.b32.xlu1 %v10284_v42, %s10508_s3 }
0x13c2   : > { %10270 = vrot.lane.b32.xlu0 %v10289_v19, %s10508_s3 }
0x13c5   : > { %10275 = vrot.lane.b32.xlu1 %v10294_v28, %s10508_s3  ;;  %s10063_s3 = smul.u32 72, %s12124_s10 }
0x13c6   : > { %10280 = vrot.lane.b32.xlu0 %v10279_v9, %s10509_s18  ;;  %v6283_v9 = vld [vmem:[%s12120_s22] sm:$0xff] }
0x13c7   : > { %s11960_s1 = scalar_lea.vmem %s10663_s4, %s10063_s3 }
0x13c9   : > { %10285 = vrot.lane.b32.xlu1 %v10284_v42, %s10509_s18 }
0x13ca   : > { %10290 = vrot.lane.b32.xlu0 %v10289_v19, %s10509_s18  ;;  %v6286_v19 = vld [vmem:[%s12120_s22 + $0x18] sm:$0xff] }
0x13cd   : > { %10295 = vrot.lane.b32.xlu1 %v10294_v28, %s10509_s18 }
0x13ce   : > { %5520 = vperm.xlu0 %10117, %v5515_v31   ;;  %v6288_v31 = vld [vmem:[%s12120_s22 + $0x28] sm:$0xff] }
0x13d1   : > { %5525 = vperm.xlu1 %10118, %v5516_v0  }
0x13d2   : > { %5530 = vperm.xlu0 %10117, %v5517_v32  }
0x13d5   : > { %5618 = vperm.xlu1 %10118, %v925_v46   ;;  %v6289_v46 = vld [vmem:[%s12120_s22 + $0x30] sm:$0xff] }
0x13d6   : > { %5623 = vperm.xlu0 %10117, %v926_v39  }
0x13d9   : > { %5628 = vperm.xlu1 %10118, %v927_v14  }
0x1403   : > { %v6630_v3 = vpop.permute.xlu0 %6629 }
0x1404   : > { %v6625_v29 = vpop.permute.xlu1 %6624  ;;  %v6663_v23 = vsub.f32 %v11778_v38, %v6630_v3  ;;  %v7999_v38 = vld [vmem:[%s12120_s22 + $0x40] sm:$0xff] }
0x1405   : > { %v6662_v35 = vsub.f32 %v11780_v18, %v6625_v29  ;;  %v8004_v29 = vld [vmem:[%s12120_s22 + $0x68] sm:$0xff] }
0x1408   : > { %v6640_v50 = vpop.permute.xlu1 %6639  ;;  %v6635_v27 = vpop.permute.xlu0 %6634 }
0x1409   : > { %v6664_v5 = vsub.f32 %v11790_v30, %v6635_v27  ;;  %v6665_v58 = vsub.f32 %v11786_v10, %v6640_v50  ;;  %v8005_v27 = vld [vmem:[%s12120_s22 + $0x70] sm:$0xff] }
0x140c   : > { %v6650_v45 = vpop.permute.xlu1 %6649  ;;  %v6645_v55 = vpop.permute.xlu0 %6644 }
0x140d   : > { %v6666_v18 = vsub.f32 %v11792_v61, %v6645_v55  ;;  %v6667_v10 = vsub.f32 %v11794_v8, %v6650_v45 }
0x1410   : > { %v6660_v60 = vpop.permute.xlu1 %6659  ;;  %v6655_v59 = vpop.permute.xlu0 %6654 }
0x1411   : > { %v6668_v61 = vsub.f32 %v11800_v53, %v6655_v59  ;;  %v6669_v8 = vsub.f32 %v11802_v51, %v6660_v60  ;;  %v6290_v53 = vld [vmem:[%s12120_s22 + $0x38] sm:$0xff] }
0x1424   : > { %v6694_v44 = vpop.permute.xlu1 %6693 }
0x1425   : > { %v6727_v33 = vmul.f32 %v6694_v44, %v6663_v23 }
0x1427   : > { %v6735_v57 = vmul.f32 %v6727_v33, %v6284_v43  ;;  %v8006_v33 = vld [vmem:[%s12120_s22 + $0x78] sm:$0xff] }
0x1428   : > { %v6689_v20 = vpop.permute.xlu1 %6688 }
0x1429   : > { %v6726_v63 = vmul.f32 %v6689_v20, %v6662_v35  ;;  %v6699_v12 = vpop.permute.xlu0 %6698  ;;  %v6743_v62 = vadd.f32 %v8000_v6, %v6735_v57 }
0x142a   : > { %v6728_v42 = vmul.f32 %v6699_v12, %v6664_v5 }
0x142b   : > { %v6734_v1 = vmul.f32 %v6726_v63, %v6283_v9  ;;  %10427 = vtanh.f32 %v6743_v62 }
0x142c   : > { %v6736_v49 = vmul.f32 %v6728_v42, %v6285_v11  ;;  %v6704_v30 = vpop.permute.xlu1 %6703 }
0x142d   : > { %v6742_v25 = vadd.f32 %v7999_v38, %v6734_v1  ;;  %v6729_v15 = vmul.f32 %v6704_v30, %v6665_v58  ;;  %v6709_v24 = vpop.permute.xlu0 %6708 }
0x142e   : > { %v6744_v28 = vadd.f32 %v8001_v16, %v6736_v49  ;;  %v6730_v2 = vmul.f32 %v6709_v24, %v6666_v18  ;;  %v6759_v24 = vld [vmem:[%s12119_s2 + $0x8] sm:$0xf] }
0x142f   : > { %10429 = vtanh.f32 %v6742_v25  ;;  %v6737_v47 = vmul.f32 %v6729_v15, %v6286_v19 }
0x1430   : > { %v6738_v48 = vmul.f32 %v6730_v2, %v6287_v26  ;;  %v6714_v54 = vpop.permute.xlu1 %6713  ;;  %10431 = vtanh.f32 %v6744_v28 }
0x1431   : > { %v6745_v0 = vadd.f32 %v8002_v56, %v6737_v47  ;;  %v6731_v32 = vmul.f32 %v6714_v54, %v6667_v10  ;;  %v6719_v39 = vpop.permute.xlu0 %6718 }
0x1432   : > { %v6746_v14 = vadd.f32 %v8003_v41, %v6738_v48  ;;  %v6732_v3 = vmul.f32 %v6719_v39, %v6668_v61 }
0x1433   : > { %10433 = vtanh.f32 %v6745_v0  ;;  %v6739_v50 = vmul.f32 %v6731_v32, %v6288_v31 }
0x1434   : > { %v6740_v45 = vmul.f32 %v6732_v3, %v6289_v46  ;;  %v6724_v55 = vpop.permute.xlu1 %6723  ;;  %10435 = vtanh.f32 %v6746_v14 }
0x1435   : > { %v6747_v23 = vadd.f32 %v8004_v29, %v6739_v50  ;;  %v6733_v43 = vmul.f32 %v6724_v55, %v6669_v8  ;;  %v11928_v44 = vpop.permute.xlu0 %6764  ;;  %v10428_v6 = vpop.eup %10427 }
0x1436   : > { %v6748_v59 = vadd.f32 %v8005_v27, %v6740_v45 }
0x1437   : > { %10437 = vtanh.f32 %v6747_v23  ;;  %v6741_v35 = vmul.f32 %v6733_v43, %v6290_v53 }
0x1438   : > { %v11931_v57 = vpop.permute.xlu1 %6769  ;;  %10439 = vtanh.f32 %v6748_v59 }
0x1439   : > { %v10430_v5 = vpop.eup %10429  ;;  %v6749_v51 = vadd.f32 %v8006_v33, %v6741_v35  ;;  %v11933_v60 = vpop.permute.xlu0 %6857 }
0x143a   : > { %v9856_v9 = vpack.c.bf16 %v10428_v6, %v10430_v5  ;;  %v10432_v20 = vpop.eup %10431 }
0x143b   : > { %10441 = vtanh.f32 %v6749_v51 }
0x143c   : > { %9857 = vmatprep.subr.bf16.mxu0 %v9856_v9  ;;  %v11935_v63 = vpop.permute.xlu1 %6862 }
0x143d   : > { %v10434_v11 = vpop.eup %10433  ;;  %v11937_v12 = vpop.permute.xlu0 %10260  ;;  %9859 = vmatpush3.bf16.msra.mxu0 %v9856_v9 }
0x143e   : > { %v9860_v62 = vpack.c.bf16 %v10434_v11, %v10432_v20  ;;  %v10436_v38 = vpop.eup %10435 }
0x1440   : > { %9861 = vmatprep.subr.bf16.mxu0 %v9860_v62  ;;  %v11939_v42 = vpop.permute.xlu1 %10265 }
0x1441   : > { %v10438_v58 = vpop.eup %10437  ;;  %v11941_v1 = vpop.permute.xlu0 %10270  ;;  %9863 = vmatpush3.bf16.msra.mxu0 %v9860_v62  ;;  %v10267_v62 = vunpack.i.l.bf16 %v11939_v42 }
0x1442   : > { %v9864_v16 = vpack.c.bf16 %v10438_v58, %v10436_v38  ;;  %v10440_v18 = vpop.eup %10439  ;;  %v7104_v38 = vld [vmem:[%s10653_s30 + $0x10] sm:$0xff] }
0x1444   : > { %9865 = vmatprep.subr.bf16.mxu0 %v9864_v16  ;;  %v11943_v49 = vpop.permute.xlu1 %10275 }
0x1445   : > { %v10442_v19 = vpop.eup %10441  ;;  %v11945_v30 = vpop.permute.xlu0 %10280  ;;  %9867 = vmatpush3.bf16.msra.mxu0 %v9864_v16  ;;  %v10273_v16 = vunpack.i.h.bf16 %v11941_v1 }
0x1446   : > { %v9868_v25 = vpack.c.bf16 %v10442_v19, %v10440_v18  ;;  %v8046_v18 = vld [vmem:[%s10653_s30 + $0x20] sm:$0xff] }
0x1448   : > { %9869 = vmatprep.subr.bf16.mxu0 %v9868_v25  ;;  %v11947_v15 = vpop.permute.xlu1 %10285 }
0x1449   : > { %v11949_v26 = vpop.permute.xlu0 %10290  ;;  %9871 = vmatpush3.bf16.msra.mxu0 %v9868_v25  ;;  %v10283_v25 = vunpack.i.h.bf16 %v11945_v30 }
0x144c   : > { %9373 = vmatmul.mubr.msk.f32.vlgmr.msra.gmra.mrb[54].mxu0 %vm2484_vm12, %v6759_v24  ;;  %v11953_v28 = vpop.permute.xlu1 %10295  ;;  %v10282_v24 = vunpack.i.l.bf16 %v11945_v30  ;;  %v8049_v30 = vld [vmem:[%s10653_s30 + $0x38] sm:$0xff] }
0x144d   : > { %v5521_v56 = vpop.permute.xlu0 %5520 }
0x144e   : > { %v5600_v2 = vadd.f32 %v11708_v37, %v5521_v56  ;;  %v9914_v56 = vpack.c.bf16 %v10283_v25, %v10282_v24 }
0x1450   : > { %10443 = vtanh.f32 %v5600_v2  ;;  %v5526_v10 = vpop.permute.xlu1 %5525  ;;  %v10288_v2 = vunpack.i.h.bf16 %v11947_v15 }
0x1451   : > { %v5605_v47 = vadd.f32 %v11710_v13, %v5526_v10  ;;  %v5531_v41 = vpop.permute.xlu0 %5530  ;;  %v8047_v10 = vld [vmem:[%s10653_s30 + $0x28] sm:$0xff] }
0x1452   : > { %v5610_v61 = vadd.f32 %v11714_v36, %v5531_v41  ;;  %v12121_v36 = vmov 0  }
0x1453   : > { %10445 = vtanh.f32 %v5605_v47  ;;  %v6884_v14 = vsel %vm6883_vm10, 1, %v12121_v36  ;;  %v6886_v29 = vsel %vm6885_vm3, 1, %v12121_v36  ;;  %v6869_v8 = vsel %vm6867_vm6, 1, %v12121_v36  ;;  %v8048_v47 = vld [vmem:[%s10653_s30 + $0x30] sm:$0xff] }
0x1454   : > { %10447 = vtanh.f32 %v5610_v61  ;;  %v5619_v48 = vpop.permute.xlu1 %5618  ;;  %v6887_v3 = vadd.s32 %v6886_v29, %v6884_v14  ;;  %v6873_v50 = vsel %vm6871_vm7, 1, %v12121_v36  ;;  %v6889_v27 = vsel %vm6888_vm8, 1, %v12121_v36 }
0x1455   : > { %v5624_v37 = vpop.permute.xlu0 %5623  ;;  %v6875_v45 = vadd.s32 %v6873_v50, %v6869_v8  ;;  %v6880_v21 = vsel %vm6878_vm0, 1, %v12121_v36  ;;  %v10293_v61 = vunpack.i.h.bf16 %v11949_v26  ;;  %v7099_v50 = vld [vmem:[%s10658_s27 + $0x8] sm:$0xff] }
0x1456   : > { %v6890_v53 = vadd.s32 %v6889_v27, %v6887_v3  ;;  %v6882_v51 = vadd.s32 2, %v6880_v21  ;;  %v7098_v27 = vld [vmem:[%s10658_s27] sm:$0xff] }
0x1458   : > { %v5629_v46 = vpop.permute.xlu1 %5628  ;;  %vm6891_vm9 = vcmp.eq.s32.totalorder %v6875_v45, %v6890_v53  ;;  %vm6892_vm5 = vcmp.eq.s32.totalorder %v6882_v51, %v6890_v53 }
0x1459   : > { %v6893_v55 = vsel %vm6891_vm9, 1.0, %v12111_v4  ;;  %v6894_v20 = vsel %vm6892_vm5, 1.0, %v12111_v4  ;;  %v10262_v4 = vunpack.i.l.bf16 %v11937_v12 }
0x145a   : > { %v10444_v31 = vpop.eup %10443  ;;  %9379 = vmatprep.mubr.msk.f32.mxu0 %vm1046_vm1, %v6893_v55 }
0x145b   : > { %v5631_v54 = vadd.f32 %v10444_v31, %v5619_v48  ;;  %v10292_v48 = vunpack.i.l.bf16 %v11949_v26  ;;  %v8054_v31 = vld [vmem:[%s10653_s30 + $0x40] sm:$0xff] }
0x145d   : > { %v10446_v0 = vpop.eup %10445  ;;  %7499 = vst.msk [vmem:[%s11960_s1 + $0x20] sm:$0xff] %vm4789_vm2, %v5631_v54  ;;  %v10298_v54 = vunpack.i.h.bf16 %v11953_v28 }
0x145e   : > { %v10448_v32 = vpop.eup %10447  ;;  %v5632_v13 = vadd.f32 %v10446_v0, %v5624_v37  ;;  %v10297_v0 = vunpack.i.l.bf16 %v11953_v28  ;;  %v8055_v37 = vld [vmem:[%s10653_s30 + $0x48] sm:$0xff]  ;;  %v8057_v28 = vld [vmem:[%s10653_s30 + $0x58] sm:$0xff] }
0x145f   : > { %v5633_v39 = vadd.f32 %v10448_v32, %v5629_v46  ;;  %v8056_v32 = vld [vmem:[%s10653_s30 + $0x50] sm:$0xff] }
0x1460   : > { %7500 = vst.msk [vmem:[%s11960_s1 + $0x28] sm:$0xff] %vm4789_vm2, %v5632_v13  ;;  %v9926_v26 = vpack.c.bf16 %v10298_v54, %v10297_v0 }
0x1461   : > { %7501 = vst.msk [vmem:[%s11960_s1 + $0x30] sm:$0xff] %vm4789_vm2, %v5633_v39 }
0x151f   : > { %v9374_v23 = vpop.f32.mrb[54].mxu0 }
0x1520   : > { %v6850_v43 = vadd.f32 %v9374_v23, %v11931_v57  ;;  %v6844_v17 = vpop.f32.mrb[55].mxu0 }
0x1521   : > { %v6845_v59 = vadd.f32 %v6844_v17, %v11928_v44  ;;  %v7100_v17 = vld [vmem:[%s10658_s27 + $0x10] sm:$0xff] }
0x1522   : > { %10449 = vtanh.f32 %v6850_v43  ;;  %v7101_v43 = vld [vmem:[%s10658_s27 + $0x18] sm:$0xff] }
0x1523   : > { %10451 = vtanh.f32 %v6845_v59 }
0x152c   : > { %v10450_v33 = vpop.eup %10449 }
0x152d   : > { %v10452_v35 = vpop.eup %10451  ;;  %v11985_v6 = vadd.f32 %v10450_v33, %v11935_v63  ;;  %v10263_v63 = vunpack.i.h.bf16 %v11937_v12  ;;  %v10272_v12 = vunpack.i.l.bf16 %v11941_v1 }
0x152e   : > { %v11988_v5 = vadd.f32 %v10452_v35, %v11933_v60  ;;  %v7102_v60 = vld [vmem:[%s10653_s30] sm:$0xff] }
0x152f   : > { %v6896_v57 = vmul.f32 %v11985_v6, %v11985_v6  ;;  %v9898_v11 = vpack.c.bf16 %v10263_v63, %v10262_v4  ;;  %v9906_v19 = vpack.c.bf16 %v10273_v16, %v10272_v12 }
0x1530   : > { %v6895_v44 = vmul.f32 %v11988_v5, %v11988_v5 }
0x1532   : > { %v9872_v9 = vpack.c.bf16 %v6896_v57, %v6895_v44 }
0x1534   : > { %9874 = vmatprep.subr.msk.bf16.mxu0 %vm10701_vm4, %v9872_v9 }
0x1535   : > { %9877 = vmatpush3.bf16.msk.msra.mxu0 %vm10701_vm4, %v9872_v9 }
0x1536   : > { %9883 = vmatprep.subr.bf16.mxu0 %v11881_v7 }
0x1538   : > { %9380 = vmatmul.mubr.msk.f32.vlgmr.msra.gmra.mrb[56].mxu0 %vm1046_vm1, %v6894_v20  ;;  %vm7503_vm1 = vcmask 19456  }
0x1539   : > { %9885 = vmatpush3.bf16.msra.mxu0 %v11881_v7  ;;  %9416 = vmatprep.mubr.msk.f32.mxu0 %vm2484_vm12, %v7102_v60  ;;  %v10268_v7 = vunpack.i.h.bf16 %v11939_v42  ;;  %v10277_v42 = vunpack.i.l.bf16 %v11943_v49 }
0x153a   : > { %9887 = vmatprep.subr.bf16.mxu0 %v11883_v40 }
0x153b   : > { %v9902_v58 = vpack.c.bf16 %v10268_v7, %v10267_v62 }
0x153d   : > { %9889 = vmatpush3.bf16.msra.mxu0 %v11883_v40  ;;  %v7103_v40 = vld [vmem:[%s10653_s30 + $0x8] sm:$0xff] }
0x153e   : > { %9891 = vmatprep.subr.bf16.mxu0 %v11885_v52 }
0x1541   : > { %9893 = vmatpush3.bf16.msra.mxu0 %v11885_v52  ;;  %v7105_v52 = vld [vmem:[%s10653_s30 + $0x18] sm:$0xff] }
0x1542   : > { %9895 = vmatprep.subr.bf16.mxu0 %v11888_v34 }
0x1545   : > { %9897 = vmatpush3.bf16.msra.mxu0 %v11888_v34  ;;  %v10278_v34 = vunpack.i.h.bf16 %v11943_v49  ;;  %v10287_v49 = vunpack.i.l.bf16 %v11947_v15  ;;  %v9922_v15 = vpack.c.bf16 %v10293_v61, %v10292_v48 }
0x1546   : > { %9899 = vmatprep.subr.bf16.mxu0 %v9898_v11 }
0x1547   : > { %v9910_v1 = vpack.c.bf16 %v10278_v34, %v10277_v42  ;;  %v9918_v41 = vpack.c.bf16 %v10288_v2, %v10287_v49 }
0x1548   : > { %9417 = vmatmul.mubr.msk.f32.vlgmr.msra.gmra.mrb[58].mxu0 %vm2484_vm12, %v7103_v40 }
0x1549   : > { %9901 = vmatpush3.bf16.msra.mxu0 %v9898_v11  ;;  %9419 = vmatprep.mubr.msk.f32.mxu0 %vm2484_vm12, %v7104_v38 }
0x154a   : > { %9903 = vmatprep.subr.bf16.mxu0 %v9902_v58 }
0x154c   : > { %9420 = vmatmul.mubr.msk.f32.gmra.mrb[60].mxu0 %vm2484_vm12, %v7105_v52 }
0x154d   : > { %9905 = vmatpush3.bf16.msra.mxu0 %v9902_v58  ;;  %9438 = vmatprep.mubr.msk.f32.mxu0 %vm2484_vm12, %v8046_v18 }
0x154e   : > { %9907 = vmatprep.subr.bf16.mxu0 %v9906_v19 }
0x1551   : > { %9909 = vmatpush3.bf16.msra.mxu0 %v9906_v19 }
0x1552   : > { %9911 = vmatprep.subr.bf16.mxu0 %v9910_v1 }
0x1555   : > { %9913 = vmatpush3.bf16.msra.mxu0 %v9910_v1 }
0x1556   : > { %9915 = vmatprep.subr.bf16.mxu0 %v9914_v56 }
0x1558   : > { %9439 = vmatmul.mubr.msk.f32.vlgmr.msra.gmra.mrb[58].mxu0 %vm2484_vm12, %v8047_v10 }
0x1559   : > { %9917 = vmatpush3.bf16.msra.mxu0 %v9914_v56  ;;  %9441 = vmatprep.mubr.msk.f32.mxu0 %vm2484_vm12, %v8048_v47 }
0x155a   : > { %9919 = vmatprep.subr.bf16.mxu0 %v9918_v41 }
0x155c   : > { %9442 = vmatmul.mubr.msk.f32.gmra.mrb[60].mxu0 %vm2484_vm12, %v8049_v30 }
0x155d   : > { %9921 = vmatpush3.bf16.msra.mxu0 %v9918_v41  ;;  %9460 = vmatprep.mubr.msk.f32.mxu0 %vm2484_vm12, %v8054_v31 }
0x155e   : > { %9923 = vmatprep.subr.bf16.mxu0 %v9922_v15 }
0x1561   : > { %9925 = vmatpush3.bf16.msra.mxu0 %v9922_v15 }
0x1562   : > { %9927 = vmatprep.subr.bf16.mxu0 %v9926_v26 }
0x1565   : > { %9929 = vmatpush3.bf16.msra.mxu0 %v9926_v26 }
0x1568   : > { %9461 = vmatmul.mubr.msk.f32.vlgmr.msra.gmra.mrb[58].mxu0 %vm2484_vm12, %v8055_v37 }
0x1569   : > { %9463 = vmatprep.mubr.msk.f32.mxu0 %vm2484_vm12, %v8056_v32 }
0x156c   : > { %9464 = vmatmul.mubr.msk.f32.gmra.mrb[60].mxu0 %vm2484_vm12, %v8057_v28 }
0x160b   : > { %v9381_v13 = vpop.f32.mrb[56].mxu0 }
0x160c   : > { %v6982_v46 = vmax.f32 %v9381_v13, 1e-24  ;;  %v6972_v39 = vpop.f32.mrb[57].mxu0 }
0x160d   : > { %v6981_v36 = vmax.f32 %v6972_v39, 1e-24 }
0x160e   : > { %10453 = vrsqrt.f32 %v6982_v46 }
0x160f   : > { %10455 = vrsqrt.f32 %v6981_v36 }
0x1618   : > { %v10454_v14 = vpop.eup %10453 }
0x1619   : > { %v10456_v29 = vpop.eup %10455  ;;  %v6986_v3 = vmul.f32 %v10454_v14, %v11985_v6 }
0x161a   : > { %v6985_v8 = vmul.f32 %v10456_v29, %v11988_v5 }
0x161b   : > { %7504 = vst.msk [vmem:[%s11960_s1 + $0x40] sm:$0xf] %vm7503_vm1, %v6986_v3 }
0x161c   : > { %7502 = vst.msk [vmem:[%s11960_s1 + $0x38] sm:$0xff] %vm4789_vm2, %v6985_v8 }
0x163b   : > { %v9462_v45 = vpop.f32.mrb[58].mxu0 }
0x163c   : > { %v9970_v53 = vadd.f32 %v9462_v45, %v7099_v50  ;;  %v7452_v55 = vpop.f32.mrb[59].mxu0 }
0x163d   : > { %v9971_v23 = vadd.f32 %v7452_v55, %v7098_v27 }
0x163e   : > { %7482 = vperm.xlu1 %10118, %v9970_v53  }
0x163f   : > { %7477 = vperm.xlu0 %10117, %v9971_v23   ;;  %v9465_v59 = vpop.f32.mrb[60].mxu0 }
0x1640   : > { %v9972_v21 = vadd.f32 %v9465_v59, %v7101_v43  ;;  %v7462_v33 = vpop.f32.mrb[61].mxu0 }
0x1641   : > { %v9973_v35 = vadd.f32 %v7462_v33, %v7100_v17 }
0x1642   : > { %7492 = vperm.xlu1 %10118, %v9972_v21  }
0x1643   : > { %7487 = vperm.xlu0 %10117, %v9973_v35  }
0x16bd   : > { %v7483_v6 = vpop.permute.xlu1 %7482 }
0x16be   : > { %7496 = vst.msk [vmem:[%s11960_s1 + $0x8] sm:$0xff] %vm4789_vm2, %v7483_v6  ;;  %v7478_v5 = vpop.permute.xlu0 %7477 }
0x16bf   : > { %7495 = vst.msk [vmem:[%s11960_s1] sm:$0xff] %vm4789_vm2, %v7478_v5 }
0x16c1   : > { %v7493_v51 = vpop.permute.xlu1 %7492 }
0x16c2   : > { %7498 = vst.msk [vmem:[%s11960_s1 + $0x18] sm:$0xff] %vm4789_vm2, %v7493_v51  ;;  %v7488_v57 = vpop.permute.xlu0 %7487 }
0x16c3   : > { %7497 = vst.msk [vmem:[%s11960_s1 + $0x10] sm:$0xff] %vm4789_vm2, %v7488_v57 }
0x16c4 PF: > { %s69_s7 = sadd.s32 1, %s10463_s7  }
0x16c5   : > { %p66_p4 = scmp.ge.s32.totalorder %s69_s7, 4  }
0x16c7   :  { %68 = sbr.rel (!%p66_p4) target bundleno = 46 (0x2e), region = 211 }

</bundles_post_ra>
